<compile_context>
chip_gen: v7x
topology: tpu7x:2x2x1
jax: 0.10.0
libtpu: 0.0.40
codegen_flags: <defaults>
</compile_context>

<pallas_src>
import functools

import jax
import jax.numpy as jnp
from jax import lax
from jax.experimental import pallas as pl
from jax.experimental.pallas import tpu as pltpu

_EPS = 1e-12                      # F.normalize default eps
_VMEM_LIMIT = 48 * 1024 * 1024    # < v7x 64 MiB physical VMEM, > 32 MiB default scoped
_KT = _KH = _KW = 3


# ------------------------------- kernel bodies ------------------------------ #

def _norm_silu_im2col(tap_refs, gamma_ref, H, W):
    """RMS_norm (channel dim) + SiLU on each causal time-tap slab, gathered into
    one (H*W, KT*KH*KW*C) im2col operand -> a single MXU dot instead of 27."""
    gamma = gamma_ref[...].astype(jnp.float32)               # (1, 1, C)
    C = gamma.shape[-1]
    scale = float(C) ** 0.5
    pieces = []
    for r in tap_refs:                                       # KT = 3 causal taps
        xt = r[0, 0].astype(jnp.float32)                     # (H+2, W+2, C)
        ss = jnp.sum(xt * xt, axis=-1, keepdims=True)
        a = xt * lax.rsqrt(jnp.maximum(ss, _EPS * _EPS))     # F.normalize(dim=C)
        a = a * (scale * gamma)                              # * dim**0.5 * gamma
        a = a * jax.nn.sigmoid(a)                            # SiLU
        a = a.astype(r.dtype)                                # keep MXU-native dtype
        for dh in range(_KH):
            for dw in range(_KW):
                pieces.append(a[dh:dh + H, dw:dw + W, :])
    cols = jnp.concatenate(pieces, axis=-1)                  # (H, W, 27*C)
    return cols.reshape(H * W, _KT * _KH * _KW * C)


def _stage1_sc_kernel(x0, x1, x2, g_ref, w_ref, b_ref, scw_ref, scb_ref,
                      y_ref, h_ref, *, H, W):
    """y1 = conv1(SiLU(RMS(x))) and fused 1x1x1 shortcut conv, for one (b, t)."""
    cols = _norm_silu_im2col((x0, x1, x2), g_ref, H, W)
    acc = jnp.dot(cols, w_ref[...], preferred_element_type=jnp.float32)
    acc = acc + b_ref[...].astype(jnp.float32)
    y_ref[0, 0] = acc.astype(y_ref.dtype)

    # Shortcut uses the raw (un-normalized) slice at time t (tap dt=2 interior).
    cin = x2.shape[-1]
    xr = x2[0, 0][1:H + 1, 1:W + 1, :].reshape(H * W, cin)
    hacc = jnp.dot(xr, scw_ref[...], preferred_element_type=jnp.float32)
    hacc = hacc + scb_ref[...].astype(jnp.float32)
    h_ref[0, 0] = hacc.astype(h_ref.dtype)


def _stage1_kernel(x0, x1, x2, g_ref, w_ref, b_ref, y_ref, *, H, W):
    """y1 = conv1(SiLU(RMS(x))) for one (b, t); identity shortcut handled outside."""
    cols = _norm_silu_im2col((x0, x1, x2), g_ref, H, W)
    acc = jnp.dot(cols, w_ref[...], preferred_element_type=jnp.float32)
    acc = acc + b_ref[...].astype(jnp.float32)
    y_ref[0, 0] = acc.astype(y_ref.dtype)


def _stage2_kernel(y0, y1, y2, h_ref, g_ref, w_ref, b_ref, o_ref, *, H, W):
    """out = conv2(SiLU(RMS(y1))) + h for one (b, t) (residual add fused)."""
    cols = _norm_silu_im2col((y0, y1, y2), g_ref, H, W)
    acc = jnp.dot(cols, w_ref[...], preferred_element_type=jnp.float32)
    acc = acc + b_ref[...].astype(jnp.float32)
    acc = acc + h_ref[0, 0].astype(jnp.float32)
    o_ref[0, 0] = acc.astype(o_ref.dtype)


# --------------------------- pallas_call wrappers --------------------------- #

def _make_tap_index_map(dt):
    def idx(b, t):                      # block idx == element idx (block size 1 on T)
        return (b, t + dt, 0, 0, 0)
    return idx


def _tap_specs(Hp, Wp, C):
    return [pl.BlockSpec((1, 1, Hp, Wp, C), _make_tap_index_map(dt))
            for dt in range(_KT)]


def _const_spec(shape):
    def idx(b, t):
        return (0,) * len(shape)
    return pl.BlockSpec(shape, idx)


def _row_spec(rows, c):
    def idx(b, t):
        return (b, t, 0, 0)
    return pl.BlockSpec((1, 1, rows, c), idx)


def _compiler_params():
    # Both grid axes are fully independent -> "parallel" lets v7x's 2 TensorCores
    # split the grid; harmless on single-core v5e/v6e.
    return pltpu.CompilerParams(
        dimension_semantics=("parallel", "parallel"),
        vmem_limit_bytes=_VMEM_LIMIT)


def _causal_pad(x):
    """Channels-last (B,T,H,W,C): causal time pad (2, 0), spatial pad (1, 1)."""
    return jnp.pad(x, ((0, 0), (2, 0), (1, 1), (1, 1), (0, 0)))


def conv_stage1(xp, gamma1, w1, b1, scw, scb, out_dim, out_dtype):
    """Fused RMS+SiLU+CausalConv3d(3x3x3) [+ 1x1x1 shortcut] over grid (B, T)."""
    B, Tp, Hp, Wp, cin = xp.shape
    T, H, W = Tp - 2, Hp - 2, Wp - 2
    kdim = _KT * _KH * _KW * cin
    w1f = w1.reshape(kdim, out_dim)                   # resident (27*Cin, Cout) slab
    g = gamma1.reshape(1, 1, cin)
    bias = b1.reshape(1, out_dim)

    in_specs = _tap_specs(Hp, Wp, cin) + [
        _const_spec((1, 1, cin)),
        _const_spec((kdim, out_dim)),
        _const_spec((1, out_dim)),
    ]
    args = [xp, xp, xp, g, w1f, bias]
    out_shape = jax.ShapeDtypeStruct((B, T, H * W, out_dim), out_dtype)

    if scw is not None:
        in_specs = in_specs + [_const_spec((cin, out_dim)), _const_spec((1, out_dim))]
        args = args + [scw.reshape(cin, out_dim), scb.reshape(1, out_dim)]
        y, h = pl.pallas_call(
            functools.partial(_stage1_sc_kernel, H=H, W=W),
            grid=(B, T),
            in_specs=in_specs,
            out_specs=(_row_spec(H * W, out_dim), _row_spec(H * W, out_dim)),
            out_shape=(out_shape, out_shape),
            compiler_params=_compiler_params(),
        )(*args)
        return y, h

    y = pl.pallas_call(
        functools.partial(_stage1_kernel, H=H, W=W),
        grid=(B, T),
        in_specs=in_specs,
        out_specs=_row_spec(H * W, out_dim),
        out_shape=out_shape,
        compiler_params=_compiler_params(),
    )(*args)
    return y, None


def conv_stage2(y1p, h, gamma2, w2, b2, out_dtype):
    """Fused RMS+SiLU+CausalConv3d(3x3x3) + residual add over grid (B, T)."""
    B, Tp, Hp, Wp, cout = y1p.shape
    T, H, W = Tp - 2, Hp - 2, Wp - 2
    kdim = _KT * _KH * _KW * cout
    w2f = w2.reshape(kdim, cout)
    g = gamma2.reshape(1, 1, cout)
    bias = b2.reshape(1, cout)

    in_specs = _tap_specs(Hp, Wp, cout) + [
        _row_spec(H * W, cout),                       # shortcut h, streamed per (b, t)
        _const_spec((1, 1, cout)),
        _const_spec((kdim, cout)),
        _const_spec((1, cout)),
    ]
    return pl.pallas_call(
        functools.partial(_stage2_kernel, H=H, W=W),
        grid=(B, T),
        in_specs=in_specs,
        out_specs=_row_spec(H * W, cout),
        out_shape=jax.ShapeDtypeStruct((B, T, H * W, cout), out_dtype),
        compiler_params=_compiler_params(),
    )(y1p, y1p, y1p, h, g, w2f, bias)


# ---------------------------- ResidualBlock module -------------------------- #

def init_residual_block(key, in_dim, out_dim):
    ks = jax.random.split(key, 6)
    params = {
        # RMS_norm gammas initialize to ones (per module __init__).
        "gamma1": jnp.ones((in_dim,), jnp.float32),
        "gamma2": jnp.ones((out_dim,), jnp.float32),
        "conv1_w": 0.1 * jax.random.normal(ks[0], (3, 3, 3, in_dim, out_dim), jnp.float32),
        "conv1_b": 0.1 * jax.random.normal(ks[1], (out_dim,), jnp.float32),
        "conv2_w": 0.1 * jax.random.normal(ks[2], (3, 3, 3, out_dim, out_dim), jnp.float32),
        "conv2_b": 0.1 * jax.random.normal(ks[3], (out_dim,), jnp.float32),
    }
    if in_dim != out_dim:
        params["sc_w"] = 0.1 * jax.random.normal(ks[4], (1, 1, 1, in_dim, out_dim), jnp.float32)
        params["sc_b"] = 0.1 * jax.random.normal(ks[5], (out_dim,), jnp.float32)
    return params


def residual_block_forward(params, x_ncdhw, in_dim, out_dim):
    """x_ncdhw: (B, C, T, H, W) PyTorch layout. Returns (B, out_dim, T, H, W)."""
    x = jnp.transpose(x_ncdhw, (0, 2, 3, 4, 1))               # (B, T, H, W, Cin)
    B, T, H, W, _ = x.shape

    has_sc = in_dim != out_dim
    xp = _causal_pad(x)
    y1, h = conv_stage1(
        xp, params["gamma1"], params["conv1_w"], params["conv1_b"],
        params["sc_w"] if has_sc else None,
        params["sc_b"] if has_sc else None,
        out_dim, x.dtype)
    if h is None:                                             # identity shortcut
        h = x.reshape(B, T, H * W, in_dim)

    # nn.Dropout(p=0.0) is the identity at inference.
    y1p = _causal_pad(y1.reshape(B, T, H, W, out_dim))
    out = conv_stage2(y1p, h, params["gamma2"], params["conv2_w"],
                      params["conv2_b"], x.dtype)
    out = out.reshape(B, T, H, W, out_dim)
    return jnp.transpose(out, (0, 4, 1, 2, 3))                # back to NCDHW


# -------------------------------- pure-JAX ref ------------------------------ #

def _ref_rms_silu(x, gamma):
    c = x.shape[-1]
    n = jnp.sqrt(jnp.sum(x * x, axis=-1, keepdims=True))
    y = x / jnp.maximum(n, _EPS) * (float(c) ** 0.5) * gamma
    return y * jax.nn.sigmoid(y)


def _ref_conv(x, w, b, pad):
    pt, ph, pw = pad
    out = lax.conv_general_dilated(
        x, w, window_strides=(1, 1, 1),
        padding=((2 * pt, 0), (ph, ph), (pw, pw)),
        dimension_numbers=("NDHWC", "DHWIO", "NDHWC"))
    return out + b


def _ref_forward(params, x_ncdhw, in_dim, out_dim):
    x = jnp.transpose(x_ncdhw, (0, 2, 3, 4, 1))
    if in_dim != out_dim:
        h = _ref_conv(x, params["sc_w"], params["sc_b"], (0, 0, 0))
    else:
        h = x
    y = _ref_rms_silu(x, params["gamma1"])
    y = _ref_conv(y, params["conv1_w"], params["conv1_b"], (1, 1, 1))
    y = _ref_rms_silu(y, params["gamma2"])
    y = _ref_conv(y, params["conv2_w"], params["conv2_b"], (1, 1, 1))
    return jnp.transpose(y + h, (0, 4, 1, 2, 3))


# ------------------------------------ main ----------------------------------- #

if __name__ == "__main__":
    key = jax.random.PRNGKey(0)
    k_x1, k_p1, k_x2, k_p2 = jax.random.split(key, 4)

    fwd = jax.jit(residual_block_forward, static_argnums=(2, 3))

    # Case 1: in_dim != out_dim -> fused 1x1x1 shortcut conv path.
    B, in_dim, out_dim, T, H, W = 2, 4, 8, 4, 8, 8
    x1 = jax.random.normal(k_x1, (B, in_dim, T, H, W), jnp.float32)   # NCDHW
    p1 = init_residual_block(k_p1, in_dim, out_dim)
    out1 = jax.block_until_ready(fwd(p1, x1, in_dim, out_dim))
    ref1 = _ref_forward(p1, x1, in_dim, out_dim)
    assert out1.shape == (B, out_dim, T, H, W)
    assert jnp.allclose(out1, ref1, rtol=1e-4, atol=1e-4), \
        float(jnp.max(jnp.abs(out1 - ref1)))

    # Case 2: in_dim == out_dim -> identity shortcut path.
    x2 = jax.random.normal(k_x2, (B, out_dim, T, H, W), jnp.float32)
    p2 = init_residual_block(k_p2, out_dim, out_dim)
    out2 = jax.block_until_ready(fwd(p2, x2, out_dim, out_dim))
    ref2 = _ref_forward(p2, x2, out_dim, out_dim)
    assert jnp.allclose(out2, ref2, rtol=1e-4, atol=1e-4), \
        float(jnp.max(jnp.abs(out2 - ref2)))

    print("KERNEL_OK")
</pallas_src>

<mosaic_0001>
module attributes {stable_mosaic.version = 11 : i64} {
  func.func @_stage1_sc_kernel(%arg0: i32, %arg1: i32, %arg2: memref<1x1x10x10x4xf32, #tpu.memory_space<vmem>>, %arg3: memref<1x1x10x10x4xf32, #tpu.memory_space<vmem>>, %arg4: memref<1x1x10x10x4xf32, #tpu.memory_space<vmem>>, %arg5: memref<1x1x4xf32, #tpu.memory_space<vmem>>, %arg6: memref<108x8xf32, #tpu.memory_space<vmem>>, %arg7: memref<1x8xf32, #tpu.memory_space<vmem>>, %arg8: memref<4x8xf32, #tpu.memory_space<vmem>>, %arg9: memref<1x8xf32, #tpu.memory_space<vmem>>, %arg10: memref<1x1x64x8xf32, #tpu.memory_space<vmem>>, %arg11: memref<1x1x64x8xf32, #tpu.memory_space<vmem>>) attributes {dimension_semantics = [#tpu.dimension_semantics<parallel>, #tpu.dimension_semantics<parallel>], iteration_bounds = array<i64: 2, 4>, scalar_prefetch = 0 : i64, scratch_operands = 0 : i64, tpu.core_type = #tpu.core_type<tc>, window_params = [{transform_indices = @transform_0, window_bounds = array<i64: 1, 1, 10, 10, 4>}, {transform_indices = @transform_1, window_bounds = array<i64: 1, 1, 10, 10, 4>}, {transform_indices = @transform_2, window_bounds = array<i64: 1, 1, 10, 10, 4>}, {pipeline_mode = #tpu.pipeline_mode<synchronous>, transform_indices = @transform_3, window_bounds = array<i64: 1, 1, 4>}, {pipeline_mode = #tpu.pipeline_mode<synchronous>, transform_indices = @transform_4, window_bounds = array<i64: 108, 8>}, {pipeline_mode = #tpu.pipeline_mode<synchronous>, transform_indices = @transform_5, window_bounds = array<i64: 1, 8>}, {pipeline_mode = #tpu.pipeline_mode<synchronous>, transform_indices = @transform_6, window_bounds = array<i64: 4, 8>}, {pipeline_mode = #tpu.pipeline_mode<synchronous>, transform_indices = @transform_7, window_bounds = array<i64: 1, 8>}, {transform_indices = @transform_8, window_bounds = array<i64: 1, 1, 64, 8>}, {transform_indices = @transform_9, window_bounds = array<i64: 1, 1, 64, 8>}]} {
    %c0 = arith.constant 0 : index
    %c0_0 = arith.constant 0 : index
    %c0_1 = arith.constant 0 : index
    %0 = vector.load %arg5[%c0, %c0_0, %c0_1] : memref<1x1x4xf32, #tpu.memory_space<vmem>>, vector<1x1x4xf32>
    %c0_2 = arith.constant 0 : index
    %c0_3 = arith.constant 0 : index
    %c0_4 = arith.constant 0 : index
    %c0_5 = arith.constant 0 : index
    %c0_6 = arith.constant 0 : index
    %1 = vector.load %arg2[%c0_2, %c0_3, %c0_4, %c0_5, %c0_6] : memref<1x1x10x10x4xf32, #tpu.memory_space<vmem>>, vector<1x1x10x10x4xf32>
    %2 = vector.shape_cast %1 : vector<1x1x10x10x4xf32> to vector<10x10x4xf32>
    %3 = arith.mulf %2, %2 : vector<10x10x4xf32>
    %cst = arith.constant dense<0.000000e+00> : vector<10x10xf32>
    %4 = vector.multi_reduction <add>, %3, %cst [2] : vector<10x10x4xf32> to vector<10x10xf32>
    %5 = vector.shape_cast %4 : vector<10x10xf32> to vector<10x10x1xf32>
    %cst_7 = arith.constant 1.000000e-24 : f32
    %6 = vector.broadcast %cst_7 : f32 to vector<10x10x1xf32>
    %7 = arith.maximumf %5, %6 : vector<10x10x1xf32>
    %8 = math.rsqrt %7 : vector<10x10x1xf32>
    %9 = vector.broadcast %8 : vector<10x10x1xf32> to vector<10x10x4xf32>
    %10 = arith.mulf %2, %9 : vector<10x10x4xf32>
    %cst_8 = arith.constant 2.000000e+00 : f32
    %11 = vector.broadcast %cst_8 : f32 to vector<1x1x4xf32>
    %12 = arith.mulf %11, %0 : vector<1x1x4xf32>
    %13 = vector.broadcast %12 : vector<1x1x4xf32> to vector<10x10x4xf32>
    %14 = arith.mulf %10, %13 : vector<10x10x4xf32>
    %15 = arith.negf %14 : vector<10x10x4xf32>
    %16 = math.exp %15 : vector<10x10x4xf32>
    %cst_9 = arith.constant 1.000000e+00 : f32
    %17 = vector.broadcast %cst_9 : f32 to vector<10x10x4xf32>
    %18 = arith.addf %17, %16 : vector<10x10x4xf32>
    %19 = arith.divf %17, %18 : vector<10x10x4xf32>
    %20 = arith.mulf %14, %19 : vector<10x10x4xf32>
    %21 = vector.extract_strided_slice %20 {offsets = [0, 0, 0], sizes = [8, 8, 4], strides = [1, 1, 1]} : vector<10x10x4xf32> to vector<8x8x4xf32>
    %22 = vector.extract_strided_slice %20 {offsets = [0, 1, 0], sizes = [8, 8, 4], strides = [1, 1, 1]} : vector<10x10x4xf32> to vector<8x8x4xf32>
    %23 = vector.extract_strided_slice %20 {offsets = [0, 2, 0], sizes = [8, 8, 4], strides = [1, 1, 1]} : vector<10x10x4xf32> to vector<8x8x4xf32>
    %24 = vector.extract_strided_slice %20 {offsets = [1, 0, 0], sizes = [8, 8, 4], strides = [1, 1, 1]} : vector<10x10x4xf32> to vector<8x8x4xf32>
    %25 = vector.extract_strided_slice %20 {offsets = [1, 1, 0], sizes = [8, 8, 4], strides = [1, 1, 1]} : vector<10x10x4xf32> to vector<8x8x4xf32>
    %26 = vector.extract_strided_slice %20 {offsets = [1, 2, 0], sizes = [8, 8, 4], strides = [1, 1, 1]} : vector<10x10x4xf32> to vector<8x8x4xf32>
    %27 = vector.extract_strided_slice %20 {offsets = [2, 0, 0], sizes = [8, 8, 4], strides = [1, 1, 1]} : vector<10x10x4xf32> to vector<8x8x4xf32>
    %28 = vector.extract_strided_slice %20 {offsets = [2, 1, 0], sizes = [8, 8, 4], strides = [1, 1, 1]} : vector<10x10x4xf32> to vector<8x8x4xf32>
    %29 = vector.extract_strided_slice %20 {offsets = [2, 2, 0], sizes = [8, 8, 4], strides = [1, 1, 1]} : vector<10x10x4xf32> to vector<8x8x4xf32>
    %c0_10 = arith.constant 0 : index
    %c0_11 = arith.constant 0 : index
    %c0_12 = arith.constant 0 : index
    %c0_13 = arith.constant 0 : index
    %c0_14 = arith.constant 0 : index
    %30 = vector.load %arg3[%c0_10, %c0_11, %c0_12, %c0_13, %c0_14] : memref<1x1x10x10x4xf32, #tpu.memory_space<vmem>>, vector<1x1x10x10x4xf32>
    %31 = vector.shape_cast %30 : vector<1x1x10x10x4xf32> to vector<10x10x4xf32>
    %32 = arith.mulf %31, %31 : vector<10x10x4xf32>
    %cst_15 = arith.constant dense<0.000000e+00> : vector<10x10xf32>
    %33 = vector.multi_reduction <add>, %32, %cst_15 [2] : vector<10x10x4xf32> to vector<10x10xf32>
    %34 = vector.shape_cast %33 : vector<10x10xf32> to vector<10x10x1xf32>
    %cst_16 = arith.constant 1.000000e-24 : f32
    %35 = vector.broadcast %cst_16 : f32 to vector<10x10x1xf32>
    %36 = arith.maximumf %34, %35 : vector<10x10x1xf32>
    %37 = math.rsqrt %36 : vector<10x10x1xf32>
    %38 = vector.broadcast %37 : vector<10x10x1xf32> to vector<10x10x4xf32>
    %39 = arith.mulf %31, %38 : vector<10x10x4xf32>
    %cst_17 = arith.constant 2.000000e+00 : f32
    %40 = vector.broadcast %cst_17 : f32 to vector<1x1x4xf32>
    %41 = arith.mulf %40, %0 : vector<1x1x4xf32>
    %42 = vector.broadcast %41 : vector<1x1x4xf32> to vector<10x10x4xf32>
    %43 = arith.mulf %39, %42 : vector<10x10x4xf32>
    %44 = arith.negf %43 : vector<10x10x4xf32>
    %45 = math.exp %44 : vector<10x10x4xf32>
    %cst_18 = arith.constant 1.000000e+00 : f32
    %46 = vector.broadcast %cst_18 : f32 to vector<10x10x4xf32>
    %47 = arith.addf %46, %45 : vector<10x10x4xf32>
    %48 = arith.divf %46, %47 : vector<10x10x4xf32>
    %49 = arith.mulf %43, %48 : vector<10x10x4xf32>
    %50 = vector.extract_strided_slice %49 {offsets = [0, 0, 0], sizes = [8, 8, 4], strides = [1, 1, 1]} : vector<10x10x4xf32> to vector<8x8x4xf32>
    %51 = vector.extract_strided_slice %49 {offsets = [0, 1, 0], sizes = [8, 8, 4], strides = [1, 1, 1]} : vector<10x10x4xf32> to vector<8x8x4xf32>
    %52 = vector.extract_strided_slice %49 {offsets = [0, 2, 0], sizes = [8, 8, 4], strides = [1, 1, 1]} : vector<10x10x4xf32> to vector<8x8x4xf32>
    %53 = vector.extract_strided_slice %49 {offsets = [1, 0, 0], sizes = [8, 8, 4], strides = [1, 1, 1]} : vector<10x10x4xf32> to vector<8x8x4xf32>
    %54 = vector.extract_strided_slice %49 {offsets = [1, 1, 0], sizes = [8, 8, 4], strides = [1, 1, 1]} : vector<10x10x4xf32> to vector<8x8x4xf32>
    %55 = vector.extract_strided_slice %49 {offsets = [1, 2, 0], sizes = [8, 8, 4], strides = [1, 1, 1]} : vector<10x10x4xf32> to vector<8x8x4xf32>
    %56 = vector.extract_strided_slice %49 {offsets = [2, 0, 0], sizes = [8, 8, 4], strides = [1, 1, 1]} : vector<10x10x4xf32> to vector<8x8x4xf32>
    %57 = vector.extract_strided_slice %49 {offsets = [2, 1, 0], sizes = [8, 8, 4], strides = [1, 1, 1]} : vector<10x10x4xf32> to vector<8x8x4xf32>
    %58 = vector.extract_strided_slice %49 {offsets = [2, 2, 0], sizes = [8, 8, 4], strides = [1, 1, 1]} : vector<10x10x4xf32> to vector<8x8x4xf32>
    %c0_19 = arith.constant 0 : index
    %c0_20 = arith.constant 0 : index
    %c0_21 = arith.constant 0 : index
    %c0_22 = arith.constant 0 : index
    %c0_23 = arith.constant 0 : index
    %59 = vector.load %arg4[%c0_19, %c0_20, %c0_21, %c0_22, %c0_23] : memref<1x1x10x10x4xf32, #tpu.memory_space<vmem>>, vector<1x1x10x10x4xf32>
    %60 = vector.shape_cast %59 : vector<1x1x10x10x4xf32> to vector<10x10x4xf32>
    %61 = arith.mulf %60, %60 : vector<10x10x4xf32>
    %cst_24 = arith.constant dense<0.000000e+00> : vector<10x10xf32>
    %62 = vector.multi_reduction <add>, %61, %cst_24 [2] : vector<10x10x4xf32> to vector<10x10xf32>
    %63 = vector.shape_cast %62 : vector<10x10xf32> to vector<10x10x1xf32>
    %cst_25 = arith.constant 1.000000e-24 : f32
    %64 = vector.broadcast %cst_25 : f32 to vector<10x10x1xf32>
    %65 = arith.maximumf %63, %64 : vector<10x10x1xf32>
    %66 = math.rsqrt %65 : vector<10x10x1xf32>
    %67 = vector.broadcast %66 : vector<10x10x1xf32> to vector<10x10x4xf32>
    %68 = arith.mulf %60, %67 : vector<10x10x4xf32>
    %cst_26 = arith.constant 2.000000e+00 : f32
    %69 = vector.broadcast %cst_26 : f32 to vector<1x1x4xf32>
    %70 = arith.mulf %69, %0 : vector<1x1x4xf32>
    %71 = vector.broadcast %70 : vector<1x1x4xf32> to vector<10x10x4xf32>
    %72 = arith.mulf %68, %71 : vector<10x10x4xf32>
    %73 = arith.negf %72 : vector<10x10x4xf32>
    %74 = math.exp %73 : vector<10x10x4xf32>
    %cst_27 = arith.constant 1.000000e+00 : f32
    %75 = vector.broadcast %cst_27 : f32 to vector<10x10x4xf32>
    %76 = arith.addf %75, %74 : vector<10x10x4xf32>
    %77 = arith.divf %75, %76 : vector<10x10x4xf32>
    %78 = arith.mulf %72, %77 : vector<10x10x4xf32>
    %79 = vector.extract_strided_slice %78 {offsets = [0, 0, 0], sizes = [8, 8, 4], strides = [1, 1, 1]} : vector<10x10x4xf32> to vector<8x8x4xf32>
    %80 = vector.extract_strided_slice %78 {offsets = [0, 1, 0], sizes = [8, 8, 4], strides = [1, 1, 1]} : vector<10x10x4xf32> to vector<8x8x4xf32>
    %81 = vector.extract_strided_slice %78 {offsets = [0, 2, 0], sizes = [8, 8, 4], strides = [1, 1, 1]} : vector<10x10x4xf32> to vector<8x8x4xf32>
    %82 = vector.extract_strided_slice %78 {offsets = [1, 0, 0], sizes = [8, 8, 4], strides = [1, 1, 1]} : vector<10x10x4xf32> to vector<8x8x4xf32>
    %83 = vector.extract_strided_slice %78 {offsets = [1, 1, 0], sizes = [8, 8, 4], strides = [1, 1, 1]} : vector<10x10x4xf32> to vector<8x8x4xf32>
    %84 = vector.extract_strided_slice %78 {offsets = [1, 2, 0], sizes = [8, 8, 4], strides = [1, 1, 1]} : vector<10x10x4xf32> to vector<8x8x4xf32>
    %85 = vector.extract_strided_slice %78 {offsets = [2, 0, 0], sizes = [8, 8, 4], strides = [1, 1, 1]} : vector<10x10x4xf32> to vector<8x8x4xf32>
    %86 = vector.extract_strided_slice %78 {offsets = [2, 1, 0], sizes = [8, 8, 4], strides = [1, 1, 1]} : vector<10x10x4xf32> to vector<8x8x4xf32>
    %87 = vector.extract_strided_slice %78 {offsets = [2, 2, 0], sizes = [8, 8, 4], strides = [1, 1, 1]} : vector<10x10x4xf32> to vector<8x8x4xf32>
    %88 = tpu.concatenate %21, %22, %23, %24, %25, %26, %27, %28, %29, %50, %51, %52, %53, %54, %55, %56 in 2 : vector<8x8x4xf32>, vector<8x8x4xf32>, vector<8x8x4xf32>, vector<8x8x4xf32>, vector<8x8x4xf32>, vector<8x8x4xf32>, vector<8x8x4xf32>, vector<8x8x4xf32>, vector<8x8x4xf32>, vector<8x8x4xf32>, vector<8x8x4xf32>, vector<8x8x4xf32>, vector<8x8x4xf32>, vector<8x8x4xf32>, vector<8x8x4xf32>, vector<8x8x4xf32> -> vector<8x8x64xf32>
    %89 = tpu.concatenate %57, %58, %79, %80, %81, %82, %83, %84, %85, %86, %87 in 2 : vector<8x8x4xf32>, vector<8x8x4xf32>, vector<8x8x4xf32>, vector<8x8x4xf32>, vector<8x8x4xf32>, vector<8x8x4xf32>, vector<8x8x4xf32>, vector<8x8x4xf32>, vector<8x8x4xf32>, vector<8x8x4xf32>, vector<8x8x4xf32> -> vector<8x8x44xf32>
    %90 = tpu.concatenate %88, %89 in 2 : vector<8x8x64xf32>, vector<8x8x44xf32> -> vector<8x8x108xf32>
    %91 = vector.shape_cast %90 : vector<8x8x108xf32> to vector<64x108xf32>
    %c0_28 = arith.constant 0 : index
    %c0_29 = arith.constant 0 : index
    %92 = vector.load %arg6[%c0_28, %c0_29] : memref<108x8xf32, #tpu.memory_space<vmem>>, vector<108x8xf32>
    %cst_30 = arith.constant dense<0.000000e+00> : vector<64x8xf32>
    %93 = tpu.matmul %91, %92, %cst_30 {dimension_numbers = #tpu.dot_dimension_numbers<[1], [0], [0], [1], [0, 0, 1, 1], [], []>} : vector<64x108xf32>, vector<108x8xf32>, vector<64x8xf32> -> vector<64x8xf32>
    %c0_31 = arith.constant 0 : index
    %c0_32 = arith.constant 0 : index
    %94 = vector.load %arg7[%c0_31, %c0_32] : memref<1x8xf32, #tpu.memory_space<vmem>>, vector<1x8xf32>
    %95 = vector.broadcast %94 : vector<1x8xf32> to vector<64x8xf32>
    %96 = arith.addf %93, %95 : vector<64x8xf32>
    %c0_33 = arith.constant 0 : index
    %c0_34 = arith.constant 0 : index
    %c0_35 = arith.constant 0 : index
    %c0_36 = arith.constant 0 : index
    %97 = vector.load %arg10[%c0_33, %c0_34, %c0_35, %c0_36] : memref<1x1x64x8xf32, #tpu.memory_space<vmem>>, vector<1x1x64x8xf32>
    %98 = vector.shape_cast %97 : vector<1x1x64x8xf32> to vector<64x8xf32>
    %99 = vector.shape_cast %96 : vector<64x8xf32> to vector<1x1x64x8xf32>
    tpu.vector_store %arg10[%c0_33, %c0_34, %c0_35, %c0_36], %99 {strides = array<i32>} : memref<1x1x64x8xf32, #tpu.memory_space<vmem>>, vector<1x1x64x8xf32>,
    %c0_37 = arith.constant 0 : index
    %c0_38 = arith.constant 0 : index
    %c0_39 = arith.constant 0 : index
    %c0_40 = arith.constant 0 : index
    %c0_41 = arith.constant 0 : index
    %100 = vector.load %arg4[%c0_37, %c0_38, %c0_39, %c0_40, %c0_41] : memref<1x1x10x10x4xf32, #tpu.memory_space<vmem>>, vector<1x1x10x10x4xf32>
    %101 = vector.shape_cast %100 : vector<1x1x10x10x4xf32> to vector<10x10x4xf32>
    %102 = vector.extract_strided_slice %101 {offsets = [1, 1, 0], sizes = [8, 8, 4], strides = [1, 1, 1]} : vector<10x10x4xf32> to vector<8x8x4xf32>
    %103 = vector.shape_cast %102 : vector<8x8x4xf32> to vector<64x4xf32>
    %c0_42 = arith.constant 0 : index
    %c0_43 = arith.constant 0 : index
    %104 = vector.load %arg8[%c0_42, %c0_43] : memref<4x8xf32, #tpu.memory_space<vmem>>, vector<4x8xf32>
    %cst_44 = arith.constant dense<0.000000e+00> : vector<64x8xf32>
    %105 = tpu.matmul %103, %104, %cst_44 {dimension_numbers = #tpu.dot_dimension_numbers<[1], [0], [0], [1], [0, 0, 1, 1], [], []>} : vector<64x4xf32>, vector<4x8xf32>, vector<64x8xf32> -> vector<64x8xf32>
    %c0_45 = arith.constant 0 : index
    %c0_46 = arith.constant 0 : index
    %106 = vector.load %arg9[%c0_45, %c0_46] : memref<1x8xf32, #tpu.memory_space<vmem>>, vector<1x8xf32>
    %107 = vector.broadcast %106 : vector<1x8xf32> to vector<64x8xf32>
    %108 = arith.addf %105, %107 : vector<64x8xf32>
    %c0_47 = arith.constant 0 : index
    %c0_48 = arith.constant 0 : index
    %c0_49 = arith.constant 0 : index
    %c0_50 = arith.constant 0 : index
    %109 = vector.load %arg11[%c0_47, %c0_48, %c0_49, %c0_50] : memref<1x1x64x8xf32, #tpu.memory_space<vmem>>, vector<1x1x64x8xf32>
    %110 = vector.shape_cast %109 : vector<1x1x64x8xf32> to vector<64x8xf32>
    %111 = vector.shape_cast %108 : vector<64x8xf32> to vector<1x1x64x8xf32>
    tpu.vector_store %arg11[%c0_47, %c0_48, %c0_49, %c0_50], %111 {strides = array<i32>} : memref<1x1x64x8xf32, #tpu.memory_space<vmem>>, vector<1x1x64x8xf32>,
    return
  }
  func.func @transform_0(%arg0: i32, %arg1: i32) -> (i32, i32, i32, i32, i32) {
    %c0_i32 = arith.constant 0 : i32
    %0 = arith.addi %arg1, %c0_i32 : i32
    %c0_i32_0 = arith.constant 0 : i32
    %c0_i32_1 = arith.constant 0 : i32
    %c0_i32_2 = arith.constant 0 : i32
    %c0_i32_3 = arith.constant 0 : i32
    return %arg0, %0, %c0_i32_0, %c0_i32_1, %c0_i32_2 : i32, i32, i32, i32, i32
  }
  func.func @transform_1(%arg0: i32, %arg1: i32) -> (i32, i32, i32, i32, i32) {
    %c1_i32 = arith.constant 1 : i32
    %0 = arith.addi %arg1, %c1_i32 : i32
    %c0_i32 = arith.constant 0 : i32
    %c0_i32_0 = arith.constant 0 : i32
    %c0_i32_1 = arith.constant 0 : i32
    %c0_i32_2 = arith.constant 0 : i32
    return %arg0, %0, %c0_i32, %c0_i32_0, %c0_i32_1 : i32, i32, i32, i32, i32
  }
  func.func @transform_2(%arg0: i32, %arg1: i32) -> (i32, i32, i32, i32, i32) {
    %c2_i32 = arith.constant 2 : i32
    %0 = arith.addi %arg1, %c2_i32 : i32
    %c0_i32 = arith.constant 0 : i32
    %c0_i32_0 = arith.constant 0 : i32
    %c0_i32_1 = arith.constant 0 : i32
    %c0_i32_2 = arith.constant 0 : i32
    return %arg0, %0, %c0_i32, %c0_i32_0, %c0_i32_1 : i32, i32, i32, i32, i32
  }
  func.func @transform_3(%arg0: i32, %arg1: i32) -> (i32, i32, i32) {
    %c0_i32 = arith.constant 0 : i32
    %c0_i32_0 = arith.constant 0 : i32
    %c0_i32_1 = arith.constant 0 : i32
    %c0_i32_2 = arith.constant 0 : i32
    return %c0_i32, %c0_i32_0, %c0_i32_1 : i32, i32, i32
  }
  func.func @transform_4(%arg0: i32, %arg1: i32) -> (i32, i32) {
    %c0_i32 = arith.constant 0 : i32
    %c0_i32_0 = arith.constant 0 : i32
    %c0_i32_1 = arith.constant 0 : i32
    return %c0_i32, %c0_i32_0 : i32, i32
  }
  func.func @transform_5(%arg0: i32, %arg1: i32) -> (i32, i32) {
    %c0_i32 = arith.constant 0 : i32
    %c0_i32_0 = arith.constant 0 : i32
    %c0_i32_1 = arith.constant 0 : i32
    return %c0_i32, %c0_i32_0 : i32, i32
  }
  func.func @transform_6(%arg0: i32, %arg1: i32) -> (i32, i32) {
    %c0_i32 = arith.constant 0 : i32
    %c0_i32_0 = arith.constant 0 : i32
    %c0_i32_1 = arith.constant 0 : i32
    return %c0_i32, %c0_i32_0 : i32, i32
  }
  func.func @transform_7(%arg0: i32, %arg1: i32) -> (i32, i32) {
    %c0_i32 = arith.constant 0 : i32
    %c0_i32_0 = arith.constant 0 : i32
    %c0_i32_1 = arith.constant 0 : i32
    return %c0_i32, %c0_i32_0 : i32, i32
  }
  func.func @transform_8(%arg0: i32, %arg1: i32) -> (i32, i32, i32, i32) {
    %c0_i32 = arith.constant 0 : i32
    %c0_i32_0 = arith.constant 0 : i32
    %c0_i32_1 = arith.constant 0 : i32
    return %arg0, %arg1, %c0_i32, %c0_i32_0 : i32, i32, i32, i32
  }
  func.func @transform_9(%arg0: i32, %arg1: i32) -> (i32, i32, i32, i32) {
    %c0_i32 = arith.constant 0 : i32
    %c0_i32_0 = arith.constant 0 : i32
    %c0_i32_1 = arith.constant 0 : i32
    return %arg0, %arg1, %c0_i32, %c0_i32_0 : i32, i32, i32, i32
  }
}

module attributes {stable_mosaic.version = 11 : i64} {
  func.func @_stage2_kernel(%arg0: i32, %arg1: i32, %arg2: memref<1x1x10x10x8xf32, #tpu.memory_space<vmem>>, %arg3: memref<1x1x10x10x8xf32, #tpu.memory_space<vmem>>, %arg4: memref<1x1x10x10x8xf32, #tpu.memory_space<vmem>>, %arg5: memref<1x1x64x8xf32, #tpu.memory_space<vmem>>, %arg6: memref<1x1x8xf32, #tpu.memory_space<vmem>>, %arg7: memref<216x8xf32, #tpu.memory_space<vmem>>, %arg8: memref<1x8xf32, #tpu.memory_space<vmem>>, %arg9: memref<1x1x64x8xf32, #tpu.memory_space<vmem>>) attributes {dimension_semantics = [#tpu.dimension_semantics<parallel>, #tpu.dimension_semantics<parallel>], iteration_bounds = array<i64: 2, 4>, scalar_prefetch = 0 : i64, scratch_operands = 0 : i64, tpu.core_type = #tpu.core_type<tc>, window_params = [{transform_indices = @transform_0, window_bounds = array<i64: 1, 1, 10, 10, 8>}, {transform_indices = @transform_1, window_bounds = array<i64: 1, 1, 10, 10, 8>}, {transform_indices = @transform_2, window_bounds = array<i64: 1, 1, 10, 10, 8>}, {transform_indices = @transform_3, window_bounds = array<i64: 1, 1, 64, 8>}, {pipeline_mode = #tpu.pipeline_mode<synchronous>, transform_indices = @transform_4, window_bounds = array<i64: 1, 1, 8>}, {pipeline_mode = #tpu.pipeline_mode<synchronous>, transform_indices = @transform_5, window_bounds = array<i64: 216, 8>}, {pipeline_mode = #tpu.pipeline_mode<synchronous>, transform_indices = @transform_6, window_bounds = array<i64: 1, 8>}, {transform_indices = @transform_7, window_bounds = array<i64: 1, 1, 64, 8>}]} {
    %c0 = arith.constant 0 : index
    %c0_0 = arith.constant 0 : index
    %c0_1 = arith.constant 0 : index
    %0 = vector.load %arg6[%c0, %c0_0, %c0_1] : memref<1x1x8xf32, #tpu.memory_space<vmem>>, vector<1x1x8xf32>
    %c0_2 = arith.constant 0 : index
    %c0_3 = arith.constant 0 : index
    %c0_4 = arith.constant 0 : index
    %c0_5 = arith.constant 0 : index
    %c0_6 = arith.constant 0 : index
    %1 = vector.load %arg2[%c0_2, %c0_3, %c0_4, %c0_5, %c0_6] : memref<1x1x10x10x8xf32, #tpu.memory_space<vmem>>, vector<1x1x10x10x8xf32>
    %2 = vector.shape_cast %1 : vector<1x1x10x10x8xf32> to vector<10x10x8xf32>
    %3 = arith.mulf %2, %2 : vector<10x10x8xf32>
    %cst = arith.constant dense<0.000000e+00> : vector<10x10xf32>
    %4 = vector.multi_reduction <add>, %3, %cst [2] : vector<10x10x8xf32> to vector<10x10xf32>
    %5 = vector.shape_cast %4 : vector<10x10xf32> to vector<10x10x1xf32>
    %cst_7 = arith.constant 1.000000e-24 : f32
    %6 = vector.broadcast %cst_7 : f32 to vector<10x10x1xf32>
    %7 = arith.maximumf %5, %6 : vector<10x10x1xf32>
    %8 = math.rsqrt %7 : vector<10x10x1xf32>
    %9 = vector.broadcast %8 : vector<10x10x1xf32> to vector<10x10x8xf32>
    %10 = arith.mulf %2, %9 : vector<10x10x8xf32>
    %cst_8 = arith.constant 2.82842708 : f32
    %11 = vector.broadcast %cst_8 : f32 to vector<1x1x8xf32>
    %12 = arith.mulf %11, %0 : vector<1x1x8xf32>
    %13 = vector.broadcast %12 : vector<1x1x8xf32> to vector<10x10x8xf32>
    %14 = arith.mulf %10, %13 : vector<10x10x8xf32>
    %15 = arith.negf %14 : vector<10x10x8xf32>
    %16 = math.exp %15 : vector<10x10x8xf32>
    %cst_9 = arith.constant 1.000000e+00 : f32
    %17 = vector.broadcast %cst_9 : f32 to vector<10x10x8xf32>
    %18 = arith.addf %17, %16 : vector<10x10x8xf32>
    %19 = arith.divf %17, %18 : vector<10x10x8xf32>
    %20 = arith.mulf %14, %19 : vector<10x10x8xf32>
    %21 = vector.extract_strided_slice %20 {offsets = [0, 0, 0], sizes = [8, 8, 8], strides = [1, 1, 1]} : vector<10x10x8xf32> to vector<8x8x8xf32>
    %22 = vector.extract_strided_slice %20 {offsets = [0, 1, 0], sizes = [8, 8, 8], strides = [1, 1, 1]} : vector<10x10x8xf32> to vector<8x8x8xf32>
    %23 = vector.extract_strided_slice %20 {offsets = [0, 2, 0], sizes = [8, 8, 8], strides = [1, 1, 1]} : vector<10x10x8xf32> to vector<8x8x8xf32>
    %24 = vector.extract_strided_slice %20 {offsets = [1, 0, 0], sizes = [8, 8, 8], strides = [1, 1, 1]} : vector<10x10x8xf32> to vector<8x8x8xf32>
    %25 = vector.extract_strided_slice %20 {offsets = [1, 1, 0], sizes = [8, 8, 8], strides = [1, 1, 1]} : vector<10x10x8xf32> to vector<8x8x8xf32>
    %26 = vector.extract_strided_slice %20 {offsets = [1, 2, 0], sizes = [8, 8, 8], strides = [1, 1, 1]} : vector<10x10x8xf32> to vector<8x8x8xf32>
    %27 = vector.extract_strided_slice %20 {offsets = [2, 0, 0], sizes = [8, 8, 8], strides = [1, 1, 1]} : vector<10x10x8xf32> to vector<8x8x8xf32>
    %28 = vector.extract_strided_slice %20 {offsets = [2, 1, 0], sizes = [8, 8, 8], strides = [1, 1, 1]} : vector<10x10x8xf32> to vector<8x8x8xf32>
    %29 = vector.extract_strided_slice %20 {offsets = [2, 2, 0], sizes = [8, 8, 8], strides = [1, 1, 1]} : vector<10x10x8xf32> to vector<8x8x8xf32>
    %c0_10 = arith.constant 0 : index
    %c0_11 = arith.constant 0 : index
    %c0_12 = arith.constant 0 : index
    %c0_13 = arith.constant 0 : index
    %c0_14 = arith.constant 0 : index
    %30 = vector.load %arg3[%c0_10, %c0_11, %c0_12, %c0_13, %c0_14] : memref<1x1x10x10x8xf32, #tpu.memory_space<vmem>>, vector<1x1x10x10x8xf32>
    %31 = vector.shape_cast %30 : vector<1x1x10x10x8xf32> to vector<10x10x8xf32>
    %32 = arith.mulf %31, %31 : vector<10x10x8xf32>
    %cst_15 = arith.constant dense<0.000000e+00> : vector<10x10xf32>
    %33 = vector.multi_reduction <add>, %32, %cst_15 [2] : vector<10x10x8xf32> to vector<10x10xf32>
    %34 = vector.shape_cast %33 : vector<10x10xf32> to vector<10x10x1xf32>
    %cst_16 = arith.constant 1.000000e-24 : f32
    %35 = vector.broadcast %cst_16 : f32 to vector<10x10x1xf32>
    %36 = arith.maximumf %34, %35 : vector<10x10x1xf32>
    %37 = math.rsqrt %36 : vector<10x10x1xf32>
    %38 = vector.broadcast %37 : vector<10x10x1xf32> to vector<10x10x8xf32>
    %39 = arith.mulf %31, %38 : vector<10x10x8xf32>
    %cst_17 = arith.constant 2.82842708 : f32
    %40 = vector.broadcast %cst_17 : f32 to vector<1x1x8xf32>
    %41 = arith.mulf %40, %0 : vector<1x1x8xf32>
    %42 = vector.broadcast %41 : vector<1x1x8xf32> to vector<10x10x8xf32>
    %43 = arith.mulf %39, %42 : vector<10x10x8xf32>
    %44 = arith.negf %43 : vector<10x10x8xf32>
    %45 = math.exp %44 : vector<10x10x8xf32>
    %cst_18 = arith.constant 1.000000e+00 : f32
    %46 = vector.broadcast %cst_18 : f32 to vector<10x10x8xf32>
    %47 = arith.addf %46, %45 : vector<10x10x8xf32>
    %48 = arith.divf %46, %47 : vector<10x10x8xf32>
    %49 = arith.mulf %43, %48 : vector<10x10x8xf32>
    %50 = vector.extract_strided_slice %49 {offsets = [0, 0, 0], sizes = [8, 8, 8], strides = [1, 1, 1]} : vector<10x10x8xf32> to vector<8x8x8xf32>
    %51 = vector.extract_strided_slice %49 {offsets = [0, 1, 0], sizes = [8, 8, 8], strides = [1, 1, 1]} : vector<10x10x8xf32> to vector<8x8x8xf32>
    %52 = vector.extract_strided_slice %49 {offsets = [0, 2, 0], sizes = [8, 8, 8], strides = [1, 1, 1]} : vector<10x10x8xf32> to vector<8x8x8xf32>
    %53 = vector.extract_strided_slice %49 {offsets = [1, 0, 0], sizes = [8, 8, 8], strides = [1, 1, 1]} : vector<10x10x8xf32> to vector<8x8x8xf32>
    %54 = vector.extract_strided_slice %49 {offsets = [1, 1, 0], sizes = [8, 8, 8], strides = [1, 1, 1]} : vector<10x10x8xf32> to vector<8x8x8xf32>
    %55 = vector.extract_strided_slice %49 {offsets = [1, 2, 0], sizes = [8, 8, 8], strides = [1, 1, 1]} : vector<10x10x8xf32> to vector<8x8x8xf32>
    %56 = vector.extract_strided_slice %49 {offsets = [2, 0, 0], sizes = [8, 8, 8], strides = [1, 1, 1]} : vector<10x10x8xf32> to vector<8x8x8xf32>
    %57 = vector.extract_strided_slice %49 {offsets = [2, 1, 0], sizes = [8, 8, 8], strides = [1, 1, 1]} : vector<10x10x8xf32> to vector<8x8x8xf32>
    %58 = vector.extract_strided_slice %49 {offsets = [2, 2, 0], sizes = [8, 8, 8], strides = [1, 1, 1]} : vector<10x10x8xf32> to vector<8x8x8xf32>
    %c0_19 = arith.constant 0 : index
    %c0_20 = arith.constant 0 : index
    %c0_21 = arith.constant 0 : index
    %c0_22 = arith.constant 0 : index
    %c0_23 = arith.constant 0 : index
    %59 = vector.load %arg4[%c0_19, %c0_20, %c0_21, %c0_22, %c0_23] : memref<1x1x10x10x8xf32, #tpu.memory_space<vmem>>, vector<1x1x10x10x8xf32>
    %60 = vector.shape_cast %59 : vector<1x1x10x10x8xf32> to vector<10x10x8xf32>
    %61 = arith.mulf %60, %60 : vector<10x10x8xf32>
    %cst_24 = arith.constant dense<0.000000e+00> : vector<10x10xf32>
    %62 = vector.multi_reduction <add>, %61, %cst_24 [2] : vector<10x10x8xf32> to vector<10x10xf32>
    %63 = vector.shape_cast %62 : vector<10x10xf32> to vector<10x10x1xf32>
    %cst_25 = arith.constant 1.000000e-24 : f32
    %64 = vector.broadcast %cst_25 : f32 to vector<10x10x1xf32>
    %65 = arith.maximumf %63, %64 : vector<10x10x1xf32>
    %66 = math.rsqrt %65 : vector<10x10x1xf32>
    %67 = vector.broadcast %66 : vector<10x10x1xf32> to vector<10x10x8xf32>
    %68 = arith.mulf %60, %67 : vector<10x10x8xf32>
    %cst_26 = arith.constant 2.82842708 : f32
    %69 = vector.broadcast %cst_26 : f32 to vector<1x1x8xf32>
    %70 = arith.mulf %69, %0 : vector<1x1x8xf32>
    %71 = vector.broadcast %70 : vector<1x1x8xf32> to vector<10x10x8xf32>
    %72 = arith.mulf %68, %71 : vector<10x10x8xf32>
    %73 = arith.negf %72 : vector<10x10x8xf32>
    %74 = math.exp %73 : vector<10x10x8xf32>
    %cst_27 = arith.constant 1.000000e+00 : f32
    %75 = vector.broadcast %cst_27 : f32 to vector<10x10x8xf32>
    %76 = arith.addf %75, %74 : vector<10x10x8xf32>
    %77 = arith.divf %75, %76 : vector<10x10x8xf32>
    %78 = arith.mulf %72, %77 : vector<10x10x8xf32>
    %79 = vector.extract_strided_slice %78 {offsets = [0, 0, 0], sizes = [8, 8, 8], strides = [1, 1, 1]} : vector<10x10x8xf32> to vector<8x8x8xf32>
    %80 = vector.extract_strided_slice %78 {offsets = [0, 1, 0], sizes = [8, 8, 8], strides = [1, 1, 1]} : vector<10x10x8xf32> to vector<8x8x8xf32>
    %81 = vector.extract_strided_slice %78 {offsets = [0, 2, 0], sizes = [8, 8, 8], strides = [1, 1, 1]} : vector<10x10x8xf32> to vector<8x8x8xf32>
    %82 = vector.extract_strided_slice %78 {offsets = [1, 0, 0], sizes = [8, 8, 8], strides = [1, 1, 1]} : vector<10x10x8xf32> to vector<8x8x8xf32>
    %83 = vector.extract_strided_slice %78 {offsets = [1, 1, 0], sizes = [8, 8, 8], strides = [1, 1, 1]} : vector<10x10x8xf32> to vector<8x8x8xf32>
    %84 = vector.extract_strided_slice %78 {offsets = [1, 2, 0], sizes = [8, 8, 8], strides = [1, 1, 1]} : vector<10x10x8xf32> to vector<8x8x8xf32>
    %85 = vector.extract_strided_slice %78 {offsets = [2, 0, 0], sizes = [8, 8, 8], strides = [1, 1, 1]} : vector<10x10x8xf32> to vector<8x8x8xf32>
    %86 = vector.extract_strided_slice %78 {offsets = [2, 1, 0], sizes = [8, 8, 8], strides = [1, 1, 1]} : vector<10x10x8xf32> to vector<8x8x8xf32>
    %87 = vector.extract_strided_slice %78 {offsets = [2, 2, 0], sizes = [8, 8, 8], strides = [1, 1, 1]} : vector<10x10x8xf32> to vector<8x8x8xf32>
    %88 = tpu.concatenate %21, %22, %23, %24, %25, %26, %27, %28, %29, %50, %51, %52, %53, %54, %55, %56 in 2 : vector<8x8x8xf32>, vector<8x8x8xf32>, vector<8x8x8xf32>, vector<8x8x8xf32>, vector<8x8x8xf32>, vector<8x8x8xf32>, vector<8x8x8xf32>, vector<8x8x8xf32>, vector<8x8x8xf32>, vector<8x8x8xf32>, vector<8x8x8xf32>, vector<8x8x8xf32>, vector<8x8x8xf32>, vector<8x8x8xf32>, vector<8x8x8xf32>, vector<8x8x8xf32> -> vector<8x8x128xf32>
    %89 = tpu.concatenate %57, %58, %79, %80, %81, %82, %83, %84, %85, %86, %87 in 2 : vector<8x8x8xf32>, vector<8x8x8xf32>, vector<8x8x8xf32>, vector<8x8x8xf32>, vector<8x8x8xf32>, vector<8x8x8xf32>, vector<8x8x8xf32>, vector<8x8x8xf32>, vector<8x8x8xf32>, vector<8x8x8xf32>, vector<8x8x8xf32> -> vector<8x8x88xf32>
    %90 = tpu.concatenate %88, %89 in 2 : vector<8x8x128xf32>, vector<8x8x88xf32> -> vector<8x8x216xf32>
    %91 = vector.shape_cast %90 : vector<8x8x216xf32> to vector<64x216xf32>
    %c0_28 = arith.constant 0 : index
    %c0_29 = arith.constant 0 : index
    %92 = vector.load %arg7[%c0_28, %c0_29] : memref<216x8xf32, #tpu.memory_space<vmem>>, vector<216x8xf32>
    %cst_30 = arith.constant dense<0.000000e+00> : vector<64x8xf32>
    %93 = tpu.matmul %91, %92, %cst_30 {dimension_numbers = #tpu.dot_dimension_numbers<[1], [0], [0], [1], [0, 0, 1, 1], [], []>} : vector<64x216xf32>, vector<216x8xf32>, vector<64x8xf32> -> vector<64x8xf32>
    %c0_31 = arith.constant 0 : index
    %c0_32 = arith.constant 0 : index
    %94 = vector.load %arg8[%c0_31, %c0_32] : memref<1x8xf32, #tpu.memory_space<vmem>>, vector<1x8xf32>
    %95 = vector.broadcast %94 : vector<1x8xf32> to vector<64x8xf32>
    %96 = arith.addf %93, %95 : vector<64x8xf32>
    %c0_33 = arith.constant 0 : index
    %c0_34 = arith.constant 0 : index
    %c0_35 = arith.constant 0 : index
    %c0_36 = arith.constant 0 : index
    %97 = vector.load %arg5[%c0_33, %c0_34, %c0_35, %c0_36] : memref<1x1x64x8xf32, #tpu.memory_space<vmem>>, vector<1x1x64x8xf32>
    %98 = vector.shape_cast %97 : vector<1x1x64x8xf32> to vector<64x8xf32>
    %99 = arith.addf %96, %98 : vector<64x8xf32>
    %c0_37 = arith.constant 0 : index
    %c0_38 = arith.constant 0 : index
    %c0_39 = arith.constant 0 : index
    %c0_40 = arith.constant 0 : index
    %100 = vector.load %arg9[%c0_37, %c0_38, %c0_39, %c0_40] : memref<1x1x64x8xf32, #tpu.memory_space<vmem>>, vector<1x1x64x8xf32>
    %101 = vector.shape_cast %100 : vector<1x1x64x8xf32> to vector<64x8xf32>
    %102 = vector.shape_cast %99 : vector<64x8xf32> to vector<1x1x64x8xf32>
    tpu.vector_store %arg9[%c0_37, %c0_38, %c0_39, %c0_40], %102 {strides = array<i32>} : memref<1x1x64x8xf32, #tpu.memory_space<vmem>>, vector<1x1x64x8xf32>,
    return
  }
  func.func @transform_0(%arg0: i32, %arg1: i32) -> (i32, i32, i32, i32, i32) {
    %c0_i32 = arith.constant 0 : i32
    %0 = arith.addi %arg1, %c0_i32 : i32
    %c0_i32_0 = arith.constant 0 : i32
    %c0_i32_1 = arith.constant 0 : i32
    %c0_i32_2 = arith.constant 0 : i32
    %c0_i32_3 = arith.constant 0 : i32
    return %arg0, %0, %c0_i32_0, %c0_i32_1, %c0_i32_2 : i32, i32, i32, i32, i32
  }
  func.func @transform_1(%arg0: i32, %arg1: i32) -> (i32, i32, i32, i32, i32) {
    %c1_i32 = arith.constant 1 : i32
    %0 = arith.addi %arg1, %c1_i32 : i32
    %c0_i32 = arith.constant 0 : i32
    %c0_i32_0 = arith.constant 0 : i32
    %c0_i32_1 = arith.constant 0 : i32
    %c0_i32_2 = arith.constant 0 : i32
    return %arg0, %0, %c0_i32, %c0_i32_0, %c0_i32_1 : i32, i32, i32, i32, i32
  }
  func.func @transform_2(%arg0: i32, %arg1: i32) -> (i32, i32, i32, i32, i32) {
    %c2_i32 = arith.constant 2 : i32
    %0 = arith.addi %arg1, %c2_i32 : i32
    %c0_i32 = arith.constant 0 : i32
    %c0_i32_0 = arith.constant 0 : i32
    %c0_i32_1 = arith.constant 0 : i32
    %c0_i32_2 = arith.constant 0 : i32
    return %arg0, %0, %c0_i32, %c0_i32_0, %c0_i32_1 : i32, i32, i32, i32, i32
  }
  func.func @transform_3(%arg0: i32, %arg1: i32) -> (i32, i32, i32, i32) {
    %c0_i32 = arith.constant 0 : i32
    %c0_i32_0 = arith.constant 0 : i32
    %c0_i32_1 = arith.constant 0 : i32
    return %arg0, %arg1, %c0_i32, %c0_i32_0 : i32, i32, i32, i32
  }
  func.func @transform_4(%arg0: i32, %arg1: i32) -> (i32, i32, i32) {
    %c0_i32 = arith.constant 0 : i32
    %c0_i32_0 = arith.constant 0 : i32
    %c0_i32_1 = arith.constant 0 : i32
    %c0_i32_2 = arith.constant 0 : i32
    return %c0_i32, %c0_i32_0, %c0_i32_1 : i32, i32, i32
  }
  func.func @transform_5(%arg0: i32, %arg1: i32) -> (i32, i32) {
    %c0_i32 = arith.constant 0 : i32
    %c0_i32_0 = arith.constant 0 : i32
    %c0_i32_1 = arith.constant 0 : i32
    return %c0_i32, %c0_i32_0 : i32, i32
  }
  func.func @transform_6(%arg0: i32, %arg1: i32) -> (i32, i32) {
    %c0_i32 = arith.constant 0 : i32
    %c0_i32_0 = arith.constant 0 : i32
    %c0_i32_1 = arith.constant 0 : i32
    return %c0_i32, %c0_i32_0 : i32, i32
  }
  func.func @transform_7(%arg0: i32, %arg1: i32) -> (i32, i32, i32, i32) {
    %c0_i32 = arith.constant 0 : i32
    %c0_i32_0 = arith.constant 0 : i32
    %c0_i32_1 = arith.constant 0 : i32
    return %arg0, %arg1, %c0_i32, %c0_i32_0 : i32, i32, i32, i32
  }
}

</mosaic_0001>

<bundles_post_ra>
// kernel: residual_block_forward.2
= control target key start
LH: loop header
LB: loop body
LE: loop exit
PB: predicated region body
PF: predicated region fallthrough
CT: control target
= control target key end

     0   :  { %s4128_s30 = smov 0   ;;  %s4130_s10 = smov 0   ;;  %s6811_s0 = inlined_call_operand.vmem [shape: f32[2,6,10,10,4], index: 0, kind: input, shape index: {}, may-alias: {0,1,2}]   ;;  %s6812_s1 = inlined_call_operand.vmem [shape: f32[2,6,10,10,4], index: 1, kind: input, shape index: {}, may-alias: {0,1,2}]   ;;  %s6813_s2 = inlined_call_operand.vmem [shape: f32[2,6,10,10,4], index: 2, kind: input, shape index: {}, may-alias: {0,1,2}]   ;;  %s6814_s3 = inlined_call_operand.vmem [shape: f32[1,1,4], index: 3, kind: input, shape index: {}]   ;;  %s6815_s4 = inlined_call_operand.vmem [shape: f32[108,8], index: 4, kind: input, shape index: {}]   ;;  %s6816_s5 = inlined_call_operand.vmem [shape: f32[1,8], index: 5, kind: input, shape index: {}]   ;;  %s6817_s6 = inlined_call_operand.vmem [shape: f32[4,8], index: 6, kind: input, shape index: {}]   ;;  %s6818_s7 = inlined_call_operand.vmem [shape: f32[1,8], index: 7, kind: input, shape index: {}]   ;;  %s6819_s8 = inlined_call_operand.vmem [shape: f32[2,4,64,8], index: 8, kind: output, shape index: {0}]   ;;  %s6820_s9 = inlined_call_operand.vmem [shape: f32[2,4,64,8], index: 9, kind: output, shape index: {1}]  }
   0x1   :  { %s4132_s11 = smov 0   ;;  %s4134_s12 = smov 0  }
   0x2   :  { %s4136_s13 = smov 0  }
   0x3 LB: > { %s29_s14 = sadd.s32 1, %s4051_s11  ;;  %s32_s15 = sadd.s32 1, %s4055_s12  ;;  %s4059_s13 = sphi %s4136_s13, %s20_s13   ;;  %s4055_s12 = sphi %s4134_s12, %s7210_s12   ;;  %s4051_s11 = sphi %s4132_s11, %s7209_s11   ;;  %s4047_s10 = sphi %s4130_s10, %s7208_s10   ;;  %s4043_s30 = sphi %s4128_s30, %s7207_s30  }
   0x4   : > { %p30_p0 = scmp.ge.s32.totalorder %s29_s14, 4  ;;  %p3351_p1 = scmp.ge.s32.totalorder %s4059_s13, 1 }
   0x5   : > { %p352_p2 = scmp.lt.s32.totalorder %s4059_s13, 9 }
   0x6   : > { %s7212_s14 = smov (%p30_p0, %s29_s14), 0  ;;  %s7214_s15 = smov (!%p30_p0, %s32_s15), %s4055_s12 }
   0x7   : > { %p353_p3 = pnand %p3351_p1, %p352_p2  ;;  %p34_p4 = scmp.ge.s32.totalorder %s7214_s15, 2 }
   0x9   : > { %s7216_s15 = smov (%p34_p4, %s7214_s15), 0  ;;  %356 = sbr.rel (%p353_p3) target bundleno = 1132 (0x46c), region = 52 }
  0x10   : > { %p425_p5 = scmp.lt.s32.totalorder %s4047_s10, 1  ;;  %p427_p6 = scmp.lt.s32.totalorder %s4043_s30, 5  ;;  %vm515_vm0 = vcmask 31744   ;;  %vm519_vm1 = vcmask 25600   ;;  %vm1460_vm2 = vcmask 1046528   ;;  %vm1509_vm3 = vcmask 1045504  }
  0x11   : > { %s434_s24 = sadd.s32 1, %s4043_s30  ;;  %s4062_s28 = smov 4   ;;  %vm6865_vm4 = vcmask 64512   ;;  %vm1976_vm5 = vcmask 97280   ;;  %vm1985_vm6 = vcmask 130048   ;;  %vm6868_vm7 = vcmask 162816  }
  0x12   : > { %s7218_s10 = smov (!%p425_p5, %s4047_s10), 1  ;;  %p437_p7 = scmp.lt.s32.totalorder %s434_s24, 5  ;;  %vm2003_vm8 = vcmask 195584   ;;  %vm2012_vm9 = vcmask 228352   ;;  %vm6866_vm10 = vcmask 261120   ;;  %vm2030_vm11 = vcmask 293888  }
  0x13   : > { %s428_s16 = scalar_select %p427_p6, %s4043_s30, 5  ;;  %vm2039_vm12 = vcmask 326656   ;;  %vm2844_vm13 = vcmask 1043456   ;;  %vm4076_vm14 = vmmov 1  }
  0x14   : > { %s4165_s17 = smul.u32 120, %s7218_s10  ;;  %s7220_s24 = smov (!%p437_p7, %s434_s24), 5  ;;  %vm3553_vm15 = vmpackc.low %vm2844_vm13, %vm4076_vm14  ;;  %vm2075_vm14 = vcmask 457728  }
  0x15   : > { %s3558_s18 = smul.u32 20, %s428_s16  ;;  %s4063_s29 = smov 8  }
  0x16   : > { %s3560_s25 = smul.u32 20, %s7220_s24  ;;  %s4070_s22 = smov 40  }
  0x17   : > { %s431_s19 = sadd.s32 %s4165_s17, %s3558_s18  ;;  %s445_s18 = sadd.s32 2, %s4043_s30 }
  0x18   : > { %s3352_s20 = sshll.u32 %s431_s19, 3  ;;  %s441_s26 = sadd.s32 %s3560_s25, %s4165_s17 }
  0x19   : > { %s4171_s23 = scalar_lea.vmem %s6811_s0, %s3352_s20  ;;  %s3353_s27 = sshll.u32 %s441_s26, 3 }
  0x1a   : > { %v4174_v0 = vld [vmem:[%s4171_s23 + $0x10] sm:$0xff]  ;;  %v4177_v1 = vld [vmem:[%s4171_s23] sm:$0xff]  ;;  %v4180_v2 = vld [vmem:[%s4171_s23 + $0x18] sm:$0x3]  ;;  %s4286_s16 = scalar_lea.vmem %s6812_s1, %s3353_s27  ;;  %p448_p8 = scmp.lt.s32.totalorder %s445_s18, 5 }
  0x1b   : > { %v497_v3 = vmul.f32 %v4174_v0, %v4174_v0  ;;  %v495_v4 = vmul.f32 %v4177_v1, %v4177_v1  ;;  %v498_v5 = vmul.f32 %v4180_v2, %v4180_v2  ;;  %v4189_v6 = vld [vmem:[%s4171_s23 + $0x8] sm:$0x3]  ;;  %v4197_v9 = vld [vmem:[%s4171_s23 + $0x20] sm:$0xff]  ;;  %v4208_v16 = vld [vmem:[%s4171_s23 + $0x38] sm:$0x3]  ;;  %s4061_s27 = smov 12  }
  0x1c   : > { %v496_v7 = vmul.f32 %v4189_v6, %v4189_v6  ;;  %v4194_v8 = vld [vmem:[%s4171_s23 + $0x28] sm:$0x3]  ;;  %v499_v15 = vmul.f32 %v4197_v9, %v4197_v9  ;;  %v4211_v17 = vld [vmem:[%s4171_s23 + $0x30] sm:$0xff]  ;;  %v502_v20 = vmul.f32 %v4208_v16, %v4208_v16  ;;  %v4223_v23 = vld [vmem:[%s4171_s23 + $0x40] sm:$0xff]  ;;  %s7222_s18 = smov (!%p448_p8, %s445_s18), 5  ;;  %s4071_s25 = smov 44  }
  0x1d   : > { %v523_v10 = vsel %vm515_vm0, %v497_v3, 0.0  ;;  %v516_v11 = vsel %vm515_vm0, %v495_v4, 0.0  ;;  %v526_v12 = vsel %vm519_vm1, %v498_v5, 0.0  ;;  %v500_v14 = vmul.f32 %v4194_v8, %v4194_v8  ;;  %v4220_v22 = vld [vmem:[%s4171_s23 + $0x48] sm:$0x3]  ;;  %v4236_v29 = vld [vmem:[%s4171_s23 + $0x50] sm:$0xff] }
  0x1e   : > { %524 = vadd.xlane.f32.xlu1 %v523_v10  ;;  %517 = vadd.xlane.f32.xlu0 %v516_v11  ;;  %v520_v13 = vsel %vm519_vm1, %v496_v7, 0.0  ;;  %v529_v19 = vsel %vm515_vm0, %v499_v15, 0.0  ;;  %v501_v21 = vmul.f32 %v4211_v17, %v4211_v17  ;;  %v538_v24 = vsel %vm519_vm1, %v502_v20, 0.0  ;;  %v4233_v28 = vld [vmem:[%s4171_s23 + $0x58] sm:$0x3]  ;;  %v4248_v35 = vld [vmem:[%s4171_s23 + $0x60] sm:$0xff] }
  0x1f   : > { %v532_v18 = vsel %vm519_vm1, %v500_v14, 0.0  ;;  %v504_v26 = vmul.f32 %v4220_v22, %v4220_v22  ;;  %v503_v27 = vmul.f32 %v4223_v23, %v4223_v23  ;;  %v506_v32 = vmul.f32 %v4233_v28, %v4233_v28  ;;  %v4245_v34 = vld [vmem:[%s4171_s23 + $0x68] sm:$0x3]  ;;  %v4257_v40 = vld [vmem:[%s4171_s23 + $0x78] sm:$0x3]  ;;  %v4260_v41 = vld [vmem:[%s4171_s23 + $0x70] sm:$0xff] }
  0x20   : > { %v535_v25 = vsel %vm515_vm0, %v501_v21, 0.0  ;;  %v505_v33 = vmul.f32 %v4236_v29, %v4236_v29  ;;  %v508_v38 = vmul.f32 %v4245_v34, %v4245_v34  ;;  %v507_v39 = vmul.f32 %v4248_v35, %v4248_v35  ;;  %v4270_v46 = vld [vmem:[%s4171_s23 + $0x88] sm:$0x3]  ;;  %v4273_v47 = vld [vmem:[%s4171_s23 + $0x80] sm:$0xff]  ;;  %v494_v52 = vld [vmem:[%s4171_s23 + $0x98] sm:$0x3] }
  0x21   : > { %v544_v30 = vsel %vm519_vm1, %v504_v26, 0.0  ;;  %v541_v31 = vsel %vm515_vm0, %v503_v27, 0.0  ;;  %v550_v36 = vsel %vm519_vm1, %v506_v32, 0.0  ;;  %v510_v44 = vmul.f32 %v4257_v40, %v4257_v40  ;;  %v493_v53 = vld [vmem:[%s4171_s23 + $0x90] sm:$0xff]  ;;  %v805_v58 = vld [vmem:[%s4286_s16 + $0x8] sm:$0x3] }
  0x22   : > { %527 = vadd.xlane.f32.xlu1 %v526_v12  ;;  %521 = vadd.xlane.f32.xlu0 %v520_v13  ;;  %v547_v37 = vsel %vm515_vm0, %v505_v33, 0.0  ;;  %v556_v42 = vsel %vm519_vm1, %v508_v38, 0.0  ;;  %v553_v43 = vsel %vm515_vm0, %v507_v39, 0.0  ;;  %v509_v45 = vmul.f32 %v4260_v41, %v4260_v41  ;;  %v804_v59 = vld [vmem:[%s4286_s16] sm:$0xff]  ;;  %v807_v3 = vld [vmem:[%s4286_s16 + $0x18] sm:$0x3] }
  0x23   : > { %v562_v48 = vsel %vm519_vm1, %v510_v44, 0.0  ;;  %v512_v50 = vmul.f32 %v4270_v46, %v4270_v46  ;;  %v511_v51 = vmul.f32 %v4273_v47, %v4273_v47  ;;  %v514_v56 = vmul.f32 %v494_v52, %v494_v52  ;;  %v806_v4 = vld [vmem:[%s4286_s16 + $0x10] sm:$0xff]  ;;  %v809_v12 = vld [vmem:[%s4286_s16 + $0x28] sm:$0x3]  ;;  %v808_v13 = vld [vmem:[%s4286_s16 + $0x20] sm:$0xff]  ;;  %s3561_s19 = smul.u32 20, %s7222_s18 }
  0x24   : > { %v559_v49 = vsel %vm515_vm0, %v509_v45, 0.0  ;;  %v513_v57 = vmul.f32 %v493_v53, %v493_v53  ;;  %v825_v62 = vmul.f32 %v805_v58, %v805_v58  ;;  %v824_v63 = vmul.f32 %v804_v59, %v804_v59  ;;  %v811_v20 = vld [vmem:[%s4286_s16 + $0x38] sm:$0x3]  ;;  %v810_v21 = vld [vmem:[%s4286_s16 + $0x30] sm:$0xff]  ;;  %s4064_s18 = smov 16   ;;  %p458_p9 = scmp.lt.s32.totalorder %s4043_s30, 3 }
  0x25   : > { %v568_v54 = vsel %vm519_vm1, %v512_v50, 0.0  ;;  %v565_v55 = vsel %vm515_vm0, %v511_v51, 0.0  ;;  %v574_v60 = vsel %vm519_vm1, %v514_v56, 0.0  ;;  %v827_v10 = vmul.f32 %v807_v3, %v807_v3  ;;  %v815_v38 = vld [vmem:[%s4286_s16 + $0x58] sm:$0x3]  ;;  %v814_v39 = vld [vmem:[%s4286_s16 + $0x50] sm:$0xff]  ;;  %s452_s20 = sadd.s32 %s3561_s19, %s4165_s17 }
  0x26   : > { %533 = vadd.xlane.f32.xlu1 %v532_v18  ;;  %530 = vadd.xlane.f32.xlu0 %v529_v19  ;;  %v571_v61 = vsel %vm515_vm0, %v513_v57, 0.0  ;;  %v847_v5 = vsel %vm519_vm1, %v825_v62, 0.0  ;;  %v844_v7 = vsel %vm515_vm0, %v824_v63, 0.0  ;;  %v826_v11 = vmul.f32 %v806_v4, %v806_v4  ;;  %s3354_s21 = sshll.u32 %s452_s20, 3  ;;  %s4065_s19 = smov 20  }
  0x27   : > { %v853_v14 = vsel %vm519_vm1, %v827_v10, 0.0  ;;  %v829_v18 = vmul.f32 %v809_v12, %v809_v12  ;;  %v828_v19 = vmul.f32 %v808_v13, %v808_v13  ;;  %v831_v26 = vmul.f32 %v811_v20, %v811_v20  ;;  %s4333_s24 = scalar_lea.vmem %s6813_s2, %s3354_s21  ;;  %s4067_s20 = smov 28  }
  0x28   : > { %v850_v15 = vsel %vm515_vm0, %v826_v11, 0.0  ;;  %v830_v27 = vmul.f32 %v810_v21, %v810_v21  ;;  %v835_v44 = vmul.f32 %v815_v38, %v815_v38  ;;  %v834_v45 = vmul.f32 %v814_v39, %v814_v39  ;;  %s4068_s21 = smov 32   ;;  %s4069_s17 = smov 36  }
  0x29   : > { %v865_v32 = vsel %vm519_vm1, %v831_v26, 0.0  ;;  %s7224_s30 = smov (!%p458_p9, %s4043_s30), 3 }
  0x2a   : > { %539 = vadd.xlane.f32.xlu1 %v538_v24  ;;  %536 = vadd.xlane.f32.xlu0 %v535_v25  ;;  %v859_v24 = vsel %vm519_vm1, %v829_v18, 0.0  ;;  %v856_v25 = vsel %vm515_vm0, %v828_v19, 0.0  ;;  %v862_v33 = vsel %vm515_vm0, %v830_v27, 0.0  ;;  %v877_v50 = vsel %vm519_vm1, %v835_v44, 0.0 }
  0x2b   : > { %v874_v51 = vsel %vm515_vm0, %v834_v45, 0.0 }
  0x2e   : > { %545 = vadd.xlane.f32.xlu1 %v544_v30  ;;  %542 = vadd.xlane.f32.xlu0 %v541_v31  ;;  %v813_v30 = vld [vmem:[%s4286_s16 + $0x48] sm:$0x3]  ;;  %v812_v31 = vld [vmem:[%s4286_s16 + $0x40] sm:$0xff] }
  0x32   : > { %551 = vadd.xlane.f32.xlu1 %v550_v36  ;;  %548 = vadd.xlane.f32.xlu0 %v547_v37  ;;  %v833_v36 = vmul.f32 %v813_v30, %v813_v30  ;;  %v832_v37 = vmul.f32 %v812_v31, %v812_v31 }
  0x36   : > { %557 = vadd.xlane.f32.xlu1 %v556_v42  ;;  %554 = vadd.xlane.f32.xlu0 %v553_v43  ;;  %v871_v42 = vsel %vm519_vm1, %v833_v36, 0.0  ;;  %v868_v43 = vsel %vm515_vm0, %v832_v37, 0.0 }
  0x3a   : > { %563 = vadd.xlane.f32.xlu1 %v562_v48  ;;  %560 = vadd.xlane.f32.xlu0 %v559_v49  ;;  %v817_v48 = vld [vmem:[%s4286_s16 + $0x68] sm:$0x3]  ;;  %v816_v49 = vld [vmem:[%s4286_s16 + $0x60] sm:$0xff] }
  0x3b   : > { %v837_v52 = vmul.f32 %v817_v48, %v817_v48  ;;  %v836_v53 = vmul.f32 %v816_v49, %v816_v49 }
  0x3d   : > { %v883_v56 = vsel %vm519_vm1, %v837_v52, 0.0  ;;  %v880_v57 = vsel %vm515_vm0, %v836_v53, 0.0 }
  0x3e   : > { %569 = vadd.xlane.f32.xlu1 %v568_v54  ;;  %566 = vadd.xlane.f32.xlu0 %v565_v55  ;;  %v819_v54 = vld [vmem:[%s4286_s16 + $0x78] sm:$0x3]  ;;  %v818_v55 = vld [vmem:[%s4286_s16 + $0x70] sm:$0xff] }
  0x3f   : > { %v839_v58 = vmul.f32 %v819_v54, %v819_v54  ;;  %v838_v59 = vmul.f32 %v818_v55, %v818_v55 }
  0x41   : > { %v889_v62 = vsel %vm519_vm1, %v839_v58, 0.0  ;;  %v886_v63 = vsel %vm515_vm0, %v838_v59, 0.0 }
  0x42   : > { %575 = vadd.xlane.f32.xlu1 %v574_v60  ;;  %572 = vadd.xlane.f32.xlu0 %v571_v61  ;;  %v821_v60 = vld [vmem:[%s4286_s16 + $0x88] sm:$0x3]  ;;  %v820_v61 = vld [vmem:[%s4286_s16 + $0x80] sm:$0xff] }
  0x43   : > { %v841_v3 = vmul.f32 %v821_v60, %v821_v60  ;;  %v840_v4 = vmul.f32 %v820_v61, %v820_v61 }
  0x45   : > { %v895_v10 = vsel %vm519_vm1, %v841_v3, 0.0  ;;  %v892_v11 = vsel %vm515_vm0, %v840_v4, 0.0 }
  0x46   : > { %848 = vadd.xlane.f32.xlu1 %v847_v5  ;;  %845 = vadd.xlane.f32.xlu0 %v844_v7  ;;  %v823_v5 = vld [vmem:[%s4286_s16 + $0x98] sm:$0x3]  ;;  %v822_v7 = vld [vmem:[%s4286_s16 + $0x90] sm:$0xff] }
  0x47   : > { %v843_v12 = vmul.f32 %v823_v5, %v823_v5  ;;  %v842_v13 = vmul.f32 %v822_v7, %v822_v7 }
  0x49   : > { %v901_v18 = vsel %vm519_vm1, %v843_v12, 0.0  ;;  %v898_v19 = vsel %vm515_vm0, %v842_v13, 0.0 }
  0x4a   : > { %854 = vadd.xlane.f32.xlu1 %v853_v14  ;;  %851 = vadd.xlane.f32.xlu0 %v850_v15  ;;  %v1125_v14 = vld [vmem:[%s4333_s24 + $0x8] sm:$0x3]  ;;  %v1124_v15 = vld [vmem:[%s4333_s24] sm:$0xff] }
  0x4b   : > { %v1145_v20 = vmul.f32 %v1125_v14, %v1125_v14  ;;  %v1144_v21 = vmul.f32 %v1124_v15, %v1124_v15 }
  0x4d   : > { %v1167_v26 = vsel %vm519_vm1, %v1145_v20, 0.0  ;;  %v1164_v27 = vsel %vm515_vm0, %v1144_v21, 0.0 }
  0x4e   : > { %860 = vadd.xlane.f32.xlu1 %v859_v24  ;;  %857 = vadd.xlane.f32.xlu0 %v856_v25  ;;  %v1127_v24 = vld [vmem:[%s4333_s24 + $0x18] sm:$0x3]  ;;  %v1126_v25 = vld [vmem:[%s4333_s24 + $0x10] sm:$0xff] }
  0x4f   : > { %v1147_v30 = vmul.f32 %v1127_v24, %v1127_v24  ;;  %v1146_v31 = vmul.f32 %v1126_v25, %v1126_v25 }
  0x51   : > { %v1173_v36 = vsel %vm519_vm1, %v1147_v30, 0.0  ;;  %v1170_v37 = vsel %vm515_vm0, %v1146_v31, 0.0 }
  0x52   : > { %866 = vadd.xlane.f32.xlu1 %v865_v32  ;;  %863 = vadd.xlane.f32.xlu0 %v862_v33  ;;  %v1129_v32 = vld [vmem:[%s4333_s24 + $0x28] sm:$0x3]  ;;  %v1128_v33 = vld [vmem:[%s4333_s24 + $0x20] sm:$0xff] }
  0x53   : > { %v1149_v38 = vmul.f32 %v1129_v32, %v1129_v32  ;;  %v1148_v39 = vmul.f32 %v1128_v33, %v1128_v33 }
  0x55   : > { %v1179_v44 = vsel %vm519_vm1, %v1149_v38, 0.0  ;;  %v1176_v45 = vsel %vm515_vm0, %v1148_v39, 0.0 }
  0x56   : > { %872 = vadd.xlane.f32.xlu1 %v871_v42  ;;  %869 = vadd.xlane.f32.xlu0 %v868_v43  ;;  %v1131_v42 = vld [vmem:[%s4333_s24 + $0x38] sm:$0x3]  ;;  %v1130_v43 = vld [vmem:[%s4333_s24 + $0x30] sm:$0xff] }
  0x57   : > { %v1151_v48 = vmul.f32 %v1131_v42, %v1131_v42  ;;  %v1150_v49 = vmul.f32 %v1130_v43, %v1130_v43  ;;  %v639_v42 = vlaneseq }
  0x59   : > { %v1185_v52 = vsel %vm519_vm1, %v1151_v48, 0.0  ;;  %v1182_v53 = vsel %vm515_vm0, %v1150_v49, 0.0  ;;  %v640_v48 = vshrl.u32 %v639_v42, 7  ;;  %v474_v49 = vld [vmem:[%s6814_s3] sm:$0x1] }
  0x5a   : > { %878 = vadd.xlane.f32.xlu1 %v877_v50  ;;  %875 = vadd.xlane.f32.xlu0 %v874_v51  ;;  %v1133_v50 = vld [vmem:[%s4333_s24 + $0x48] sm:$0x3]  ;;  %v1132_v51 = vld [vmem:[%s4333_s24 + $0x40] sm:$0xff] }
  0x5b   : > { %v1153_v54 = vmul.f32 %v1133_v50, %v1133_v50  ;;  %v1152_v55 = vmul.f32 %v1132_v51, %v1132_v51 }
  0x5d   : > { %v1191_v58 = vsel %vm519_vm1, %v1153_v54, 0.0  ;;  %v1188_v59 = vsel %vm515_vm0, %v1152_v55, 0.0 }
  0x5e   : > { %884 = vadd.xlane.f32.xlu1 %v883_v56  ;;  %881 = vadd.xlane.f32.xlu0 %v880_v57  ;;  %v1135_v56 = vld [vmem:[%s4333_s24 + $0x58] sm:$0x3]  ;;  %v1134_v57 = vld [vmem:[%s4333_s24 + $0x50] sm:$0xff] }
  0x5f   : > { %v1155_v60 = vmul.f32 %v1135_v56, %v1135_v56  ;;  %v1154_v61 = vmul.f32 %v1134_v57, %v1134_v57 }
  0x61   : > { %v1197_v3 = vsel %vm519_vm1, %v1155_v60, 0.0  ;;  %v1194_v4 = vsel %vm515_vm0, %v1154_v61, 0.0 }
  0x62   : > { %890 = vadd.xlane.f32.xlu1 %v889_v62  ;;  %887 = vadd.xlane.f32.xlu0 %v886_v63  ;;  %v1137_v62 = vld [vmem:[%s4333_s24 + $0x68] sm:$0x3]  ;;  %v1136_v63 = vld [vmem:[%s4333_s24 + $0x60] sm:$0xff] }
  0x63   : > { %v1157_v5 = vmul.f32 %v1137_v62, %v1137_v62  ;;  %v1156_v7 = vmul.f32 %v1136_v63, %v1136_v63 }
  0x65   : > { %v1203_v12 = vsel %vm519_vm1, %v1157_v5, 0.0  ;;  %v1200_v13 = vsel %vm515_vm0, %v1156_v7, 0.0 }
  0x66   : > { %896 = vadd.xlane.f32.xlu1 %v895_v10  ;;  %893 = vadd.xlane.f32.xlu0 %v892_v11  ;;  %v1139_v10 = vld [vmem:[%s4333_s24 + $0x78] sm:$0x3]  ;;  %v1138_v11 = vld [vmem:[%s4333_s24 + $0x70] sm:$0xff] }
  0x67   : > { %v1159_v14 = vmul.f32 %v1139_v10, %v1139_v10  ;;  %v1158_v15 = vmul.f32 %v1138_v11, %v1138_v11 }
  0x69   : > { %v1209_v20 = vsel %vm519_vm1, %v1159_v14, 0.0  ;;  %v1206_v21 = vsel %vm515_vm0, %v1158_v15, 0.0 }
  0x6a   : > { %902 = vadd.xlane.f32.xlu1 %v901_v18  ;;  %899 = vadd.xlane.f32.xlu0 %v898_v19  ;;  %v1141_v18 = vld [vmem:[%s4333_s24 + $0x88] sm:$0x3]  ;;  %v1140_v19 = vld [vmem:[%s4333_s24 + $0x80] sm:$0xff] }
  0x6b   : > { %v1161_v24 = vmul.f32 %v1141_v18, %v1141_v18  ;;  %v1160_v25 = vmul.f32 %v1140_v19, %v1140_v19 }
  0x6d   : > { %v1215_v30 = vsel %vm519_vm1, %v1161_v24, 0.0  ;;  %v1212_v31 = vsel %vm515_vm0, %v1160_v25, 0.0 }
  0x6e   : > { %1168 = vadd.xlane.f32.xlu1 %v1167_v26  ;;  %1165 = vadd.xlane.f32.xlu0 %v1164_v27  ;;  %v1143_v26 = vld [vmem:[%s4333_s24 + $0x98] sm:$0x3]  ;;  %v1142_v27 = vld [vmem:[%s4333_s24 + $0x90] sm:$0xff] }
  0x6f   : > { %v1163_v32 = vmul.f32 %v1143_v26, %v1143_v26  ;;  %v1162_v33 = vmul.f32 %v1142_v27, %v1142_v27 }
  0x72   : > { %1174 = vadd.xlane.f32.xlu1 %v1173_v36  ;;  %1171 = vadd.xlane.f32.xlu0 %v1170_v37  ;;  %v1221_v36 = vsel %vm519_vm1, %v1163_v32, 0.0  ;;  %v1218_v37 = vsel %vm515_vm0, %v1162_v33, 0.0  ;;  %vm6867_vm1 = vcmask 359424  }
  0x76   : > { %1180 = vadd.xlane.f32.xlu1 %v1179_v44  ;;  %1177 = vadd.xlane.f32.xlu0 %v1176_v45 }
  0x7a   : > { %1186 = vadd.xlane.f32.xlu1 %v1185_v52  ;;  %1183 = vadd.xlane.f32.xlu0 %v1182_v53  ;;  %v637_v52 = vmul.f32 2.0, %v474_v49  ;;  %v641_v53 = vsub.s32 0, %v640_v48 }
  0x7e   : > { %1192 = vadd.xlane.f32.xlu1 %v1191_v58  ;;  %1189 = vadd.xlane.f32.xlu0 %v1188_v59  ;;  %v4382_v59 = vrot.slane %v637_v52, %v641_v53 }
  0x82   : > { %1198 = vadd.xlane.f32.xlu1 %v1197_v3  ;;  %1195 = vadd.xlane.f32.xlu0 %v1194_v4 }
  0x86   : > { %1204 = vadd.xlane.f32.xlu1 %v1203_v12  ;;  %1201 = vadd.xlane.f32.xlu0 %v1200_v13 }
  0x8a   : > { %1210 = vadd.xlane.f32.xlu1 %v1209_v20  ;;  %1207 = vadd.xlane.f32.xlu0 %v1206_v21 }
  0x8e   : > { %1216 = vadd.xlane.f32.xlu1 %v1215_v30  ;;  %1213 = vadd.xlane.f32.xlu0 %v1212_v31 }
  0x92   : > { %1222 = vadd.xlane.f32.xlu1 %v1221_v36  ;;  %1219 = vadd.xlane.f32.xlu0 %v1218_v37 }
  0xab   : > { %v525_v38 = vpop.xlane.xlu1 %524  ;;  %v518_v39 = vpop.xlane.xlu0 %517 }
  0xac   : > { %v579_v43 = vmax.f32 %v525_v38, 1e-24  ;;  %v577_v54 = vmax.f32 %v518_v39, 1e-24 }
  0xae   : > { %3619 = vrsqrt.f32 %v579_v43 }
  0xaf   : > { %v528_v44 = vpop.xlane.xlu1 %527  ;;  %v522_v45 = vpop.xlane.xlu0 %521 }
  0xb0   : > { %v578_v56 = vmax.f32 %v522_v45, 1e-24  ;;  %v580_v63 = vmax.f32 %v528_v44, 1e-24 }
  0xb3   : > { %v534_v50 = vpop.xlane.xlu1 %533  ;;  %v531_v51 = vpop.xlane.xlu0 %530 }
  0xb4   : > { %v581_v55 = vmax.f32 %v531_v51, 1e-24  ;;  %v582_v10 = vmax.f32 %v534_v50, 1e-24 }
  0xb6   : > { %3621 = vrsqrt.f32 %v581_v55 }
  0xb7   : > { %v540_v57 = vpop.xlane.xlu1 %539  ;;  %v537_v58 = vpop.xlane.xlu0 %536  ;;  %3623 = vrsqrt.f32 %v577_v54 }
  0xb8   : > { %v3620_v60 = vpop.eup %3619  ;;  %v583_v61 = vmax.f32 %v537_v58, 1e-24  ;;  %3625 = vrsqrt.f32 %v578_v56  ;;  %v584_v30 = vmax.f32 %v540_v57, 1e-24 }
  0xb9   : > { %v619_v62 = vmul.f32 %v3620_v60, %v4174_v0 }
  0xba   : > { %3627 = vrsqrt.f32 %v583_v61 }
  0xbb   : > { %v546_v3 = vpop.xlane.xlu1 %545  ;;  %v543_v4 = vpop.xlane.xlu0 %542  ;;  %v4386_v5 = vmul.f32 %v4382_v59, %v619_v62  ;;  %3629 = vrsqrt.f32 %v580_v63 }
  0xbc   : > { %v585_v7 = vmax.f32 %v543_v4, 1e-24  ;;  %v586_v27 = vmax.f32 %v546_v3, 1e-24 }
  0xbd   : > { %v3363_v11 = vmul.f32 -1.442695, %v4386_v5 }
  0xbe   : > { %3631 = vrsqrt.f32 %v585_v7 }
  0xbf   : > { %v549_v12 = vpop.xlane.xlu0 %548  ;;  %3633 = vpow2.f32 %v3363_v11  ;;  %v552_v0 = vpop.xlane.xlu1 %551 }
  0xc0   : > { %v587_v13 = vmax.f32 %v549_v12, 1e-24  ;;  %v3622_v14 = vpop.eup %3621  ;;  %3635 = vrsqrt.f32 %v582_v10  ;;  %v588_v55 = vmax.f32 %v552_v0, 1e-24 }
  0xc1   : > { %v3624_v15 = vpop.eup %3623  ;;  %v621_v18 = vmul.f32 %v3622_v14, %v4197_v9 }
  0xc2   : > { %3637 = vrsqrt.f32 %v587_v13  ;;  %v3626_v20 = vpop.eup %3625  ;;  %v617_v26 = vmul.f32 %v3624_v15, %v4177_v1 }
  0xc3   : > { %v555_v19 = vpop.xlane.xlu0 %554  ;;  %v4391_v24 = vmul.f32 %v4382_v59, %v621_v18  ;;  %v558_v33 = vpop.xlane.xlu1 %557  ;;  %v618_v9 = vmul.f32 %v3626_v20, %v4189_v6 }
  0xc4   : > { %v589_v21 = vmax.f32 %v555_v19, 1e-24  ;;  %v3628_v25 = vpop.eup %3627  ;;  %v4401_v1 = vmul.f32 %v4382_v59, %v617_v26  ;;  %v590_v44 = vmax.f32 %v558_v33, 1e-24 }
  0xc5   : > { %v623_v31 = vmul.f32 %v3628_v25, %v4211_v17  ;;  %v3365_v32 = vmul.f32 -1.442695, %v4391_v24  ;;  %v3630_v37 = vpop.eup %3629  ;;  %v4406_v50 = vmul.f32 %v4382_v59, %v618_v9 }
  0xc6   : > { %3639 = vrsqrt.f32 %v589_v21  ;;  %v620_v51 = vmul.f32 %v3630_v37, %v4180_v2 }
  0xc7   : > { %v561_v36 = vpop.xlane.xlu0 %560  ;;  %3641 = vpow2.f32 %v3365_v32  ;;  %v4398_v39 = vmul.f32 %v4382_v59, %v623_v31  ;;  %v3362_v2 = vmul.f32 -1.442695, %v4406_v50  ;;  %v564_v12 = vpop.xlane.xlu1 %563 }
  0xc8   : > { %v591_v38 = vmax.f32 %v561_v36, 1e-24  ;;  %v3632_v42 = vpop.eup %3631  ;;  %3643 = vrsqrt.f32 %v586_v27  ;;  %v4418_v60 = vmul.f32 %v4382_v59, %v620_v51  ;;  %v592_v21 = vmax.f32 %v564_v12, 1e-24 }
  0xc9   : > { %v3634_v43 = vpop.eup %3633  ;;  %3645 = vrsqrt.f32 %v584_v30  ;;  %v625_v17 = vmul.f32 %v3632_v42, %v4223_v23  ;;  %v3367_v45 = vmul.f32 -1.442695, %v4398_v39  ;;  %v3361_v23 = vmul.f32 -1.442695, %v4401_v1 }
  0xca   : > { %v3636_v48 = vpop.eup %3635  ;;  %3647 = vrsqrt.f32 %v591_v38  ;;  %v726_v49 = vadd.f32 1.0, %v3634_v43  ;;  %v3364_v10 = vmul.f32 -1.442695, %v4418_v60 }
  0xcb   : > { %v567_v6 = vpop.xlane.xlu0 %566  ;;  %3649 = vpow2.f32 %v3367_v45  ;;  %v4410_v53 = vmul.f32 %v4382_v59, %v625_v17  ;;  %v622_v58 = vmul.f32 %v3636_v48, %v4194_v8 }
  0xcc   : > { %v593_v52 = vmax.f32 %v567_v6, 1e-24  ;;  %v3638_v54 = vpop.eup %3637  ;;  %3651 = vrcp.f32 %v726_v49  ;;  %v4458_v6 = vpop.xlane.xlu1 %569 }
  0xcd   : > { %v627_v56 = vmul.f32 %v3638_v54, %v4236_v29  ;;  %3653 = vrsqrt.f32 %v590_v44  ;;  %v3369_v57 = vmul.f32 -1.442695, %v4410_v53  ;;  %v4426_v8 = vmul.f32 %v4382_v59, %v622_v58 }
  0xce   : > { %3655 = vrsqrt.f32 %v593_v52 }
  0xcf   : > { %3657 = vpow2.f32 %v3369_v57  ;;  %v4421_v61 = vmul.f32 %v4382_v59, %v627_v56  ;;  %v3366_v19 = vmul.f32 -1.442695, %v4426_v8  ;;  %v4463_v49 = vpop.xlane.xlu0 %572 }
  0xd0   : > { %v3640_v62 = vpop.eup %3639  ;;  %3659 = vpow2.f32 %v3361_v23 }
  0xd1   : > { %v3642_v63 = vpop.eup %3641  ;;  %3661 = vrsqrt.f32 %v588_v55  ;;  %v629_v29 = vmul.f32 %v3640_v62, %v4248_v35  ;;  %v3371_v3 = vmul.f32 -1.442695, %v4421_v61  ;;  %v4472_v62 = vpop.xlane.xlu1 %575 }
  0xd2   : > { %v3644_v4 = vpop.eup %3643  ;;  %v728_v7 = vadd.f32 1.0, %v3642_v63  ;;  %3663 = vpow2.f32 %v3362_v2 }
  0xd3   : > { %v3646_v11 = vpop.eup %3645  ;;  %3665 = vpow2.f32 %v3371_v3  ;;  %v4430_v13 = vmul.f32 %v4382_v59, %v629_v29  ;;  %v626_v18 = vmul.f32 %v3644_v4, %v4220_v22 }
  0xd4   : > { %v3648_v14 = vpop.eup %3647  ;;  %3667 = vrcp.f32 %v728_v7  ;;  %v624_v52 = vmul.f32 %v3646_v11, %v4208_v16  ;;  %v4480_v7 = vpop.xlane.xlu0 %845 }
  0xd5   : > { %v3650_v0 = vpop.eup %3649  ;;  %v631_v35 = vmul.f32 %v3648_v14, %v4260_v41  ;;  %v3373_v15 = vmul.f32 -1.442695, %v4430_v13  ;;  %3669 = vpow2.f32 %v3364_v10  ;;  %v4447_v33 = vmul.f32 %v4382_v59, %v626_v18 }
  0xd6   : > { %v3652_v20 = vpop.eup %3651  ;;  %v730_v25 = vadd.f32 1.0, %v3650_v0  ;;  %v4475_v63 = vmul.f32 %v4382_v59, %v624_v52 }
  0xd7   : > { %v3654_v26 = vpop.eup %3653  ;;  %v4437_v27 = vmul.f32 %v3652_v20, %v4386_v5  ;;  %3671 = vpow2.f32 %v3373_v15  ;;  %v4440_v30 = vmul.f32 %v4382_v59, %v631_v35  ;;  %v4491_v35 = vpop.xlane.xlu1 %848 }
  0xd8   : > { %v3656_v31 = vpop.eup %3655  ;;  %3673 = vrcp.f32 %v730_v25  ;;  %v630_v9 = vmul.f32 %v3654_v26, %v4245_v34  ;;  %v3368_v14 = vmul.f32 -1.442695, %v4475_v63 }
  0xd9   : > { %6869 = vst [vmem:[#allocation2_spill] sm:$0xff] %v4437_v27  ;;  %v3658_v41 = vpop.eup %3657  ;;  %1559 = vrot.lane.b32.xlu0 %v4437_v27, %s4061_s27  ;;  %v3375_v22 = vmul.f32 -1.442695, %v4440_v30  ;;  %v633_v32 = vmul.f32 %v3656_v31, %v4273_v47  ;;  %3675 = vpow2.f32 %v3366_v19  ;;  %v3370_v47 = vmul.f32 -1.442695, %v4447_v33 }
  0xda   : > { %v3660_v5 = vpop.eup %3659  ;;  %3677 = vrsqrt.f32 %v592_v21  ;;  %v732_v36 = vadd.f32 1.0, %v3658_v41  ;;  %v4456_v48 = vmul.f32 %v4382_v59, %v630_v9  ;;  %v4497_v21 = vpop.xlane.xlu0 %851 }
  0xdb   : > { %v3662_v37 = vpop.eup %3661  ;;  %3679 = vpow2.f32 %v3375_v22  ;;  %v4451_v38 = vmul.f32 %v4382_v59, %v633_v32  ;;  %v724_v23 = vadd.f32 1.0, %v3660_v5  ;;  %v4508_v32 = vpop.xlane.xlu1 %854 }
  0xdc   : > { %v3664_v42 = vpop.eup %3663  ;;  %3681 = vrcp.f32 %v732_v36  ;;  %v3374_v58 = vmul.f32 -1.442695, %v4456_v48  ;;  %v628_v3 = vmul.f32 %v3662_v37, %v4233_v28 }
  0xdd   : > { %v3666_v43 = vpop.eup %3665  ;;  %v3377_v17 = vmul.f32 -1.442695, %v4451_v38  ;;  %v725_v51 = vadd.f32 1.0, %v3664_v42 }
  0xde   : > { %v3668_v44 = vpop.eup %3667  ;;  %v734_v45 = vadd.f32 1.0, %v3666_v43  ;;  %v4487_v28 = vmul.f32 %v4382_v59, %v628_v3  ;;  %v4515_v37 = vpop.xlane.xlu0 %857  ;;  %v1464_v3 = vrot.slane %v4437_v27, 1 }
  0xdf   : > { %v4461_v34 = vmul.f32 %v3668_v44, %v4391_v24  ;;  %3683 = vpow2.f32 %v3377_v17  ;;  %v3670_v54 = vpop.eup %3669  ;;  %v4530_v52 = vpop.xlane.xlu1 %860 }
  0xe0   : > { %3685 = vrcp.f32 %v734_v45  ;;  %v727_v16 = vadd.f32 1.0, %v3670_v54  ;;  %v3372_v26 = vmul.f32 -1.442695, %v4487_v28 }
  0xe1   : > { %6870 = vst [vmem:[#allocation3_spill] sm:$0xff] %v4461_v34  ;;  %v3672_v55 = vpop.eup %3671  ;;  %1561 = vrot.lane.b32.xlu1 %v4461_v34, %s4061_s27  ;;  %3687 = vpow2.f32 %v3370_v47 }
  0xe2   : > { %v3674_v56 = vpop.eup %3673  ;;  %v736_v57 = vadd.f32 1.0, %v3672_v55  ;;  %3689 = vrcp.f32 %v725_v51 }
  0xe3   : > { %v3676_v24 = vpop.eup %3675  ;;  %v4470_v2 = vmul.f32 %v3674_v56, %v4398_v39 }
  0xe4   : > { %v3678_v29 = vpop.eup %3677  ;;  %3691 = vrcp.f32 %v736_v57  ;;  %v729_v11 = vadd.f32 1.0, %v3676_v24 }
  0xe5   : > { %6871 = vst [vmem:[#allocation4_spill] sm:$0xff] %v4470_v2  ;;  %v3680_v4 = vpop.eup %3679  ;;  %1563 = vrot.lane.b32.xlu0 %v4470_v2, %s4061_s27  ;;  %3693 = vrcp.f32 %v724_v23  ;;  %v632_v15 = vmul.f32 %v3678_v29, %v4257_v40  ;;  %v4536_v23 = vpop.xlane.xlu0 %863  ;;  %v594_v29 = vmax.f32 %v4458_v6, 1e-24 }
  0xe6   : > { %v3682_v39 = vpop.eup %3681  ;;  %v738_v10 = vadd.f32 1.0, %v3680_v4  ;;  %3695 = vpow2.f32 %v3374_v58 }
  0xe7   : > { %v4483_v12 = vmul.f32 %v3682_v39, %v4410_v53  ;;  %3697 = vrcp.f32 %v727_v16  ;;  %v4503_v40 = vmul.f32 %v4382_v59, %v632_v15 }
  0xe8   : > { %3699 = vrcp.f32 %v738_v10 }
  0xe9   : > { %6872 = vst [vmem:[#allocation5_spill] sm:$0xff] %v4483_v12  ;;  %v3684_v0 = vpop.eup %3683  ;;  %1565 = vrot.lane.b32.xlu1 %v4483_v12, %s4061_s27  ;;  %3701 = vrcp.f32 %v729_v11  ;;  %v3376_v43 = vmul.f32 -1.442695, %v4503_v40  ;;  %v1467_v11 = vrot.slane %v4461_v34, 1  ;;  %v4562_v6 = vpop.xlane.xlu0 %869 }
  0xea   : > { %v3686_v18 = vpop.eup %3685  ;;  %v740_v19 = vadd.f32 1.0, %v3684_v0  ;;  %3703 = vpow2.f32 %v3368_v14 }
  0xeb   : > { %v3688_v53 = vpop.eup %3687  ;;  %v4495_v20 = vmul.f32 %v3686_v18, %v4421_v61 }
  0xec   : > { %3705 = vrcp.f32 %v740_v19  ;;  %v733_v25 = vadd.f32 1.0, %v3688_v53  ;;  %v3690_v31 = vpop.eup %3689 }
  0xed   : > { %6873 = vst [vmem:[#allocation6_spill] sm:$0xff] %v4495_v20  ;;  %1567 = vrot.lane.b32.xlu0 %v4495_v20, %s4061_s27  ;;  %v4511_v36 = vmul.f32 %v3690_v31, %v4406_v50 }
  0xee   : > { %v3692_v41 = vpop.eup %3691  ;;  %3707 = vrcp.f32 %v733_v25 }
  0xef   : > { %v3694_v22 = vpop.eup %3693  ;;  %v4506_v61 = vmul.f32 %v3692_v41, %v4430_v13  ;;  %3709 = vpow2.f32 %v3372_v26  ;;  %v1462_v44 = vrot.slane %v4511_v36, 1 }
  0xf0   : > { %v3696_v5 = vpop.eup %3695  ;;  %v4519_v13 = vmul.f32 %v3694_v22, %v4401_v1 }
  0xf1   : > { %6874 = vst [vmem:[#allocation7_spill] sm:$0xff] %v4506_v61  ;;  %v3698_v9 = vpop.eup %3697  ;;  %1569 = vrot.lane.b32.xlu1 %v4506_v61, %s4061_s27  ;;  %v737_v42 = vadd.f32 1.0, %v3696_v5  ;;  %v1479_v18 = vrot.slane %v4506_v61, 1  ;;  %v1511_v5 = vrot.slane %v4511_v36, 2 }
  0xf2   : > { %v3700_v17 = vpop.eup %3699  ;;  %6875 = vst [vmem:[#allocation8_spill] sm:$0xff] %v4519_v13  ;;  %v4526_v45 = vmul.f32 %v3698_v9, %v4418_v60  ;;  %v1461_v54 = vrot.slane %v4519_v13, 1  ;;  %v1470_v9 = vrot.slane %v4470_v2, 1 }
  0xf3   : > { %v4522_v47 = vmul.f32 %v3700_v17, %v4440_v30  ;;  %3711 = vrcp.f32 %v737_v42  ;;  %v3702_v50 = vpop.eup %3701  ;;  %v4583_v42 = vpop.xlane.xlu0 %875 }
  0xf4   : > { %v3704_v51 = vpop.eup %3703  ;;  %3713 = vpow2.f32 %v3376_v43  ;;  %v1463_v60 = vsel %vm1460_vm2, %v1461_v54, %v1462_v44  ;;  %v1465_v57 = vrot.slane %v4526_v45, 1  ;;  %v789_v58 = vmul.f32 %v3702_v50, %v4426_v8  ;;  %v4551_v8 = vpop.xlane.xlu1 %866 }
  0xf5   : > { %6876 = vst [vmem:[#allocation9_spill] sm:$0xff] %v4522_v47  ;;  %1571 = vrot.lane.b32.xlu0 %v4522_v47, %s4061_s27  ;;  %v731_v30 = vadd.f32 1.0, %v3704_v51  ;;  %v1510_v43 = vrot.slane %v4519_v13, 2  ;;  %v1516_v44 = vrot.slane %v4461_v34, 2 }
  0xf6   : > { %v3706_v1 = vpop.eup %3705  ;;  %v4554_v10 = vsel %vm1460_vm2, %v1464_v3, %v1465_v57  ;;  %v1468_v14 = vrot.slane %v789_v58, 1  ;;  %v1517_v51 = vrot.slane %v789_v58, 2 }
  0xf7   : > { %v4534_v55 = vmul.f32 %v3706_v1, %v4451_v38  ;;  %3715 = vrcp.f32 %v731_v30  ;;  %v1473_v38 = vrot.slane %v4483_v12, 1  ;;  %v1512_v50 = vsel %vm1509_vm3, %v1510_v43, %v1511_v5 }
  0xf8   : > { %v3708_v56 = vpop.eup %3707  ;;  %v4569_v25 = vsel %vm1460_vm2, %v1467_v11, %v1468_v14  ;;  %v4573_v31 = vpop.xlane.xlu1 %872  ;;  %v4601_v57 = vsel %vm1509_vm3, %v1516_v44, %v1517_v51  ;;  %v1482_v14 = vrot.slane %v4522_v47, 1  ;;  %v1513_v5 = vrot.slane %v4437_v27, 2 }
  0xf9   : > { %1485 = vrot.lane.b32.xlu0 %v1463_v60, %s4062_s28  ;;  %1573 = vrot.lane.b32.xlu1 %v4534_v55, %s4061_s27  ;;  %v4545_v24 = vmul.f32 %v3708_v56, %v4447_v33  ;;  %v3710_v16 = vpop.eup %3709  ;;  %v1476_v56 = vrot.slane %v4495_v20, 1  ;;  %v4598_v60 = vpop.xlane.xlu0 %881 }
  0xfa   : > { %v735_v39 = vadd.f32 1.0, %v3710_v16 }
  0xfb   : > { %v1474_v4 = vrot.slane %v4545_v24, 1  ;;  %v1523_v16 = vrot.slane %v4545_v24, 2 }
  0xfc   : > { %3717 = vrcp.f32 %v735_v39  ;;  %v1528_v39 = vrot.slane %v4506_v61, 2 }
  0xfd   : > { %v3712_v33 = vpop.eup %3711  ;;  %v4558_v0 = vsel %vm1460_vm2, %v1473_v38, %v1474_v4  ;;  %1487 = vrot.lane.b32.xlu1 %v4554_v10, %s4062_s28  ;;  %3719 = vrsqrt.f32 %v594_v29  ;;  %v1522_v38 = vrot.slane %v4483_v12, 2 }
  0xfe   : > { %1493 = vrot.lane.b32.xlu0 %v4558_v0, %s4062_s28  ;;  %v797_v15 = vmul.f32 %v3712_v33, %v4456_v48  ;;  %v3714_v19 = vpop.eup %3713 }
  0xff   : > { %v739_v26 = vadd.f32 1.0, %v3714_v19  ;;  %v4617_v11 = vsel %vm1509_vm3, %v1522_v38, %v1523_v16 }
 0x100   : > { %v1480_v53 = vrot.slane %v797_v15, 1  ;;  %v1529_v33 = vrot.slane %v797_v15, 2 }
 0x101   : > { %1489 = vrot.lane.b32.xlu1 %v4569_v25, %s4062_s28  ;;  %v3716_v41 = vpop.eup %3715  ;;  %3721 = vrcp.f32 %v739_v26 }
 0x102   : > { %v4576_v22 = vsel %vm1460_vm2, %v1479_v18, %v1480_v53  ;;  %v791_v48 = vmul.f32 %v3716_v41, %v4475_v63  ;;  %v4592_v63 = vpop.xlane.xlu1 %878  ;;  %v4632_v26 = vsel %vm1509_vm3, %v1528_v39, %v1529_v33 }
 0x103   : > { %1497 = vrot.lane.b32.xlu0 %v4576_v22, %s4062_s28 }
 0x104   : > { %v1471_v17 = vrot.slane %v791_v48, 1 }
 0x106   : > { %v3718_v36 = vpop.eup %3717  ;;  %v4590_v1 = vsel %vm1460_vm2, %v1470_v9, %v1471_v17  ;;  %v4613_v4 = vpop.xlane.xlu1 %884  ;;  %v1519_v17 = vrot.slane %v4470_v2, 2 }
 0x107   : > { %1534 = vrot.lane.b32.xlu0 %v1512_v50, %s4063_s29  ;;  %v3720_v54 = vpop.eup %3719  ;;  %1491 = vrot.lane.b32.xlu1 %v4590_v1, %s4062_s28  ;;  %v795_v30 = vmul.f32 %v3718_v36, %v4487_v28  ;;  %v1520_v50 = vrot.slane %v791_v48, 2  ;;  %v1525_v36 = vrot.slane %v4495_v20, 2  ;;  %v1531_v48 = vrot.slane %v4522_v47, 2 }
 0x108   : > { %v634_v29 = vmul.f32 %v3720_v54, %v4270_v46  ;;  %v4623_v46 = vpop.xlane.xlu0 %887 }
 0x109   : > { %v1477_v58 = vrot.slane %v795_v30, 1  ;;  %v4654_v51 = vsel %vm1509_vm3, %v1519_v17, %v1520_v50  ;;  %v1526_v54 = vrot.slane %v795_v30, 2 }
 0x10a   : > { %v4626_v18 = vmul.f32 %v4382_v59, %v634_v29  ;;  %v4637_v15 = vpop.xlane.xlu1 %890 }
 0x10b   : > { %1538 = vrot.lane.b32.xlu0 %v4601_v57, %s4063_s29  ;;  %v4609_v3 = vsel %vm1460_vm2, %v1476_v56, %v1477_v58  ;;  %v3722_v28 = vpop.eup %3721  ;;  %v596_v58 = vmax.f32 %v4472_v62, 1e-24 }
 0x10c   : > { %1495 = vrot.lane.b32.xlu1 %v4609_v3, %s4062_s28  ;;  %v799_v24 = vmul.f32 %v3722_v28, %v4503_v40  ;;  %v1514_v40 = vrot.slane %v4526_v45, 2  ;;  %v3378_v41 = vmul.f32 -1.442695, %v4626_v18  ;;  %v4643_v9 = vpop.xlane.xlu0 %893  ;;  %v595_v45 = vmax.f32 %v4463_v49, 1e-24 }
 0x10e   : > { %v1483_v19 = vrot.slane %v799_v24, 1  ;;  %v1515_v43 = vsel %vm1509_vm3, %v1513_v5, %v1514_v40  ;;  %3723 = vpow2.f32 %v3378_v41  ;;  %v4651_v44 = vpop.xlane.xlu1 %896  ;;  %v1532_v56 = vrot.slane %v799_v24, 2 }
 0x10f   : > { %1542 = vrot.lane.b32.xlu0 %v4617_v11, %s4063_s29  ;;  %3725 = vrsqrt.f32 %v595_v45  ;;  %v908_v40 = vmax.f32 %v4515_v37, 1e-24  ;;  %v1584_v45 = vrot.slane %v4534_v55, 1 }
 0x110   : > { %v4629_v53 = vsel %vm1460_vm2, %v1482_v14, %v1483_v19  ;;  %v4661_v49 = vpop.xlane.xlu0 %899  ;;  %v4677_v29 = vsel %vm1509_vm3, %v1531_v48, %v1532_v56  ;;  %3727 = vrsqrt.f32 %v596_v58  ;;  %v3979_v14 = vld [vmem:[%s4171_s23 + $0x90] sm:$0xff]  ;;  %v904_v19 = vmax.f32 %v4480_v7, 1e-24 }
 0x111   : > { %1499 = vrot.lane.b32.xlu1 %v4629_v53, %s4062_s28  ;;  %v912_v7 = vmax.f32 %v4562_v6, 1e-24  ;;  %v905_v6 = vmax.f32 %v4491_v35, 1e-24  ;;  %v909_v35 = vmax.f32 %v4530_v52, 1e-24 }
 0x112   : > { %v4668_v38 = vpop.xlane.xlu1 %902 }
 0x113   : > { %1546 = vrot.lane.b32.xlu0 %v4632_v26, %s4063_s29 }
 0x114   : > { %v4674_v16 = vpop.xlane.xlu0 %1165 }
 0x115   : > { %1536 = vrot.lane.b32.xlu1 %v1515_v43, %s4063_s29 }
 0x116   : > { %v4683_v39 = vpop.xlane.xlu1 %1168 }
 0x117   : > { %1587 = vrot.lane.b32.xlu0 %v4554_v10, %s4064_s18  ;;  %v4664_v10 = vsel %vm1509_vm3, %v1525_v36, %v1526_v54  ;;  %v3980_v54 = vld [vmem:[%s4171_s23 + $0x98] sm:$0x3]  ;;  %s4066_s23 = smov 24  }
 0x118   : > { %v3724_v30 = vpop.eup %3723  ;;  %v4687_v24 = vpop.xlane.xlu0 %1171 }
 0x119   : > { %1540 = vrot.lane.b32.xlu1 %v4654_v51, %s4063_s29  ;;  %v741_v28 = vadd.f32 1.0, %v3724_v30  ;;  %v3726_v62 = vpop.eup %3725 }
 0x11a   : > { %v635_v33 = vmul.f32 %v3979_v14, %v3726_v62  ;;  %v4693_v41 = vpop.xlane.xlu1 %1174  ;;  %v3728_v17 = vpop.eup %3727 }
 0x11b   : > { %1591 = vrot.lane.b32.xlu0 %v4590_v1, %s4064_s18  ;;  %3729 = vrcp.f32 %v741_v28  ;;  %v636_v48 = vmul.f32 %v3980_v54, %v3728_v17 }
 0x11c   : > { %v4700_v5 = vmul.f32 %v4382_v59, %v635_v33  ;;  %3731 = vrsqrt.f32 %v904_v19  ;;  %v906_v33 = vmax.f32 %v4497_v21, 1e-24  ;;  %v3981_v21 = vld [vmem:[%s4286_s16] sm:$0xff] }
 0x11d   : > { %1544 = vrot.lane.b32.xlu1 %v4664_v10, %s4063_s29  ;;  %3733 = vrsqrt.f32 %v908_v40  ;;  %v4730_v62 = vmul.f32 %v4382_v59, %v636_v48  ;;  %v910_v40 = vmax.f32 %v4536_v23, 1e-24 }
 0x11e   : > { %v3379_v36 = vmul.f32 -1.442695, %v4700_v5  ;;  %v4715_v56 = vpop.xlane.xlu1 %1180  ;;  %3735 = vrsqrt.f32 %v912_v7  ;;  %v913_v7 = vmax.f32 %v4573_v31, 1e-24  ;;  %v917_v31 = vmax.f32 %v4613_v4, 1e-24 }
 0x11f   : > { %1595 = vrot.lane.b32.xlu0 %v4609_v3, %s4064_s18  ;;  %v3380_v52 = vmul.f32 -1.442695, %v4730_v62 }
 0x120   : > { %3737 = vpow2.f32 %v3379_v36 }
 0x121   : > { %1548 = vrot.lane.b32.xlu1 %v4677_v29, %s4063_s29  ;;  %3739 = vrsqrt.f32 %v905_v6 }
 0x122   : > { %v4734_v19 = vpop.xlane.xlu1 %1186 }
 0x123   : > { %1599 = vrot.lane.b32.xlu0 %v4629_v53, %s4064_s18 }
 0x125   : > { %1589 = vrot.lane.b32.xlu1 %v4569_v25, %s4064_s18  ;;  %v3730_v50 = vpop.eup %3729 }
 0x126   : > { %v4710_v37 = vmul.f32 %v3730_v50, %v4626_v18  ;;  %v916_v18 = vmax.f32 %v4598_v60, 1e-24  ;;  %v3732_v14 = vpop.eup %3731  ;;  %v4751_v54 = vpop.xlane.xlu1 %1192 }
 0x127   : > { %1614 = vrot.lane.b32.xlu0 %v1515_v43, %s4065_s19  ;;  %v4702_v43 = vpop.xlane.xlu0 %1177  ;;  %v3734_v60 = vpop.eup %3733  ;;  %v944_v50 = vmul.f32 %v3981_v21, %v3732_v14 }
 0x128   : > { %v1585_v58 = vrot.slane %v4710_v37, 1  ;;  %3741 = vrsqrt.f32 %v916_v18  ;;  %v3736_v36 = vpop.eup %3735  ;;  %v1612_v14 = vrot.slane %v4710_v37, 2 }
 0x129   : > { %1593 = vrot.lane.b32.xlu1 %v4558_v0, %s4064_s18  ;;  %3743 = vrsqrt.f32 %v909_v35  ;;  %v4755_v6 = vmul.f32 %v944_v50, %v4382_v59  ;;  %v1611_v35 = vrot.slane %v4534_v55, 2  ;;  %v907_v50 = vmax.f32 %v4508_v32, 1e-24 }
 0x12a   : > { %v4722_v28 = vsel %vm1460_vm2, %v1584_v45, %v1585_v58  ;;  %3745 = vrsqrt.f32 %v906_v33  ;;  %v3982_v45 = vld [vmem:[%s4286_s16 + $0x20] sm:$0xff]  ;;  %v3738_v48 = vpop.eup %3737  ;;  %v914_v58 = vmax.f32 %v4583_v42, 1e-24  ;;  %v4772_v37 = vpop.xlane.xlu1 %1198 }
 0x12b   : > { %1618 = vrot.lane.b32.xlu0 %v4654_v51, %s4065_s19  ;;  %v4719_v30 = vpop.xlane.xlu0 %1183  ;;  %v948_v23 = vmul.f32 %v3982_v45, %v3734_v60  ;;  %3747 = vrsqrt.f32 %v910_v40  ;;  %v3740_v42 = vpop.eup %3739  ;;  %v3983_v40 = vld [vmem:[%s4286_s16 + $0x40] sm:$0xff]  ;;  %v742_v4 = vadd.f32 1.0, %v3738_v48 }
 0x12c   : > { %3749 = vpow2.f32 %v3380_v52  ;;  %v952_v60 = vmul.f32 %v3983_v40, %v3736_v36  ;;  %v3381_v52 = vmul.f32 -1.442695, %v4755_v6 }
 0x12d   : > { %1597 = vrot.lane.b32.xlu1 %v4576_v22, %s4064_s18  ;;  %3751 = vrsqrt.f32 %v913_v7  ;;  %v4765_v33 = vmul.f32 %v948_v23, %v4382_v59  ;;  %v4775_v7 = vsel %vm1509_vm3, %v1611_v35, %v1612_v14  ;;  %v3984_v23 = vld [vmem:[%s4286_s16 + $0x8] sm:$0x3]  ;;  %v3985_v14 = vld [vmem:[%s4286_s16 + $0x60] sm:$0xff] }
 0x12e   : > { %3753 = vrsqrt.f32 %v914_v58  ;;  %v945_v36 = vmul.f32 %v3984_v23, %v3740_v42  ;;  %v4784_v58 = vmul.f32 %v952_v60, %v4382_v59  ;;  %v3986_v23 = vld [vmem:[%s4286_s16 + $0x28] sm:$0x3] }
 0x12f   : > { %1622 = vrot.lane.b32.xlu0 %v4664_v10, %s4065_s19  ;;  %v4741_v17 = vpop.xlane.xlu0 %1189  ;;  %3755 = vrsqrt.f32 %v917_v31  ;;  %v3385_v48 = vmul.f32 -1.442695, %v4765_v33  ;;  %v918_v31 = vmax.f32 %v4623_v46, 1e-24  ;;  %v911_v46 = vmax.f32 %v4551_v8, 1e-24 }
 0x130   : > { %3757 = vrcp.f32 %v742_v4  ;;  %v4797_v60 = vmul.f32 %v945_v36, %v4382_v59  ;;  %v3988_v8 = vld [vmem:[%s4286_s16 + $0x10] sm:$0xff] }
 0x131   : > { %1601 = vrot.lane.b32.xlu1 %v4722_v28, %s4064_s18  ;;  %3759 = vpow2.f32 %v3381_v52  ;;  %v3987_v52 = vld [vmem:[%s4286_s16 + $0x30] sm:$0xff] }
 0x132   : > { %v3742_v21 = vpop.eup %3741  ;;  %3761 = vrsqrt.f32 %v907_v50  ;;  %v3389_v50 = vmul.f32 -1.442695, %v4784_v58 }
 0x133   : > { %1626 = vrot.lane.b32.xlu0 %v4677_v29, %s4065_s19  ;;  %v4758_v18 = vpop.xlane.xlu0 %1195  ;;  %v3744_v45 = vpop.eup %3743  ;;  %v956_v40 = vmul.f32 %v3985_v14, %v3742_v21  ;;  %3763 = vpow2.f32 %v3385_v48 }
 0x134   : > { %v3746_v32 = vpop.eup %3745  ;;  %3765 = vrsqrt.f32 %v918_v31 }
 0x135   : > { %1616 = vrot.lane.b32.xlu1 %v4601_v57, %s4065_s19  ;;  %v946_v14 = vmul.f32 %v3988_v8, %v3746_v32  ;;  %3767 = vrsqrt.f32 %v911_v46  ;;  %v3382_v32 = vmul.f32 -1.442695, %v4797_v60 }
 0x136   : > { %3769 = vpow2.f32 %v3389_v50 }
 0x137   : > { %1639 = vrot.lane.b32.xlu0 %v4461_v34, %s4066_s23  ;;  %v4787_v35 = vpop.xlane.xlu0 %1201 }
 0x139   : > { %1620 = vrot.lane.b32.xlu1 %v4617_v11, %s4065_s19 }
 0x13b   : > { %1643 = vrot.lane.b32.xlu0 %v4483_v12, %s4066_s23  ;;  %v4808_v12 = vpop.xlane.xlu0 %1207 }
 0x13d   : > { %1624 = vrot.lane.b32.xlu1 %v4632_v26, %s4065_s19 }
 0x13f   : > { %1647 = vrot.lane.b32.xlu0 %v4506_v61, %s4066_s23  ;;  %v949_v61 = vmul.f32 %v3986_v23, %v3744_v45  ;;  %v4801_v45 = vpop.xlane.xlu1 %1204  ;;  %v915_v23 = vmax.f32 %v4592_v63, 1e-24 }
 0x141   : > { %1628 = vrot.lane.b32.xlu1 %v4775_v7, %s4065_s19  ;;  %v4813_v36 = vmul.f32 %v949_v61, %v4382_v59 }
 0x143   : > { %1651 = vrot.lane.b32.xlu0 %v4534_v55, %s4066_s23  ;;  %v3748_v55 = vpop.eup %3747 }
 0x144   : > { %v3750_v42 = vpop.eup %3749  ;;  %v950_v21 = vmul.f32 %v3987_v52, %v3748_v55  ;;  %v3989_v55 = vld [vmem:[%s4286_s16 + $0x48] sm:$0x3] }
 0x145   : > { %1641 = vrot.lane.b32.xlu1 %v4470_v2, %s4066_s23  ;;  %v3752_v4 = vpop.eup %3751  ;;  %v743_v48 = vadd.f32 1.0, %v3750_v42  ;;  %v4825_v42 = vmul.f32 %v946_v14, %v4382_v59  ;;  %v3993_v2 = vld [vmem:[%s4286_s16 + $0x70] sm:$0xff] }
 0x146   : > { %v3754_v31 = vpop.eup %3753  ;;  %v953_v52 = vmul.f32 %v3989_v55, %v3752_v4  ;;  %v3990_v4 = vld [vmem:[%s4286_s16 + $0x50] sm:$0xff]  ;;  %v4828_v55 = vpop.xlane.xlu1 %1210 }
 0x147   : > { %1667 = vrot.lane.b32.xlu0 %v4569_v25, %s4067_s20  ;;  %v4804_v25 = vmul.f32 %v956_v40, %v4382_v59  ;;  %v3756_v63 = vpop.eup %3755  ;;  %v4820_v40 = vmul.f32 %v950_v21, %v4382_v59  ;;  %3771 = vrcp.f32 %v743_v48  ;;  %v954_v8 = vmul.f32 %v3990_v4, %v3754_v31  ;;  %v4840_v31 = vpop.xlane.xlu0 %1213 }
 0x148   : > { %v3758_v46 = vpop.eup %3757  ;;  %3773 = vrsqrt.f32 %v915_v23  ;;  %v3386_v21 = vmul.f32 -1.442695, %v4813_v36  ;;  %v4837_v48 = vmul.f32 %v953_v52, %v4382_v59 }
 0x149   : > { %1645 = vrot.lane.b32.xlu1 %v4495_v20, %s4066_s23  ;;  %v3393_v61 = vmul.f32 -1.442695, %v4804_v25  ;;  %v3760_v50 = vpop.eup %3759  ;;  %v3991_v20 = vld [vmem:[%s4286_s16 + $0x68] sm:$0x3]  ;;  %3775 = vpow2.f32 %v3382_v32  ;;  %v3387_v23 = vmul.f32 -1.442695, %v4820_v40  ;;  %v4843_v4 = vmul.f32 %v3758_v46, %v4700_v5 }
 0x14a   : > { %v3762_v14 = vpop.eup %3761  ;;  %v4847_v32 = vmul.f32 %v954_v8, %v4382_v59  ;;  %v1044_v52 = vadd.f32 1.0, %v3760_v50  ;;  %v3390_v5 = vmul.f32 -1.442695, %v4837_v48  ;;  %v4858_v46 = vpop.xlane.xlu1 %1216 }
 0x14b   : > { %1671 = vrot.lane.b32.xlu0 %v4558_v0, %s4067_s20  ;;  %v919_v0 = vmax.f32 %v4637_v15, 1e-24  ;;  %v957_v15 = vmul.f32 %v3991_v20, %v3756_v63  ;;  %v3383_v20 = vmul.f32 -1.442695, %v4825_v42 }
 0x14c   : > { %v3391_v50 = vmul.f32 -1.442695, %v4847_v32 }
 0x14d   : > { %1649 = vrot.lane.b32.xlu1 %v4522_v47, %s4066_s23  ;;  %3777 = vrsqrt.f32 %v919_v0  ;;  %v3992_v0 = vld [vmem:[%s4286_s16 + $0x18] sm:$0x3] }
 0x14e   : > { %3779 = vpow2.f32 %v3393_v61  ;;  %v947_v47 = vmul.f32 %v3992_v0, %v3762_v14  ;;  %v4856_v61 = vmul.f32 %v957_v15, %v4382_v59  ;;  %v4862_v14 = vpop.xlane.xlu0 %1219  ;;  %v1225_v0 = vmax.f32 %v4683_v39, 1e-24 }
 0x14f   : > { %1675 = vrot.lane.b32.xlu0 %v4576_v22, %s4067_s20  ;;  %v3764_v22 = vpop.eup %3763  ;;  %3781 = vpow2.f32 %v3386_v21 }
 0x150   : > { %v3766_v63 = vpop.eup %3765  ;;  %3783 = vpow2.f32 %v3387_v23  ;;  %v1048_v34 = vadd.f32 1.0, %v3764_v22  ;;  %v4869_v23 = vmul.f32 %v947_v47, %v4382_v59  ;;  %v4878_v47 = vpop.xlane.xlu1 %1222 }
 0x151   : > { %1653 = vrot.lane.b32.xlu1 %v4843_v4, %s4066_s23  ;;  %v3768_v8 = vpop.eup %3767  ;;  %3785 = vpow2.f32 %v3383_v20  ;;  %v3994_v20 = vld [vmem:[%s4286_s16 + $0x38] sm:$0x3] }
 0x152   : > { %v3770_v21 = vpop.eup %3769  ;;  %3787 = vrcp.f32 %v1044_v52 }
 0x153   : > { %1679 = vrot.lane.b32.xlu0 %v4722_v28, %s4067_s20  ;;  %v958_v28 = vmul.f32 %v3993_v2, %v3766_v63  ;;  %v3772_v15 = vpop.eup %3771  ;;  %3789 = vpow2.f32 %v3390_v5  ;;  %v3394_v2 = vmul.f32 -1.442695, %v4856_v61  ;;  %v951_v63 = vmul.f32 %v3994_v20, %v3768_v8  ;;  %v4880_v5 = vpop.permute.xlu0 %1559 }
 0x154   : > { %v3774_v22 = vpop.eup %3773  ;;  %3791 = vrcp.f32 %v1048_v34  ;;  %6877 = vst [vmem:[#allocation10_spill] sm:$0xff] %v4880_v5  ;;  %v4885_v8 = vmul.f32 %v3772_v15, %v4730_v62  ;;  %v3995_v34 = vld [vmem:[%s4286_s16 + $0x58] sm:$0x3] }
 0x155   : > { %1669 = vrot.lane.b32.xlu1 %v4590_v1, %s4067_s20  ;;  %v3776_v27 = vpop.eup %3775  ;;  %v4875_v52 = vmul.f32 %v958_v28, %v4382_v59  ;;  %3793 = vpow2.f32 %v3391_v50  ;;  %v1226_v1 = vmax.f32 %v4687_v24, 1e-24  ;;  %v3384_v28 = vmul.f32 -1.442695, %v4869_v23 }
 0x156   : > { %3795 = vpow2.f32 %v3394_v2  ;;  %v1045_v50 = vadd.f32 1.0, %v3776_v27  ;;  %v4892_v20 = vmul.f32 %v951_v63, %v4382_v59  ;;  %v1665_v2 = vrot.slane %v4885_v8, 1  ;;  %v3996_v63 = vld [vmem:[%s4286_s16 + $0x78] sm:$0x3] }
 0x157   : > { %1694 = vrot.lane.b32.xlu0 %v4601_v57, %s4068_s21  ;;  %v1052_v57 = vadd.f32 1.0, %v3770_v21  ;;  %v3778_v13 = vpop.eup %3777  ;;  %v955_v21 = vmul.f32 %v3995_v34, %v3774_v22  ;;  %3797 = vrsqrt.f32 %v1225_v0  ;;  %v4895_v22 = vpop.permute.xlu1 %1561 }
 0x158   : > { %v3780_v39 = vpop.eup %3779  ;;  %6878 = vst [vmem:[#allocation11_spill] sm:$0xff] %v4895_v22  ;;  %v4897_v34 = vpop.permute.xlu0 %1563  ;;  %v959_v0 = vmul.f32 %v3996_v63, %v3778_v13 }
 0x159   : > { %1673 = vrot.lane.b32.xlu1 %v4609_v3, %s4067_s20  ;;  %v3782_v24 = vpop.eup %3781  ;;  %3799 = vrcp.f32 %v1052_v57  ;;  %v1056_v15 = vadd.f32 1.0, %v3780_v39  ;;  %6879 = vst [vmem:[#allocation12_spill] sm:$0xff] %v4897_v34  ;;  %v1664_v3 = vrot.slane %v4843_v4, 1  ;;  %v3388_v34 = vmul.f32 -1.442695, %v4892_v20 }
 0x15a   : > { %v3784_v62 = vpop.eup %3783  ;;  %3801 = vrsqrt.f32 %v1226_v1  ;;  %v1049_v57 = vadd.f32 1.0, %v3782_v24  ;;  %v4907_v1 = vmul.f32 %v955_v21, %v4382_v59  ;;  %v4920_v24 = vmul.f32 %v959_v0, %v4382_v59 }
 0x15b   : > { %1698 = vrot.lane.b32.xlu0 %v4617_v11, %s4068_s21  ;;  %v3395_v11 = vmul.f32 -1.442695, %v4875_v52  ;;  %v3786_v27 = vpop.eup %3785  ;;  %3803 = vpow2.f32 %v3384_v28  ;;  %v1050_v5 = vadd.f32 1.0, %v3784_v62  ;;  %v1666_v13 = vsel %vm1460_vm2, %v1664_v3, %v1665_v2 }
 0x15c   : > { %v3788_v39 = vpop.eup %3787  ;;  %3805 = vrcp.f32 %v1045_v50  ;;  %v3392_v28 = vmul.f32 -1.442695, %v4907_v1  ;;  %v1224_v2 = vmax.f32 %v4674_v16, 1e-24 }
 0x15d   : > { %1677 = vrot.lane.b32.xlu1 %v4629_v53, %s4067_s20  ;;  %v3790_v22 = vpop.eup %3789  ;;  %3807 = vpow2.f32 %v3395_v11  ;;  %v1046_v53 = vadd.f32 1.0, %v3786_v27  ;;  %v4923_v11 = vmul.f32 %v3788_v39, %v4755_v6 }
 0x15e   : > { %3809 = vrcp.f32 %v1056_v15  ;;  %v3792_v21 = vpop.eup %3791  ;;  %v1053_v62 = vadd.f32 1.0, %v3790_v22 }
 0x15f   : > { %1702 = vrot.lane.b32.xlu0 %v4632_v26, %s4068_s21  ;;  %v4910_v26 = vpop.permute.xlu1 %1565  ;;  %v4913_v63 = vpop.permute.xlu0 %1567  ;;  %3811 = vrcp.f32 %v1049_v57  ;;  %v4937_v22 = vmul.f32 %v3792_v21, %v4765_v33 }
 0x160   : > { %6880 = vst [vmem:[#allocation13_spill] sm:$0xff] %v4910_v26  ;;  %6881 = vst [vmem:[#allocation14_spill] sm:$0xff] %v4913_v63  ;;  %v3794_v50 = vpop.eup %3793  ;;  %3813 = vpow2.f32 %v3388_v34 }
 0x161   : > { %1681 = vrot.lane.b32.xlu1 %v1666_v13, %s4067_s20  ;;  %v3796_v15 = vpop.eup %3795  ;;  %3815 = vrcp.f32 %v1050_v5  ;;  %v3396_v5 = vmul.f32 -1.442695, %v4920_v24 }
 0x162   : > { %v3798_v3 = vpop.eup %3797  ;;  %3817 = vrcp.f32 %v1046_v53  ;;  %v1057_v16 = vadd.f32 1.0, %v3796_v15  ;;  %v1054_v53 = vadd.f32 1.0, %v3794_v50  ;;  %v1692_v50 = vrot.slane %v4885_v8, 2 }
 0x163   : > { %1706 = vrot.lane.b32.xlu0 %v4775_v7, %s4068_s21  ;;  %v1227_v7 = vmax.f32 %v4693_v41, 1e-24  ;;  %v4927_v27 = vpop.permute.xlu1 %1569  ;;  %v3800_v6 = vpop.eup %3799  ;;  %3819 = vpow2.f32 %v3392_v28  ;;  %v3997_v28 = vld [vmem:[%s4333_s24 + $0x10] sm:$0xff] }
 0x164   : > { %6882 = vst [vmem:[#allocation15_spill] sm:$0xff] %v4927_v27  ;;  %v3802_v41 = vpop.eup %3801  ;;  %3821 = vrcp.f32 %v1053_v62  ;;  %v4948_v21 = vmul.f32 %v3800_v6, %v4784_v58 }
 0x165   : > { %1696 = vrot.lane.b32.xlu1 %v4654_v51, %s4068_s21  ;;  %v3804_v34 = vpop.eup %3803  ;;  %3823 = vrsqrt.f32 %v1227_v7  ;;  %v1266_v62 = vmul.f32 %v3997_v28, %v3802_v41 }
 0x166   : > { %v3806_v57 = vpop.eup %3805  ;;  %3825 = vrsqrt.f32 %v1224_v2  ;;  %6886 = vst [vmem:[#allocation19_spill] sm:$0xff] %v4948_v21  ;;  %v1047_v2 = vadd.f32 1.0, %v3804_v34  ;;  %v1758_v34 = vrot.slane %v4923_v11, 1 }
 0x167   : > { %1726 = vrot.lane.b32.xlu0 %v4923_v11, %s4069_s17  ;;  %v4931_v0 = vpop.permute.xlu0 %1571  ;;  %v3808_v13 = vpop.eup %3807  ;;  %3827 = vpow2.f32 %v3396_v5  ;;  %v4952_v7 = vmul.f32 %v3806_v57, %v4797_v60  ;;  %v4968_v8 = vmul.f32 %v1266_v62, %v4382_v59  ;;  %v1764_v62 = vrot.slane %v4937_v22, 1 }
 0x168   : > { %6883 = vst [vmem:[#allocation16_spill] sm:$0xff] %v4931_v0  ;;  %v3810_v33 = vpop.eup %3809  ;;  %3829 = vrcp.f32 %v1057_v16  ;;  %v1691_v0 = vrot.slane %v4843_v4, 2  ;;  %v1058_v4 = vadd.f32 1.0, %v3808_v13 }
 0x169   : > { %1700 = vrot.lane.b32.xlu1 %v4664_v10, %s4068_s21  ;;  %v3812_v15 = vpop.eup %3811  ;;  %3831 = vrcp.f32 %v1054_v53  ;;  %v4965_v5 = vmul.f32 %v3810_v33, %v4804_v25  ;;  %v1759_v57 = vrot.slane %v4952_v7, 1  ;;  %v3998_v25 = vld [vmem:[%s4333_s24 + $0x8] sm:$0x3] }
 0x16a   : > { %v4971_v41 = vmul.f32 %v3812_v15, %v4813_v36  ;;  %3833 = vrcp.f32 %v1047_v2  ;;  %v1693_v28 = vsel %vm1509_vm3, %v1691_v0, %v1692_v50  ;;  %v1265_v13 = vmul.f32 %v3998_v25, %v3798_v3 }
 0x16b   : > { %1730 = vrot.lane.b32.xlu0 %v4937_v22, %s4069_s17  ;;  %v4941_v39 = vpop.permute.xlu1 %1573  ;;  %v4943_v51 = vpop.permute.xlu0 %1485  ;;  %6889 = vst [vmem:[#allocation22_spill] sm:$0xff] %v4965_v5  ;;  %3835 = vrcp.f32 %v1058_v4  ;;  %v1228_v3 = vmax.f32 %v4702_v43, 1e-24 }
 0x16c   : > { %6884 = vst [vmem:[#allocation17_spill] sm:$0xff] %v4941_v39  ;;  %6885 = vst [vmem:[#allocation18_spill] sm:$0xff] %v4943_v51  ;;  %v3814_v39 = vpop.eup %3813 }
 0x16d   : > { %v3816_v58 = vpop.eup %3815  ;;  %1704 = vrot.lane.b32.xlu1 %v4677_v29, %s4068_s21  ;;  %v1051_v29 = vadd.f32 1.0, %v3814_v39  ;;  %v3403_v39 = vmul.f32 -1.442695, %v4968_v8 }
 0x16e   : > { %v3818_v60 = vpop.eup %3817 }
 0x16f   : > { %1734 = vrot.lane.b32.xlu0 %v4948_v21, %s4069_s17  ;;  %v4958_v10 = vpop.permute.xlu1 %1487  ;;  %v3820_v16 = vpop.eup %3819  ;;  %v4985_v2 = vmul.f32 %v3818_v60, %v4825_v42  ;;  %3837 = vrcp.f32 %v1051_v29  ;;  %v4996_v42 = vmul.f32 %v1265_v13, %v4382_v59  ;;  %v3999_v60 = vld [vmem:[%s4333_s24 + $0x18] sm:$0x3] }
 0x170   : > { %6887 = vst [vmem:[#allocation20_spill] sm:$0xff] %v4958_v10  ;;  %v4962_v6 = vpop.permute.xlu0 %1493  ;;  %v3822_v53 = vpop.eup %3821  ;;  %v1055_v27 = vadd.f32 1.0, %v3820_v16  ;;  %3839 = vpow2.f32 %v3403_v39 }
 0x171   : > { %6888 = vst [vmem:[#allocation21_spill] sm:$0xff] %v4962_v6  ;;  %v3824_v33 = vpop.eup %3823  ;;  %1708 = vrot.lane.b32.xlu1 %v1693_v28, %s4068_s21  ;;  %v1760_v28 = vsel %vm1460_vm2, %v1758_v34, %v1759_v57  ;;  %v4992_v25 = vmul.f32 %v3822_v53, %v4837_v48  ;;  %v4000_v48 = vld [vmem:[%s4333_s24] sm:$0xff]  ;;  %v6894_v57 = vrot.slane %v4971_v41, 1  ;;  %v1770_v53 = vrot.slane %v4948_v21, 1 }
 0x172   : > { %v3826_v15 = vpop.eup %3825  ;;  %v1267_v4 = vmul.f32 %v3999_v60, %v3824_v33  ;;  %3841 = vrcp.f32 %v1055_v27 }
 0x173   : > { %1738 = vrot.lane.b32.xlu0 %v4965_v5, %s4069_s17  ;;  %v4980_v36 = vpop.permute.xlu1 %1489  ;;  %v3828_v50 = vpop.eup %3827  ;;  %6892 = vst [vmem:[#allocation25_spill] sm:$0xff] %v4992_v25  ;;  %v1264_v34 = vmul.f32 %v4000_v48, %v3826_v15  ;;  %v5011_v29 = vsel %vm1460_vm2, %v1764_v62, %v6894_v57  ;;  %v6829_v43 = vrot.slane %v4992_v25, 1  ;;  %v3402_v15 = vmul.f32 -1.442695, %v4996_v42 }
 0x174   : > { %6890 = vst [vmem:[#allocation23_spill] sm:$0xff] %v4980_v36  ;;  %v3830_v63 = vpop.eup %3829  ;;  %v1059_v33 = vadd.f32 1.0, %v3828_v50  ;;  %v5024_v62 = vmul.f32 %v1267_v4, %v4382_v59  ;;  %3843 = vrsqrt.f32 %v1228_v3  ;;  %v1776_v50 = vrot.slane %v4965_v5, 1 }
 0x175   : > { %v4987_v0 = vpop.permute.xlu0 %1497  ;;  %1728 = vrot.lane.b32.xlu1 %v4985_v2, %s4069_s17  ;;  %v3832_v13 = vpop.eup %3831  ;;  %v5039_v27 = vsel %vm1460_vm2, %v1770_v53, %v6829_v43  ;;  %v1230_v57 = vmax.f32 %v4719_v30, 1e-24  ;;  %v1761_v43 = vrot.slane %v4985_v2, 1 }
 0x176   : > { %6891 = vst [vmem:[#allocation24_spill] sm:$0xff] %v4987_v0  ;;  %v5000_v0 = vmul.f32 %v3816_v58, %v4820_v40  ;;  %v5018_v58 = vmul.f32 %v3830_v63, %v4856_v61  ;;  %v3834_v39 = vpop.eup %3833  ;;  %v5034_v63 = vmul.f32 %v1264_v34, %v4382_v59  ;;  %3845 = vrcp.f32 %v1059_v33 }
 0x177   : > { %1782 = vrot.lane.b32.xlu0 %v1760_v28, %s4070_s22  ;;  %v5029_v28 = vmul.f32 %v3832_v13, %v4847_v32  ;;  %v3836_v60 = vpop.eup %3835  ;;  %v5048_v32 = vmul.f32 %v3834_v39, %v4869_v23  ;;  %3847 = vpow2.f32 %v3402_v15  ;;  %v3404_v48 = vmul.f32 -1.442695, %v5024_v62 }
 0x178   : > { %6896 = vst [vmem:[#allocation28_spill] sm:$0xff] %v5018_v58  ;;  %v6830_v3 = vrot.slane %v5018_v58, 1  ;;  %v3401_v13 = vmul.f32 -1.442695, %v5034_v63  ;;  %v5058_v33 = vmul.f32 %v3836_v60, %v4875_v52  ;;  %v1806_v15 = vrot.slane %v4923_v11, 2 }
 0x179   : > { %v5006_v16 = vpop.permute.xlu0 %1534  ;;  %v5014_v40 = vpop.permute.xlu1 %1491  ;;  %1732 = vrot.lane.b32.xlu1 %v5000_v0, %s4069_s17  ;;  %6897 = vst [vmem:[#allocation29_spill] sm:$0xff] %v5029_v28  ;;  %v1807_v39 = vrot.slane %v4952_v7, 2  ;;  %3849 = vpow2.f32 %v3404_v48  ;;  %v1229_v11 = vmax.f32 %v4715_v56, 1e-24  ;;  %v1813_v48 = vrot.slane %v4971_v41, 2 }
 0x17a   : > { %6893 = vst [vmem:[#allocation26_spill] sm:$0xff] %v5006_v16  ;;  %6895 = vst [vmem:[#allocation27_spill] sm:$0xff] %v5014_v40  ;;  %v3838_v34 = vpop.eup %3837  ;;  %v5063_v23 = vsel %vm1460_vm2, %v1776_v50, %v6830_v3  ;;  %3851 = vrsqrt.f32 %v1230_v57  ;;  %v1812_v3 = vrot.slane %v4937_v22, 2  ;;  %v1767_v57 = vrot.slane %v5000_v0, 1 }
 0x17b   : > { %1786 = vrot.lane.b32.xlu0 %v5011_v29, %s4070_s22  ;;  %6901 = vst [vmem:[#allocation33_spill] sm:$0xff] %v5058_v33  ;;  %6902 = vst [vmem:[#allocation34_spill] sm:$0xff] %v5063_v23  ;;  %v3840_v30 = vpop.eup %3839  ;;  %v5072_v52 = vmul.f32 %v3838_v34, %v4892_v20  ;;  %v1808_v20 = vsel %vm1509_vm3, %v1806_v15, %v1807_v39  ;;  %3853 = vpow2.f32 %v3401_v13  ;;  %v4001_v13 = vld [vmem:[%s4333_s24 + $0x20] sm:$0xff]  ;;  %v1773_v26 = vrot.slane %v5029_v28, 1 }
 0x17c   : > { %v3842_v60 = vpop.eup %3841  ;;  %v1366_v6 = vadd.f32 1.0, %v3840_v30  ;;  %3855 = vrsqrt.f32 %v1229_v11  ;;  %v5101_v30 = vsel %vm1509_vm3, %v1812_v3, %v1813_v48 }
 0x17d   : > { %v5031_v61 = vpop.permute.xlu0 %1538  ;;  %1736 = vrot.lane.b32.xlu1 %v5029_v28, %s4069_s17  ;;  %v1768_v56 = vrot.slane %v5072_v52, 1 }
 0x17e   : > { %6898 = vst [vmem:[#allocation30_spill] sm:$0xff] %v5031_v61  ;;  %v5043_v4 = vpop.permute.xlu1 %1495  ;;  %3857 = vrcp.f32 %v1366_v6 }
 0x17f   : > { %6899 = vst [vmem:[#allocation31_spill] sm:$0xff] %v5043_v4  ;;  %1790 = vrot.lane.b32.xlu0 %v5039_v27, %s4070_s22  ;;  %v1762_v4 = vrot.slane %v5048_v32, 1 }
 0x181   : > { %v5054_v53 = vpop.permute.xlu0 %1542  ;;  %1740 = vrot.lane.b32.xlu1 %v5058_v33, %s4069_s17  ;;  %v5085_v34 = vsel %vm1460_vm2, %v1761_v43, %v1762_v4 }
 0x182   : > { %6900 = vst [vmem:[#allocation32_spill] sm:$0xff] %v5054_v53  ;;  %v3844_v53 = vpop.eup %3843 }
 0x183   : > { %1794 = vrot.lane.b32.xlu0 %v5063_v23, %s4070_s22  ;;  %v5077_v7 = vpop.permute.xlu1 %1499  ;;  %v1268_v39 = vmul.f32 %v4001_v13, %v3844_v53 }
 0x184   : > { %6903 = vst [vmem:[#allocation35_spill] sm:$0xff] %v5077_v7  ;;  %v5091_v7 = vmul.f32 %v3842_v60, %v4907_v1  ;;  %v1819_v1 = vrot.slane %v4992_v25, 2  ;;  %v5106_v60 = vsel %vm1460_vm2, %v1767_v57, %v1768_v56 }
 0x185   : > { %v5079_v50 = vpop.permute.xlu0 %1546  ;;  %1784 = vrot.lane.b32.xlu1 %v5085_v34, %s4070_s22  ;;  %v5118_v48 = vmul.f32 %v1268_v39, %v4382_v59 }
 0x186   : > { %6904 = vst [vmem:[#allocation36_spill] sm:$0xff] %v5079_v50  ;;  %6905 = vst [vmem:[#allocation37_spill] sm:$0xff] %v5091_v7  ;;  %v3846_v50 = vpop.eup %3845 }
 0x187   : > { %1830 = vrot.lane.b32.xlu0 %v1808_v20, %s4071_s25  ;;  %v3848_v15 = vpop.eup %3847  ;;  %v5096_v43 = vpop.permute.xlu1 %1536  ;;  %v1818_v20 = vrot.slane %v4948_v21, 2  ;;  %v5113_v53 = vmul.f32 %v3846_v50, %v4920_v24  ;;  %v6912_v24 = vrot.slane %v5091_v7, 1 }
 0x188   : > { %6906 = vst [vmem:[#allocation38_spill] sm:$0xff] %v5096_v43  ;;  %v1365_v6 = vadd.f32 1.0, %v3848_v15  ;;  %v3850_v3 = vpop.eup %3849  ;;  %v1779_v15 = vrot.slane %v5058_v33, 1 }
 0x189   : > { %v5098_v4 = vpop.permute.xlu0 %1587  ;;  %6908 = vst [vmem:[#allocation40_spill] sm:$0xff] %v5113_v53  ;;  %1788 = vrot.lane.b32.xlu1 %v5106_v60, %s4070_s22  ;;  %v3852_v11 = vpop.eup %3851  ;;  %v5125_v61 = vsel %vm1509_vm3, %v1818_v20, %v1819_v1  ;;  %v5130_v50 = vsel %vm1460_vm2, %v1773_v26, %v6912_v24  ;;  %v3405_v20 = vmul.f32 -1.442695, %v5118_v48  ;;  %v4002_v1 = vld [vmem:[%s4333_s24 + $0x30] sm:$0xff]  ;;  %v1231_v24 = vmax.f32 %v4734_v19, 1e-24 }
 0x18a   : > { %6907 = vst [vmem:[#allocation39_spill] sm:$0xff] %v5098_v4  ;;  %6911 = vst [vmem:[#allocation43_spill] sm:$0xff] %v5125_v61  ;;  %v3854_v39 = vpop.eup %3853  ;;  %3859 = vrcp.f32 %v1365_v6  ;;  %v6916_v43 = vrot.slane %v5113_v53, 1  ;;  %v1809_v6 = vrot.slane %v4985_v2, 2 }
 0x18b   : > { %1834 = vrot.lane.b32.xlu0 %v5101_v30, %s4071_s25  ;;  %v5120_v57 = vpop.permute.xlu1 %1540  ;;  %6913 = vst [vmem:[#allocation44_spill] sm:$0xff] %v5130_v50  ;;  %v3856_v36 = vpop.eup %3855 }
 0x18c   : > { %6909 = vst [vmem:[#allocation41_spill] sm:$0xff] %v5120_v57  ;;  %v1270_v57 = vmul.f32 %v4002_v1, %v3852_v11  ;;  %v5148_v10 = vsel %vm1460_vm2, %v1779_v15, %v6916_v43  ;;  %v6918_v11 = vrot.slane %v4971_v41, 1  ;;  %v1364_v1 = vadd.f32 1.0, %v3854_v39 }
 0x18d   : > { %v5122_v13 = vpop.permute.xlu0 %1591  ;;  %1792 = vrot.lane.b32.xlu1 %v5130_v50, %s4070_s22  ;;  %6917 = vst [vmem:[#allocation47_spill] sm:$0xff] %v5148_v10 }
 0x18e   : > { %6910 = vst [vmem:[#allocation42_spill] sm:$0xff] %v5122_v13  ;;  %v1367_v13 = vadd.f32 1.0, %v3850_v3  ;;  %v1810_v3 = vrot.slane %v5048_v32, 2  ;;  %v5158_v19 = vmul.f32 %v1270_v57, %v4382_v59  ;;  %v1815_v32 = vrot.slane %v5000_v0, 2 }
 0x18f   : > { %1838 = vrot.lane.b32.xlu0 %v5125_v61, %s4071_s25  ;;  %v5140_v40 = vpop.permute.xlu1 %1544 }
 0x190   : > { %6914 = vst [vmem:[#allocation45_spill] sm:$0xff] %v5140_v40  ;;  %v3858_v40 = vpop.eup %3857  ;;  %3861 = vrcp.f32 %v1367_v13  ;;  %v5167_v39 = vsel %vm1509_vm3, %v1809_v6, %v1810_v3  ;;  %v3407_v57 = vmul.f32 -1.442695, %v5158_v19 }
 0x191   : > { %v5142_v26 = vpop.permute.xlu0 %1595  ;;  %1796 = vrot.lane.b32.xlu1 %v5148_v10, %s4070_s22  ;;  %3863 = vpow2.f32 %v3405_v20  ;;  %v5172_v13 = vmul.f32 %v3858_v40, %v4968_v8 }
 0x192   : > { %6915 = vst [vmem:[#allocation46_spill] sm:$0xff] %v5142_v26  ;;  %3865 = vrsqrt.f32 %v1231_v24  ;;  %v4003_v26 = vld [vmem:[%s4333_s24 + $0x28] sm:$0x3] }
 0x193   : > { %2099 = vrot.lane.b32.xlu0 %v6918_v11, %s4062_s28  ;;  %v5160_v43 = vpop.permute.xlu1 %1548  ;;  %v1269_v4 = vmul.f32 %v4003_v26, %v3856_v36  ;;  %v1816_v11 = vrot.slane %v5072_v52, 2  ;;  %3867 = vrcp.f32 %v1364_v1  ;;  %v6831_v36 = vrot.slane %v5172_v13, 7 }
 0x194   : > { %6919 = vst [vmem:[#allocation48_spill] sm:$0xff] %v5160_v43  ;;  %v3860_v26 = vpop.eup %3859  ;;  %3869 = vpow2.f32 %v3407_v57 }
 0x195   : > { %v5162_v15 = vpop.permute.xlu0 %1599  ;;  %1832 = vrot.lane.b32.xlu1 %v5167_v39, %s4071_s25  ;;  %v5183_v6 = vsel %vm1509_vm3, %v1815_v32, %v1816_v11  ;;  %v5189_v8 = vmul.f32 %v1269_v4, %v4382_v59  ;;  %v1425_v3 = vmul.f32 %v3860_v26, %v4996_v42  ;;  %v4004_v42 = vld [vmem:[%s4333_s24 + $0x38] sm:$0x3] }
 0x196   : > { %6920 = vst [vmem:[#allocation49_spill] sm:$0xff] %v5162_v15  ;;  %6923 = vst [vmem:[#allocation52_spill] sm:$0xff] %v5183_v6 }
 0x197   : > { %2103 = vrot.lane.b32.xlu0 %v1768_v56, %s4062_s28  ;;  %v5177_v20 = vpop.permute.xlu1 %1589  ;;  %v3406_v11 = vmul.f32 -1.442695, %v5189_v8 }
 0x198   : > { %6921 = vst [vmem:[#allocation50_spill] sm:$0xff] %v5177_v20 }
 0x199   : > { %v5179_v24 = vpop.permute.xlu0 %1614  ;;  %1836 = vrot.lane.b32.xlu1 %v5183_v6, %s4071_s25  ;;  %3871 = vpow2.f32 %v3406_v11 }
 0x19a   : > { %6922 = vst [vmem:[#allocation51_spill] sm:$0xff] %v5179_v24  ;;  %v3862_v1 = vpop.eup %3861  ;;  %v4015_v24 = vld [vmem:[%s4333_s24 + $0x68] sm:$0x3] }
 0x19b   : > { %2163 = vrot.lane.b32.xlu0 %v6831_v36, %s4063_s29  ;;  %v5193_v40 = vpop.permute.xlu1 %1593  ;;  %v3864_v32 = vpop.eup %3863  ;;  %v5207_v43 = vmul.f32 %v3862_v1, %v5024_v62 }
 0x19c   : > { %6924 = vst [vmem:[#allocation53_spill] sm:$0xff] %v5193_v40  ;;  %v3866_v36 = vpop.eup %3865 }
 0x19d   : > { %v5195_v56 = vpop.permute.xlu0 %1618  ;;  %2097 = vrot.lane.b32.xlu1 %v5011_v29, %s4062_s28  ;;  %v3868_v4 = vpop.eup %3867  ;;  %v1271_v26 = vmul.f32 %v4004_v42, %v3866_v36 }
 0x19e   : > { %6925 = vst [vmem:[#allocation54_spill] sm:$0xff] %v5195_v56  ;;  %v1368_v56 = vadd.f32 1.0, %v3864_v32  ;;  %v1424_v40 = vmul.f32 %v3868_v4, %v5034_v63  ;;  %v3870_v1 = vpop.eup %3869  ;;  %v6932_v63 = vrot.slane %v4992_v25, 1  ;;  %v1241_v25 = vmax.f32 %v4858_v46, 1e-24 }
 0x19f   : > { %2195 = vrot.lane.b32.xlu0 %v1425_v3, %s4061_s27  ;;  %v5202_v15 = vpop.permute.xlu1 %1597  ;;  %v5221_v32 = vmul.f32 %v1271_v26, %v4382_v59  ;;  %v1370_v11 = vadd.f32 1.0, %v3870_v1  ;;  %v2245_v26 = vrot.slane %v5207_v43, 1  ;;  %v1232_v1 = vmax.f32 %v4741_v17, 1e-24 }
 0x1a0   : > { %6926 = vst [vmem:[#allocation55_spill] sm:$0xff] %v5202_v15  ;;  %v2242_v15 = vrot.slane %v1425_v3, 1  ;;  %3873 = vrcp.f32 %v1368_v56  ;;  %v2153_v62 = vrot.slane %v1424_v40, 7 }
 0x1a1   : > { %v5204_v57 = vpop.permute.xlu0 %1622  ;;  %2101 = vrot.lane.b32.xlu1 %v5106_v60, %s4062_s28  ;;  %v3408_v56 = vmul.f32 -1.442695, %v5221_v32  ;;  %3875 = vrcp.f32 %v1370_v11 }
 0x1a2   : > { %6927 = vst [vmem:[#allocation56_spill] sm:$0xff] %v5204_v57 }
 0x1a3   : > { %2199 = vrot.lane.b32.xlu0 %v5207_v43, %s4061_s27  ;;  %v5217_v57 = vpop.permute.xlu1 %1601  ;;  %v3872_v3 = vpop.eup %3871  ;;  %3877 = vpow2.f32 %v3408_v56 }
 0x1a4   : > { %6929 = vst [vmem:[#allocation58_spill] sm:$0xff] %v5217_v57  ;;  %v2241_v57 = vrot.slane %v1424_v40, 1  ;;  %3879 = vrsqrt.f32 %v1232_v1 }
 0x1a5   : > { %v5215_v20 = vpop.permute.xlu0 %1626  ;;  %2161 = vrot.lane.b32.xlu1 %v2153_v62, %s4063_s29 }
 0x1a6   : > { %6928 = vst [vmem:[#allocation57_spill] sm:$0xff] %v5215_v20  ;;  %v2243_v11 = vsel %vm1460_vm2, %v2241_v57, %v2242_v15 }
 0x1a7   : > { %2267 = vrot.lane.b32.xlu0 %v2242_v15, %s4064_s18  ;;  %v5226_v42 = vpop.permute.xlu1 %1616 }
 0x1a8   : > { %6931 = vst [vmem:[#allocation60_spill] sm:$0xff] %v5226_v42 }
 0x1a9   : > { %v5224_v36 = vpop.permute.xlu0 %1639  ;;  %2193 = vrot.lane.b32.xlu1 %v1424_v40, %s4061_s27 }
 0x1aa   : > { %6930 = vst [vmem:[#allocation59_spill] sm:$0xff] %v5224_v36  ;;  %v3874_v20 = vpop.eup %3873 }
 0x1ab   : > { %2107 = vrot.lane.b32.xlu0 %v6932_v63, %s4062_s28  ;;  %v5236_v62 = vpop.permute.xlu1 %1620  ;;  %v1369_v63 = vadd.f32 1.0, %v3872_v3  ;;  %v2244_v3 = vrot.slane %v5172_v13, 1 }
 0x1ac   : > { %6934 = vst [vmem:[#allocation62_spill] sm:$0xff] %v5236_v62 }
 0x1ad   : > { %v5233_v4 = vpop.permute.xlu0 %1643  ;;  %2197 = vrot.lane.b32.xlu1 %v5172_v13, %s4061_s27  ;;  %3881 = vrcp.f32 %v1369_v63  ;;  %v2246_v63 = vsel %vm1460_vm2, %v2244_v3, %v2245_v26  ;;  %v6943_v3 = vrot.slane %v5172_v13, 7 }
 0x1ae   : > { %6933 = vst [vmem:[#allocation61_spill] sm:$0xff] %v5233_v4  ;;  %v5247_v4 = vmul.f32 %v3874_v20, %v5118_v48  ;;  %v3876_v48 = vpop.eup %3875 }
 0x1af   : > { %2271 = vrot.lane.b32.xlu0 %v2245_v26, %s4064_s18  ;;  %v5244_v36 = vpop.permute.xlu1 %1624  ;;  %v3878_v15 = vpop.eup %3877  ;;  %v5270_v1 = vmul.f32 %v3876_v48, %v5158_v19  ;;  %v1234_v19 = vmax.f32 %v4758_v18, 1e-24  ;;  %v4005_v48 = vld [vmem:[%s4333_s24 + $0x40] sm:$0xff]  ;;  %v6946_v18 = vrot.slane %v5091_v7, 1 }
 0x1b0   : > { %6936 = vst [vmem:[#allocation64_spill] sm:$0xff] %v5244_v36  ;;  %v5256_v40 = vrot.slane %v5247_v4, 7 }
 0x1b1   : > { %v5242_v42 = vpop.permute.xlu0 %1647  ;;  %2265 = vrot.lane.b32.xlu1 %v2243_v11, %s4064_s18  ;;  %v1371_v11 = vadd.f32 1.0, %v3878_v15  ;;  %v5279_v36 = vrot.slane %v5270_v1, 7 }
 0x1b2   : > { %6935 = vst [vmem:[#allocation63_spill] sm:$0xff] %v5242_v42 }
 0x1b3   : > { %2109 = vrot.lane.b32.xlu0 %v5130_v50, %s4062_s28  ;;  %v5258_v56 = vpop.permute.xlu1 %1628  ;;  %3883 = vrcp.f32 %v1371_v11 }
 0x1b4   : > { %6938 = vst [vmem:[#allocation66_spill] sm:$0xff] %v5258_v56  ;;  %v3880_v56 = vpop.eup %3879  ;;  %3885 = vrsqrt.f32 %v1234_v19 }
 0x1b5   : > { %v5253_v17 = vpop.permute.xlu0 %1651  ;;  %2105 = vrot.lane.b32.xlu1 %v5039_v27, %s4062_s28  ;;  %v1272_v15 = vmul.f32 %v4005_v48, %v3880_v56  ;;  %v1233_v56 = vmax.f32 %v4751_v54, 1e-24 }
 0x1b6   : > { %6937 = vst [vmem:[#allocation65_spill] sm:$0xff] %v5253_v17 }
 0x1b7   : > { %2165 = vrot.lane.b32.xlu0 %v5256_v40, %s4063_s29  ;;  %v5267_v57 = vpop.permute.xlu1 %1641  ;;  %v3882_v42 = vpop.eup %3881  ;;  %3887 = vrsqrt.f32 %v1233_v56 }
 0x1b8   : > { %6940 = vst [vmem:[#allocation68_spill] sm:$0xff] %v5267_v57 }
 0x1b9   : > { %v5265_v20 = vpop.permute.xlu0 %1667  ;;  %2269 = vrot.lane.b32.xlu1 %v2246_v63, %s4064_s18 }
 0x1ba   : > { %6939 = vst [vmem:[#allocation67_spill] sm:$0xff] %v5265_v20 }
 0x1bb   : > { %2340 = vrot.lane.b32.xlu0 %v5172_v13, %s4066_s23  ;;  %v5281_v62 = vpop.permute.xlu1 %1645  ;;  %v5303_v13 = vmul.f32 %v1272_v15, %v4382_v59 }
 0x1bc   : > { %6942 = vst [vmem:[#allocation70_spill] sm:$0xff] %v5281_v62  ;;  %v921_v62 = vmax.f32 %v4651_v44, 1e-24 }
 0x1bd   : > { %v5276_v17 = vpop.permute.xlu0 %1671  ;;  %2315 = vrot.lane.b32.xlu1 %v6943_v3, %s4065_s19  ;;  %v3884_v19 = vpop.eup %3883 }
 0x1be   : > { %6941 = vst [vmem:[#allocation69_spill] sm:$0xff] %v5276_v17  ;;  %v5293_v17 = vmul.f32 %v3882_v42, %v5189_v8  ;;  %v3409_v8 = vmul.f32 -1.442695, %v5303_v13  ;;  %v5325_v15 = vmul.f32 %v3884_v19, %v5221_v32  ;;  %v920_v19 = vmax.f32 %v4643_v9, 1e-24 }
 0x1bf   : > { %2167 = vrot.lane.b32.xlu0 %v5279_v36, %s4063_s29  ;;  %v5295_v20 = vpop.permute.xlu1 %1649 }
 0x1c0   : > { %6945 = vst [vmem:[#allocation72_spill] sm:$0xff] %v5295_v20  ;;  %3889 = vpow2.f32 %v3409_v8 }
 0x1c1   : > { %v5290_v57 = vpop.permute.xlu0 %1675  ;;  %2111 = vrot.lane.b32.xlu1 %v6946_v18, %s4062_s28  ;;  %v3886_v18 = vpop.eup %3885  ;;  %3891 = vrsqrt.f32 %v920_v19 }
 0x1c2   : > { %6944 = vst [vmem:[#allocation71_spill] sm:$0xff] %v5290_v57  ;;  %v3888_v32 = vpop.eup %3887 }
 0x1c3   : > { %2203 = vrot.lane.b32.xlu0 %v5293_v17, %s4061_s27  ;;  %v5308_v3 = vpop.permute.xlu1 %1653 }
 0x1c4   : > { %6948 = vst [vmem:[#allocation74_spill] sm:$0xff] %v5308_v3 }
 0x1c5   : > { %v5305_v11 = vpop.permute.xlu0 %1679  ;;  %2317 = vrot.lane.b32.xlu1 %v5256_v40, %s4065_s19 }
 0x1c6   : > { %6947 = vst [vmem:[#allocation73_spill] sm:$0xff] %v5305_v11 }
 0x1c7   : > { %2346 = vrot.lane.b32.xlu0 %v5293_v17, %s4066_s23  ;;  %v5317_v48 = vpop.permute.xlu1 %1669 }
 0x1c8   : > { %6950 = vst [vmem:[#allocation76_spill] sm:$0xff] %v5317_v48 }
 0x1c9   : > { %v5315_v42 = vpop.permute.xlu0 %1694  ;;  %2342 = vrot.lane.b32.xlu1 %v5207_v43, %s4066_s23  ;;  %v5337_v43 = vrot.slane %v5293_v17, 1 }
 0x1ca   : > { %6949 = vst [vmem:[#allocation75_spill] sm:$0xff] %v5315_v42  ;;  %v3890_v57 = vpop.eup %3889 }
 0x1cb   : > { %2393 = vrot.lane.b32.xlu0 %v2245_v26, %s4067_s20  ;;  %v5327_v3 = vpop.permute.xlu1 %1673  ;;  %v4006_v26 = vld [vmem:[%s4333_s24 + $0x50] sm:$0xff] }
 0x1cc   : > { %6952 = vst [vmem:[#allocation78_spill] sm:$0xff] %v5327_v3  ;;  %v1274_v56 = vmul.f32 %v4006_v26, %v3886_v18  ;;  %v1235_v26 = vmax.f32 %v4772_v37, 1e-24  ;;  %v2250_v37 = vrot.slane %v5270_v1, 1 }
 0x1cd   : > { %v5322_v54 = vpop.permute.xlu0 %1698  ;;  %2201 = vrot.lane.b32.xlu1 %v5247_v4, %s4061_s27 }
 0x1ce   : > { %6951 = vst [vmem:[#allocation77_spill] sm:$0xff] %v5322_v54  ;;  %v5347_v20 = vmul.f32 %v1274_v56, %v4382_v59  ;;  %v1372_v56 = vadd.f32 1.0, %v3890_v57  ;;  %3893 = vrsqrt.f32 %v1235_v26 }
 0x1cf   : > { %2207 = vrot.lane.b32.xlu0 %v5325_v15, %s4061_s27  ;;  %v5339_v8 = vpop.permute.xlu1 %1677 }
 0x1d0   : > { %6954 = vst [vmem:[#allocation80_spill] sm:$0xff] %v5339_v8  ;;  %v4007_v8 = vld [vmem:[%s4333_s24 + $0x48] sm:$0x3]  ;;  %v3411_v9 = vmul.f32 -1.442695, %v5347_v20 }
 0x1d1   : > { %v5334_v11 = vpop.permute.xlu0 %1702  ;;  %2344 = vrot.lane.b32.xlu1 %v5247_v4, %s4066_s23  ;;  %v1273_v54 = vmul.f32 %v4007_v8, %v3888_v32  ;;  %v2247_v8 = vrot.slane %v5247_v4, 1 }
 0x1d2   : > { %6953 = vst [vmem:[#allocation79_spill] sm:$0xff] %v5334_v11  ;;  %3895 = vpow2.f32 %v3411_v9 }
 0x1d3   : > { %2275 = vrot.lane.b32.xlu0 %v5337_v43, %s4064_s18  ;;  %v5352_v11 = vpop.permute.xlu1 %1681  ;;  %3897 = vrcp.f32 %v1372_v56  ;;  %v5386_v19 = vsel %vm1460_vm2, %v2247_v8, %v5337_v43  ;;  %v3892_v56 = vpop.eup %3891  ;;  %v4008_v8 = vld [vmem:[%s4286_s16 + $0x80] sm:$0xff] }
 0x1d4   : > { %6956 = vst [vmem:[#allocation82_spill] sm:$0xff] %v5352_v11  ;;  %v5365_v11 = vrot.slane %v5325_v15, 1  ;;  %3899 = vrsqrt.f32 %v921_v62 }
 0x1d5   : > { %v5349_v18 = vpop.permute.xlu0 %1706  ;;  %2391 = vrot.lane.b32.xlu1 %v2246_v63, %s4067_s20  ;;  %v5372_v63 = vmul.f32 %v1273_v54, %v4382_v59 }
 0x1d6   : > { %6955 = vst [vmem:[#allocation81_spill] sm:$0xff] %v5349_v18  ;;  %v5382_v44 = vsel %vm1460_vm2, %v2250_v37, %v5365_v11 }
 0x1d7   : > { %2397 = vrot.lane.b32.xlu0 %v5337_v43, %s4067_s20  ;;  %v5361_v18 = vpop.permute.xlu1 %1696  ;;  %v3410_v54 = vmul.f32 -1.442695, %v5372_v63 }
 0x1d8   : > { %6958 = vst [vmem:[#allocation84_spill] sm:$0xff] %v5361_v18  ;;  %v3894_v62 = vpop.eup %3893 }
 0x1d9   : > { %v5359_v3 = vpop.permute.xlu0 %1726  ;;  %2205 = vrot.lane.b32.xlu1 %v5270_v1, %s4061_s27  ;;  %3901 = vpow2.f32 %v3410_v54 }
 0x1da   : > { %6957 = vst [vmem:[#allocation83_spill] sm:$0xff] %v5359_v3  ;;  %v922_v3 = vmax.f32 %v4661_v49, 1e-24  ;;  %v4010_v49 = vld [vmem:[%s4286_s16 + $0x88] sm:$0x3] }
 0x1db   : > { %2113 = vrot.lane.b32.xlu0 %v5063_v23, %s4062_s28  ;;  %v5378_v32 = vpop.permute.xlu1 %1700 }
 0x1dc   : > { %6960 = vst [vmem:[#allocation86_spill] sm:$0xff] %v5378_v32  ;;  %v3896_v18 = vpop.eup %3895  ;;  %3903 = vrsqrt.f32 %v922_v3 }
 0x1dd   : > { %v5376_v57 = vpop.permute.xlu0 %1730  ;;  %2273 = vrot.lane.b32.xlu1 %v5386_v19, %s4064_s18  ;;  %v3898_v48 = vpop.eup %3897 }
 0x1de   : > { %6959 = vst [vmem:[#allocation85_spill] sm:$0xff] %v5376_v57  ;;  %v960_v57 = vmul.f32 %v4008_v8, %v3892_v56  ;;  %v3900_v54 = vpop.eup %3899  ;;  %v1374_v8 = vadd.f32 1.0, %v3896_v18 }
 0x1df   : > { %2277 = vrot.lane.b32.xlu0 %v5382_v44, %s4064_s18  ;;  %v5395_v9 = vpop.permute.xlu1 %1704 }
 0x1e0   : > { %6962 = vst [vmem:[#allocation88_spill] sm:$0xff] %v5395_v9  ;;  %v4009_v9 = vld [vmem:[%s4333_s24 + $0x58] sm:$0x3]  ;;  %v5415_v56 = vmul.f32 %v960_v57, %v4382_v59  ;;  %v6967_v57 = vrot.slane %v5018_v58, 1  ;;  %3905 = vrcp.f32 %v1374_v8  ;;  %v1236_v8 = vmax.f32 %v4787_v35, 1e-24 }
 0x1e1   : > { %v5393_v26 = vpop.permute.xlu0 %1734  ;;  %2395 = vrot.lane.b32.xlu1 %v5386_v19, %s4067_s20 }
 0x1e2   : > { %6961 = vst [vmem:[#allocation87_spill] sm:$0xff] %v5393_v26  ;;  %v1275_v26 = vmul.f32 %v4009_v9, %v3894_v62  ;;  %v961_v9 = vmul.f32 %v4010_v49, %v3900_v54 }
 0x1e3   : > { %2319 = vrot.lane.b32.xlu0 %v5279_v36, %s4065_s19  ;;  %v5404_v32 = vpop.permute.xlu1 %1708  ;;  %v3902_v18 = vpop.eup %3901 }
 0x1e4   : > { %6964 = vst [vmem:[#allocation90_spill] sm:$0xff] %v5404_v32  ;;  %v1373_v3 = vadd.f32 1.0, %v3902_v18  ;;  %v5446_v54 = vmul.f32 %v961_v9, %v4382_v59 }
 0x1e5   : > { %v5401_v37 = vpop.permute.xlu0 %1738  ;;  %2441 = vrot.lane.b32.xlu1 %v5256_v40, %s4068_s21  ;;  %v5426_v40 = vmul.f32 %v1275_v26, %v4382_v59 }
 0x1e6   : > { %6963 = vst [vmem:[#allocation89_spill] sm:$0xff] %v5401_v37  ;;  %v923_v37 = vmax.f32 %v4668_v38, 1e-24 }
 0x1e7   : > { %2466 = vrot.lane.b32.xlu0 %v5247_v4, %s4069_s17  ;;  %v5417_v32 = vpop.permute.xlu1 %1728  ;;  %v5421_v4 = vmul.f32 %v3898_v48, %v5303_v13  ;;  %v3397_v13 = vmul.f32 -1.442695, %v5415_v56  ;;  %v3412_v26 = vmul.f32 -1.442695, %v5426_v40 }
 0x1e8   : > { %6966 = vst [vmem:[#allocation92_spill] sm:$0xff] %v5417_v32  ;;  %3907 = vrsqrt.f32 %v923_v37  ;;  %v3398_v37 = vmul.f32 -1.442695, %v5446_v54 }
 0x1e9   : > { %v5412_v42 = vpop.permute.xlu0 %1782  ;;  %2115 = vrot.lane.b32.xlu1 %v6967_v57, %s4062_s28  ;;  %v5435_v38 = vrot.slane %v5421_v4, 7  ;;  %3909 = vpow2.f32 %v3397_v13  ;;  %v3904_v13 = vpop.eup %3903 }
 0x1ea   : > { %6965 = vst [vmem:[#allocation91_spill] sm:$0xff] %v5412_v42  ;;  %3911 = vpow2.f32 %v3412_v26  ;;  %v3906_v35 = vpop.eup %3905 }
 0x1eb   : > { %2117 = vrot.lane.b32.xlu0 %v5148_v10, %s4062_s28  ;;  %v5438_v48 = vpop.permute.xlu1 %1732  ;;  %3913 = vrcp.f32 %v1373_v3 }
 0x1ec   : > { %6969 = vst [vmem:[#allocation94_spill] sm:$0xff] %v5438_v48  ;;  %3915 = vrsqrt.f32 %v1236_v8 }
 0x1ed   : > { %v5432_v62 = vpop.permute.xlu0 %1786  ;;  %2279 = vrot.lane.b32.xlu1 %v5365_v11, %s4064_s18  ;;  %3917 = vpow2.f32 %v3398_v37 }
 0x1ee   : > { %6968 = vst [vmem:[#allocation93_spill] sm:$0xff] %v5432_v62 }
 0x1ef   : > { %2169 = vrot.lane.b32.xlu0 %v5435_v38, %s4063_s29  ;;  %v5450_v57 = vpop.permute.xlu1 %1736 }
 0x1f0   : > { %6971 = vst [vmem:[#allocation96_spill] sm:$0xff] %v5450_v57  ;;  %v4011_v57 = vld [vmem:[%s4286_s16 + $0x90] sm:$0xff] }
 0x1f1   : > { %v5448_v49 = vpop.permute.xlu0 %1790  ;;  %2443 = vrot.lane.b32.xlu1 %v5279_v36, %s4068_s21 }
 0x1f2   : > { %6970 = vst [vmem:[#allocation95_spill] sm:$0xff] %v5448_v49  ;;  %v3908_v26 = vpop.eup %3907  ;;  %v5472_v49 = vmul.f32 %v3906_v35, %v5347_v20 }
 0x1f3   : > { %2348 = vrot.lane.b32.xlu0 %v5270_v1, %s4066_s23  ;;  %v5460_v18 = vpop.permute.xlu1 %1740  ;;  %v3910_v8 = vpop.eup %3909 }
 0x1f4   : > { %6973 = vst [vmem:[#allocation98_spill] sm:$0xff] %v5460_v18  ;;  %v3912_v37 = vpop.eup %3911  ;;  %v5483_v48 = vrot.slane %v5472_v49, 7  ;;  %v2256_v10 = vrot.slane %v5472_v49, 1 }
 0x1f5   : > { %v5458_v9 = vpop.permute.xlu0 %1794  ;;  %2468 = vrot.lane.b32.xlu1 %v5293_v17, %s4069_s17  ;;  %v6976_v17 = vrot.slane %v5113_v53, 1 }
 0x1f6   : > { %6972 = vst [vmem:[#allocation97_spill] sm:$0xff] %v5458_v9  ;;  %v962_v9 = vmul.f32 %v4011_v57, %v3904_v13  ;;  %v3914_v57 = vpop.eup %3913 }
 0x1f7   : > { %2470 = vrot.lane.b32.xlu0 %v5270_v1, %s4069_s17  ;;  %v5468_v3 = vpop.permute.xlu1 %1784  ;;  %v4012_v1 = vld [vmem:[%s4286_s16 + $0x98] sm:$0x3] }
 0x1f8   : > { %6975 = vst [vmem:[#allocation100_spill] sm:$0xff] %v5468_v3  ;;  %v963_v18 = vmul.f32 %v4012_v1, %v3908_v26  ;;  %v5490_v20 = vmul.f32 %v962_v9, %v4382_v59  ;;  %v3916_v26 = vpop.eup %3915  ;;  %v1060_v1 = vadd.f32 1.0, %v3910_v8  ;;  %v1238_v3 = vmax.f32 %v4808_v12, 1e-24  ;;  %v4013_v8 = vld [vmem:[%s4333_s24 + $0x60] sm:$0xff] }
 0x1f9   : > { %v5466_v36 = vpop.permute.xlu0 %1830  ;;  %2119 = vrot.lane.b32.xlu1 %v6976_v17, %s4062_s28 }
 0x1fa   : > { %6974 = vst [vmem:[#allocation99_spill] sm:$0xff] %v5466_v36  ;;  %v5495_v35 = vmul.f32 %v963_v18, %v4382_v59 }
 0x1fb   : > { %2517 = vrot.lane.b32.xlu0 %v5386_v19, %s4070_s22  ;;  %v5485_v13 = vpop.permute.xlu1 %1788  ;;  %v1375_v19 = vadd.f32 1.0, %v3912_v37  ;;  %v3399_v37 = vmul.f32 -1.442695, %v5490_v20 }
 0x1fc   : > { %6978 = vst [vmem:[#allocation102_spill] sm:$0xff] %v5485_v13  ;;  %v3918_v13 = vpop.eup %3917  ;;  %v3400_v18 = vmul.f32 -1.442695, %v5495_v35 }
 0x1fd   : > { %v5480_v62 = vpop.permute.xlu0 %1834  ;;  %2321 = vrot.lane.b32.xlu1 %v5435_v38, %s4065_s19  ;;  %3919 = vrcp.f32 %v1375_v19 }
 0x1fe   : > { %6977 = vst [vmem:[#allocation101_spill] sm:$0xff] %v5480_v62  ;;  %v5500_v62 = vmul.f32 %v3914_v57, %v5372_v63  ;;  %3921 = vrcp.f32 %v1060_v1  ;;  %v1276_v63 = vmul.f32 %v4013_v8, %v3916_v26  ;;  %v1237_v26 = vmax.f32 %v4801_v45, 1e-24 }
 0x1ff   : > { %2171 = vrot.lane.b32.xlu0 %v5483_v48, %s4063_s29  ;;  %v5503_v9 = vpop.permute.xlu1 %1792  ;;  %3923 = vrsqrt.f32 %v1238_v3 }
 0x200   : > { %6980 = vst [vmem:[#allocation104_spill] sm:$0xff] %v5503_v9  ;;  %3925 = vpow2.f32 %v3399_v37  ;;  %v5521_v19 = vmul.f32 %v1276_v63, %v4382_v59 }
 0x201   : > { %v5497_v17 = vpop.permute.xlu0 %1838  ;;  %2350 = vrot.lane.b32.xlu1 %v5325_v15, %s4066_s23  ;;  %3927 = vpow2.f32 %v3400_v18 }
 0x202   : > { %6979 = vst [vmem:[#allocation103_spill] sm:$0xff] %v5497_v17  ;;  %v1061_v17 = vadd.f32 1.0, %v3918_v13  ;;  %v3413_v3 = vmul.f32 -1.442695, %v5521_v19 }
 0x203   : > { %2211 = vrot.lane.b32.xlu0 %v5500_v62, %s4061_s27  ;;  %v5514_v12 = vpop.permute.xlu1 %1796 }
 0x204   : > { %6981 = vst [vmem:[#allocation105_spill] sm:$0xff] %v5514_v12  ;;  %3929 = vrcp.f32 %v1061_v17 }
 0x205   : > { %v5512_v57 = vpop.permute.xlu0 %2099  ;;  %2472 = vrot.lane.b32.xlu1 %v5325_v15, %s4069_s17  ;;  %3931 = vrsqrt.f32 %v1237_v26 }
 0x206   : > { %3933 = vpow2.f32 %v3413_v3  ;;  %v5556_v3 = vrot.slane %v5500_v62, 1 }
 0x207   : > { %2354 = vrot.lane.b32.xlu0 %v5500_v62, %s4066_s23  ;;  %v5526_v13 = vpop.permute.xlu1 %1832  ;;  %v3920_v37 = vpop.eup %3919 }
 0x208   : > { %6982 = vst [vmem:[#allocation106_spill] sm:$0xff] %v5526_v13  ;;  %v3922_v17 = vpop.eup %3921  ;;  %v5544_v63 = vmul.f32 %v3920_v37, %v5426_v40 }
 0x209   : > { %v5523_v1 = vpop.permute.xlu0 %2103  ;;  %2519 = vrot.lane.b32.xlu1 %v5337_v43, %s4070_s22  ;;  %v3924_v45 = vpop.eup %3923  ;;  %v5559_v37 = vmul.f32 %v3922_v17, %v5415_v56 }
 0x20a   : > { %v3926_v8 = vpop.eup %3925  ;;  %v5595_v23 = vrot.slane %v5544_v63, 1 }
 0x20b   : > { %2401 = vrot.lane.b32.xlu0 %v5365_v11, %s4067_s20  ;;  %v5535_v18 = vpop.permute.xlu1 %1836  ;;  %v3928_v12 = vpop.eup %3927  ;;  %6984 = vst [vmem:[#allocation108_spill] sm:$0xff] %v5559_v37 }
 0x20c   : > { %6983 = vst [vmem:[#allocation107_spill] sm:$0xff] %v5535_v18  ;;  %v4014_v18 = vld [vmem:[%s4333_s24 + $0x70] sm:$0xff]  ;;  %v1063_v40 = vadd.f32 1.0, %v3928_v12 }
 0x20d   : > { %v5533_v15 = vpop.permute.xlu0 %2163  ;;  %2209 = vrot.lane.b32.xlu1 %v5421_v4, %s4061_s27  ;;  %v1278_v13 = vmul.f32 %v4014_v18, %v3924_v45  ;;  %v1239_v18 = vmax.f32 %v4828_v55, 1e-24 }
 0x20e   : > { %v3930_v9 = vpop.eup %3929 }
 0x20f   : > { %2523 = vrot.lane.b32.xlu0 %v5365_v11, %s4070_s22  ;;  %v5546_v26 = vpop.permute.xlu1 %2097  ;;  %v1062_v11 = vadd.f32 1.0, %v3926_v8  ;;  %v5564_v42 = vmul.f32 %v3930_v9, %v5446_v54  ;;  %v3932_v8 = vpop.eup %3931  ;;  %v5572_v12 = vmul.f32 %v1278_v13, %v4382_v59  ;;  %v1880_v54 = vrot.slane %v5559_v37, 1 }
 0x210   : > { %v3934_v45 = vpop.eup %3933 }
 0x211   : > { %v5541_v43 = vpop.permute.xlu0 %2195  ;;  %2352 = vrot.lane.b32.xlu1 %v5421_v4, %s4066_s23  ;;  %3935 = vrcp.f32 %v1062_v11  ;;  %v1881_v9 = vrot.slane %v5564_v42, 1  ;;  %v1277_v11 = vmul.f32 %v4015_v24, %v3932_v8  ;;  %v3415_v55 = vmul.f32 -1.442695, %v5572_v12 }
 0x212   : > { %3937 = vrcp.f32 %v1063_v40  ;;  %v1376_v40 = vadd.f32 1.0, %v3934_v45  ;;  %v2253_v24 = vrot.slane %v5421_v4, 1  ;;  %v5611_v45 = vsel %vm1460_vm2, %v2256_v10, %v5595_v23 }
 0x213   : > { %2215 = vrot.lane.b32.xlu0 %v5544_v63, %s4061_s27  ;;  %v5561_v36 = vpop.permute.xlu1 %2101  ;;  %3939 = vrsqrt.f32 %v1239_v18  ;;  %v5591_v51 = vsel %vm1460_vm2, %v1880_v54, %v1881_v9 }
 0x214   : > { %6986 = vst [vmem:[#allocation110_spill] sm:$0xff] %v5591_v51  ;;  %3941 = vpow2.f32 %v3415_v55 }
 0x215   : > { %v5553_v32 = vpop.permute.xlu0 %2199  ;;  %2399 = vrot.lane.b32.xlu1 %v5382_v44, %s4067_s20  ;;  %3943 = vrcp.f32 %v1376_v40 }
 0x217   : > { %2283 = vrot.lane.b32.xlu0 %v5556_v3, %s4064_s18  ;;  %v5576_v17 = vpop.permute.xlu1 %2161 }
 0x219   : > { %v5574_v56 = vpop.permute.xlu0 %2267  ;;  %2521 = vrot.lane.b32.xlu1 %v5382_v44, %s4070_s22  ;;  %v5601_v44 = vmul.f32 %v1277_v11, %v4382_v59 }
 0x21b   : > { %2405 = vrot.lane.b32.xlu0 %v5556_v3, %s4067_s20  ;;  %v5588_v16 = vpop.permute.xlu1 %2193  ;;  %v3936_v18 = vpop.eup %3935  ;;  %v3414_v11 = vmul.f32 -1.442695, %v5601_v44 }
 0x21c   : > { %v3938_v53 = vpop.eup %3937  ;;  %v5624_v33 = vmul.f32 %v3936_v18, %v5490_v20 }
 0x21d   : > { %v5586_v13 = vpop.permute.xlu0 %2107  ;;  %2213 = vrot.lane.b32.xlu1 %v5472_v49, %s4061_s27  ;;  %v5627_v10 = vmul.f32 %v3938_v53, %v5495_v35  ;;  %v3940_v50 = vpop.eup %3939  ;;  %3945 = vpow2.f32 %v3414_v11  ;;  %v4016_v53 = vld [vmem:[%s4333_s24 + $0x78] sm:$0x3] }
 0x21e   : > { %6985 = vst [vmem:[#allocation109_spill] sm:$0xff] %v5586_v13  ;;  %6988 = vst [vmem:[#allocation112_spill] sm:$0xff] %v5624_v33  ;;  %v2094_v6 = vrot.slane %v5624_v33, 1  ;;  %v3942_v20 = vpop.eup %3941  ;;  %v1279_v35 = vmul.f32 %v4016_v53, %v3940_v50  ;;  %v1240_v50 = vmax.f32 %v4840_v31, 1e-24 }
 0x21f   : > { %2121 = vrot.lane.b32.xlu0 %v5591_v51, %s4062_s28  ;;  %v5607_v54 = vpop.permute.xlu1 %2197  ;;  %v2255_v51 = vsel %vm1460_vm2, %v2253_v24, %v5556_v3  ;;  %6989 = vst [vmem:[#allocation113_spill] sm:$0xff] %v5627_v10  ;;  %v2095_v5 = vrot.slane %v5627_v10, 1  ;;  %v3944_v18 = vpop.eup %3943 }
 0x220   : > { %v5649_v33 = vmul.f32 %v3944_v18, %v5521_v19 }
 0x221   : > { %v5605_v8 = vpop.permute.xlu0 %2271  ;;  %2281 = vrot.lane.b32.xlu1 %v2255_v51, %s4064_s18 }
 0x223   : > { %2285 = vrot.lane.b32.xlu0 %v5611_v45, %s4064_s18  ;;  %v5621_v40 = vpop.permute.xlu1 %2265 }
 0x225   : > { %v5619_v55 = vpop.permute.xlu0 %2109  ;;  %2403 = vrot.lane.b32.xlu1 %v2255_v51, %s4067_s20 }
 0x226   : > { %6987 = vst [vmem:[#allocation111_spill] sm:$0xff] %v5619_v55  ;;  %v1378_v55 = vadd.f32 1.0, %v3942_v20  ;;  %v5660_v20 = vrot.slane %v5649_v33, 7 }
 0x227   : > { %2323 = vrot.lane.b32.xlu0 %v5483_v48, %s4065_s19  ;;  %v5634_v58 = vpop.permute.xlu1 %2105 }
 0x228   : > { %6991 = vst [vmem:[#allocation115_spill] sm:$0xff] %v5634_v58  ;;  %v2096_v58 = vsel %vm1460_vm2, %v2094_v6, %v2095_v5  ;;  %3947 = vrcp.f32 %v1378_v55 }
 0x229   : > { %v5632_v24 = vpop.permute.xlu0 %2165  ;;  %2445 = vrot.lane.b32.xlu1 %v5435_v38, %s4068_s21  ;;  %v3946_v38 = vpop.eup %3945  ;;  %3949 = vrsqrt.f32 %v1240_v50 }
 0x22a   : > { %6990 = vst [vmem:[#allocation114_spill] sm:$0xff] %v5632_v24  ;;  %v1377_v31 = vadd.f32 1.0, %v3946_v38 }
 0x22b   : > { %2474 = vrot.lane.b32.xlu0 %v5421_v4, %s4069_s17  ;;  %v5645_v24 = vpop.permute.xlu1 %2269  ;;  %v5653_v4 = vmul.f32 %v1279_v35, %v4382_v59 }
 0x22d   : > { %v5643_v11 = vpop.permute.xlu0 %2340  ;;  %2123 = vrot.lane.b32.xlu1 %v1881_v9, %s4062_s28 }
 0x22f   : > { %2125 = vrot.lane.b32.xlu0 %v2096_v58, %s4062_s28  ;;  %v5662_v6 = vpop.permute.xlu1 %2315  ;;  %v3416_v58 = vmul.f32 -1.442695, %v5653_v4 }
 0x231   : > { %v5657_v53 = vpop.permute.xlu0 %2167  ;;  %2287 = vrot.lane.b32.xlu1 %v5595_v23, %s4064_s18  ;;  %3951 = vpow2.f32 %v3416_v58 }
 0x232   : > { %6992 = vst [vmem:[#allocation116_spill] sm:$0xff] %v5657_v53  ;;  %3953 = vrcp.f32 %v1377_v31  ;;  %v3948_v18 = vpop.eup %3947  ;;  %v4017_v31 = vld [vmem:[%s4333_s24 + $0x80] sm:$0xff] }
 0x233   : > { %2173 = vrot.lane.b32.xlu0 %v5660_v20, %s4063_s29  ;;  %v5671_v9 = vpop.permute.xlu1 %2111  ;;  %v3950_v38 = vpop.eup %3949  ;;  %v5690_v58 = vmul.f32 %v3948_v18, %v5572_v12  ;;  %3955 = vrsqrt.f32 %v1241_v25 }
 0x234   : > { %6994 = vst [vmem:[#allocation118_spill] sm:$0xff] %v5671_v9  ;;  %v1280_v53 = vmul.f32 %v4017_v31, %v3950_v38 }
 0x235   : > { %v5669_v19 = vpop.permute.xlu0 %2203  ;;  %2447 = vrot.lane.b32.xlu1 %v5483_v48, %s4068_s21  ;;  %v5698_v10 = vrot.slane %v5690_v58, 7 }
 0x236   : > { %6993 = vst [vmem:[#allocation117_spill] sm:$0xff] %v5669_v19 }
 0x237   : > { %2356 = vrot.lane.b32.xlu0 %v5472_v49, %s4066_s23  ;;  %v5679_v35 = vpop.permute.xlu1 %2317 }
 0x239   : > { %v5677_v55 = vpop.permute.xlu0 %2346  ;;  %2476 = vrot.lane.b32.xlu1 %v5500_v62, %s4069_s17 }
 0x23b   : > { %2478 = vrot.lane.b32.xlu0 %v5472_v49, %s4069_s17  ;;  %v5687_v19 = vpop.permute.xlu1 %2342  ;;  %v3952_v48 = vpop.eup %3951 }
 0x23c   : > { %v3954_v62 = vpop.eup %3953 }
 0x23d   : > { %v5685_v50 = vpop.permute.xlu0 %2393  ;;  %2127 = vrot.lane.b32.xlu1 %v2095_v5, %s4062_s28  ;;  %v5708_v5 = vmul.f32 %v1280_v53, %v4382_v59  ;;  %v5713_v18 = vmul.f32 %v3954_v62, %v5601_v44  ;;  %v3956_v31 = vpop.eup %3955  ;;  %v1242_v62 = vmax.f32 %v4862_v14, 1e-24  ;;  %s4074_s28 = smov 56  }
 0x23f   : > { %2525 = vrot.lane.b32.xlu0 %v2255_v51, %s4070_s22  ;;  %v5701_v13 = vpop.permute.xlu1 %2201  ;;  %v1379_v51 = vadd.f32 1.0, %v3952_v48  ;;  %v3417_v46 = vmul.f32 -1.442695, %v5708_v5 }
 0x240   : > { %6996 = vst [vmem:[#allocation120_spill] sm:$0xff] %v5701_v13 }
 0x241   : > { %v5695_v49 = vpop.permute.xlu0 %2207  ;;  %2325 = vrot.lane.b32.xlu1 %v5660_v20, %s4065_s19  ;;  %3957 = vrcp.f32 %v1379_v51 }
 0x242   : > { %6995 = vst [vmem:[#allocation119_spill] sm:$0xff] %v5695_v49  ;;  %3959 = vpow2.f32 %v3417_v46  ;;  %v4019_v49 = vld [vmem:[%s4333_s24 + $0x90] sm:$0xff] }
 0x243   : > { %2175 = vrot.lane.b32.xlu0 %v5698_v10, %s4063_s29  ;;  %v5715_v38 = vpop.permute.xlu1 %2344  ;;  %3961 = vrsqrt.f32 %v1242_v62  ;;  %v5766_v62 = vrot.slane %v5713_v18, 1  ;;  %s4072_s29 = smov 48  }
 0x245   : > { %v5710_v12 = vpop.permute.xlu0 %2275  ;;  %2358 = vrot.lane.b32.xlu1 %v5544_v63, %s4066_s23 }
 0x246   : > { %6997 = vst [vmem:[#allocation121_spill] sm:$0xff] %v5710_v12 }
 0x247   : > { %2219 = vrot.lane.b32.xlu0 %v5713_v18, %s4061_s27  ;;  %v5724_v48 = vpop.permute.xlu1 %2391 }
 0x249   : > { %v5722_v53 = vpop.permute.xlu0 %2397  ;;  %2480 = vrot.lane.b32.xlu1 %v5544_v63, %s4069_s17  ;;  %v4018_v63 = vld [vmem:[%s4333_s24 + $0x88] sm:$0x3] }
 0x24a   : > { %6998 = vst [vmem:[#allocation122_spill] sm:$0xff] %v5722_v53  ;;  %v1281_v46 = vmul.f32 %v4018_v63, %v3956_v31 }
 0x24b   : > { %2362 = vrot.lane.b32.xlu0 %v5713_v18, %s4066_s23  ;;  %v5732_v44 = vpop.permute.xlu1 %2205  ;;  %v3958_v13 = vpop.eup %3957 }
 0x24c   : > { %7000 = vst [vmem:[#allocation124_spill] sm:$0xff] %v5732_v44  ;;  %v5751_v14 = vmul.f32 %v3958_v13, %v5653_v4 }
 0x24d   : > { %v5730_v25 = vpop.permute.xlu0 %2113  ;;  %2527 = vrot.lane.b32.xlu1 %v5556_v3, %s4070_s22 }
 0x24e   : > { %6999 = vst [vmem:[#allocation123_spill] sm:$0xff] %v5730_v25 }
 0x24f   : > { %2409 = vrot.lane.b32.xlu0 %v5595_v23, %s4067_s20  ;;  %v5741_v12 = vpop.permute.xlu1 %2273 }
 0x250   : > { %7002 = vst [vmem:[#allocation126_spill] sm:$0xff] %v5741_v12  ;;  %v5758_v12 = vmul.f32 %v1281_v46, %v4382_v59 }
 0x251   : > { %v5739_v51 = vpop.permute.xlu0 %2277  ;;  %2217 = vrot.lane.b32.xlu1 %v5649_v33, %s4061_s27 }
 0x252   : > { %7001 = vst [vmem:[#allocation125_spill] sm:$0xff] %v5739_v51  ;;  %v3960_v51 = vpop.eup %3959  ;;  %v3418_v63 = vmul.f32 -1.442695, %v5758_v12 }
 0x253   : > { %2531 = vrot.lane.b32.xlu0 %v5595_v23, %s4070_s22  ;;  %v5753_v3 = vpop.permute.xlu1 %2395  ;;  %v1243_v23 = vmax.f32 %v4878_v47, 1e-24  ;;  %v1380_v13 = vadd.f32 1.0, %v3960_v51  ;;  %v3962_v47 = vpop.eup %3961  ;;  %v5781_v51 = vrot.slane %v5751_v14, 1 }
 0x255   : > { %v5748_v25 = vpop.permute.xlu0 %2319  ;;  %2360 = vrot.lane.b32.xlu1 %v5649_v33, %s4066_s23  ;;  %3963 = vrsqrt.f32 %v1243_v23  ;;  %v1282_v23 = vmul.f32 %v4019_v49, %v3962_v47 }
 0x256   : > { %7003 = vst [vmem:[#allocation127_spill] sm:$0xff] %v5748_v25  ;;  %3965 = vrcp.f32 %v1380_v13  ;;  %v2262_v25 = vrot.slane %v5690_v58, 1 }
 0x257   : > { %2223 = vrot.lane.b32.xlu0 %v5751_v14, %s4061_s27  ;;  %v5768_v4 = vpop.permute.xlu1 %2441  ;;  %3967 = vpow2.f32 %v3418_v63  ;;  %v5804_v49 = vmul.f32 %v1282_v23, %v4382_v59 }
 0x258   : > { %v5794_v13 = vsel %vm1460_vm2, %v2262_v25, %v5781_v51 }
 0x259   : > { %v5763_v31 = vpop.permute.xlu0 %2466  ;;  %2407 = vrot.lane.b32.xlu1 %v5611_v45, %s4067_s20 }
 0x25b   : > { %2291 = vrot.lane.b32.xlu0 %v5766_v62, %s4064_s18  ;;  %v5777_v44 = vpop.permute.xlu1 %2115 }
 0x25c   : > { %7005 = vst [vmem:[#allocation129_spill] sm:$0xff] %v5777_v44  ;;  %v2259_v44 = vrot.slane %v5649_v33, 1 }
 0x25d   : > { %v5775_v46 = vpop.permute.xlu0 %2117  ;;  %2529 = vrot.lane.b32.xlu1 %v5611_v45, %s4070_s22 }
 0x25e   : > { %7004 = vst [vmem:[#allocation128_spill] sm:$0xff] %v5775_v46  ;;  %v2261_v25 = vsel %vm1460_vm2, %v2259_v44, %v5766_v62  ;;  %v4020_v44 = vld [vmem:[%s4333_s24 + $0x98] sm:$0x3] }
 0x25f   : > { %2413 = vrot.lane.b32.xlu0 %v5766_v62, %s4067_s20  ;;  %v5790_v46 = vpop.permute.xlu1 %2279  ;;  %v3964_v47 = vpop.eup %3963 }
 0x260   : > { %7007 = vst [vmem:[#allocation131_spill] sm:$0xff] %v5790_v46  ;;  %v1283_v61 = vmul.f32 %v4020_v44, %v3964_v47 }
 0x261   : > { %v5788_v9 = vpop.permute.xlu0 %2169  ;;  %2221 = vrot.lane.b32.xlu1 %v5690_v58, %s4061_s27  ;;  %s4075_s27 = smov 64  }
 0x262   : > { %7006 = vst [vmem:[#allocation130_spill] sm:$0xff] %v5788_v9  ;;  %v3966_v9 = vpop.eup %3965 }
 0x263   : > { %2293 = vrot.lane.b32.xlu0 %v5794_v13, %s4064_s18  ;;  %v5806_v63 = vpop.permute.xlu1 %2443  ;;  %v3968_v46 = vpop.eup %3967  ;;  %v5821_v23 = vmul.f32 %v3966_v9, %v5708_v5 }
 0x264   : > { %v1381_v53 = vadd.f32 1.0, %v3968_v46 }
 0x265   : > { %v5801_v45 = vpop.permute.xlu0 %2348  ;;  %2289 = vrot.lane.b32.xlu1 %v2261_v25, %s4064_s18  ;;  %v6862_v28 = vrot.slane %v5821_v23, 7 }
 0x266   : > { %7008 = vst [vmem:[#allocation132_spill] sm:$0xff] %v5801_v45  ;;  %v3419_v45 = vmul.f32 -1.442695, %v5804_v49 }
 0x267   : > { %2327 = vrot.lane.b32.xlu0 %v5698_v10, %s4065_s19  ;;  %v5816_v21 = vpop.permute.xlu1 %2468 }
 0x268   : > { %3969 = vpow2.f32 %v3419_v45 }
 0x269   : > { %v5813_v37 = vpop.permute.xlu0 %2470  ;;  %2411 = vrot.lane.b32.xlu1 %v2261_v25, %s4067_s20  ;;  %3971 = vrcp.f32 %v1381_v53 }
 0x26a   : > { %7009 = vst [vmem:[#allocation133_spill] sm:$0xff] %v5813_v37 }
 0x26b   : > { %2482 = vrot.lane.b32.xlu0 %v5649_v33, %s4069_s17  ;;  %v5828_v37 = vpop.permute.xlu1 %2119  ;;  %v1303_v33 = vmul.f32 %v1283_v61, %v4382_v59 }
 0x26c   : > { %7010 = vst [vmem:[#allocation134_spill] sm:$0xff] %v5828_v37 }
 0x26d   : > { %v5825_v7 = vpop.permute.xlu0 %2517  ;;  %2449 = vrot.lane.b32.xlu1 %v5660_v20, %s4068_s21  ;;  %v3420_v46 = vmul.f32 -1.442695, %v1303_v33 }
 0x26f   : > { %2329 = vrot.lane.b32.xlu0 %v6862_v28, %s4065_s19  ;;  %v5838_v5 = vpop.permute.xlu1 %2321  ;;  %3973 = vpow2.f32 %v3420_v46 }
 0x271   : > { %v5836_v9 = vpop.permute.xlu0 %2171  ;;  %2295 = vrot.lane.b32.xlu1 %v5781_v51, %s4064_s18  ;;  %s4077_s18 = smov 60  }
 0x272   : > { %7011 = vst [vmem:[#allocation135_spill] sm:$0xff] %v5836_v9  ;;  %v3970_v59 = vpop.eup %3969 }
 0x273   : > { %2366 = vrot.lane.b32.xlu0 %v5751_v14, %s4066_s23  ;;  %v5846_v47 = vpop.permute.xlu1 %2350  ;;  %v3972_v20 = vpop.eup %3971  ;;  %v1382_v44 = vadd.f32 1.0, %v3970_v59 }
 0x275   : > { %v5844_v45 = vpop.permute.xlu0 %2211  ;;  %2451 = vrot.lane.b32.xlu1 %v5698_v10, %s4068_s21  ;;  %3975 = vrcp.f32 %v1382_v44 }
 0x276   : > { %7012 = vst [vmem:[#allocation136_spill] sm:$0xff] %v5844_v45 }
 0x277   : > { %2488 = vrot.lane.b32.xlu0 %v5751_v14, %s4069_s17  ;;  %v5854_v53 = vpop.permute.xlu1 %2472  ;;  %v1441_v14 = vmul.f32 %v3972_v20, %v5758_v12 }
 0x279   : > { %v5852_v61 = vpop.permute.xlu0 %2354  ;;  %2484 = vrot.lane.b32.xlu1 %v5713_v18, %s4069_s17  ;;  %v3974_v10 = vpop.eup %3973  ;;  %v2389_v37 = vrot.slane %v1441_v14, 1 }
 0x27a   : > { %v1383_v12 = vadd.f32 1.0, %v3974_v10 }
 0x27b   : > { %2535 = vrot.lane.b32.xlu0 %v5766_v62, %s4070_s22  ;;  %v5863_v46 = vpop.permute.xlu1 %2519 }
 0x27c   : > { %3977 = vrcp.f32 %v1383_v12 }
 0x27d   : > { %v5860_v28 = vpop.permute.xlu0 %2401  ;;  %2364 = vrot.lane.b32.xlu1 %v5690_v58, %s4066_s23 }
 0x27f   : > { %2370 = vrot.lane.b32.xlu0 %v1441_v14, %s4066_s23  ;;  %v5870_v9 = vpop.permute.xlu1 %2209  ;;  %v3976_v20 = vpop.eup %3975 }
 0x280   : > { %7013 = vst [vmem:[#allocation137_spill] sm:$0xff] %v5870_v9 }
 0x281   : > { %v5868_v59 = vpop.permute.xlu0 %2523  ;;  %2486 = vrot.lane.b32.xlu1 %v5690_v58, %s4069_s17  ;;  %v5889_v58 = vmul.f32 %v3976_v20, %v5804_v49  ;;  %v2388_v49 = vrot.slane %v5821_v23, 1 }
 0x283   : > { %2417 = vrot.lane.b32.xlu0 %v5781_v51, %s4067_s20  ;;  %v5878_v62 = vpop.permute.xlu1 %2352 }
 0x284   : > { %7015 = vst [vmem:[#allocation139_spill] sm:$0xff] %v5878_v62 }
 0x285   : > { %v5876_v18 = vpop.permute.xlu0 %2215  ;;  %2533 = vrot.lane.b32.xlu1 %v2261_v25, %s4070_s22 }
 0x286   : > { %7014 = vst [vmem:[#allocation138_spill] sm:$0xff] %v5876_v18  ;;  %v3978_v12 = vpop.eup %3977 }
 0x287   : > { %2539 = vrot.lane.b32.xlu0 %v5781_v51, %s4070_s22  ;;  %v5885_v9 = vpop.permute.xlu1 %2399  ;;  %v2440_v51 = vrot.slane %v5889_v58, 7  ;;  %v5911_v45 = vmul.f32 %v3978_v12, %v1303_v33 }
 0x288   : > { %7017 = vst [vmem:[#allocation141_spill] sm:$0xff] %v5885_v9  ;;  %v2390_v9 = vsel %vm1460_vm2, %v2388_v49, %v2389_v37  ;;  %v2566_v49 = vsel %vm515_vm0, %v4971_v41, %v5512_v57  ;;  %v2565_v41 = vsel %vm515_vm0, %v4937_v22, %v5546_v26 }
 0x289   : > { %v5883_v44 = vpop.permute.xlu0 %2283  ;;  %2368 = vrot.lane.b32.xlu1 %v5821_v23, %s4066_s23 }
 0x28a   : > { %7016 = vst [vmem:[#allocation140_spill] sm:$0xff] %v5883_v44 }
 0x28b   : > { %2421 = vrot.lane.b32.xlu0 %v2389_v37, %s4067_s20  ;;  %v5896_v18 = vpop.permute.xlu1 %2521 }
 0x28d   : > { %v5893_v10 = vpop.permute.xlu0 %2405  ;;  %2415 = vrot.lane.b32.xlu1 %v5794_v13, %s4067_s20 }
 0x28f   : > { %2455 = vrot.lane.b32.xlu0 %v2440_v51, %s4068_s21  ;;  %v5903_v44 = vpop.permute.xlu1 %2213 }
 0x290   : > { %7018 = vst [vmem:[#allocation142_spill] sm:$0xff] %v5903_v44 }
 0x291   : > { %v5901_v25 = vpop.permute.xlu0 %2121  ;;  %2537 = vrot.lane.b32.xlu1 %v5794_v13, %s4070_s22  ;;  %v7022_v13 = vrot.slane %v5821_v23, 7 }
 0x293   : > { %2492 = vrot.lane.b32.xlu0 %v1441_v14, %s4069_s17  ;;  %v5913_v51 = vpop.permute.xlu1 %2281  ;;  %v2515_v14 = vrot.slane %v5911_v45, 1 }
 0x294   : > { %7020 = vst [vmem:[#allocation144_spill] sm:$0xff] %v5913_v51 }
 0x295   : > { %v5909_v20 = vpop.permute.xlu0 %2285  ;;  %2419 = vrot.lane.b32.xlu1 %v2390_v9, %s4067_s20 }
 0x296   : > { %7019 = vst [vmem:[#allocation143_spill] sm:$0xff] %v5909_v20 }
 0x297   : > { %2496 = vrot.lane.b32.xlu0 %v5911_v45, %s4069_s17  ;;  %v5921_v62 = vpop.permute.xlu1 %2403  ;;  %v2799_v45 = vld [vmem:[%s6815_s4 + $0x8] sm:$0xff] }
 0x299   : > { %v5919_v44 = vpop.permute.xlu0 %2323  ;;  %2453 = vrot.lane.b32.xlu1 %v7022_v13, %s4068_s21  ;;  %v2582_v13 = vsel %vm6865_vm4, %v2566_v49, %v5576_v17  ;;  %v2800_v49 = vld [vmem:[%s6815_s4 + $0x10] sm:$0xff]  ;;  %s4073_s21 = smov 52  }
 0x29a   : > { %7021 = vst [vmem:[#allocation145_spill] sm:$0xff] %v5919_v44 }
 0x29b   : > { %2543 = vrot.lane.b32.xlu0 %v2389_v37, %s4070_s22  ;;  %v5930_v12 = vpop.permute.xlu1 %2445  ;;  %v2798_v37 = vld [vmem:[%s6815_s4] sm:$0xff] }
 0x29c   : > { %v3528_v44 = vpack.c.bf16 %v2799_v45, %v2798_v37  ;;  %v2801_v37 = vld [vmem:[%s6815_s4 + $0x18] sm:$0xff] }
 0x29d   : > { %v5927_v33 = vpop.permute.xlu0 %2474  ;;  %2490 = vrot.lane.b32.xlu1 %v5821_v23, %s4069_s17  ;;  %v2581_v23 = vsel %vm6865_vm4, %v2565_v41, %v5576_v17  ;;  %v2598_v17 = vsel %vm1976_vm5, %v2582_v13, %v5541_v43  ;;  %v3532_v45 = vpack.c.bf16 %v2801_v37, %v2800_v49 }
 0x29e   : > { %3529 = vmatprep.subr.bf16.mxu0 %v3528_v44  ;;  %v2597_v26 = vsel %vm1976_vm5, %v2581_v23, %v5588_v16  ;;  %v2614_v41 = vsel %vm1985_vm6, %v2598_v17, %v5574_v56  ;;  %v2514_v56 = vrot.slane %v5889_v58, 1 }
 0x29f   : > { %2547 = vrot.lane.b32.xlu0 %v2515_v14, %s4070_s22  ;;  %v5951_v57 = vpop.permute.xlu1 %2123  ;;  %3531 = vmatpush3.bf16.msra.mxu0 %v3528_v44  ;;  %v2613_v51 = vsel %vm1985_vm6, %v2597_v26, %v5621_v40  ;;  %v2630_v43 = vsel %vm6868_vm7, %v2614_v41, %v5662_v6  ;;  %v2802_v40 = vld [vmem:[%s6815_s4 + $0x20] sm:$0xff]  ;;  %v2807_v41 = vld [vmem:[%s6815_s4 + $0x48] sm:$0xff] }
 0x2a0   : > { %v2629_v16 = vsel %vm6868_vm7, %v2613_v51, %v5662_v6  ;;  %3533 = vmatprep.subr.bf16.mxu0 %v3532_v45  ;;  %v2646_v44 = vsel %vm2003_vm8, %v2630_v43, %v5687_v19  ;;  %v2803_v6 = vld [vmem:[%s6815_s4 + $0x28] sm:$0xff]  ;;  %v2516_v26 = vsel %vm1460_vm2, %v2514_v56, %v2515_v14 }
 0x2a1   : > { %v5946_v20 = vpop.permute.xlu0 %2125  ;;  %2494 = vrot.lane.b32.xlu1 %v5889_v58, %s4069_s17  ;;  %v2662_v51 = vsel %vm2012_vm9, %v2646_v44, %v5685_v50  ;;  %v3536_v19 = vpack.c.bf16 %v2803_v6, %v2802_v40  ;;  %v2808_v40 = vld [vmem:[%s6815_s4 + $0x50] sm:$0xff] }
 0x2a2   : > { %7023 = vst [vmem:[#allocation146_spill] sm:$0xff] %v5946_v20  ;;  %v2678_v58 = vsel %vm6866_vm10, %v2662_v51, %v5768_v4  ;;  %v2567_v51 = vsel %vm515_vm0, %v5000_v0, %v5561_v36 }
 0x2a3   : > { %1857 = vrot.lane.b32.xlu0 %v4937_v22, %s4072_s29  ;;  %v5979_v13 = vpop.permute.xlu1 %2287  ;;  %3535 = vmatpush3.bf16.msra.mxu0 %v3532_v45  ;;  %v2694_v50 = vsel %vm2030_vm11, %v2678_v58, %v5816_v21  ;;  %v2805_v21 = vld [vmem:[%s6815_s4 + $0x38] sm:$0xff]  ;;  %v2568_v58 = vsel %vm515_vm0, %v5072_v52, %v5523_v1  ;;  %v2810_v52 = vld [vmem:[%s6815_s4 + $0x60] sm:$0xff]  ;;  %v2811_v1 = vld [vmem:[%s6815_s4 + $0x68] sm:$0xf] }
 0x2a4   : > { %3537 = vmatprep.subr.bf16.mxu0 %v3536_v19 }
 0x2a5   : > { %v5973_v20 = vpop.permute.xlu0 %2173  ;;  %2541 = vrot.lane.b32.xlu1 %v2390_v9, %s4070_s22 }
 0x2a7   : > { %1885 = vrot.lane.b32.xlu0 %v5011_v29, %s4073_s21  ;;  %v2645_v29 = vsel %vm2003_vm8, %v2629_v16, %v5643_v11  ;;  %v6005_v37 = vpop.permute.xlu1 %2447  ;;  %v2710_v11 = vsel %vm2039_vm12, %v2694_v50, %v5863_v46  ;;  %3539 = vmatpush3.bf16.msra.mxu0 %v3536_v19 }
 0x2a8   : > { %v2661_v49 = vsel %vm2012_vm9, %v2645_v29, %v5724_v48  ;;  %v2804_v48 = vld [vmem:[%s6815_s4 + $0x30] sm:$0xff] }
 0x2a9   : > { %v5999_v23 = vpop.permute.xlu0 %2356  ;;  %v2677_v9 = vsel %vm6866_vm10, %v2661_v49, %v5768_v4  ;;  %2545 = vrot.lane.b32.xlu1 %v2516_v26, %s4070_s22  ;;  %v3540_v46 = vpack.c.bf16 %v2805_v21, %v2804_v48  ;;  %v2578_v49 = vsel %vm515_vm0, %v5564_v42, %v5951_v57 }
 0x2aa   : > { %v2693_v4 = vsel %vm2030_vm11, %v2677_v9, %v5763_v31  ;;  %v2806_v31 = vld [vmem:[%s6815_s4 + $0x40] sm:$0xff] }
 0x2ab   : > { %1912 = vrot.lane.b32.xlu0 %v5101_v30, %s4074_s28  ;;  %v2709_v14 = vsel %vm2039_vm12, %v2693_v4, %v5825_v7  ;;  %v2742_v30 = vrot.slane %v2710_v11, 1  ;;  %v6027_v45 = vpop.permute.xlu1 %2476  ;;  %3541 = vmatprep.subr.bf16.mxu0 %v3540_v46  ;;  %v3544_v7 = vpack.c.bf16 %v2807_v41, %v2806_v31  ;;  %v3552_v11 = vpack.c.bf16 %v2811_v1, %v2810_v52  ;;  %v7026_v31 = vld [vmem:[#allocation122_spill] sm:$0xff]  ;;  %v7027_v41 = vld [vmem:[#allocation133_spill] sm:$0xff] }
 0x2ac   : > { %v2741_v16 = vrot.slane %v2709_v14, 1  ;;  %3543 = vmatpush3.bf16.msra.mxu0 %v3540_v46  ;;  %v7024_v46 = vld [vmem:[#allocation29_spill] sm:$0xff] }
 0x2ad   : > { %v6025_v17 = vpop.permute.xlu0 %2478  ;;  %1855 = vrot.lane.b32.xlu1 %v4985_v2, %s4072_s29  ;;  %3545 = vmatprep.subr.bf16.mxu0 %v3544_v7  ;;  %v2809_v2 = vld [vmem:[%s6815_s4 + $0x58] sm:$0xff] }
 0x2ae   : > { %v2743_v56 = vsel %vm1460_vm2, %v2741_v16, %v2742_v30  ;;  %v3548_v6 = vpack.c.bf16 %v2809_v2, %v2808_v40  ;;  %v7025_v14 = vld [vmem:[#allocation37_spill] sm:$0xff]  ;;  %v7028_v16 = vld [vmem:[#allocation43_spill] sm:$0xff] }
 0x2af   : > { %1859 = vrot.lane.b32.xlu0 %v5000_v0, %s4072_s29  ;;  %v6041_v44 = vpop.permute.xlu1 %2127  ;;  %v1822_v30 = vrot.slane %v7025_v14, 2  ;;  %v7033_v52 = vld [vmem:[#allocation25_spill] sm:$0xff] }
 0x2b0   : > { %3547 = vmatpush3.bf16.msra.mxu0 %v3544_v7 }
 0x2b1   : > { %v6039_v43 = vpop.permute.xlu0 %2525  ;;  %1883 = vrot.lane.b32.xlu1 %v5085_v34, %s4073_s21  ;;  %3549 = vmatprep.subr.bf16.mxu0 %v3548_v6  ;;  %v2583_v34 = vsel %vm6865_vm4, %v2567_v51, %v5533_v15 }
 0x2b2   : > { %v2599_v36 = vsel %vm1976_vm5, %v2583_v34, %v5607_v54 }
 0x2b3   : > { %2765 = vrot.lane.b32.xlu0 %v2743_v56, %s4075_s27  ;;  %v6058_v29 = vpop.permute.xlu1 %2325  ;;  %v2615_v57 = vsel %vm1985_vm6, %v2599_v36, %v5645_v24 }
 0x2b4   : > { %3551 = vmatpush3.bf16.msra.mxu0 %v3548_v6  ;;  %v2631_v48 = vsel %vm6868_vm7, %v2615_v57, %v5679_v35 }
 0x2b5   : > { %v6056_v19 = vpop.permute.xlu0 %2175  ;;  %1910 = vrot.lane.b32.xlu1 %v5167_v39, %s4074_s28  ;;  %v2584_v39 = vsel %vm6865_vm4, %v2568_v58, %v5533_v15  ;;  %v2647_v24 = vsel %vm2003_vm8, %v2631_v48, %v5715_v38  ;;  %3554 = vmatprep.subr.msk.bf16.mxu0 %vm3553_vm15, %v3552_v11  ;;  %v7036_v48 = vld [vmem:[#allocation113_spill] sm:$0xff] }
 0x2b6   : > { %v2600_v26 = vsel %vm1976_vm5, %v2584_v39, %v5553_v32  ;;  %v2663_v21 = vsel %vm2012_vm9, %v2647_v24, %v5753_v3  ;;  %v7037_v24 = vld [vmem:[#allocation115_spill] sm:$0xff] }
 0x2b7   : > { %1887 = vrot.lane.b32.xlu0 %v5106_v60, %s4073_s21  ;;  %v2594_v60 = vsel %vm6865_vm4, %v2578_v49, %v5973_v20  ;;  %v6086_v54 = vpop.permute.xlu1 %2358  ;;  %v2616_v15 = vsel %vm1985_vm6, %v2600_v26, %v5605_v8  ;;  %v2679_v8 = vsel %vm6866_vm10, %v2663_v21, %v5806_v63  ;;  %v7031_v49 = vld [vmem:[#allocation118_spill] sm:$0xff]  ;;  %v7038_v21 = vld [vmem:[#allocation116_spill] sm:$0xff] }
 0x2b8   : > { %v2632_v32 = vsel %vm6868_vm7, %v2616_v15, %v5679_v35  ;;  %3557 = vmatpush3.bf16.msk.msra.mxu0 %vm3553_vm15, %v3552_v11  ;;  %v2695_v3 = vsel %vm2030_vm11, %v2679_v8, %v7027_v41  ;;  %v7035_v26 = vld [vmem:[#allocation114_spill] sm:$0xff]  ;;  %v2580_v15 = vsel %vm515_vm0, %v7036_v48, %v6041_v44  ;;  %v7039_v8 = vld [vmem:[#allocation117_spill] sm:$0xff]  ;;  %v7040_v44 = vld [vmem:[#allocation119_spill] sm:$0xff]  ;;  %vm2789_vm15 = vcmask 523264  }
 0x2b9   : > { %v2220_v50 = vpop.permute.xlu0 %2219  ;;  %1935 = vrot.lane.b32.xlu1 %v4937_v22, %s4077_s18  ;;  %v1821_v22 = vrot.slane %v7024_v46, 2  ;;  %v2711_v7 = vsel %vm2039_vm12, %v2695_v3, %v5896_v18  ;;  %v7030_v18 = vld [vmem:[#allocation108_spill] sm:$0xff]  ;;  %v7041_v41 = vld [vmem:[#allocation121_spill] sm:$0xff] }
 0x2ba   : > { %v6089_v9 = vsel %vm1976_vm5, %v2594_v60, %v2220_v50  ;;  %v2744_v58 = vrot.slane %v2711_v7, 1  ;;  %v7032_v50 = vld [vmem:[#allocation109_spill] sm:$0xff] }
 0x2bb   : > { %1889 = vrot.lane.b32.xlu0 %v5039_v27, %s4073_s21  ;;  %v2648_v27 = vsel %vm2003_vm8, %v2632_v32, %v5677_v55  ;;  %v6114_v38 = vpop.permute.xlu1 %2480  ;;  %v6137_v51 = vsel %vm1509_vm3, %v1821_v22, %v1822_v30  ;;  %v2570_v1 = vsel %vm515_vm0, %v7033_v52, %v7032_v50  ;;  %v7047_v50 = vld [vmem:[#allocation126_spill] sm:$0xff] }
 0x2bc   : > { %v2664_v35 = vsel %vm2012_vm9, %v2648_v27, %v7026_v31 }
 0x2bd   : > { %v6108_v4 = vpop.permute.xlu0 %2362  ;;  %v2680_v55 = vsel %vm6866_vm10, %v2664_v35, %v5806_v63  ;;  %1937 = vrot.lane.b32.xlu1 %v5000_v0, %s4077_s18  ;;  %v7029_v63 = vld [vmem:[#allocation19_spill] sm:$0xff] }
 0x2be   : > { %v2696_v56 = vsel %vm2030_vm11, %v2680_v55, %v5854_v53  ;;  %v2577_v53 = vsel %vm515_vm0, %v7030_v18, %v5901_v25  ;;  %v7034_v25 = vld [vmem:[#allocation111_spill] sm:$0xff]  ;;  %v2569_v32 = vsel %vm515_vm0, %v7029_v63, %v7037_v24 }
 0x2bf   : > { %1916 = vrot.lane.b32.xlu0 %v7028_v16, %s4074_s28  ;;  %v2712_v2 = vsel %vm2039_vm12, %v2696_v56, %v5868_v59  ;;  %v2528_v6 = vpop.permute.xlu1 %2527  ;;  %v2572_v59 = vsel %vm515_vm0, %v7025_v14, %v7031_v49  ;;  %v2593_v36 = vsel %vm6865_vm4, %v2577_v53, %v5973_v20  ;;  %v2571_v11 = vsel %vm515_vm0, %v7024_v46, %v7034_v25  ;;  %v7042_v56 = vld [vmem:[#allocation120_spill] sm:$0xff]  ;;  %v7044_v53 = vld [vmem:[#allocation131_spill] sm:$0xff] }
 0x2c0   : > { %v2745_v0 = vrot.slane %v2712_v2, 1  ;;  %v2586_v20 = vsel %vm6865_vm4, %v2570_v1, %v7035_v26  ;;  %v2588_v27 = vsel %vm6865_vm4, %v2572_v59, %v7038_v21  ;;  %v2596_v14 = vsel %vm6865_vm4, %v2580_v15, %v6056_v19  ;;  %v7045_v59 = vld [vmem:[#allocation22_spill] sm:$0xff]  ;;  %v7048_v25 = vld [vmem:[#allocation52_spill] sm:$0xff] }
 0x2c1   : > { %v6132_v40 = vpop.permute.xlu0 %2409  ;;  %1861 = vrot.lane.b32.xlu1 %v7029_v63, %s4072_s29  ;;  %v2602_v22 = vsel %vm1976_vm5, %v2586_v20, %v7039_v8  ;;  %v2585_v31 = vsel %vm6865_vm4, %v2569_v32, %v7035_v26  ;;  %v2604_v35 = vsel %vm1976_vm5, %v2588_v27, %v7040_v44  ;;  %v2587_v7 = vsel %vm6865_vm4, %v2571_v11, %v7038_v21  ;;  %v7049_v11 = vld [vmem:[#allocation125_spill] sm:$0xff]  ;;  %v7050_v32 = vld [vmem:[#allocation132_spill] sm:$0xff] }
 0x2c2   : > { %v2746_v57 = vsel %vm1460_vm2, %v2744_v58, %v2745_v0  ;;  %v2618_v3 = vsel %vm1985_vm6, %v2602_v22, %v7041_v41  ;;  %v2601_v2 = vsel %vm1976_vm5, %v2585_v31, %v7042_v56  ;;  %v7043_v58 = vld [vmem:[#allocation127_spill] sm:$0xff]  ;;  %v2620_v49 = vsel %vm1985_vm6, %v2604_v35, %v7044_v53 }
 0x2c3   : > { %1840 = vrot.lane.b32.xlu0 %v6137_v51, %s4071_s25  ;;  %v2218_v60 = vpop.permute.xlu1 %2217  ;;  %v2634_v0 = vsel %vm6868_vm7, %v2618_v3, %v7043_v58  ;;  %v2617_v52 = vsel %vm1985_vm6, %v2601_v2, %v7047_v50  ;;  %v2636_v1 = vsel %vm6868_vm7, %v2620_v49, %v5838_v5 }
 0x2c4   : > { %v6155_v39 = vsel %vm1976_vm5, %v2593_v36, %v2218_v60  ;;  %v7046_v36 = vld [vmem:[#allocation124_spill] sm:$0xff]  ;;  %v2633_v20 = vsel %vm6868_vm7, %v2617_v52, %v7043_v58  ;;  %v2652_v48 = vsel %vm2003_vm8, %v2636_v1, %v5852_v61  ;;  %v7051_v61 = vld [vmem:[#allocation139_spill] sm:$0xff]  ;;  %v1824_v52 = vrot.slane %v7045_v59, 2 }
 0x2c5   : > { %v2532_v34 = vpop.permute.xlu0 %2531  ;;  %2767 = vrot.lane.b32.xlu1 %v2746_v57, %s4075_s27  ;;  %v2603_v60 = vsel %vm1976_vm5, %v2587_v7, %v7046_v36  ;;  %v2650_v57 = vsel %vm2003_vm8, %v2634_v0, %v5846_v47  ;;  %v2649_v47 = vsel %vm2003_vm8, %v2633_v20, %v7050_v32  ;;  %v2668_v27 = vsel %vm2012_vm9, %v2652_v48, %v5893_v10  ;;  %v7055_v1 = vld [vmem:[#allocation28_spill] sm:$0xff]  ;;  %v7057_v20 = vld [vmem:[#allocation33_spill] sm:$0xff] }
 0x2c6   : > { %v2619_v26 = vsel %vm1985_vm6, %v2603_v60, %v7049_v11  ;;  %v2666_v15 = vsel %vm2012_vm9, %v2650_v57, %v5860_v28  ;;  %v7052_v28 = vld [vmem:[#allocation141_spill] sm:$0xff]  ;;  %v2684_v31 = vsel %vm6866_vm10, %v2668_v27, %v6005_v37  ;;  %v7056_v57 = vld [vmem:[#allocation44_spill] sm:$0xff]  ;;  %v1827_v48 = vrot.slane %v7057_v20, 2 }
 0x2c7   : > { %1941 = vrot.lane.b32.xlu0 %v7024_v46, %s4077_s18  ;;  %v6184_v16 = vpop.permute.xlu1 %2360  ;;  %v2635_v21 = vsel %vm6868_vm7, %v2619_v26, %v5838_v5  ;;  %v2682_v8 = vsel %vm6866_vm10, %v2666_v15, %v5930_v12  ;;  %v2700_v35 = vsel %vm2030_vm11, %v2684_v31, %v6114_v38  ;;  %v7058_v15 = vld [vmem:[#allocation40_spill] sm:$0xff] }
 0x2c8   : > { %v2698_v5 = vsel %vm2030_vm11, %v2682_v8, %v6027_v45  ;;  %v2716_v7 = vsel %vm2039_vm12, %v2700_v35, %v2532_v34  ;;  %v1828_v32 = vrot.slane %v7058_v15, 2 }
 0x2c9   : > { %v2224_v30 = vpop.permute.xlu0 %2223  ;;  %1914 = vrot.lane.b32.xlu1 %v7048_v25, %s4074_s28  ;;  %v2714_v41 = vsel %vm2039_vm12, %v2698_v5, %v2528_v6  ;;  %v2751_v2 = vrot.slane %v2716_v7, 1  ;;  %v7060_v5 = vld [vmem:[#allocation123_spill] sm:$0xff] }
 0x2ca   : > { %v6187_v55 = vsel %vm1976_vm5, %v2596_v14, %v2224_v30  ;;  %v2651_v14 = vsel %vm2003_vm8, %v2635_v21, %v7051_v61  ;;  %v2665_v30 = vsel %vm2012_vm9, %v2649_v47, %v7052_v28  ;;  %v2748_v56 = vrot.slane %v2714_v41, 1  ;;  %v7059_v47 = vld [vmem:[#allocation34_spill] sm:$0xff] }
 0x2cb   : > { %1865 = vrot.lane.b32.xlu0 %v7045_v59, %s4072_s29  ;;  %v6227_v22 = vpop.permute.xlu1 %2407  ;;  %v2667_v10 = vsel %vm2012_vm9, %v2651_v14, %v5921_v62  ;;  %v2681_v44 = vsel %vm6866_vm10, %v2665_v30, %v5930_v12  ;;  %v6295_v27 = vsel %vm1509_vm3, %v1827_v48, %v1828_v32  ;;  %v7062_v41 = vld [vmem:[#allocation130_spill] sm:$0xff] }
 0x2cc   : > { %v2697_v3 = vsel %vm2030_vm11, %v2681_v44, %v5927_v33  ;;  %v2683_v45 = vsel %vm6866_vm10, %v2667_v10, %v6005_v37  ;;  %v7053_v33 = vld [vmem:[#allocation146_spill] sm:$0xff]  ;;  %v7054_v37 = vld [vmem:[#allocation112_spill] sm:$0xff]  ;;  %v2573_v10 = vsel %vm515_vm0, %v7045_v59, %v7060_v5  ;;  %v7061_v44 = vld [vmem:[#allocation129_spill] sm:$0xff] }
 0x2cd   : > { %v6217_v24 = vpop.permute.xlu0 %2291  ;;  %1939 = vrot.lane.b32.xlu1 %v7029_v63, %s4077_s18  ;;  %v2699_v12 = vsel %vm2030_vm11, %v2683_v45, %v6025_v17  ;;  %v2713_v38 = vsel %vm2039_vm12, %v2697_v3, %v6039_v43  ;;  %v2579_v34 = vsel %vm515_vm0, %v7054_v37, %v7053_v33  ;;  %v2574_v35 = vsel %vm515_vm0, %v7055_v1, %v7061_v44 }
 0x2ce   : > { %v2747_v0 = vrot.slane %v2713_v38, 1  ;;  %v2595_v17 = vsel %vm6865_vm4, %v2579_v34, %v6056_v19  ;;  %v1825_v19 = vrot.slane %v7055_v1, 2  ;;  %v2589_v3 = vsel %vm6865_vm4, %v2573_v10, %v7062_v41  ;;  %v7067_v34 = vld [vmem:[#allocation145_spill] sm:$0xff]  ;;  %v7069_v10 = vld [vmem:[#allocation135_spill] sm:$0xff] }
 0x2cf   : > { %v2530_v6 = vpop.permute.xlu1 %2529  ;;  %v2590_v45 = vsel %vm6865_vm4, %v2574_v35, %v7062_v41  ;;  %v7070_v35 = vld [vmem:[#allocation138_spill] sm:$0xff] }
 0x2d0   : > { %v2715_v63 = vsel %vm2039_vm12, %v2699_v12, %v2530_v6  ;;  %v1826_v26 = vsel %vm1509_vm3, %v1824_v52, %v1825_v19  ;;  %v7063_v12 = vld [vmem:[#allocation136_spill] sm:$0xff]  ;;  %v7064_v6 = vld [vmem:[#allocation137_spill] sm:$0xff] }
 0x2d1   : > { %v6251_v62 = vpop.permute.xlu0 %2413  ;;  %v2750_v58 = vrot.slane %v2715_v63, 1  ;;  %1863 = vrot.lane.b32.xlu1 %v7024_v46, %s4072_s29  ;;  %v2749_v46 = vsel %vm1460_vm2, %v2747_v0, %v2748_v56  ;;  %v2606_v38 = vsel %vm1976_vm5, %v2590_v45, %v7063_v12  ;;  %v2605_v56 = vsel %vm1976_vm5, %v2589_v3, %v7064_v6  ;;  %v7071_v45 = vld [vmem:[#allocation128_spill] sm:$0xff] }
 0x2d3   : > { %v2222_v43 = vpop.permute.xlu1 %2221  ;;  %v2752_v49 = vsel %vm1460_vm2, %v2750_v58, %v2751_v2  ;;  %v7066_v58 = vld [vmem:[#allocation144_spill] sm:$0xff] }
 0x2d4   : > { %v6269_v36 = vsel %vm1976_vm5, %v2595_v17, %v2222_v43  ;;  %2771 = vrot.lane.b32.xlu0 %v2752_v49, %s4075_s27  ;;  %v2621_v33 = vsel %vm1985_vm6, %v2605_v56, %v7066_v58 }
 0x2d5   : > { %v6263_v53 = vpop.permute.xlu0 %2293  ;;  %2769 = vrot.lane.b32.xlu1 %v2749_v46, %s4075_s27  ;;  %v2637_v0 = vsel %vm6868_vm7, %v2621_v33, %v7067_v34 }
 0x2d6   : > { %v2653_v43 = vsel %vm2003_vm8, %v2637_v0, %v5999_v23 }
 0x2d7   : > { %v6276_v50 = vpop.permute.xlu1 %2289  ;;  %v2669_v1 = vsel %vm2012_vm9, %v2653_v43, %v6227_v22 }
 0x2d8   : > { %1918 = vrot.lane.b32.xlu0 %v6137_v51, %s4074_s28 }
 0x2d9   : > { %v6274_v60 = vpop.permute.xlu0 %2327  ;;  %1891 = vrot.lane.b32.xlu1 %v7056_v57, %s4073_s21 }
 0x2db   : > { %v6284_v11 = vpop.permute.xlu1 %2411 }
 0x2dc   : > { %1920 = vrot.lane.b32.xlu0 %v1826_v26, %s4074_s28 }
 0x2dd   : > { %v2483_v25 = vpop.permute.xlu0 %2482  ;;  %1893 = vrot.lane.b32.xlu1 %v7059_v47, %s4073_s21  ;;  %v7068_v47 = vld [vmem:[#allocation134_spill] sm:$0xff] }
 0x2df   : > { %v2450_v51 = vpop.permute.xlu1 %2449 }
 0x2e0   : > { %1844 = vrot.lane.b32.xlu0 %v6295_v27, %s4071_s25  ;;  %v2685_v57 = vsel %vm6866_vm10, %v2669_v1, %v2450_v51 }
 0x2e1   : > { %v6292_v21 = vpop.permute.xlu0 %2329  ;;  %1842 = vrot.lane.b32.xlu1 %v1826_v26, %s4071_s25  ;;  %v2701_v5 = vsel %vm2030_vm11, %v2685_v57, %v2483_v25  ;;  %v2575_v25 = vsel %vm515_vm0, %v7057_v20, %v7071_v45  ;;  %v1908_v57 = vrot.slane %v5564_v42, 2  ;;  %v2967_v45 = vld [vmem:[%s4333_s24 + $0x40] sm:$0xff] }
 0x2e2   : > { %v2591_v6 = vsel %vm6865_vm4, %v2575_v25, %v7069_v10  ;;  %v2968_v25 = vld [vmem:[%s4333_s24 + $0x48] sm:$0x3] }
 0x2e3   : > { %v6302_v61 = vpop.permute.xlu1 %2295 }
 0x2e4   : > { %1945 = vrot.lane.b32.xlu0 %v7057_v20, %s4077_s18 }
 0x2e5   : > { %v6300_v8 = vpop.permute.xlu0 %2366  ;;  %1943 = vrot.lane.b32.xlu1 %v7045_v59, %s4077_s18  ;;  %v7065_v59 = vld [vmem:[#allocation140_spill] sm:$0xff] }
 0x2e6   : > { %v2622_v2 = vsel %vm1985_vm6, %v2606_v38, %v7065_v59 }
 0x2e7   : > { %v2452_v28 = vpop.permute.xlu1 %2451  ;;  %v2638_v17 = vsel %vm6868_vm7, %v2622_v2, %v7067_v34  ;;  %v7073_v2 = vld [vmem:[#allocation143_spill] sm:$0xff] }
 0x2e8   : > { %1869 = vrot.lane.b32.xlu0 %v7030_v18, %s4072_s29  ;;  %v2654_v49 = vsel %vm2003_vm8, %v2638_v17, %v6086_v54  ;;  %v2576_v54 = vsel %vm515_vm0, %v7058_v15, %v7068_v47  ;;  %v7075_v47 = vld [vmem:[#allocation110_spill] sm:$0xff] }
 0x2e9   : > { %v2489_v14 = vpop.permute.xlu0 %2488  ;;  %1867 = vrot.lane.b32.xlu1 %v7057_v20, %s4072_s29  ;;  %v2670_v52 = vsel %vm2012_vm9, %v2654_v49, %v6132_v40  ;;  %v2592_v22 = vsel %vm6865_vm4, %v2576_v54, %v7069_v10  ;;  %v7074_v49 = vld [vmem:[#allocation47_spill] sm:$0xff]  ;;  %v2963_v54 = vld [vmem:[%s4333_s24 + $0x20] sm:$0xff] }
 0x2ea   : > { %v2686_v26 = vsel %vm6866_vm10, %v2670_v52, %v2450_v51  ;;  %v2608_v51 = vsel %vm1976_vm5, %v2592_v22, %v7070_v35  ;;  %v2996_v22 = vrot.slane %v2963_v54, 1  ;;  %v2966_v35 = vld [vmem:[%s4333_s24 + $0x38] sm:$0x3]  ;;  %v2975_v54 = vld [vmem:[%s4333_s24 + $0x80] sm:$0xff] }
 0x2eb   : > { %v2485_v31 = vpop.permute.xlu1 %2484 }
 0x2ec   : > { %v2702_v48 = vsel %vm2030_vm11, %v2686_v26, %v2485_v31 }
 0x2ed   : > { %v2536_v30 = vpop.permute.xlu0 %2535 }
 0x2ee   : > { %v2718_v23 = vsel %vm2039_vm12, %v2702_v48, %v2536_v30  ;;  %v2624_v30 = vsel %vm1985_vm6, %v2608_v51, %v5979_v13  ;;  %v7072_v13 = vld [vmem:[#allocation142_spill] sm:$0xff] }
 0x2ef   : > { %v6328_v63 = vpop.permute.xlu1 %2364  ;;  %v2754_v41 = vrot.slane %v2718_v23, 1  ;;  %v2640_v15 = vsel %vm6868_vm7, %v2624_v30, %v6058_v29  ;;  %v2607_v59 = vsel %vm1976_vm5, %v2591_v6, %v7072_v13  ;;  %v2961_v23 = vld [vmem:[%s4333_s24 + $0x10] sm:$0xff]  ;;  %v3000_v30 = vrot.slane %v2966_v35, 1 }
 0x2f0   : > { %v2656_v56 = vsel %vm2003_vm8, %v2640_v15, %v6108_v4  ;;  %v2623_v58 = vsel %vm1985_vm6, %v2607_v59, %v7073_v2  ;;  %v2993_v42 = vrot.slane %v2961_v23, 1  ;;  %v2969_v15 = vld [vmem:[%s4333_s24 + $0x50] sm:$0xff]  ;;  %v3002_v59 = vrot.slane %v2967_v45, 1 }
 0x2f1   : > { %v6322_v7 = vpop.permute.xlu0 %2370  ;;  %v2672_v20 = vsel %vm2012_vm9, %v2656_v56, %v6251_v62  ;;  %v2639_v0 = vsel %vm6868_vm7, %v2623_v58, %v6058_v29  ;;  %v3003_v58 = vrot.slane %v2968_v25, 1 }
 0x2f2   : > { %v2688_v33 = vsel %vm6866_vm10, %v2672_v20, %v2452_v28  ;;  %v2655_v43 = vsel %vm2003_vm8, %v2639_v0, %v6184_v16  ;;  %v2970_v20 = vld [vmem:[%s4333_s24 + $0x58] sm:$0x3] }
 0x2f3   : > { %v2487_v19 = vpop.permute.xlu1 %2486  ;;  %v2704_v4 = vsel %vm2030_vm11, %v2688_v33, %v2489_v14  ;;  %v2671_v52 = vsel %vm2012_vm9, %v2655_v43, %v6284_v11  ;;  %v1907_v14 = vrot.slane %v7030_v18, 2  ;;  %v3017_v11 = vld [vmem:[%s6817_s6] sm:$0xf]  ;;  %v3005_v33 = vrot.slane %v2969_v15, 1 }
 0x2f4   : > { %v2687_v1 = vsel %vm6866_vm10, %v2671_v52, %v2452_v28  ;;  %3514 = vmatprep.subr.msk.mxu1 %vm2844_vm13, %v3017_v11  ;;  %v3006_v0 = vrot.slane %v2970_v20, 1  ;;  %v3004_v43 = vsel %vm1460_vm2, %v3002_v59, %v3003_v58  ;;  %v2626_v52 = vsel %vm1985_vm6, %v6089_v9, %v6217_v24  ;;  %v2974_v9 = vld [vmem:[%s4333_s24 + $0x78] sm:$0x3]  ;;  %v7076_v20 = vld [vmem:[#allocation18_spill] sm:$0xff] }
 0x2f5   : > { %v6342_v46 = vpop.permute.xlu0 %2417  ;;  %v2703_v16 = vsel %vm2030_vm11, %v2687_v1, %v2487_v19  ;;  %3515 = vmatpush3.msk.msra.mxu1 %vm2844_vm13, %v3017_v11  ;;  %v1909_v6 = vsel %vm1509_vm3, %v1907_v14, %v1908_v57  ;;  %v2642_v14 = vsel %vm6868_vm7, %v2626_v52, %v6274_v60  ;;  %v2973_v11 = vld [vmem:[%s4333_s24 + $0x70] sm:$0xff]  ;;  %v2628_v24 = vsel %vm1985_vm6, %v6187_v55, %v6302_v61  ;;  %v7079_v52 = vld [vmem:[#allocation10_spill] sm:$0xff] }
 0x2f6   : > { %vm2066_vm3 = vcmask 424960   ;;  %vm2084_vm13 = vcmask 490496  }
 0x2f7   : > { %v2534_v40 = vpop.permute.xlu1 %2533 }
 0x2f8   : > { %v2717_v44 = vsel %vm2039_vm12, %v2701_v5, %v2534_v40  ;;  %v2964_v5 = vld [vmem:[%s4333_s24 + $0x28] sm:$0x3]  ;;  %v2965_v40 = vld [vmem:[%s4333_s24 + $0x30] sm:$0xff] }
 0x2f9   : > { %v2540_v32 = vpop.permute.xlu0 %2539  ;;  %v2753_v31 = vrot.slane %v2717_v44, 1  ;;  %v2997_v44 = vrot.slane %v2964_v5, 1  ;;  %v2999_v51 = vrot.slane %v2965_v40, 1  ;;  %v3014_v40 = vrot.slane %v2975_v54, 1 }
 0x2fa   : > { %v2720_v62 = vsel %vm2039_vm12, %v2704_v4, %v2540_v32  ;;  %v2962_v32 = vld [vmem:[%s4333_s24 + $0x18] sm:$0x3] }
 0x2fb   : > { %v6370_v12 = vpop.permute.xlu1 %2368  ;;  %v2755_v38 = vsel %vm1460_vm2, %v2753_v31, %v2754_v41  ;;  %v2757_v26 = vrot.slane %v2720_v62, 1  ;;  %v2994_v19 = vrot.slane %v2962_v32, 1  ;;  %v2998_v13 = vsel %vm1460_vm2, %v2996_v22, %v2997_v44 }
 0x2fc   : > { %2773 = vrot.lane.b32.xlu1 %v2755_v38, %s4075_s27  ;;  %v3001_v2 = vsel %vm1460_vm2, %v2999_v51, %v3000_v30  ;;  %v3011_v32 = vrot.slane %v2973_v11, 1 }
 0x2fd   : > { %v6363_v3 = vpop.permute.xlu0 %2421  ;;  %v2995_v31 = vsel %vm1460_vm2, %v2993_v42, %v2994_v19  ;;  %v2627_v19 = vsel %vm1985_vm6, %v6269_v36, %v6263_v53 }
 0x2fe   : > { %3516 = vmatprep.mubr.msk.f32.mxu1 %vm515_vm0, %v2995_v31  ;;  %v2643_v36 = vsel %vm6868_vm7, %v2627_v19, %v6292_v21  ;;  %v7087_v19 = vld [vmem:[#allocation2_spill] sm:$0xff] }
 0x2ff   : > { %v6390_v17 = vpop.permute.xlu1 %2415  ;;  %3517 = vmatmul.mubr.msk.f32.vlgmr.msra.gmra.mrb[0].mxu1 %vm515_vm0, %v2998_v13  ;;  %v2659_v44 = vsel %vm2003_vm8, %v2643_v36, %v6370_v12 }
 0x300   : > { %1895 = vrot.lane.b32.xlu1 %v7074_v49, %s4073_s21  ;;  %3519 = vmatprep.mubr.msk.f32.mxu1 %vm515_vm0, %v3001_v2  ;;  %v3007_v49 = vsel %vm1460_vm2, %v3005_v33, %v3006_v0  ;;  %v7077_v2 = vld [vmem:[#allocation8_spill] sm:$0xff] }
 0x301   : > { %v6385_v34 = vpop.permute.xlu0 %2455  ;;  %v1959_v58 = vsel %vm515_vm0, %v7077_v2, %v7076_v20  ;;  %v7098_v20 = vld [vmem:[#allocation100_spill] sm:$0xff] }
 0x303   : > { %v2538_v48 = vpop.permute.xlu1 %2537  ;;  %3520 = vmatmul.mubr.msk.f32.gmra.mrb[2].mxu1 %vm515_vm0, %v3004_v43 }
 0x304   : > { %v2719_v28 = vsel %vm2039_vm12, %v2703_v16, %v2538_v48  ;;  %1897 = vrot.lane.b32.xlu1 %v7075_v47, %s4073_s21  ;;  %3522 = vmatprep.mubr.msk.f32.mxu1 %vm515_vm0, %v3007_v49  ;;  %v2971_v16 = vld [vmem:[%s4333_s24 + $0x60] sm:$0xff]  ;;  %s3356_s21 = sshll.u32 %s7218_s10, 5 }
 0x305   : > { %v6400_v29 = vpop.permute.xlu0 %2492  ;;  %v2756_v10 = vrot.slane %v2719_v28, 1  ;;  %v3012_v28 = vrot.slane %v2974_v9, 1  ;;  %v7083_v9 = vld [vmem:[#allocation67_spill] sm:$0xff] }
 0x307   : > { %v6425_v38 = vpop.permute.xlu1 %2419  ;;  %v2758_v56 = vsel %vm1460_vm2, %v2756_v10, %v2757_v26  ;;  %v2972_v26 = vld [vmem:[%s4333_s24 + $0x68] sm:$0x3] }
 0x308   : > { %1924 = vrot.lane.b32.xlu1 %v1909_v6, %s4074_s28  ;;  %2775 = vrot.lane.b32.xlu0 %v2758_v56, %s4075_s27  ;;  %v3009_v48 = vrot.slane %v2972_v26, 1 }
 0x309   : > { %v6419_v41 = vpop.permute.xlu0 %2496 }
 0x30b   : > { %v2454_v62 = vpop.permute.xlu1 %2453 }
 0x30c   : > { %1949 = vrot.lane.b32.xlu1 %v7054_v37, %s4077_s18  ;;  %1922 = vrot.lane.b32.xlu0 %v6295_v27, %s4074_s28  ;;  %v2658_v37 = vsel %vm2003_vm8, %v2642_v14, %v6300_v8  ;;  %v3008_v27 = vrot.slane %v2971_v16, 1  ;;  %v2625_v8 = vsel %vm1985_vm6, %v6155_v39, %v6276_v50  ;;  %v2976_v39 = vld [vmem:[%s4333_s24 + $0x88] sm:$0x3]  ;;  %v2644_v50 = vsel %vm6868_vm7, %v2628_v24, %v6292_v21  ;;  %s3355_s24 = sshll.u32 %s7224_s30, 3 }
 0x30d   : > { %v2544_v4 = vpop.permute.xlu0 %2543  ;;  %v2674_v23 = vsel %vm2012_vm9, %v2658_v37, %v6342_v46  ;;  %v2641_v55 = vsel %vm6868_vm7, %v2625_v8, %v6274_v60  ;;  %v3013_v46 = vsel %vm1460_vm2, %v3011_v32, %v3012_v28  ;;  %v3015_v53 = vrot.slane %v2976_v39, 1  ;;  %v7080_v14 = vld [vmem:[#allocation39_spill] sm:$0xff]  ;;  %v7089_v39 = vld [vmem:[#allocation38_spill] sm:$0xff]  ;;  %s6765_s28 = sadd.s32 %s3356_s21, %s3355_s24 }
 0x30e   : > { %v3010_v42 = vsel %vm1460_vm2, %v3008_v27, %v3009_v48  ;;  %v2657_v5 = vsel %vm2003_vm8, %v2641_v55, %v6328_v63  ;;  %v2660_v60 = vsel %vm2003_vm8, %v2644_v50, %v6322_v7  ;;  %v7081_v16 = vld [vmem:[#allocation51_spill] sm:$0xff]  ;;  %s3357_s23 = sshll.u32 %s6765_s28, 3 }
 0x30f   : > { %v2491_v57 = vpop.permute.xlu1 %2490  ;;  %3523 = vmatmul.mubr.msk.f32.gmra.mrb[4].mxu1 %vm515_vm0, %v3010_v42  ;;  %v2673_v10 = vsel %vm2012_vm9, %v2657_v5, %v6390_v17  ;;  %v3016_v21 = vsel %vm1460_vm2, %v3014_v40, %v3015_v53  ;;  %v2676_v7 = vsel %vm2012_vm9, %v2660_v60, %v6363_v3  ;;  %v2675_v17 = vsel %vm2012_vm9, %v2659_v44, %v6425_v38  ;;  %v7082_v27 = vld [vmem:[#allocation59_spill] sm:$0xff]  ;;  %v7086_v42 = vld [vmem:[#allocation20_spill] sm:$0xff]  ;;  %s473_s16 = scalar_lea.vmem %s6820_s9, %s3357_s23 }
 0x310   : > { %1947 = vrot.lane.b32.xlu0 %v7030_v18, %s4077_s18  ;;  %v2690_v18 = vsel %vm6866_vm10, %v2674_v23, %v2454_v62  ;;  %3525 = vmatprep.mubr.msk.f32.mxu1 %vm515_vm0, %v3013_v46  ;;  %v2689_v63 = vsel %vm6866_vm10, %v2673_v10, %v2454_v62  ;;  %v2692_v12 = vsel %vm6866_vm10, %v2676_v7, %v6385_v34  ;;  %v7084_v23 = vld [vmem:[#allocation75_spill] sm:$0xff]  ;;  %s464_s18 = scalar_lea.vmem %s6819_s8, %s3357_s23 }
 0x311   : > { %v2548_v1 = vpop.permute.xlu0 %2547  ;;  %v2706_v22 = vsel %vm2030_vm11, %v2690_v18, %v6400_v29  ;;  %v2705_v31 = vsel %vm2030_vm11, %v2689_v63, %v2491_v57  ;;  %v2708_v45 = vsel %vm2030_vm11, %v2692_v12, %v6419_v41  ;;  %v2691_v3 = vsel %vm6866_vm10, %v2675_v17, %v6385_v34  ;;  %v7078_v41 = vld [vmem:[#allocation26_spill] sm:$0xff]  ;;  %v7085_v28 = vld [vmem:[#allocation83_spill] sm:$0xff]  ;;  %v7093_v17 = vld [vmem:[#allocation60_spill] sm:$0xff] }
 0x312   : > { %v2722_v35 = vsel %vm2039_vm12, %v2706_v22, %v2544_v4  ;;  %v2724_v38 = vsel %vm2039_vm12, %v2708_v45, %v2548_v1  ;;  %v1968_v0 = vsel %vm6865_vm4, %v1959_v58, %v7078_v41  ;;  %v1960_v55 = vsel %vm515_vm0, %v7087_v19, %v7086_v42  ;;  %v7090_v5 = vld [vmem:[#allocation99_spill] sm:$0xff]  ;;  %v7094_v12 = vld [vmem:[#allocation68_spill] sm:$0xff]  ;;  %v7099_v58 = vld [vmem:[#allocation106_spill] sm:$0xff] }
 0x313   : > { %v2495_v61 = vpop.permute.xlu1 %2494  ;;  %3526 = vmatmul.mubr.msk.f32.gmra.mrb[6].mxu1 %vm515_vm0, %v3016_v21  ;;  %v2760_v25 = vrot.slane %v2722_v35, 1  ;;  %v2763_v34 = vrot.slane %v2724_v38, 1  ;;  %v1977_v1 = vsel %vm1976_vm5, %v1968_v0, %v7079_v52  ;;  %v1969_v50 = vsel %vm6865_vm4, %v1960_v55, %v7089_v39  ;;  %v7091_v10 = vld [vmem:[#allocation11_spill] sm:$0xff]  ;;  %v7092_v35 = vld [vmem:[#allocation50_spill] sm:$0xff]  ;;  %v7095_v45 = vld [vmem:[#allocation76_spill] sm:$0xff] }
 0x314   : > { %v2707_v56 = vsel %vm2030_vm11, %v2691_v3, %v2495_v61  ;;  %v1986_v57 = vsel %vm1985_vm6, %v1977_v1, %v7080_v14  ;;  %v7088_v61 = vld [vmem:[#allocation91_spill] sm:$0xff]  ;;  %v1978_v22 = vsel %vm1976_vm5, %v1969_v50, %v7091_v10  ;;  %vm2819_vm4 = vcmask 883712   ;;  %v7096_v3 = vld [vmem:[#allocation84_spill] sm:$0xff]  ;;  %v7112_v19 = vld [vmem:[#allocation70_spill] sm:$0xff] }
 0x315   : > { %v6467_v47 = vpop.permute.xlu0 %1857  ;;  %v1995_v26 = vsel %vm6868_vm7, %v1986_v57, %v7081_v16  ;;  %v1987_v21 = vsel %vm1985_vm6, %v1978_v22, %v7092_v35  ;;  %v7100_v0 = vld [vmem:[#allocation27_spill] sm:$0xff]  ;;  %v7114_v39 = vld [vmem:[#allocation78_spill] sm:$0xff]  ;;  %v7118_v22 = vld [vmem:[#allocation61_spill] sm:$0xff] }
 0x316   : > { %v2004_v48 = vsel %vm2003_vm8, %v1995_v26, %v7082_v27  ;;  %v7104_v16 = vld [vmem:[#allocation23_spill] sm:$0xff] }
 0x317   : > { %v2542_v29 = vpop.permute.xlu1 %2541  ;;  %v2013_v24 = vsel %vm2012_vm9, %v2004_v48, %v7083_v9  ;;  %v7105_v26 = vld [vmem:[#allocation3_spill] sm:$0xff]  ;;  %v7108_v9 = vld [vmem:[#allocation13_spill] sm:$0xff] }
 0x318   : > { %v2721_v30 = vsel %vm2039_vm12, %v2705_v31, %v2542_v29  ;;  %v2022_v32 = vsel %vm6866_vm10, %v2013_v24, %v7084_v23  ;;  %v1996_v31 = vsel %vm6868_vm7, %v1987_v21, %v7093_v17  ;;  %v7120_v21 = vld [vmem:[#allocation69_spill] sm:$0xff]  ;;  %v7121_v17 = vld [vmem:[#allocation102_spill] sm:$0xff] }
 0x319   : > { %v6496_v51 = vpop.permute.xlu0 %1885  ;;  %v2759_v15 = vrot.slane %v2721_v30, 1  ;;  %v2031_v8 = vsel %vm2030_vm11, %v2022_v32, %v7085_v28  ;;  %v2005_v30 = vsel %vm2003_vm8, %v1996_v31, %v7094_v12  ;;  %v7110_v32 = vld [vmem:[#allocation62_spill] sm:$0xff]  ;;  %v7122_v12 = vld [vmem:[#allocation77_spill] sm:$0xff] }
 0x31a   : > { %v2040_v46 = vsel %vm2039_vm12, %v2031_v8, %v7088_v61  ;;  %v7111_v8 = vld [vmem:[#allocation12_spill] sm:$0xff] }
 0x31b   : > { %v2546_v13 = vpop.permute.xlu1 %2545  ;;  %v2761_v59 = vsel %vm1460_vm2, %v2759_v15, %v2760_v25  ;;  %v2049_v40 = vsel %vm6867_vm1, %v2040_v46, %v7090_v5  ;;  %v2014_v25 = vsel %vm2012_vm9, %v2005_v30, %v7095_v45  ;;  %v7113_v46 = vld [vmem:[#allocation42_spill] sm:$0xff]  ;;  %v7124_v45 = vld [vmem:[#allocation107_spill] sm:$0xff] }
 0x31c   : > { %v2723_v33 = vsel %vm2039_vm12, %v2707_v56, %v2546_v13  ;;  %2777 = vrot.lane.b32.xlu0 %v2761_v59, %s4075_s27  ;;  %v2023_v38 = vsel %vm6866_vm10, %v2014_v25, %v7096_v3  ;;  %v7097_v13 = vld [vmem:[#allocation92_spill] sm:$0xff]  ;;  %vm7103_vm10 = vcmask 64512  }
 0x31d   : > { %v1913_v6 = vpop.permute.xlu0 %1912  ;;  %v2762_v4 = vrot.slane %v2723_v33, 1  ;;  %v2032_v59 = vsel %vm2030_vm11, %v2023_v38, %v7097_v13  ;;  %v7127_v13 = vld [vmem:[#allocation93_spill] sm:$0xff] }
 0x31e   : > { %v2041_v2 = vsel %vm2039_vm12, %v2032_v59, %v7098_v20 }
 0x31f   : > { %v1856_v62 = vpop.permute.xlu1 %1855  ;;  %v2764_v49 = vsel %vm1460_vm2, %v2762_v4, %v2763_v34  ;;  %vm2057_vm2 = vcmask 392192   ;;  %v2050_v33 = vsel %vm6867_vm1, %v2041_v2, %v7099_v58  ;;  %v7101_v34 = vld [vmem:[#allocation4_spill] sm:$0xff]  ;;  %vm7107_vm1 = vmmov %vm7103_vm10  ;;  %v7128_v2 = vld [vmem:[#allocation101_spill] sm:$0xff] }
 0x320   : > { %2779 = vrot.lane.b32.xlu1 %v2764_v49, %s4075_s27  ;;  %v2058_v53 = vsel %vm2057_vm2, %v2049_v40, %v1856_v62  ;;  %v1962_v4 = vsel %vm515_vm0, %v7101_v34, %v7100_v0  ;;  %v2059_v62 = vsel %vm2057_vm2, %v2050_v33, %v6467_v47  ;;  %v7102_v49 = vld [vmem:[#allocation41_spill] sm:$0xff]  ;;  %v7115_v40 = vld [vmem:[#allocation54_spill] sm:$0xff] }
 0x321   : > { %v6522_v43 = vpop.permute.xlu0 %1859  ;;  %v1971_v52 = vsel %vm7103_vm10, %v1962_v4, %v7102_v49  ;;  %v2068_v1 = vsel %vm2066_vm3, %v2059_v62, %v6496_v51  ;;  %v7109_v51 = vld [vmem:[#allocation53_spill] sm:$0xff]  ;;  %vm7117_vm10 = vcmask 261120  }
 0x322   : > { %v2077_v14 = vsel %vm2075_vm14, %v2068_v1, %v1913_v6  ;;  %v1980_v24 = vsel %vm1976_vm5, %v1971_v52, %v7108_v9  ;;  %v7134_v9 = vld [vmem:[#allocation14_spill] sm:$0xff] }
 0x323   : > { %v1884_v11 = vpop.permute.xlu1 %1883  ;;  %v1989_v6 = vsel %vm1985_vm6, %v1980_v24, %v7109_v51 }
 0x324   : > { %v2067_v36 = vsel %vm2066_vm3, %v2058_v53, %v1884_v11  ;;  %v7106_v11 = vld [vmem:[#allocation30_spill] sm:$0xff]  ;;  %v1998_v28 = vsel %vm6868_vm7, %v1989_v6, %v7110_v32  ;;  %v7136_v6 = vld [vmem:[#allocation56_spill] sm:$0xff] }
 0x325   : > { %v2766_v37 = vpop.permute.xlu0 %2765  ;;  %v2007_v55 = vsel %vm2003_vm8, %v1998_v28, %v7112_v19  ;;  %v7138_v28 = vld [vmem:[#allocation63_spill] sm:$0xff] }
 0x326   : > { %v2016_v50 = vsel %vm2012_vm9, %v2007_v55, %v7114_v39  ;;  %v7142_v39 = vld [vmem:[#allocation87_spill] sm:$0xff] }
 0x327   : > { %v1911_v54 = vpop.permute.xlu1 %1910 }
 0x328   : > { %v2076_v44 = vsel %vm2075_vm14, %v2067_v36, %v1911_v54  ;;  %v7116_v36 = vld [vmem:[#allocation86_spill] sm:$0xff] }
 0x329   : > { %v6540_v18 = vpop.permute.xlu0 %1887  ;;  %v2025_v10 = vsel %vm7117_vm10, %v2016_v50, %v7116_v36  ;;  %v7145_v36 = vld [vmem:[#allocation6_spill] sm:$0xff] }
 0x32b   : > { %v1936_v63 = vpop.permute.xlu1 %1935 }
 0x32c   : > { %v2085_v7 = vsel %vm2084_vm13, %v2076_v44, %v1936_v63  ;;  %v7119_v63 = vld [vmem:[#allocation94_spill] sm:$0xff] }
 0x32d   : > { %v1890_v60 = vpop.permute.xlu0 %1889  ;;  %v2790_v29 = vsel %vm2789_vm15, %v2085_v7, %v2766_v37  ;;  %v1961_v37 = vsel %vm515_vm0, %v7105_v26, %v7104_v16  ;;  %v2034_v35 = vsel %vm2030_vm11, %v2025_v10, %v7119_v63  ;;  %v7148_v63 = vld [vmem:[#allocation45_spill] sm:$0xff] }
 0x32e   : > { %3502 = vmatprep.mubr.msk.f32.mxu0 %vm2819_vm4, %v2790_v29  ;;  %v1970_v47 = vsel %vm7107_vm1, %v1961_v37, %v7106_v11  ;;  %v2043_v31 = vsel %vm2039_vm12, %v2034_v35, %v7121_v17  ;;  %vm7123_vm1 = vmmov %vm7117_vm10  ;;  %v7131_v37 = vld [vmem:[#allocation5_spill] sm:$0xff] }
 0x32f   : > { %v1938_v15 = vpop.permute.xlu1 %1937  ;;  %v1979_v42 = vsel %vm1976_vm5, %v1970_v47, %v7111_v8 }
 0x330   : > { %v2086_v27 = vsel %vm2084_vm13, %v2077_v14, %v1938_v15  ;;  %v1988_v54 = vsel %vm1985_vm6, %v1979_v42, %v7113_v46  ;;  %v7126_v15 = vld [vmem:[#allocation85_spill] sm:$0xff]  ;;  %v7139_v42 = vld [vmem:[#allocation71_spill] sm:$0xff] }
 0x331   : > { %v1917_v56 = vpop.permute.xlu0 %1916  ;;  %v1997_v53 = vsel %vm6868_vm7, %v1988_v54, %v7115_v40  ;;  %vm7125_vm7 = vcmask 359424   ;;  %v7140_v46 = vld [vmem:[#allocation79_spill] sm:$0xff] }
 0x332   : > { %v2006_v44 = vsel %vm2003_vm8, %v1997_v53, %v7118_v22  ;;  %v2052_v25 = vsel %vm7125_vm7, %v2043_v31, %v7124_v45  ;;  %vm7129_vm10 = vmmov %vm7125_vm7  ;;  %vm7133_vm7 = vcmask 64512   ;;  %v7144_v53 = vld [vmem:[#allocation31_spill] sm:$0xff] }
 0x333   : > { %v1862_v41 = vpop.permute.xlu1 %1861  ;;  %v2015_v7 = vsel %vm2012_vm9, %v2006_v44, %v7120_v21  ;;  %v1964_v10 = vsel %vm515_vm0, %v7145_v36, %v7144_v53  ;;  %v7146_v22 = vld [vmem:[#allocation103_spill] sm:$0xff]  ;;  %v7175_v53 = vld [vmem:[#allocation73_spill] sm:$0xff] }
 0x334   : > { %v2024_v30 = vsel %vm7123_vm1, %v2015_v7, %v7122_v12  ;;  %v2061_v38 = vsel %vm2057_vm2, %v2052_v25, %v1862_v41  ;;  %vm7137_vm1 = vcmask 162816  }
 0x335   : > { %v6585_v57 = vpop.permute.xlu0 %1840  ;;  %v2033_v3 = vsel %vm2030_vm11, %v2024_v30, %v7126_v15  ;;  %v2070_v34 = vsel %vm2066_vm3, %v2061_v38, %v1890_v60  ;;  %v7130_v60 = vld [vmem:[#allocation21_spill] sm:$0xff]  ;;  %v7151_v30 = vld [vmem:[#allocation55_spill] sm:$0xff]  ;;  %v7152_v15 = vld [vmem:[#allocation64_spill] sm:$0xff] }
 0x336   : > { %v2042_v59 = vsel %vm2039_vm12, %v2033_v3, %v7127_v13  ;;  %v2079_v41 = vsel %vm2075_vm14, %v2070_v34, %v1917_v56  ;;  %v7132_v56 = vld [vmem:[#allocation32_spill] sm:$0xff] }
 0x337   : > { %v2768_v48 = vpop.permute.xlu1 %2767  ;;  %v2051_v58 = vsel %vm7129_vm10, %v2042_v59, %v7128_v2  ;;  %vm7141_vm10 = vcmask 261120   ;;  %v7154_v59 = vld [vmem:[#allocation72_spill] sm:$0xff] }
 0x338   : > { %v2791_v23 = vsel %vm2789_vm15, %v2086_v27, %v2768_v48  ;;  %v2060_v0 = vsel %vm2057_vm2, %v2051_v58, %v6522_v43  ;;  %v1963_v27 = vsel %vm515_vm0, %v7131_v37, %v7130_v60 }
 0x339   : > { %3503 = vmatmul.mubr.msk.f32.vlgmr.msra.gmra.mrb[0].mxu0 %vm2819_vm4, %v2791_v23  ;;  %v1942_v5 = vpop.permute.xlu0 %1941  ;;  %v2069_v4 = vsel %vm2066_vm3, %v2060_v0, %v6540_v18  ;;  %v1972_v48 = vsel %vm7133_vm7, %v1963_v27, %v7132_v56  ;;  %v7135_v23 = vld [vmem:[#allocation46_spill] sm:$0xff]  ;;  %vm7147_vm7 = vcmask 359424  }
 0x33a   : > { %v2088_v14 = vsel %vm2084_vm13, %v2079_v41, %v1942_v5  ;;  %v1981_v24 = vsel %vm1976_vm5, %v1972_v48, %v7134_v9  ;;  %v7143_v5 = vld [vmem:[#allocation95_spill] sm:$0xff] }
 0x33b   : > { %v1915_v61 = vpop.permute.xlu1 %1914  ;;  %v1990_v51 = vsel %vm1985_vm6, %v1981_v24, %v7135_v23  ;;  %v7162_v9 = vld [vmem:[#allocation7_spill] sm:$0xff] }
 0x33c   : > { %v2078_v62 = vsel %vm2075_vm14, %v2069_v4, %v1915_v61  ;;  %v1999_v32 = vsel %vm7137_vm1, %v1990_v51, %v7136_v6  ;;  %vm7149_vm1 = vcmask 64512   ;;  %v7156_v4 = vld [vmem:[#allocation88_spill] sm:$0xff]  ;;  %v7165_v23 = vld [vmem:[#allocation35_spill] sm:$0xff] }
 0x33d   : > { %v1866_v20 = vpop.permute.xlu0 %1865  ;;  %v2008_v8 = vsel %vm2003_vm8, %v1999_v32, %v7138_v28  ;;  %v1973_v35 = vsel %vm7149_vm1, %v1964_v10, %v7148_v63  ;;  %vm7160_vm1 = vcmask 359424   ;;  %v7167_v6 = vld [vmem:[#allocation16_spill] sm:$0xff]  ;;  %v7176_v10 = vld [vmem:[#allocation58_spill] sm:$0xff] }
 0x33e   : > { %v2017_v19 = vsel %vm2012_vm9, %v2008_v8, %v7139_v42  ;;  %v7168_v8 = vld [vmem:[#allocation48_spill] sm:$0xff] }
 0x33f   : > { %v1940_v29 = vpop.permute.xlu1 %1939  ;;  %v2026_v54 = vsel %vm7141_vm10, %v2017_v19, %v7140_v46  ;;  %vm7153_vm10 = vcmask 162816   ;;  %v7170_v19 = vld [vmem:[#allocation49_spill] sm:$0xff] }
 0x340   : > { %v2087_v52 = vsel %vm2084_vm13, %v2078_v62, %v1940_v29  ;;  %v2035_v50 = vsel %vm2030_vm11, %v2026_v54, %v7142_v39  ;;  %v7150_v29 = vld [vmem:[#allocation15_spill] sm:$0xff]  ;;  %v7173_v39 = vld [vmem:[#allocation65_spill] sm:$0xff] }
 0x341   : > { %v2044_v40 = vsel %vm2039_vm12, %v2035_v50, %v7143_v5  ;;  %v1982_v12 = vsel %vm1976_vm5, %v1973_v35, %v7150_v29  ;;  %v7174_v5 = vld [vmem:[#allocation17_spill] sm:$0xff]  ;;  %v7179_v35 = vld [vmem:[#allocation66_spill] sm:$0xff] }
 0x342   : > { %v2053_v44 = vsel %vm7147_vm7, %v2044_v40, %v7146_v22  ;;  %v1991_v45 = vsel %vm1985_vm6, %v1982_v12, %v7151_v30  ;;  %vm7157_vm7 = vcmask 261120   ;;  %v7182_v30 = vld [vmem:[#allocation74_spill] sm:$0xff] }
 0x343   : > { %v1864_v33 = vpop.permute.xlu1 %1863  ;;  %v2000_v3 = vsel %vm7153_vm10, %v1991_v45, %v7152_v15  ;;  %vm7164_vm10 = vcmask 64512  }
 0x344   : > { %v2062_v21 = vsel %vm2057_vm2, %v2053_v44, %v1864_v33  ;;  %v2009_v2 = vsel %vm2003_vm8, %v2000_v3, %v7154_v59  ;;  %v7155_v33 = vld [vmem:[#allocation80_spill] sm:$0xff]  ;;  %v7177_v44 = vld [vmem:[#allocation81_spill] sm:$0xff]  ;;  %v7184_v3 = vld [vmem:[#allocation82_spill] sm:$0xff] }
 0x345   : > { %v2018_v0 = vsel %vm2012_vm9, %v2009_v2, %v7155_v33  ;;  %v7186_v2 = vld [vmem:[#allocation90_spill] sm:$0xff] }
 0x346   : > { %v2772_v49 = vpop.permute.xlu0 %2771  ;;  %v2027_v62 = vsel %vm7157_vm7, %v2018_v0, %v7156_v4  ;;  %vm7169_vm7 = vmmov %vm7164_vm10  ;;  %v7188_v0 = vld [vmem:[#allocation98_spill] sm:$0xff] }
 0x347   : > { %v2770_v1 = vpop.permute.xlu1 %2769  ;;  %v2793_v26 = vsel %vm2789_vm15, %v2088_v14, %v2772_v49  ;;  %v7158_v49 = vld [vmem:[#allocation96_spill] sm:$0xff] }
 0x348   : > { %v2792_v16 = vsel %vm2789_vm15, %v2087_v52, %v2770_v1  ;;  %v2036_v41 = vsel %vm2030_vm11, %v2027_v62, %v7158_v49  ;;  %v7159_v52 = vld [vmem:[#allocation104_spill] sm:$0xff]  ;;  %v7189_v62 = vld [vmem:[#allocation105_spill] sm:$0xff] }
 0x349   : > { %3505 = vmatprep.mubr.msk.f32.mxu0 %vm2819_vm4, %v2792_v16  ;;  %v2045_v1 = vsel %vm2039_vm12, %v2036_v41, %v7159_v52 }
 0x34a   : > { %3506 = vmatmul.mubr.msk.f32.gmra.mrb[2].mxu0 %vm2819_vm4, %v2793_v26  ;;  %v1919_v11 = vpop.permute.xlu0 %1918  ;;  %v2054_v14 = vsel %vm7160_vm1, %v2045_v1, %v6585_v57  ;;  %v7163_v57 = vld [vmem:[#allocation36_spill] sm:$0xff]  ;;  %vm7172_vm1 = vcmask 162816  }
 0x34b   : > { %v1892_v43 = vpop.permute.xlu1 %1891  ;;  %v2063_v16 = vsel %vm2057_vm2, %v2054_v14, %v1866_v20 }
 0x34c   : > { %v2071_v7 = vsel %vm2066_vm3, %v2062_v21, %v1892_v43 }
 0x34d   : > { %v2080_v25 = vsel %vm2075_vm14, %v2071_v7, %v1919_v11  ;;  %v7161_v11 = vld [vmem:[#allocation24_spill] sm:$0xff]  ;;  %v7181_v7 = vld [vmem:[#allocation89_spill] sm:$0xff] }
 0x34e   : > { %v1921_v55 = vpop.permute.xlu0 %1920  ;;  %v1965_v24 = vsel %vm515_vm0, %v7162_v9, %v7161_v11 }
 0x34f   : > { %v1894_v18 = vpop.permute.xlu1 %1893  ;;  %v1974_v20 = vsel %vm7164_vm10, %v1965_v24, %v7163_v57  ;;  %vm7180_vm10 = vmmov %vm7172_vm1 }
 0x350   : > { %v2072_v26 = vsel %vm2066_vm3, %v2063_v16, %v1894_v18  ;;  %v7166_v18 = vld [vmem:[#allocation9_spill] sm:$0xff]  ;;  %v1983_v32 = vsel %vm1976_vm5, %v1974_v20, %v7167_v6 }
 0x351   : > { %v2081_v60 = vsel %vm2075_vm14, %v2072_v26, %v1921_v55  ;;  %v1966_v51 = vsel %vm515_vm0, %v7166_v18, %v7165_v23  ;;  %v1992_v55 = vsel %vm1985_vm6, %v1983_v32, %v7170_v19  ;;  %vm7178_vm0 = vcmask 261120  }
 0x352   : > { %v1845_v17 = vpop.permute.xlu0 %1844  ;;  %v1975_v42 = vsel %vm7169_vm7, %v1966_v51, %v7168_v8 }
 0x353   : > { %v6650_v47 = vpop.permute.xlu1 %1842  ;;  %v1984_v40 = vsel %vm1976_vm5, %v1975_v42, %v7174_v5  ;;  %vm7185_vm5 = vcmask 359424  }
 0x354   : > { %v1993_v22 = vsel %vm1985_vm6, %v1984_v40, %v7176_v10  ;;  %vm7187_vm6 = vmmov %vm7178_vm0 }
 0x355   : > { %v2002_v21 = vsel %vm7180_vm10, %v1993_v22, %v7179_v35 }
 0x356   : > { %v1946_v34 = vpop.permute.xlu0 %1945  ;;  %v2011_v45 = vsel %vm2003_vm8, %v2002_v21, %v7182_v30 }
 0x357   : > { %v1944_v61 = vpop.permute.xlu1 %1943  ;;  %v2090_v37 = vsel %vm2084_vm13, %v2081_v60, %v1946_v34 }
 0x358   : > { %v2089_v38 = vsel %vm2084_vm13, %v2080_v25, %v1944_v61  ;;  %v7171_v61 = vld [vmem:[#allocation57_spill] sm:$0xff] }
 0x359   : > { %v2001_v46 = vsel %vm7172_vm1, %v1992_v55, %v7171_v61  ;;  %v7183_v25 = vld [vmem:[#allocation97_spill] sm:$0xff]  ;;  %v3421_v55 = vld [vmem:[%s6816_s5] ss:$0 sm:$0xff] }
 0x35a   : > { %v1870_v43 = vpop.permute.xlu0 %1869  ;;  %v2010_v50 = vsel %vm2003_vm8, %v2001_v46, %v7173_v39  ;;  %vm7190_vm8 = vmmov %vm7185_vm5 }
 0x35b   : > { %v1868_v31 = vpop.permute.xlu1 %1867  ;;  %v2019_v36 = vsel %vm2012_vm9, %v2010_v50, %v7175_v53 }
 0x35c   : > { %v2028_v63 = vsel %vm7178_vm0, %v2019_v36, %v7177_v44 }
 0x35d   : > { %v2037_v29 = vsel %vm2030_vm11, %v2028_v63, %v7181_v7 }
 0x35e   : > { %v2046_v15 = vsel %vm2039_vm12, %v2037_v29, %v7183_v25 }
 0x36e   : > { %v2774_v13 = vpop.permute.xlu1 %2773 }
 0x36f   : > { %v2794_v58 = vsel %vm2789_vm15, %v2089_v38, %v2774_v13  ;;  %v2020_v38 = vsel %vm2012_vm9, %v2011_v45, %v7184_v3  ;;  %v2055_v13 = vsel %vm7185_vm5, %v2046_v15, %v6650_v47 }
 0x370   : > { %3508 = vmatprep.mubr.msk.f32.mxu0 %vm2819_vm4, %v2794_v58  ;;  %v2029_v58 = vsel %vm7187_vm6, %v2020_v38, %v7186_v2  ;;  %v2064_v33 = vsel %vm2057_vm2, %v2055_v13, %v1868_v31 }
 0x371   : > { %v2038_v34 = vsel %vm2030_vm11, %v2029_v58, %v7188_v0 }
 0x372   : > { %v1896_v48 = vpop.permute.xlu1 %1895  ;;  %v2047_v49 = vsel %vm2039_vm12, %v2038_v34, %v7189_v62 }
 0x373   : > { %v2073_v4 = vsel %vm2066_vm3, %v2064_v33, %v1896_v48  ;;  %v2056_v47 = vsel %vm7190_vm8, %v2047_v49, %v1845_v17 }
 0x374   : > { %v2065_v31 = vsel %vm2057_vm2, %v2056_v47, %v1870_v43  ;;  %v3431_v43 = vld [vmem:[%s6818_s7] ss:$0 sm:$0xff] }
 0x376   : > { %v1898_v28 = vpop.permute.xlu1 %1897 }
 0x377   : > { %v2074_v26 = vsel %vm2066_vm3, %v2065_v31, %v1898_v28 }
 0x37a   : > { %v2776_v27 = vpop.permute.xlu0 %2775  ;;  %v1925_v12 = vpop.permute.xlu1 %1924 }
 0x37b   : > { %v2795_v56 = vsel %vm2789_vm15, %v2090_v37, %v2776_v27  ;;  %v2083_v60 = vsel %vm2075_vm14, %v2074_v26, %v1925_v12 }
 0x37c   : > { %3509 = vmatmul.mubr.msk.f32.gmra.mrb[4].mxu0 %vm2819_vm4, %v2795_v56 }
 0x37e   : > { %v1923_v54 = vpop.permute.xlu0 %1922  ;;  %v1950_v52 = vpop.permute.xlu1 %1949 }
 0x37f   : > { %v2082_v41 = vsel %vm2075_vm14, %v2073_v4, %v1923_v54  ;;  %v2092_v37 = vsel %vm2084_vm13, %v2083_v60, %v1950_v52 }
 0x382   : > { %v1948_v59 = vpop.permute.xlu0 %1947 }
 0x383   : > { %v2091_v1 = vsel %vm2084_vm13, %v2082_v41, %v1948_v59 }
 0x38e   : > { %v2778_v14 = vpop.permute.xlu0 %2777 }
 0x38f   : > { %v2796_v16 = vsel %vm2789_vm15, %v2091_v1, %v2778_v14 }
 0x390   : > { %3511 = vmatprep.mubr.msk.f32.mxu0 %vm2819_vm4, %v2796_v16 }
 0x392   : > { %v2780_v27 = vpop.permute.xlu1 %2779 }
 0x393   : > { %v2797_v17 = vsel %vm2789_vm15, %v2092_v37, %v2780_v27 }
 0x394   : > { %3512 = vmatmul.mubr.msk.f32.gmra.mrb[6].mxu0 %vm2819_vm4, %v2797_v17  ;;  %vm7191_vm4 = vmmov %vm7169_vm7 }
 0x395   : > { %vm7192_vm9 = vmmov %vm7191_vm4 }
 0x396   : > { %vm7193_vm11 = vmmov %vm7191_vm4 }
 0x397   : > { %vm7194_vm12 = vmmov %vm7191_vm4 }
 0x398   : > { %vm7195_vm2 = vmmov %vm7191_vm4 }
 0x399   : > { %vm7196_vm3 = vmmov %vm7195_vm2 }
 0x39a   : > { %vm7197_vm13 = vmmov %vm7195_vm2 }
 0x39b   : > { %vm7198_vm14 = vmmov %vm7195_vm2 }
 0x39c   : > { %vm7199_vm15 = vmmov %vm7195_vm2 }
 0x39d   : > { %vm7200_vm7 = vmmov %vm7195_vm2 }
 0x39e   : > { %vm7201_vm1 = vmmov %vm7195_vm2 }
 0x39f   : > { %vm7202_vm0 = vmmov %vm7201_vm1 }
 0x3a0   : > { %vm7203_vm10 = vmmov %vm7202_vm0 }
 0x3a1   : > { %vm7204_vm5 = vmmov %vm7202_vm0 }
 0x3a2   : > { %vm7205_vm6 = vmmov %vm7202_vm0 }
 0x3a3   : > { %vm7206_vm8 = vmmov %vm7202_vm0 }
 0x3d2   : > { %v3518_v56 = vpop.f32.mrb[0].mxu1 }
 0x3d3   : > { %v3116_v48 = vadd.f32 %v3518_v56, %v3431_v43  ;;  %v3110_v11 = vpop.f32.mrb[1].mxu1 }
 0x3d4   : > { %v3111_v9 = vadd.f32 %v3431_v43, %v3110_v11 }
 0x3d5   : > { %3150 = vst.msk [vmem:[%s473_s16 + $0x8] sm:$0xff] %vm7191_vm4, %v3116_v48 }
 0x3d6   : > { %3149 = vst.msk [vmem:[%s473_s16] sm:$0xff] %vm7192_vm9, %v3111_v9  ;;  %v3521_v24 = vpop.f32.mrb[2].mxu1 }
 0x3d7   : > { %v3126_v57 = vadd.f32 %v3521_v24, %v3431_v43  ;;  %v3120_v20 = vpop.f32.mrb[3].mxu1 }
 0x3d8   : > { %v3121_v23 = vadd.f32 %v3431_v43, %v3120_v20 }
 0x3d9   : > { %3152 = vst.msk [vmem:[%s473_s16 + $0x18] sm:$0xff] %vm7193_vm11, %v3126_v57 }
 0x3da   : > { %3151 = vst.msk [vmem:[%s473_s16 + $0x10] sm:$0xff] %vm7194_vm12, %v3121_v23 }
 0x3e2   : > { %v3524_v18 = vpop.f32.mrb[4].mxu1 }
 0x3e3   : > { %v3136_v51 = vadd.f32 %v3524_v18, %v3431_v43  ;;  %v3130_v6 = vpop.f32.mrb[5].mxu1 }
 0x3e4   : > { %v3131_v32 = vadd.f32 %v3431_v43, %v3130_v6 }
 0x3e5   : > { %3154 = vst.msk [vmem:[%s473_s16 + $0x28] sm:$0xff] %vm7195_vm2, %v3136_v51 }
 0x3e6   : > { %3153 = vst.msk [vmem:[%s473_s16 + $0x20] sm:$0xff] %vm7196_vm3, %v3131_v32  ;;  %v3527_v28 = vpop.f32.mrb[6].mxu1 }
 0x3e7   : > { %v3146_v8 = vadd.f32 %v3527_v28, %v3431_v43  ;;  %v3140_v42 = vpop.f32.mrb[7].mxu1 }
 0x3e8   : > { %v3141_v19 = vadd.f32 %v3431_v43, %v3140_v42 }
 0x3e9   : > { %3156 = vst.msk [vmem:[%s473_s16 + $0x38] sm:$0xff] %vm7197_vm13, %v3146_v8 }
 0x3ea   : > { %3155 = vst.msk [vmem:[%s473_s16 + $0x30] sm:$0xff] %vm7198_vm14, %v3141_v19 }
 0x40c   : > { %v3504_v61 = vpop.f32.mrb[0].mxu0 }
 0x40d   : > { %v2920_v46 = vadd.f32 %v3504_v61, %v3421_v55  ;;  %v2914_v54 = vpop.f32.mrb[1].mxu0 }
 0x40e   : > { %v2915_v39 = vadd.f32 %v3421_v55, %v2914_v54 }
 0x40f   : > { %2954 = vst.msk [vmem:[%s464_s18 + $0x8] sm:$0xff] %vm7199_vm15, %v2920_v46 }
 0x410   : > { %2953 = vst.msk [vmem:[%s464_s18] sm:$0xff] %vm7200_vm7, %v2915_v39 }
 0x41d   : > { %v3507_v50 = vpop.f32.mrb[2].mxu0 }
 0x41e   : > { %v2930_v5 = vadd.f32 %v3507_v50, %v3421_v55  ;;  %v2924_v40 = vpop.f32.mrb[3].mxu0 }
 0x41f   : > { %v2925_v53 = vadd.f32 %v3421_v55, %v2924_v40 }
 0x420   : > { %2956 = vst.msk [vmem:[%s464_s18 + $0x18] sm:$0xff] %vm7201_vm1, %v2930_v5 }
 0x421   : > { %2955 = vst.msk [vmem:[%s464_s18 + $0x10] sm:$0xff] %vm7202_vm0, %v2925_v53 }
 0x44f   : > { %v3510_v36 = vpop.f32.mrb[4].mxu0 }
 0x450   : > { %v2940_v10 = vadd.f32 %v3510_v36, %v3421_v55  ;;  %v2934_v22 = vpop.f32.mrb[5].mxu0 }
 0x451   : > { %v2935_v44 = vadd.f32 %v3421_v55, %v2934_v22 }
 0x452   : > { %2958 = vst.msk [vmem:[%s464_s18 + $0x28] sm:$0xff] %vm7203_vm10, %v2940_v10 }
 0x453   : > { %2957 = vst.msk [vmem:[%s464_s18 + $0x20] sm:$0xff] %vm7204_vm5, %v2935_v44 }
 0x467   : > { %v3513_v63 = vpop.f32.mrb[6].mxu0 }
 0x468   : > { %v2950_v35 = vadd.f32 %v3513_v63, %v3421_v55  ;;  %v2944_v21 = vpop.f32.mrb[7].mxu0 }
 0x469   : > { %v2945_v7 = vadd.f32 %v3421_v55, %v2944_v21 }
 0x46a   : > { %2960 = vst.msk [vmem:[%s464_s18 + $0x38] sm:$0xff] %vm7205_vm6, %v2950_v35 }
 0x46b   : > { %2959 = vst.msk [vmem:[%s464_s18 + $0x30] sm:$0xff] %vm7206_vm8, %v2945_v7 }
 0x46c PF: > { %s20_s13 = sadd.s32 1, %s4059_s13   ;;  %s7207_s30 = smov %s4051_s11 }
 0x46d   : > { %p17_p10 = scmp.ge.s32.totalorder %s20_s13, 10   ;;  %s7208_s10 = smov %s4055_s12 }
 0x46e   : > { %s7209_s11 = smov %s7212_s14  ;;  %s7210_s12 = smov %s7216_s15 }
 0x46f   :  { %19 = sbr.rel (!%p17_p10) target bundleno = 3 (0x3), region = 100 }

// kernel: residual_block_forward.3
= control target key start
LH: loop header
LB: loop body
LE: loop exit
PB: predicated region body
PF: predicated region fallthrough
CT: control target
= control target key end

     0   :  { %s4061_s24 = smov 0   ;;  %s4063_s25 = smov 0   ;;  %s6673_s0 = inlined_call_operand.vmem [shape: f32[2,6,10,10,8], index: 0, kind: input, shape index: {}, may-alias: {0,1,2}]   ;;  %s6674_s1 = inlined_call_operand.vmem [shape: f32[2,6,10,10,8], index: 1, kind: input, shape index: {}, may-alias: {0,1,2}]   ;;  %s6675_s2 = inlined_call_operand.vmem [shape: f32[2,6,10,10,8], index: 2, kind: input, shape index: {}, may-alias: {0,1,2}]   ;;  %s6676_s3 = inlined_call_operand.vmem [shape: f32[2,4,64,8], index: 3, kind: input, shape index: {}]   ;;  %s6677_s4 = inlined_call_operand.vmem [shape: f32[1,1,8], index: 4, kind: input, shape index: {}]   ;;  %s6678_s5 = inlined_call_operand.vmem [shape: f32[216,8], index: 5, kind: input, shape index: {}]   ;;  %s6679_s6 = inlined_call_operand.vmem [shape: f32[1,8], index: 6, kind: input, shape index: {}]   ;;  %s6680_s7 = inlined_call_operand.vmem [shape: f32[2,4,64,8], index: 7, kind: output, shape index: {}]  }
   0x1   :  { %s4065_s26 = smov 0   ;;  %s4067_s27 = smov 0  }
   0x2   :  { %s4069_s28 = smov 0  }
   0x3 LB: > { %s26_s29 = sadd.s32 1, %s3994_s26  ;;  %s29_s30 = sadd.s32 1, %s3998_s27  ;;  %s4002_s28 = sphi %s4069_s28, %s17_s28   ;;  %s3998_s27 = sphi %s4067_s27, %s6969_s27   ;;  %s3994_s26 = sphi %s4065_s26, %s6968_s26   ;;  %s3990_s25 = sphi %s4063_s25, %s6967_s25   ;;  %s3986_s24 = sphi %s4061_s24, %s6966_s24  }
   0x4   : > { %p27_p0 = scmp.ge.s32.totalorder %s26_s29, 4  ;;  %p3063_p1 = scmp.ge.s32.totalorder %s4002_s28, 1 }
   0x5   : > { %p313_p2 = scmp.lt.s32.totalorder %s4002_s28, 9 }
   0x6   : > { %s6971_s29 = smov (%p27_p0, %s26_s29), 0  ;;  %s6973_s30 = smov (!%p27_p0, %s29_s30), %s3998_s27 }
   0x7   : > { %p314_p3 = pnand %p3063_p1, %p313_p2  ;;  %p31_p4 = scmp.ge.s32.totalorder %s6973_s30, 2 }
   0x9   : > { %s6975_s30 = smov (%p31_p4, %s6973_s30), 0  ;;  %317 = sbr.rel (%p314_p3) target bundleno = 1009 (0x3f1), region = 48 }
  0x10   : > { %p382_p5 = scmp.lt.s32.totalorder %s3990_s25, 1  ;;  %p384_p6 = scmp.lt.s32.totalorder %s3986_s24, 5  ;;  %vm472_vm0 = vcmask 64512   ;;  %vm476_vm1 = vcmask 58368   ;;  %vm1417_vm2 = vcmask 1046528   ;;  %vm1466_vm3 = vcmask 1045504  }
  0x11   : > { %s391_s16 = sadd.s32 1, %s3986_s24  ;;  %s402_s23 = sadd.s32 2, %s3986_s24  ;;  %vm1924_vm4 = vcmask 130048   ;;  %vm1933_vm5 = vcmask 195584   ;;  %vm1942_vm6 = vcmask 261120   ;;  %vm1951_vm7 = vcmask 326656  }
  0x12   : > { %s6977_s25 = smov (!%p382_p5, %s3990_s25), 1  ;;  %p394_p7 = scmp.lt.s32.totalorder %s391_s16, 5  ;;  %vm1960_vm8 = vcmask 392192   ;;  %vm1969_vm9 = vcmask 457728   ;;  %vm1978_vm10 = vcmask 523264   ;;  %vm1987_vm11 = vcmask 588800  }
  0x13   : > { %s385_s8 = scalar_select %p384_p6, %s3986_s24, 5  ;;  %vm1996_vm12 = vcmask 654336   ;;  %vm2005_vm13 = vcmask 719872   ;;  %vm2014_vm14 = vcmask 785408   ;;  %vm2023_vm15 = vcmask 850944  }
  0x14   : > { %s4098_s9 = smul.u32 120, %s6977_s25  ;;  %s6979_s16 = smov (!%p394_p7, %s391_s16), 5 }
  0x15   : > { %s3211_s10 = smul.u32 20, %s385_s8  ;;  %p405_p8 = scmp.lt.s32.totalorder %s402_s23, 5 }
  0x16   : > { %s3213_s17 = smul.u32 20, %s6979_s16  ;;  %s4004_s16 = smov 24  }
  0x17   : > { %s388_s11 = sadd.s32 %s4098_s9, %s3211_s10  ;;  %s6981_s23 = smov (!%p405_p8, %s402_s23), 5 }
  0x18   : > { %s3064_s12 = sshll.u32 %s388_s11, 3  ;;  %s398_s18 = sadd.s32 %s3213_s17, %s4098_s9 }
  0x19   : > { %s4104_s15 = scalar_lea.vmem %s6673_s0, %s3064_s12  ;;  %s3065_s19 = sshll.u32 %s398_s18, 3 }
  0x1a   : > { %v4107_v0 = vld [vmem:[%s4104_s15 + $0x10] sm:$0xff]  ;;  %v4110_v1 = vld [vmem:[%s4104_s15] sm:$0xff]  ;;  %v4113_v2 = vld [vmem:[%s4104_s15 + $0x18] sm:$0x3]  ;;  %s4223_s22 = scalar_lea.vmem %s6674_s1, %s3065_s19  ;;  %s3214_s8 = smul.u32 20, %s6981_s23 }
  0x1b   : > { %v454_v3 = vmul.f32 %v4107_v0, %v4107_v0  ;;  %v452_v4 = vmul.f32 %v4110_v1, %v4110_v1  ;;  %v455_v5 = vmul.f32 %v4113_v2, %v4113_v2  ;;  %v4122_v6 = vld [vmem:[%s4104_s15 + $0x8] sm:$0x3]  ;;  %v4130_v9 = vld [vmem:[%s4104_s15 + $0x20] sm:$0xff]  ;;  %v4141_v16 = vld [vmem:[%s4104_s15 + $0x38] sm:$0x3]  ;;  %s4005_s17 = smov 48  }
  0x1c   : > { %v453_v7 = vmul.f32 %v4122_v6, %v4122_v6  ;;  %v4127_v8 = vld [vmem:[%s4104_s15 + $0x28] sm:$0x3]  ;;  %v456_v15 = vmul.f32 %v4130_v9, %v4130_v9  ;;  %v4144_v17 = vld [vmem:[%s4104_s15 + $0x30] sm:$0xff]  ;;  %v459_v20 = vmul.f32 %v4141_v16, %v4141_v16  ;;  %v4156_v23 = vld [vmem:[%s4104_s15 + $0x40] sm:$0xff]  ;;  %s409_s10 = sadd.s32 %s3214_s8, %s4098_s9  ;;  %s4006_s18 = smov 72  }
  0x1d   : > { %v480_v10 = vsel %vm472_vm0, %v454_v3, 0.0  ;;  %v473_v11 = vsel %vm472_vm0, %v452_v4, 0.0  ;;  %v483_v12 = vsel %vm476_vm1, %v455_v5, 0.0  ;;  %v457_v14 = vmul.f32 %v4127_v8, %v4127_v8  ;;  %v4153_v22 = vld [vmem:[%s4104_s15 + $0x48] sm:$0x3]  ;;  %v4169_v29 = vld [vmem:[%s4104_s15 + $0x50] sm:$0xff] }
  0x1e   : > { %481 = vadd.xlane.f32.xlu1 %v480_v10  ;;  %474 = vadd.xlane.f32.xlu0 %v473_v11  ;;  %v477_v13 = vsel %vm476_vm1, %v453_v7, 0.0  ;;  %v486_v19 = vsel %vm472_vm0, %v456_v15, 0.0  ;;  %v458_v21 = vmul.f32 %v4144_v17, %v4144_v17  ;;  %v495_v24 = vsel %vm476_vm1, %v459_v20, 0.0  ;;  %v4166_v28 = vld [vmem:[%s4104_s15 + $0x58] sm:$0x3]  ;;  %v4181_v35 = vld [vmem:[%s4104_s15 + $0x60] sm:$0xff] }
  0x1f   : > { %v489_v18 = vsel %vm476_vm1, %v457_v14, 0.0  ;;  %v461_v26 = vmul.f32 %v4153_v22, %v4153_v22  ;;  %v460_v27 = vmul.f32 %v4156_v23, %v4156_v23  ;;  %v463_v32 = vmul.f32 %v4166_v28, %v4166_v28  ;;  %v4178_v34 = vld [vmem:[%s4104_s15 + $0x68] sm:$0x3]  ;;  %v4190_v40 = vld [vmem:[%s4104_s15 + $0x78] sm:$0x3]  ;;  %v4193_v41 = vld [vmem:[%s4104_s15 + $0x70] sm:$0xff] }
  0x20   : > { %v492_v25 = vsel %vm472_vm0, %v458_v21, 0.0  ;;  %v462_v33 = vmul.f32 %v4169_v29, %v4169_v29  ;;  %v465_v38 = vmul.f32 %v4178_v34, %v4178_v34  ;;  %v464_v39 = vmul.f32 %v4181_v35, %v4181_v35  ;;  %v4203_v46 = vld [vmem:[%s4104_s15 + $0x88] sm:$0x3]  ;;  %v4206_v47 = vld [vmem:[%s4104_s15 + $0x80] sm:$0xff]  ;;  %v4215_v52 = vld [vmem:[%s4104_s15 + $0x98] sm:$0x3] }
  0x21   : > { %v501_v30 = vsel %vm476_vm1, %v461_v26, 0.0  ;;  %v498_v31 = vsel %vm472_vm0, %v460_v27, 0.0  ;;  %v507_v36 = vsel %vm476_vm1, %v463_v32, 0.0  ;;  %v467_v44 = vmul.f32 %v4190_v40, %v4190_v40  ;;  %v4218_v53 = vld [vmem:[%s4104_s15 + $0x90] sm:$0xff]  ;;  %v762_v58 = vld [vmem:[%s4223_s22 + $0x8] sm:$0x3] }
  0x22   : > { %484 = vadd.xlane.f32.xlu1 %v483_v12  ;;  %478 = vadd.xlane.f32.xlu0 %v477_v13  ;;  %v504_v37 = vsel %vm472_vm0, %v462_v33, 0.0  ;;  %v513_v42 = vsel %vm476_vm1, %v465_v38, 0.0  ;;  %v510_v43 = vsel %vm472_vm0, %v464_v39, 0.0  ;;  %v466_v45 = vmul.f32 %v4193_v41, %v4193_v41  ;;  %v4233_v59 = vld [vmem:[%s4223_s22] sm:$0xff]  ;;  %v764_v3 = vld [vmem:[%s4223_s22 + $0x18] sm:$0x3] }
  0x23   : > { %v519_v48 = vsel %vm476_vm1, %v467_v44, 0.0  ;;  %v469_v50 = vmul.f32 %v4203_v46, %v4203_v46  ;;  %v468_v51 = vmul.f32 %v4206_v47, %v4206_v47  ;;  %v471_v56 = vmul.f32 %v4215_v52, %v4215_v52  ;;  %v4241_v4 = vld [vmem:[%s4223_s22 + $0x10] sm:$0xff]  ;;  %v4248_v12 = vld [vmem:[%s4223_s22 + $0x28] sm:$0x3]  ;;  %v4251_v13 = vld [vmem:[%s4223_s22 + $0x20] sm:$0xff]  ;;  %s3066_s11 = sshll.u32 %s409_s10, 3 }
  0x24   : > { %v516_v49 = vsel %vm472_vm0, %v466_v45, 0.0  ;;  %v470_v57 = vmul.f32 %v4218_v53, %v4218_v53  ;;  %v782_v62 = vmul.f32 %v762_v58, %v762_v58  ;;  %v781_v63 = vmul.f32 %v4233_v59, %v4233_v59  ;;  %v768_v20 = vld [vmem:[%s4223_s22 + $0x38] sm:$0x3]  ;;  %v4261_v21 = vld [vmem:[%s4223_s22 + $0x30] sm:$0xff]  ;;  %s4306_s14 = scalar_lea.vmem %s6675_s2, %s3066_s11  ;;  %s4007_s19 = smov 8  }
  0x25   : > { %v525_v54 = vsel %vm476_vm1, %v469_v50, 0.0  ;;  %v522_v55 = vsel %vm472_vm0, %v468_v51, 0.0  ;;  %v531_v60 = vsel %vm476_vm1, %v471_v56, 0.0  ;;  %v784_v10 = vmul.f32 %v764_v3, %v764_v3  ;;  %v772_v38 = vld [vmem:[%s4223_s22 + $0x58] sm:$0x3]  ;;  %v4278_v39 = vld [vmem:[%s4223_s22 + $0x50] sm:$0xff] }
  0x26   : > { %490 = vadd.xlane.f32.xlu1 %v489_v18  ;;  %487 = vadd.xlane.f32.xlu0 %v486_v19  ;;  %v528_v61 = vsel %vm472_vm0, %v470_v57, 0.0  ;;  %v804_v5 = vsel %vm476_vm1, %v782_v62, 0.0  ;;  %v801_v7 = vsel %vm472_vm0, %v781_v63, 0.0  ;;  %v783_v11 = vmul.f32 %v4241_v4, %v4241_v4  ;;  %v776_v56 = vld [vmem:[%s4223_s22 + $0x78] sm:$0x3]  ;;  %v775_v57 = vld [vmem:[%s4223_s22 + $0x70] sm:$0xff] }
  0x27   : > { %v810_v14 = vsel %vm476_vm1, %v784_v10, 0.0  ;;  %v786_v18 = vmul.f32 %v4248_v12, %v4248_v12  ;;  %v785_v19 = vmul.f32 %v4251_v13, %v4251_v13  ;;  %v788_v26 = vmul.f32 %v768_v20, %v768_v20  ;;  %v778_v63 = vld [vmem:[%s4223_s22 + $0x88] sm:$0x3]  ;;  %v777_v3 = vld [vmem:[%s4223_s22 + $0x80] sm:$0xff]  ;;  %s4008_s20 = smov 16   ;;  %s4009_s21 = smov 32  }
  0x28   : > { %v807_v15 = vsel %vm472_vm0, %v783_v11, 0.0  ;;  %v787_v27 = vmul.f32 %v4261_v21, %v4261_v21  ;;  %v792_v44 = vmul.f32 %v772_v38, %v772_v38  ;;  %v791_v45 = vmul.f32 %v4278_v39, %v4278_v39  ;;  %s4010_s23 = smov 40   ;;  %s4011_s8 = smov 56  }
  0x29   : > { %v822_v32 = vsel %vm476_vm1, %v788_v26, 0.0  ;;  %v795_v62 = vmul.f32 %v775_v57, %v775_v57  ;;  %v798_v10 = vmul.f32 %v778_v63, %v778_v63  ;;  %v797_v11 = vmul.f32 %v777_v3, %v777_v3  ;;  %v1081_v26 = vld [vmem:[%s4306_s14] sm:$0xff]  ;;  %v1087_v57 = vld [vmem:[%s4306_s14 + $0x30] sm:$0xff]  ;;  %v1090_v63 = vld [vmem:[%s4306_s14 + $0x48] sm:$0x3]  ;;  %s4012_s10 = smov 64  }
  0x2a   : > { %496 = vadd.xlane.f32.xlu1 %v495_v24  ;;  %493 = vadd.xlane.f32.xlu0 %v492_v25  ;;  %v816_v24 = vsel %vm476_vm1, %v786_v18, 0.0  ;;  %v813_v25 = vsel %vm472_vm0, %v785_v19, 0.0  ;;  %v819_v33 = vsel %vm472_vm0, %v787_v27, 0.0  ;;  %v834_v50 = vsel %vm476_vm1, %v792_v44, 0.0  ;;  %v1089_v3 = vld [vmem:[%s4306_s14 + $0x40] sm:$0xff]  ;;  %s4013_s11 = smov 80  }
  0x2b   : > { %v831_v51 = vsel %vm472_vm0, %v791_v45, 0.0  ;;  %v852_v18 = vsel %vm476_vm1, %v798_v10, 0.0  ;;  %v849_v19 = vsel %vm472_vm0, %v797_v11, 0.0  ;;  %v1086_v45 = vld [vmem:[%s4306_s14 + $0x28] sm:$0x3]  ;;  %v1110_v10 = vmul.f32 %v1090_v63, %v1090_v63  ;;  %s4014_s12 = smov 88  }
  0x2c   : > { %v1109_v11 = vmul.f32 %v1089_v3, %v1089_v3  ;;  %s4015_s13 = smov 96   ;;  %s4016_s9 = smov 104  }
  0x2d   : > { %s4017_s15 = smov 112   ;;  %p415_p9 = scmp.lt.s32.totalorder %s3986_s24, 3 }
  0x2e   : > { %502 = vadd.xlane.f32.xlu1 %v501_v30  ;;  %499 = vadd.xlane.f32.xlu0 %v498_v31  ;;  %v770_v30 = vld [vmem:[%s4223_s22 + $0x48] sm:$0x3]  ;;  %v4269_v31 = vld [vmem:[%s4223_s22 + $0x40] sm:$0xff] }
  0x2f   : > { %s6983_s24 = smov (!%p415_p9, %s3986_s24), 3 }
  0x32   : > { %508 = vadd.xlane.f32.xlu1 %v507_v36  ;;  %505 = vadd.xlane.f32.xlu0 %v504_v37  ;;  %v790_v36 = vmul.f32 %v770_v30, %v770_v30  ;;  %v789_v37 = vmul.f32 %v4269_v31, %v4269_v31 }
  0x36   : > { %514 = vadd.xlane.f32.xlu1 %v513_v42  ;;  %511 = vadd.xlane.f32.xlu0 %v510_v43  ;;  %v828_v42 = vsel %vm476_vm1, %v790_v36, 0.0  ;;  %v825_v43 = vsel %vm472_vm0, %v789_v37, 0.0  ;;  %v1084_v36 = vld [vmem:[%s4306_s14 + $0x18] sm:$0x3]  ;;  %v1083_v37 = vld [vmem:[%s4306_s14 + $0x10] sm:$0xff] }
  0x37   : > { %v1103_v44 = vmul.f32 %v1083_v37, %v1083_v37  ;;  %v1096_v37 = vld [vmem:[%s4306_s14 + $0x78] sm:$0x3] }
  0x3a   : > { %520 = vadd.xlane.f32.xlu1 %v519_v48  ;;  %517 = vadd.xlane.f32.xlu0 %v516_v49  ;;  %v4285_v48 = vld [vmem:[%s4223_s22 + $0x68] sm:$0x3]  ;;  %v773_v49 = vld [vmem:[%s4223_s22 + $0x60] sm:$0xff] }
  0x3e   : > { %526 = vadd.xlane.f32.xlu1 %v525_v54  ;;  %523 = vadd.xlane.f32.xlu0 %v522_v55  ;;  %v794_v54 = vmul.f32 %v4285_v48, %v4285_v48  ;;  %v793_v55 = vmul.f32 %v773_v49, %v773_v49  ;;  %v1085_v49 = vld [vmem:[%s4306_s14 + $0x20] sm:$0xff] }
  0x40   : > { %v840_v58 = vsel %vm476_vm1, %v794_v54, 0.0  ;;  %v1106_v54 = vmul.f32 %v1086_v45, %v1086_v45  ;;  %v1097_v45 = vld [vmem:[%s4306_s14 + $0x80] sm:$0xff] }
  0x42   : > { %532 = vadd.xlane.f32.xlu1 %v531_v60  ;;  %529 = vadd.xlane.f32.xlu0 %v528_v61  ;;  %v837_v60 = vsel %vm472_vm0, %v793_v55, 0.0  ;;  %v796_v61 = vmul.f32 %v776_v56, %v776_v56  ;;  %v1105_v55 = vmul.f32 %v1085_v49, %v1085_v49  ;;  %v1088_v56 = vld [vmem:[%s4306_s14 + $0x38] sm:$0x3]  ;;  %v1098_v49 = vld [vmem:[%s4306_s14 + $0x88] sm:$0x3] }
  0x46   : > { %805 = vadd.xlane.f32.xlu1 %v804_v5  ;;  %802 = vadd.xlane.f32.xlu0 %v801_v7  ;;  %v846_v5 = vsel %vm476_vm1, %v796_v61, 0.0  ;;  %v843_v7 = vsel %vm472_vm0, %v795_v62, 0.0  ;;  %v1108_v61 = vmul.f32 %v1088_v56, %v1088_v56  ;;  %v1107_v62 = vmul.f32 %v1087_v57, %v1087_v57  ;;  %v1099_v56 = vld [vmem:[%s4306_s14 + $0x90] sm:$0xff]  ;;  %v1100_v57 = vld [vmem:[%s4306_s14 + $0x98] sm:$0x3] }
  0x4a   : > { %811 = vadd.xlane.f32.xlu1 %v810_v14  ;;  %808 = vadd.xlane.f32.xlu0 %v807_v15  ;;  %v779_v14 = vld [vmem:[%s4223_s22 + $0x90] sm:$0xff]  ;;  %v780_v15 = vld [vmem:[%s4223_s22 + $0x98] sm:$0x3] }
  0x4b   : > { %v799_v20 = vmul.f32 %v779_v14, %v779_v14  ;;  %v1091_v14 = vld [vmem:[%s4306_s14 + $0x50] sm:$0xff] }
  0x4d   : > { %v855_v27 = vsel %vm472_vm0, %v799_v20, 0.0  ;;  %v1111_v20 = vmul.f32 %v1091_v14, %v1091_v14 }
  0x4e   : > { %817 = vadd.xlane.f32.xlu1 %v816_v24  ;;  %814 = vadd.xlane.f32.xlu0 %v813_v25  ;;  %v800_v24 = vmul.f32 %v780_v15, %v780_v15  ;;  %v1082_v25 = vld [vmem:[%s4306_s14 + $0x8] sm:$0x3]  ;;  %v1092_v15 = vld [vmem:[%s4306_s14 + $0x58] sm:$0x3] }
  0x50   : > { %v858_v30 = vsel %vm476_vm1, %v800_v24, 0.0  ;;  %v1112_v24 = vmul.f32 %v1092_v15, %v1092_v15 }
  0x52   : > { %823 = vadd.xlane.f32.xlu1 %v822_v32  ;;  %820 = vadd.xlane.f32.xlu0 %v819_v33  ;;  %v1102_v32 = vmul.f32 %v1082_v25, %v1082_v25  ;;  %v1101_v33 = vmul.f32 %v1081_v26, %v1081_v26  ;;  %v1093_v25 = vld [vmem:[%s4306_s14 + $0x60] sm:$0xff]  ;;  %v1094_v26 = vld [vmem:[%s4306_s14 + $0x68] sm:$0x3] }
  0x54   : > { %v1124_v38 = vsel %vm476_vm1, %v1102_v32, 0.0  ;;  %v1113_v32 = vmul.f32 %v1093_v25, %v1093_v25 }
  0x56   : > { %829 = vadd.xlane.f32.xlu1 %v828_v42  ;;  %826 = vadd.xlane.f32.xlu0 %v825_v43  ;;  %v1121_v42 = vsel %vm472_vm0, %v1101_v33, 0.0  ;;  %v1104_v43 = vmul.f32 %v1084_v36, %v1084_v36  ;;  %v1114_v33 = vmul.f32 %v1094_v26, %v1094_v26  ;;  %v1095_v36 = vld [vmem:[%s4306_s14 + $0x70] sm:$0xff] }
  0x5a   : > { %835 = vadd.xlane.f32.xlu1 %v834_v50  ;;  %832 = vadd.xlane.f32.xlu0 %v831_v51  ;;  %v1130_v50 = vsel %vm476_vm1, %v1104_v43, 0.0  ;;  %v1127_v51 = vsel %vm472_vm0, %v1103_v44, 0.0  ;;  %v1115_v43 = vmul.f32 %v1095_v36, %v1095_v36  ;;  %v1116_v44 = vmul.f32 %v1096_v37, %v1096_v37 }
  0x5e   : > { %841 = vadd.xlane.f32.xlu1 %v840_v58  ;;  %838 = vadd.xlane.f32.xlu0 %v837_v60  ;;  %v1136_v58 = vsel %vm476_vm1, %v1106_v54, 0.0  ;;  %v1133_v60 = vsel %vm472_vm0, %v1105_v55, 0.0  ;;  %v1117_v54 = vmul.f32 %v1097_v45, %v1097_v45  ;;  %v1118_v55 = vmul.f32 %v1098_v49, %v1098_v49 }
  0x62   : > { %847 = vadd.xlane.f32.xlu1 %v846_v5  ;;  %844 = vadd.xlane.f32.xlu0 %v843_v7  ;;  %v1142_v5 = vsel %vm476_vm1, %v1108_v61, 0.0  ;;  %v1139_v7 = vsel %vm472_vm0, %v1107_v62, 0.0  ;;  %v1119_v61 = vmul.f32 %v1099_v56, %v1099_v56  ;;  %v1120_v62 = vmul.f32 %v1100_v57, %v1100_v57 }
  0x64   : > { %v1175_v63 = vsel %vm472_vm0, %v1119_v61, 0.0  ;;  %v1178_v3 = vsel %vm476_vm1, %v1120_v62, 0.0 }
  0x66   : > { %853 = vadd.xlane.f32.xlu1 %v852_v18  ;;  %850 = vadd.xlane.f32.xlu0 %v849_v19  ;;  %v1148_v18 = vsel %vm476_vm1, %v1110_v10, 0.0  ;;  %v1145_v19 = vsel %vm472_vm0, %v1109_v11, 0.0  ;;  %v596_v11 = vlaneseq }
  0x6a   : > { %856 = vadd.xlane.f32.xlu0 %v855_v27  ;;  %859 = vadd.xlane.f32.xlu1 %v858_v30  ;;  %v1151_v27 = vsel %vm472_vm0, %v1111_v20, 0.0  ;;  %v1154_v30 = vsel %vm476_vm1, %v1112_v24, 0.0 }
  0x6e   : > { %1125 = vadd.xlane.f32.xlu1 %v1124_v38  ;;  %1122 = vadd.xlane.f32.xlu0 %v1121_v42  ;;  %v1157_v38 = vsel %vm472_vm0, %v1113_v32, 0.0  ;;  %v1160_v42 = vsel %vm476_vm1, %v1114_v33, 0.0 }
  0x72   : > { %1131 = vadd.xlane.f32.xlu1 %v1130_v50  ;;  %1128 = vadd.xlane.f32.xlu0 %v1127_v51  ;;  %v1163_v50 = vsel %vm472_vm0, %v1115_v43, 0.0  ;;  %v1166_v51 = vsel %vm476_vm1, %v1116_v44, 0.0 }
  0x76   : > { %1137 = vadd.xlane.f32.xlu1 %v1136_v58  ;;  %1134 = vadd.xlane.f32.xlu0 %v1133_v60  ;;  %v1169_v58 = vsel %vm472_vm0, %v1117_v54, 0.0  ;;  %v1172_v60 = vsel %vm476_vm1, %v1118_v55, 0.0  ;;  %vm2032_vm1 = vcmask 916480  }
  0x7a   : > { %1143 = vadd.xlane.f32.xlu1 %v1142_v5  ;;  %1140 = vadd.xlane.f32.xlu0 %v1139_v7 }
  0x7e   : > { %1149 = vadd.xlane.f32.xlu1 %v1148_v18  ;;  %1146 = vadd.xlane.f32.xlu0 %v1145_v19  ;;  %v597_v18 = vshrl.u32 %v596_v11, 7  ;;  %v431_v19 = vld [vmem:[%s6677_s4] sm:$0x1] }
  0x7f   : > { %v594_v25 = vmul.f32 2.828427, %v431_v19 }
  0x80   : > { %v598_v26 = vsub.s32 0, %v597_v18 }
  0x82   : > { %1152 = vadd.xlane.f32.xlu0 %v1151_v27  ;;  %1155 = vadd.xlane.f32.xlu1 %v1154_v30  ;;  %v4364_v37 = vrot.slane %v594_v25, %v598_v26 }
  0x86   : > { %1158 = vadd.xlane.f32.xlu0 %v1157_v38  ;;  %1161 = vadd.xlane.f32.xlu1 %v1160_v42 }
  0x8a   : > { %1164 = vadd.xlane.f32.xlu0 %v1163_v50  ;;  %1167 = vadd.xlane.f32.xlu1 %v1166_v51 }
  0x8e   : > { %1170 = vadd.xlane.f32.xlu0 %v1169_v58  ;;  %1173 = vadd.xlane.f32.xlu1 %v1172_v60 }
  0x92   : > { %1176 = vadd.xlane.f32.xlu0 %v1175_v63  ;;  %1179 = vadd.xlane.f32.xlu1 %v1178_v3 }
  0xab   : > { %v482_v5 = vpop.xlane.xlu1 %481  ;;  %v4352_v7 = vpop.xlane.xlu0 %474 }
  0xac   : > { %v536_v10 = vmax.f32 %v482_v5, 1e-24  ;;  %v534_v25 = vmax.f32 %v4352_v7, 1e-24 }
  0xae   : > { %3572 = vrsqrt.f32 %v536_v10 }
  0xaf   : > { %v4354_v14 = vpop.xlane.xlu1 %484  ;;  %v4356_v15 = vpop.xlane.xlu0 %478 }
  0xb3   : > { %v488_v20 = vpop.xlane.xlu0 %487  ;;  %v4361_v27 = vpop.xlane.xlu1 %490 }
  0xb4   : > { %v538_v24 = vmax.f32 %v488_v20, 1e-24 }
  0xb6   : > { %3574 = vrsqrt.f32 %v538_v24 }
  0xb7   : > { %v494_v30 = vpop.xlane.xlu0 %493  ;;  %v4366_v38 = vpop.xlane.xlu1 %496 }
  0xb8   : > { %v3573_v32 = vpop.eup %3572  ;;  %v540_v33 = vmax.f32 %v494_v30, 1e-24 }
  0xb9   : > { %v576_v36 = vmul.f32 %v3573_v32, %v4107_v0 }
  0xba   : > { %3576 = vrsqrt.f32 %v540_v33 }
  0xbb   : > { %v500_v42 = vpop.xlane.xlu0 %499  ;;  %v4369_v43 = vmul.f32 %v4364_v37, %v576_v36  ;;  %v4372_v54 = vpop.xlane.xlu1 %502 }
  0xbc   : > { %v542_v44 = vmax.f32 %v500_v42, 1e-24 }
  0xbd   : > { %v3075_v45 = vmul.f32 -1.442695, %v4369_v43 }
  0xbe   : > { %3578 = vrsqrt.f32 %v542_v44 }
  0xbf   : > { %v506_v49 = vpop.xlane.xlu0 %505  ;;  %3580 = vpow2.f32 %v3075_v45  ;;  %v4380_v62 = vpop.xlane.xlu1 %508 }
  0xc0   : > { %v544_v50 = vmax.f32 %v506_v49, 1e-24  ;;  %v3575_v51 = vpop.eup %3574 }
  0xc1   : > { %v578_v0 = vmul.f32 %v3575_v51, %v4130_v9 }
  0xc2   : > { %3582 = vrsqrt.f32 %v544_v50 }
  0xc3   : > { %v512_v55 = vpop.xlane.xlu0 %511  ;;  %v4376_v56 = vmul.f32 %v4364_v37, %v578_v0  ;;  %v4390_v24 = vpop.xlane.xlu1 %514 }
  0xc4   : > { %v546_v57 = vmax.f32 %v512_v55, 1e-24  ;;  %v3577_v58 = vpop.eup %3576  ;;  %v535_v55 = vmax.f32 %v4356_v15, 1e-24 }
  0xc5   : > { %v3077_v60 = vmul.f32 -1.442695, %v4376_v56  ;;  %v580_v61 = vmul.f32 %v3577_v58, %v4144_v17 }
  0xc6   : > { %3584 = vrsqrt.f32 %v546_v57 }
  0xc7   : > { %v518_v63 = vpop.xlane.xlu0 %517  ;;  %3586 = vpow2.f32 %v3077_v60  ;;  %v4383_v3 = vmul.f32 %v4364_v37, %v580_v61  ;;  %v4400_v50 = vpop.xlane.xlu1 %520 }
  0xc8   : > { %v548_v9 = vmax.f32 %v518_v63, 1e-24  ;;  %v3579_v5 = vpop.eup %3578 }
  0xc9   : > { %v3079_v10 = vmul.f32 -1.442695, %v4383_v3  ;;  %v582_v11 = vmul.f32 %v3579_v5, %v4156_v23  ;;  %v3581_v19 = vpop.eup %3580 }
  0xca   : > { %3588 = vrsqrt.f32 %v548_v9  ;;  %v683_v33 = vadd.f32 1.0, %v3581_v19 }
  0xcb   : > { %v524_v18 = vpop.xlane.xlu0 %523  ;;  %3590 = vpow2.f32 %v3079_v10  ;;  %v4388_v17 = vmul.f32 %v4364_v37, %v582_v11  ;;  %v4415_v63 = vpop.xlane.xlu1 %526 }
  0xcc   : > { %v3583_v20 = vpop.eup %3582  ;;  %v550_v15 = vmax.f32 %v524_v18, 1e-24 }
  0xcd   : > { %v3081_v26 = vmul.f32 -1.442695, %v4388_v17  ;;  %v584_v30 = vmul.f32 %v3583_v20, %v4169_v29 }
  0xcf   : > { %v530_v32 = vpop.xlane.xlu0 %529  ;;  %3592 = vpow2.f32 %v3081_v26  ;;  %v4396_v23 = vmul.f32 %v4364_v37, %v584_v30 }
  0xd0   : > { %v3585_v36 = vpop.eup %3584  ;;  %3594 = vrsqrt.f32 %v534_v25  ;;  %v539_v25 = vmax.f32 %v4361_v27, 1e-24  ;;  %v552_v30 = vmax.f32 %v530_v32, 1e-24 }
  0xd1   : > { %v3587_v42 = vpop.eup %3586  ;;  %v3083_v44 = vmul.f32 -1.442695, %v4396_v23  ;;  %v586_v45 = vmul.f32 %v3585_v36, %v4181_v35  ;;  %3596 = vrcp.f32 %v683_v33 }
  0xd2   : > { %v685_v49 = vadd.f32 1.0, %v3587_v42  ;;  %v4420_v42 = vpop.xlane.xlu1 %532 }
  0xd3   : > { %v4402_v7 = vpop.xlane.xlu0 %802  ;;  %3598 = vpow2.f32 %v3083_v44  ;;  %v4405_v29 = vmul.f32 %v4364_v37, %v586_v45 }
  0xd4   : > { %v3589_v51 = vpop.eup %3588  ;;  %3600 = vrcp.f32 %v685_v49 }
  0xd5   : > { %v3591_v0 = vpop.eup %3590  ;;  %v3085_v57 = vmul.f32 -1.442695, %v4405_v29  ;;  %v588_v58 = vmul.f32 %v3589_v51, %v4193_v41  ;;  %v537_v41 = vmax.f32 %v4354_v14, 1e-24 }
  0xd6   : > { %v687_v35 = vadd.f32 1.0, %v3591_v0 }
  0xd7   : > { %v4410_v60 = vpop.xlane.xlu0 %808  ;;  %3602 = vpow2.f32 %v3085_v57  ;;  %v4413_v61 = vmul.f32 %v4364_v37, %v588_v58 }
  0xd8   : > { %3604 = vrsqrt.f32 %v535_v55 }
  0xd9   : > { %v3593_v9 = vpop.eup %3592  ;;  %v3087_v5 = vmul.f32 -1.442695, %v4413_v61  ;;  %3606 = vrcp.f32 %v687_v35 }
  0xda   : > { %v689_v10 = vadd.f32 1.0, %v3593_v9  ;;  %v3595_v19 = vpop.eup %3594 }
  0xdb   : > { %v815_v11 = vpop.xlane.xlu0 %814  ;;  %3608 = vpow2.f32 %v3087_v5  ;;  %v3597_v20 = vpop.eup %3596  ;;  %v574_v27 = vmul.f32 %v3595_v19, %v4110_v1 }
  0xdc   : > { %3610 = vrcp.f32 %v689_v10  ;;  %v4423_v18 = vmul.f32 %v3597_v20, %v4369_v43  ;;  %v865_v0 = vmax.f32 %v815_v11, 1e-24  ;;  %v861_v20 = vmax.f32 %v4402_v7, 1e-24 }
  0xdd   : > { %v3599_v26 = vpop.eup %3598  ;;  %3612 = vrsqrt.f32 %v550_v15  ;;  %v4435_v1 = vmul.f32 %v4364_v37, %v574_v27 }
  0xde   : > { %v3601_v33 = vpop.eup %3600  ;;  %v691_v36 = vadd.f32 1.0, %v3599_v26  ;;  %3614 = vrsqrt.f32 %v537_v41 }
  0xdf   : > { %v821_v44 = vpop.xlane.xlu0 %820  ;;  %v4426_v14 = vmul.f32 %v3601_v33, %v4376_v56  ;;  %3616 = vrsqrt.f32 %v539_v25  ;;  %v4432_v56 = vpop.xlane.xlu1 %805  ;;  %v3073_v26 = vmul.f32 -1.442695, %v4435_v1 }
  0xe0   : > { %v867_v45 = vmax.f32 %v821_v44, 1e-24  ;;  %3618 = vrsqrt.f32 %v552_v30 }
  0xe1   : > { %v3603_v49 = vpop.eup %3602  ;;  %v3272_v32 = vpack.i.bf16 %v4426_v14, %v4423_v18  ;;  %3620 = vrcp.f32 %v691_v36 }
  0xe2   : > { %v693_v51 = vadd.f32 1.0, %v3603_v49  ;;  %v3605_v57 = vpop.eup %3604  ;;  %3622 = vrsqrt.f32 %v867_v45 }
  0xe3   : > { %v827_v55 = vpop.xlane.xlu0 %826  ;;  %3273 = vrot.lane.b32.xlu0 %v3272_v32, %s4004_s16  ;;  %v3607_v43 = vpop.eup %3606  ;;  %v575_v30 = vmul.f32 %v3605_v57, %v4122_v6  ;;  %v541_v6 = vmax.f32 %v4366_v38, 1e-24 }
  0xe4   : > { %3624 = vrcp.f32 %v693_v51  ;;  %v869_v58 = vmax.f32 %v827_v55, 1e-24  ;;  %v4438_v11 = vmul.f32 %v3607_v43, %v4383_v3  ;;  %v4448_v44 = vpop.xlane.xlu1 %811  ;;  %v863_v43 = vmax.f32 %v4410_v60, 1e-24 }
  0xe5   : > { %v3609_v35 = vpop.eup %3608  ;;  %3626 = vrsqrt.f32 %v865_v0  ;;  %v4455_v27 = vmul.f32 %v4364_v37, %v575_v30  ;;  %v543_v0 = vmax.f32 %v4372_v54, 1e-24 }
  0xe6   : > { %v3611_v9 = vpop.eup %3610  ;;  %v695_v5 = vadd.f32 1.0, %v3609_v35  ;;  %3628 = vrsqrt.f32 %v869_v58  ;;  %v3292_v30 = vpack.i.bf16 %v4438_v11, %v4426_v14 }
  0xe7   : > { %v833_v10 = vpop.xlane.xlu0 %832  ;;  %v4441_v19 = vmul.f32 %v3611_v9, %v4388_v17  ;;  %v3613_v41 = vpop.eup %3612 }
  0xe8   : > { %v871_v15 = vmax.f32 %v833_v10, 1e-24  ;;  %v3615_v25 = vpop.eup %3614  ;;  %3630 = vrcp.f32 %v695_v5  ;;  %v590_v17 = vmul.f32 %v3613_v41, %v4206_v47  ;;  %v545_v47 = vmax.f32 %v4380_v62, 1e-24  ;;  %v4465_v58 = vpop.xlane.xlu1 %817 }
  0xe9   : > { %6769 = vst [vmem:[#allocation2_spill] sm:$0xff] %v4441_v19  ;;  %v3277_v33 = vpack.i.bf16 %v4441_v19, %v4438_v11  ;;  %v3617_v36 = vpop.eup %3616  ;;  %v577_v45 = vmul.f32 %v3615_v25, %v4113_v2  ;;  %v3074_v62 = vmul.f32 -1.442695, %v4455_v27  ;;  %v547_v41 = vmax.f32 %v4390_v24, 1e-24 }
  0xea   : > { %3632 = vrsqrt.f32 %v871_v15  ;;  %v3619_v3 = vpop.eup %3618  ;;  %v579_v51 = vmul.f32 %v3617_v36, %v4127_v8  ;;  %v4461_v55 = vmul.f32 %v4364_v37, %v590_v17 }
  0xeb   : > { %3278 = vrot.lane.b32.xlu1 %v3277_v33, %s4004_s16  ;;  %v3621_v7 = vpop.eup %3620  ;;  %3634 = vrsqrt.f32 %v861_v20  ;;  %v592_v2 = vmul.f32 %v3619_v3, %v4218_v53  ;;  %v4474_v8 = vmul.f32 %v4364_v37, %v577_v45  ;;  %v549_v45 = vmax.f32 %v4400_v50, 1e-24 }
  0xec   : > { %v3623_v49 = vpop.eup %3622  ;;  %3636 = vpow2.f32 %v3073_v26  ;;  %v4468_v38 = vmul.f32 %v3621_v7, %v4396_v23  ;;  %v4481_v9 = vmul.f32 %v4364_v37, %v579_v51  ;;  %v3089_v5 = vmul.f32 -1.442695, %v4461_v55  ;;  %v4494_v26 = vpop.xlane.xlu1 %823 }
  0xed   : > { %3638 = vrsqrt.f32 %v541_v6  ;;  %v907_v54 = vmul.f32 %v3623_v49, %v4261_v21  ;;  %v4486_v10 = vmul.f32 %v4364_v37, %v592_v2  ;;  %v3076_v15 = vmul.f32 -1.442695, %v4474_v8 }
  0xee   : > { %v3625_v32 = vpop.eup %3624  ;;  %3640 = vrsqrt.f32 %v543_v0  ;;  %v3078_v36 = vmul.f32 -1.442695, %v4481_v9 }
  0xef   : > { %v3627_v57 = vpop.eup %3626  ;;  %v4471_v35 = vmul.f32 %v3625_v32, %v4405_v29  ;;  %3642 = vrsqrt.f32 %v545_v47  ;;  %v4492_v20 = vmul.f32 %v907_v54, %v4364_v37  ;;  %v3091_v7 = vmul.f32 -1.442695, %v4486_v10 }
  0xf0   : > { %v3629_v53 = vpop.eup %3628  ;;  %v905_v29 = vmul.f32 %v3627_v57, %v4251_v13  ;;  %3644 = vrsqrt.f32 %v863_v43  ;;  %v551_v47 = vmax.f32 %v4415_v63, 1e-24  ;;  %v553_v57 = vmax.f32 %v4420_v42, 1e-24 }
  0xf1   : > { %6770 = vst [vmem:[#allocation3_spill] sm:$0xff] %v4471_v35  ;;  %v3282_v60 = vpack.i.bf16 %v4471_v35, %v4468_v38  ;;  %3646 = vpow2.f32 %v3074_v62  ;;  %v909_v13 = vmul.f32 %v3629_v53, %v4269_v31  ;;  %v3099_v31 = vmul.f32 -1.442695, %v4492_v20 }
  0xf2   : > { %v3631_v23 = vpop.eup %3630  ;;  %v4504_v24 = vmul.f32 %v905_v29, %v4364_v37  ;;  %3648 = vpow2.f32 %v3089_v5  ;;  %v862_v63 = vmax.f32 %v4432_v56, 1e-24 }
  0xf3   : > { %3283 = vrot.lane.b32.xlu0 %v3282_v60, %s4004_s16  ;;  %v4500_v33 = vmul.f32 %v3631_v23, %v4413_v61  ;;  %3650 = vpow2.f32 %v3076_v15  ;;  %v4513_v6 = vmul.f32 %v909_v13, %v4364_v37 }
  0xf4   : > { %v3633_v21 = vpop.eup %3632  ;;  %3652 = vrsqrt.f32 %v547_v41  ;;  %v3097_v50 = vmul.f32 -1.442695, %v4504_v24 }
  0xf5   : > { %v3635_v25 = vpop.eup %3634  ;;  %6771 = vst [vmem:[#allocation4_spill] sm:$0xff] %v4500_v33  ;;  %v911_v17 = vmul.f32 %v3633_v21, %v4278_v39  ;;  %v3302_v39 = vpack.i.bf16 %v4500_v33, %v4471_v35  ;;  %3654 = vpow2.f32 %v3078_v36  ;;  %v3101_v62 = vmul.f32 -1.442695, %v4513_v6 }
  0xf6   : > { %v3637_v3 = vpop.eup %3636  ;;  %v901_v61 = vmul.f32 %v3635_v25, %v4233_v59  ;;  %3656 = vpow2.f32 %v3091_v7  ;;  %v830_v59 = vpop.xlane.xlu1 %829  ;;  %v864_v21 = vmax.f32 %v4448_v44, 1e-24  ;;  %v866_v25 = vmax.f32 %v4465_v58, 1e-24 }
  0xf7   : > { %3293 = vrot.lane.b32.xlu0 %v3292_v30, %s4005_s17  ;;  %v681_v49 = vadd.f32 1.0, %v3637_v3  ;;  %v3639_v32 = vpop.eup %3638  ;;  %v4519_v51 = vmul.f32 %v911_v17, %v4364_v37  ;;  %3658 = vrsqrt.f32 %v549_v45  ;;  %v870_v17 = vmax.f32 %v830_v59, 1e-24 }
  0xf8   : > { %v3641_v0 = vpop.eup %3640  ;;  %3660 = vpow2.f32 %v3099_v31  ;;  %v4525_v43 = vmul.f32 %v901_v61, %v4364_v37  ;;  %v581_v36 = vmul.f32 %v3639_v32, %v4141_v16 }
  0xf9   : > { %v3643_v2 = vpop.eup %3642  ;;  %3662 = vrcp.f32 %v681_v49  ;;  %v3103_v60 = vmul.f32 -1.442695, %v4519_v51  ;;  %v583_v16 = vmul.f32 %v3641_v0, %v4153_v22 }
  0xfa   : > { %v3645_v54 = vpop.eup %3644  ;;  %3664 = vpow2.f32 %v3097_v50  ;;  %v3093_v29 = vmul.f32 -1.442695, %v4525_v43  ;;  %v836_v15 = vpop.xlane.xlu1 %835  ;;  %v585_v59 = vmul.f32 %v3643_v2, %v4166_v28 }
  0xfb   : > { %3303 = vrot.lane.b32.xlu0 %v3302_v39, %s4005_s17  ;;  %v4528_v53 = vpop.eup %3646  ;;  %3666 = vrsqrt.f32 %v551_v47  ;;  %v903_v42 = vmul.f32 %v3645_v54, %v4241_v4  ;;  %v868_v4 = vmax.f32 %v4494_v26, 1e-24  ;;  %v872_v58 = vmax.f32 %v836_v15, 1e-24  ;;  %v839_v54 = vpop.xlane.xlu0 %838 }
  0xfc   : > { %v3649_v23 = vpop.eup %3648  ;;  %3668 = vrsqrt.f32 %v553_v57  ;;  %v4550_v39 = vmul.f32 %v4364_v37, %v581_v36  ;;  %v4562_v15 = vmul.f32 %v4364_v37, %v585_v59  ;;  %v682_v59 = vadd.f32 1.0, %v4528_v53 }
  0xfd   : > { %v4534_v5 = vpop.eup %3650  ;;  %3670 = vpow2.f32 %v3101_v62  ;;  %v697_v56 = vadd.f32 1.0, %v3649_v23  ;;  %v4543_v3 = vmul.f32 %v903_v42, %v4364_v37  ;;  %v4556_v23 = vmul.f32 %v4364_v37, %v583_v16 }
  0xfe   : > { %v3653_v41 = vpop.eup %3652  ;;  %3672 = vpow2.f32 %v3103_v60  ;;  %v842_v31 = vpop.xlane.xlu1 %841  ;;  %v3080_v0 = vmul.f32 -1.442695, %v4550_v39 }
  0xff   : > { %v4538_v13 = vpop.eup %3654  ;;  %3674 = vrsqrt.f32 %v862_v63  ;;  %v3095_v26 = vmul.f32 -1.442695, %v4543_v3  ;;  %v874_v57 = vmax.f32 %v842_v31, 1e-24  ;;  %v587_v22 = vmul.f32 %v3653_v41, %v4178_v34 }
 0x100   : > { %v3657_v30 = vpop.eup %3656  ;;  %3676 = vpow2.f32 %v3093_v29  ;;  %v873_v29 = vmax.f32 %v839_v54, 1e-24  ;;  %v686_v31 = vadd.f32 1.0, %v4538_v13 }
 0x101   : > { %v3659_v44 = vpop.eup %3658  ;;  %3678 = vrsqrt.f32 %v864_v21  ;;  %v699_v61 = vadd.f32 1.0, %v3657_v30  ;;  %v4568_v30 = vmul.f32 %v4364_v37, %v587_v22  ;;  %v3297_v22 = vpack.i.bf16 %v4468_v38, %v4441_v19 }
 0x102   : > { %v3661_v7 = vpop.eup %3660  ;;  %3680 = vrsqrt.f32 %v866_v25  ;;  %v589_v2 = vmul.f32 %v3659_v44, %v4190_v40 }
 0x103   : > { %v4545_v45 = vpop.eup %3662  ;;  %3682 = vrcp.f32 %v697_v56  ;;  %v1007_v50 = vadd.f32 1.0, %v3661_v7  ;;  %v3082_v56 = vmul.f32 -1.442695, %v4556_v23  ;;  %v3086_v16 = vmul.f32 -1.442695, %v4568_v30 }
 0x104   : > { %v3665_v49 = vpop.eup %3664  ;;  %3684 = vrsqrt.f32 %v868_v4  ;;  %v4577_v7 = vmul.f32 %v4364_v37, %v589_v2 }
 0x105   : > { %v3667_v32 = vpop.eup %3666  ;;  %3686 = vrsqrt.f32 %v870_v17  ;;  %v1005_v60 = vadd.f32 1.0, %v3665_v49  ;;  %v3084_v17 = vmul.f32 -1.442695, %v4562_v15 }
 0x106   : > { %v3669_v47 = vpop.eup %3668  ;;  %3688 = vrsqrt.f32 %v872_v58  ;;  %v591_v13 = vmul.f32 %v3667_v32, %v4203_v46  ;;  %v4602_v46 = vmul.f32 %v4545_v45, %v4435_v1 }
 0x107   : > { %v3671_v62 = vpop.eup %3670  ;;  %3690 = vrcp.f32 %v699_v61 }
 0x108   : > { %v3673_v63 = vpop.eup %3672  ;;  %3692 = vpow2.f32 %v3095_v26  ;;  %v1009_v21 = vadd.f32 1.0, %v3671_v62  ;;  %v684_v62 = vadd.f32 1.0, %v4534_v5  ;;  %6772 = vst [vmem:[#allocation5_spill] sm:$0xff] %v4602_v46 }
 0x109   : > { %v4558_v42 = vpop.eup %3674  ;;  %3694 = vrcp.f32 %v1007_v50  ;;  %v1011_v34 = vadd.f32 1.0, %v3673_v63  ;;  %v3088_v50 = vmul.f32 -1.442695, %v4577_v7  ;;  %v593_v63 = vmul.f32 %v3669_v47, %v4215_v52  ;;  %v848_v47 = vpop.xlane.xlu1 %847 }
 0x10a   : > { %v3677_v28 = vpop.eup %3676  ;;  %3696 = vrsqrt.f32 %v874_v57 }
 0x10b   : > { %v4564_v25 = vpop.eup %3678  ;;  %3698 = vrcp.f32 %v1005_v60  ;;  %v1001_v4 = vadd.f32 1.0, %v3677_v28  ;;  %v4610_v28 = vmul.f32 %v4364_v37, %v591_v13  ;;  %v1424_v13 = vrot.slane %v4426_v14, 1 }
 0x10c   : > { %v3681_v41 = vpop.eup %3680  ;;  %3700 = vpow2.f32 %v3080_v0 }
 0x10d   : > { %v3683_v36 = vpop.eup %3682  ;;  %3702 = vrsqrt.f32 %v873_v29  ;;  %v906_v5 = vmul.f32 %v3681_v41, %v4248_v12 }
 0x10e   : > { %v4570_v40 = vpop.eup %3684  ;;  %3704 = vrcp.f32 %v1009_v21  ;;  %v4573_v44 = vmul.f32 %v3683_v36, %v4461_v55  ;;  %v1418_v21 = vrot.slane %v4602_v46, 1 }
 0x10f   : > { %v4579_v58 = vpop.eup %3686  ;;  %3706 = vrcp.f32 %v1011_v34  ;;  %v1467_v34 = vrot.slane %v4602_v46, 2 }
 0x110   : > { %v4582_v61 = vpop.eup %3688  ;;  %v3287_v49 = vpack.i.bf16 %v4573_v44, %v4500_v33  ;;  %3708 = vpow2.f32 %v3082_v56  ;;  %v4623_v56 = vmul.f32 %v906_v5, %v4364_v37 }
 0x111   : > { %v3691_v55 = vpop.eup %3690  ;;  %3710 = vrcp.f32 %v1001_v4  ;;  %v1421_v4 = vrot.slane %v4423_v18, 1 }
 0x112   : > { %v3693_v26 = vpop.eup %3692  ;;  %3288 = vrot.lane.b32.xlu1 %v3287_v49, %s4004_s16  ;;  %3712 = vpow2.f32 %v3084_v17  ;;  %v4598_v0 = vmul.f32 %v3691_v55, %v4486_v10  ;;  %v1470_v55 = vrot.slane %v4423_v18, 2 }
 0x113   : > { %v3695_v57 = vpop.eup %3694  ;;  %v1003_v54 = vadd.f32 1.0, %v3693_v26  ;;  %3714 = vrcp.f32 %v686_v31  ;;  %v3932_v31 = vld [vmem:[%s4223_s22 + $0x8] sm:$0x3]  ;;  %v4635_v26 = vmul.f32 -1.442695, %v4610_v28 }
 0x114   : > { %v4592_v60 = vpop.eup %3696  ;;  %3716 = vpow2.f32 %v3086_v16  ;;  %v4606_v32 = vmul.f32 %v3695_v57, %v4492_v20  ;;  %v3307_v12 = vpack.i.bf16 %v4598_v0, %v4573_v44  ;;  %v4618_v20 = vmul.f32 %v4364_v37, %v593_v63  ;;  %v845_v63 = vpop.xlane.xlu0 %844 }
 0x115   : > { %v3699_v29 = vpop.eup %3698  ;;  %3718 = vrcp.f32 %v1003_v54  ;;  %v4631_v49 = vmul.f32 %v3932_v31, %v4558_v42 }
 0x116   : > { %v3701_v53 = vpop.eup %3700  ;;  %6773 = vst [vmem:[#allocation6_spill] sm:$0xff] %v4606_v32  ;;  %3298 = vrot.lane.b32.xlu1 %v3297_v22, %s4005_s17  ;;  %3720 = vpow2.f32 %v3088_v50  ;;  %v4613_v1 = vmul.f32 %v3699_v29, %v4504_v24  ;;  %v876_v24 = vmax.f32 %v848_v47, 1e-24  ;;  %v1427_v22 = vrot.slane %v4438_v11, 1 }
 0x117   : > { %v3703_v52 = vpop.eup %3702  ;;  %v688_v10 = vadd.f32 1.0, %v3701_v53  ;;  %3722 = vrcp.f32 %v682_v59  ;;  %v3933_v59 = vld [vmem:[%s4223_s22 + $0x18] sm:$0x3]  ;;  %v1430_v47 = vrot.slane %v4441_v19, 1 }
 0x118   : > { %v3705_v2 = vpop.eup %3704  ;;  %6774 = vst [vmem:[#allocation7_spill] sm:$0xff] %v4613_v1  ;;  %3724 = vrcp.f32 %v684_v62  ;;  %v3317_v36 = vpack.i.bf16 %v4606_v32, %v4613_v1  ;;  %v4639_v57 = vmul.f32 %v3933_v59, %v4564_v25  ;;  %v4644_v62 = vmul.f32 -1.442695, %v4618_v20 }
 0x119   : > { %v3707_v45 = vpop.eup %3706  ;;  %3726 = vrcp.f32 %v688_v10  ;;  %v4649_v25 = vmul.f32 -1.442695, %v4623_v56 }
 0x11a   : > { %v3709_v41 = vpop.eup %3708  ;;  %3308 = vrot.lane.b32.xlu1 %v3307_v12, %s4005_s17  ;;  %v4659_v59 = vmul.f32 %v3707_v45, %v4519_v51  ;;  %v3936_v51 = vld [vmem:[%s4223_s22 + $0x58] sm:$0x3] }
 0x11b   : > { %v3711_v17 = vpop.eup %3710  ;;  %v690_v16 = vadd.f32 1.0, %v3709_v41  ;;  %v3934_v41 = vld [vmem:[%s4223_s22 + $0x38] sm:$0x3] }
 0x11c   : > { %v3713_v50 = vpop.eup %3712  ;;  %v908_v31 = vmul.f32 %v3934_v41, %v4570_v40  ;;  %6775 = vst [vmem:[#allocation8_spill] sm:$0xff] %v4659_v59  ;;  %v3935_v41 = vld [vmem:[%s4223_s22 + $0x60] sm:$0xff] }
 0x11d   : > { %v3715_v42 = vpop.eup %3714  ;;  %v692_v29 = vadd.f32 1.0, %v3713_v50  ;;  %3728 = vrcp.f32 %v690_v16  ;;  %v914_v16 = vmul.f32 %v4592_v60, %v4285_v48  ;;  %v913_v10 = vmul.f32 %v3935_v41, %v3703_v52 }
 0x11e   : > { %v3717_v5 = vpop.eup %3716  ;;  %3730 = vrsqrt.f32 %v876_v24  ;;  %3318 = vrot.lane.b32.xlu1 %v3317_v36, %s4006_s18  ;;  %v4662_v36 = vmul.f32 %v3711_v17, %v4525_v43  ;;  %v4668_v53 = vmul.f32 %v3715_v42, %v4481_v9  ;;  %v875_v48 = vmax.f32 %v845_v63, 1e-24  ;;  %v4685_v42 = vpop.xlane.xlu0 %850 }
 0x11f   : > { %v3719_v12 = vpop.eup %3718  ;;  %3732 = vrcp.f32 %v692_v29  ;;  %v694_v50 = vadd.f32 1.0, %v3717_v5  ;;  %v4672_v5 = vmul.f32 %v3705_v2, %v4513_v6  ;;  %v912_v43 = vmul.f32 %v3936_v51, %v4582_v61 }
 0x120   : > { %v3721_v24 = vpop.eup %3720  ;;  %v4665_v54 = vmul.f32 %v3719_v12, %v4543_v3  ;;  %v4680_v17 = vmul.f32 %v908_v31, %v4364_v37  ;;  %v4683_v52 = vmul.f32 %v914_v16, %v4364_v37  ;;  %v1425_v2 = vrot.slane %v4668_v53, 1  ;;  %v3937_v12 = vld [vmem:[%s4223_s22 + $0x48] sm:$0x3] }
 0x121   : > { %v3723_v40 = vpop.eup %3722  ;;  %v696_v60 = vadd.f32 1.0, %v3721_v24  ;;  %3734 = vrcp.f32 %v694_v50  ;;  %6776 = vst [vmem:[#allocation9_spill] sm:$0xff] %v4672_v5  ;;  %v910_v31 = vmul.f32 %v3937_v12, %v4579_v58  ;;  %v4698_v16 = vmul.f32 %v913_v10, %v4364_v37 }
 0x122   : > { %v3725_v29 = vpop.eup %3724  ;;  %v3312_v3 = vpack.i.bf16 %v4665_v54, %v4662_v36  ;;  %v742_v9 = vmul.f32 %v3723_v40, %v4455_v27  ;;  %v3322_v27 = vpack.i.bf16 %v4659_v59, %v4672_v5 }
 0x123   : > { %v3727_v45 = vpop.eup %3726  ;;  %3736 = vrcp.f32 %v696_v60  ;;  %v744_v6 = vmul.f32 %v3725_v29, %v4474_v8  ;;  %v4701_v8 = vmul.f32 %v912_v43, %v4364_v37  ;;  %v3106_v60 = vmul.f32 -1.442695, %v4683_v52 }
 0x124   : > { %3313 = vrot.lane.b32.xlu0 %v3312_v3, %s4006_s18  ;;  %v4690_v61 = vmul.f32 %v3727_v45, %v4550_v39  ;;  %v1419_v63 = vrot.slane %v742_v9, 1  ;;  %v1468_v24 = vrot.slane %v742_v9, 2  ;;  %3738 = vrsqrt.f32 %v875_v48  ;;  %v4728_v3 = vpop.xlane.xlu0 %856 }
 0x125   : > { %v1422_v50 = vrot.slane %v744_v6, 1  ;;  %v1471_v40 = vrot.slane %v744_v6, 2  ;;  %3740 = vpow2.f32 %v4635_v26  ;;  %v4717_v48 = vsel %vm1417_vm2, %v1424_v13, %v1425_v2 }
 0x126   : > { %v1428_v39 = vrot.slane %v4690_v61, 1  ;;  %v1420_v29 = vsel %vm1417_vm2, %v1418_v21, %v1419_v63  ;;  %v1433_v43 = vrot.slane %v4468_v38, 1  ;;  %v3105_v26 = vmul.f32 -1.442695, %v4698_v16 }
 0x127   : > { %v3729_v41 = vpop.eup %3728  ;;  %v4711_v58 = vsel %vm1417_vm2, %v1421_v4, %v1422_v50  ;;  %v4743_v2 = vsel %vm1466_vm3, %v1470_v55, %v1471_v40  ;;  %v4746_v63 = vmul.f32 %v910_v31, %v4364_v37  ;;  %v3104_v12 = vmul.f32 -1.442695, %v4701_v8 }
 0x128   : > { %v3731_v10 = vpop.eup %3730  ;;  %v4722_v51 = vsel %vm1417_vm2, %v1427_v22, %v1428_v39  ;;  %v750_v21 = vmul.f32 %v3729_v41, %v4556_v23  ;;  %3323 = vrot.lane.b32.xlu0 %v3322_v27, %s4006_s18  ;;  %v1469_v22 = vsel %vm1466_vm3, %v1467_v34, %v1468_v24  ;;  %v1482_v23 = vrot.slane %v4468_v38, 2  ;;  %v3938_v34 = vld [vmem:[%s4223_s22 + $0x78] sm:$0x3]  ;;  %v4758_v40 = vpop.xlane.xlu0 %1122 }
 0x129   : > { %v3733_v4 = vpop.eup %3732  ;;  %v4732_v13 = vpack.i.bf16 %v4722_v51, %v4717_v48  ;;  %v3327_v6 = vpack.i.bf16 %v4711_v58, %v1420_v29  ;;  %3742 = vpow2.f32 %v3106_v60  ;;  %v916_v50 = vmul.f32 %v3938_v34, %v3731_v10 }
 0x12a   : > { %v752_v9 = vmul.f32 %v3733_v4, %v4562_v15  ;;  %v1431_v45 = vrot.slane %v750_v21, 1  ;;  %v1436_v15 = vrot.slane %v4471_v35, 1  ;;  %v1439_v55 = vrot.slane %v4500_v33, 1 }
 0x12b   : > { %v3735_v27 = vpop.eup %3734  ;;  %3333 = vrot.lane.b32.xlu1 %v4732_v13, %s4007_s19  ;;  %3744 = vpow2.f32 %v3105_v26  ;;  %v3347_v41 = vpack.i.bf16 %v4743_v2, %v1469_v22  ;;  %v1480_v60 = vrot.slane %v750_v21, 2  ;;  %v3102_v26 = vmul.f32 -1.442695, %v4746_v63 }
 0x12c   : > { %v1434_v24 = vrot.slane %v752_v9, 1  ;;  %v4754_v39 = vmul.f32 %v3735_v27, %v4568_v30  ;;  %3328 = vrot.lane.b32.xlu0 %v3327_v6, %s4007_s19  ;;  %v1483_v29 = vrot.slane %v752_v9, 2  ;;  %v4764_v10 = vsel %vm1417_vm2, %v1430_v47, %v1431_v45  ;;  %v854_v27 = vpop.xlane.xlu1 %853 }
 0x12d   : > { %v3737_v31 = vpop.eup %3736  ;;  %3746 = vpow2.f32 %v3104_v12  ;;  %v4784_v9 = vmul.f32 %v4631_v49, %v4364_v37  ;;  %v3100_v12 = vmul.f32 -1.442695, %v4680_v17  ;;  %v878_v46 = vmax.f32 %v854_v27, 1e-24 }
 0x12e   : > { %v4767_v30 = vsel %vm1417_vm2, %v1433_v43, %v1434_v24  ;;  %v756_v4 = vmul.f32 %v3737_v31, %v4577_v7  ;;  %v1437_v6 = vrot.slane %v4754_v39, 1  ;;  %v4777_v22 = vsel %vm1466_vm3, %v1482_v23, %v1483_v29  ;;  %v3739_v47 = vpop.eup %3738 }
 0x12f   : > { %v4774_v21 = vpack.i.bf16 %v4767_v30, %v4764_v10  ;;  %3748 = vpow2.f32 %v4649_v25  ;;  %v1477_v7 = vrot.slane %v4690_v61, 2  ;;  %v3741_v45 = vpop.eup %3740  ;;  %v4788_v23 = vmul.f32 %v916_v50, %v4364_v37 }
 0x130   : > { %v1440_v43 = vrot.slane %v756_v4, 1  ;;  %3348 = vrot.lane.b32.xlu0 %v3347_v41, %s4008_s20  ;;  %v1474_v25 = vrot.slane %v4668_v53, 2  ;;  %v6777_v61 = vrot.slane %v4441_v19, 2  ;;  %v1438_v24 = vsel %vm1417_vm2, %v1436_v15, %v1437_v6  ;;  %v3939_v41 = vld [vmem:[%s4223_s22 + $0x70] sm:$0xff]  ;;  %v4807_v53 = vpop.xlane.xlu1 %859 }
 0x131   : > { %3338 = vrot.lane.b32.xlu1 %v4774_v21, %s4007_s19  ;;  %v698_v50 = vadd.f32 1.0, %v3741_v45  ;;  %3750 = vpow2.f32 %v3102_v26  ;;  %v915_v29 = vmul.f32 %v3939_v41, %v3739_v47  ;;  %v6778_v15 = vrot.slane %v4438_v11, 2 }
 0x132   : > { %v4796_v34 = vsel %vm1466_vm3, %v6777_v61, %v1480_v60  ;;  %v4800_v49 = vsel %vm1417_vm2, %v1439_v55, %v1440_v43  ;;  %v4812_v60 = vpop.xlane.xlu0 %1128  ;;  %v1488_v6 = vrot.slane %v4500_v33, 2  ;;  %v1489_v43 = vrot.slane %v756_v4, 2 }
 0x133   : > { %v4804_v31 = vpack.i.bf16 %v4777_v22, %v4796_v34  ;;  %v4810_v19 = vpack.i.bf16 %v4800_v49, %v1438_v24  ;;  %v4817_v55 = vsel %vm1466_vm3, %v6778_v15, %v1477_v7  ;;  %3752 = vrcp.f32 %v698_v50  ;;  %v3743_v26 = vpop.eup %3742 }
 0x134   : > { %v877_v27 = vmax.f32 %v4685_v42, 1e-24  ;;  %v1485_v47 = vrot.slane %v4471_v35, 2  ;;  %3754 = vpow2.f32 %v4644_v62  ;;  %v4829_v7 = vmul.f32 %v4639_v57, %v4364_v37 }
 0x135   : > { %3358 = vrot.lane.b32.xlu0 %v4804_v31, %s4008_s20  ;;  %3343 = vrot.lane.b32.xlu1 %v4810_v19, %s4007_s19  ;;  %v3108_v4 = vmul.f32 -1.442695, %v4788_v23  ;;  %v6779_v45 = vrot.slane %v4426_v14, 2  ;;  %v1486_v50 = vrot.slane %v4754_v39, 2  ;;  %v3367_v42 = vpack.i.bf16 %v4717_v48, %v4711_v58  ;;  %v3745_v41 = vpop.eup %3744  ;;  %v4849_v58 = vpop.xlane.xlu1 %1125 }
 0x136   : > { %3756 = vpow2.f32 %v3100_v12  ;;  %v4839_v15 = vmul.f32 %v915_v29, %v4364_v37  ;;  %v3094_v57 = vmul.f32 -1.442695, %v4784_v9  ;;  %v1014_v35 = vadd.f32 1.0, %v3743_v26  ;;  %v4853_v48 = vpop.xlane.xlu0 %1134 }
 0x137   : > { %v1475_v61 = vsel %vm1466_vm3, %v6779_v45, %v1474_v25  ;;  %3758 = vrsqrt.f32 %v878_v46  ;;  %v4846_v33 = vsel %vm1466_vm3, %v1488_v6, %v1489_v43  ;;  %v3747_v39 = vpop.eup %3746  ;;  %v3096_v12 = vmul.f32 -1.442695, %v4829_v7 }
 0x138   : > { %v4842_v62 = vpack.i.bf16 %v4817_v55, %v1475_v61  ;;  %3760 = vrsqrt.f32 %v877_v27  ;;  %v1013_v29 = vadd.f32 1.0, %v3745_v41  ;;  %v1487_v46 = vsel %vm1466_vm3, %v1485_v47, %v1486_v50 }
 0x139   : > { %3368 = vrot.lane.b32.xlu0 %v3367_v42, %s4009_s21  ;;  %v3749_v25 = vpop.eup %3748  ;;  %3762 = vpow2.f32 %v3108_v4  ;;  %v3377_v6 = vpack.i.bf16 %v1438_v24, %v4767_v30  ;;  %v3107_v43 = vmul.f32 -1.442695, %v4839_v15  ;;  %v4860_v26 = vpack.i.bf16 %v4846_v33, %v1487_v46  ;;  %v4866_v24 = vpop.xlane.xlu1 %1131 }
 0x13a   : > { %3353 = vrot.lane.b32.xlu1 %v4842_v62, %s4008_s20  ;;  %3764 = vpow2.f32 %v3094_v57  ;;  %v1012_v27 = vadd.f32 1.0, %v3747_v39  ;;  %v3387_v47 = vpack.i.bf16 %v1475_v61, %v4743_v2  ;;  %v3372_v50 = vpack.i.bf16 %v4764_v10, %v4722_v51  ;;  %v4870_v42 = vpop.xlane.xlu0 %1140 }
 0x13b   : > { %3766 = vrcp.f32 %v1014_v35  ;;  %v3751_v45 = vpop.eup %3750  ;;  %v1541_v41 = vrot.slane %v4573_v44, 1  ;;  %v1006_v2 = vadd.f32 1.0, %v3749_v25 }
 0x13c   : > { %3768 = vpow2.f32 %v3096_v12  ;;  %v1010_v10 = vadd.f32 1.0, %v3751_v45  ;;  %v3940_v45 = vld [vmem:[%s4223_s22 + $0x88] sm:$0x3] }
 0x13d   : > { %3378 = vrot.lane.b32.xlu0 %v3377_v6, %s4009_s21  ;;  %v3753_v4 = vpop.eup %3752  ;;  %3770 = vrcp.f32 %v1013_v29  ;;  %v3397_v29 = vpack.i.bf16 %v1487_v46, %v4777_v22  ;;  %v1568_v22 = vrot.slane %v4573_v44, 2 }
 0x13e   : > { %3363 = vrot.lane.b32.xlu1 %v4860_v26, %s4008_s20  ;;  %v3755_v30 = vpop.eup %3754  ;;  %3772 = vpow2.f32 %v3107_v43  ;;  %v758_v35 = vmul.f32 %v3753_v4, %v4610_v28  ;;  %v1147_v4 = vpop.xlane.xlu0 %1146 }
 0x13f   : > { %3774 = vrcp.f32 %v1012_v27  ;;  %v700_v57 = vadd.f32 1.0, %v3755_v30  ;;  %v4883_v27 = vpop.xlane.xlu1 %1137 }
 0x140   : > { %v3757_v39 = vpop.eup %3756  ;;  %v1542_v61 = vrot.slane %v758_v35, 1  ;;  %v1569_v46 = vrot.slane %v758_v35, 2 }
 0x141   : > { %3388 = vrot.lane.b32.xlu0 %v3387_v47, %s4010_s23  ;;  %v3759_v12 = vpop.eup %3758  ;;  %3776 = vrcp.f32 %v700_v57  ;;  %v1008_v30 = vadd.f32 1.0, %v3757_v39 }
 0x142   : > { %3373 = vrot.lane.b32.xlu1 %v3372_v50, %s4009_s21  ;;  %v3761_v51 = vpop.eup %3760  ;;  %v4878_v28 = vsel %vm1417_vm2, %v1541_v41, %v1542_v61  ;;  %3778 = vrcp.f32 %v1006_v2  ;;  %v918_v50 = vmul.f32 %v3940_v45, %v3759_v12  ;;  %v1189_v61 = vmax.f32 %v1147_v4, 1e-24 }
 0x143   : > { %v3763_v6 = vpop.eup %3762  ;;  %v3382_v43 = vpack.i.bf16 %v4878_v28, %v4800_v49  ;;  %3780 = vrcp.f32 %v1010_v10  ;;  %v3392_v2 = vpack.i.bf16 %v4796_v34, %v4817_v55  ;;  %v4893_v39 = vsel %vm1466_vm3, %v1568_v22, %v1569_v46  ;;  %v3941_v10 = vld [vmem:[%s4223_s22 + $0x80] sm:$0xff] }
 0x144   : > { %v3765_v25 = vpop.eup %3764  ;;  %v1016_v55 = vadd.f32 1.0, %v3763_v6  ;;  %v3402_v46 = vpack.i.bf16 %v4893_v39, %v4846_v33 }
 0x145   : > { %3398 = vrot.lane.b32.xlu0 %v3397_v29, %s4010_s23  ;;  %v3767_v47 = vpop.eup %3766  ;;  %v1002_v41 = vadd.f32 1.0, %v3765_v25  ;;  %v4896_v29 = vmul.f32 %v918_v50, %v4364_v37  ;;  %v4906_v25 = vpop.xlane.xlu1 %1143 }
 0x146   : > { %3383 = vrot.lane.b32.xlu1 %v3382_v43, %s4009_s21  ;;  %v3769_v57 = vpop.eup %3768  ;;  %v917_v43 = vmul.f32 %v3941_v10, %v3761_v51  ;;  %v4901_v34 = vmul.f32 %v3767_v47, %v4683_v52  ;;  %v1181_v51 = vmax.f32 %v4758_v40, 1e-24 }
 0x147   : > { %v3771_v49 = vpop.eup %3770  ;;  %v1004_v44 = vadd.f32 1.0, %v3769_v57  ;;  %3782 = vrcp.f32 %v1002_v41  ;;  %v3110_v47 = vmul.f32 -1.442695, %v4896_v29  ;;  %v1778_v57 = vrot.slane %v4659_v59, 2 }
 0x148   : > { %v3773_v35 = vpop.eup %3772  ;;  %3784 = vrcp.f32 %v1008_v30  ;;  %6780 = vst [vmem:[#allocation10_spill] sm:$0xff] %v4901_v34  ;;  %v4920_v30 = vmul.f32 %v917_v43, %v4364_v37  ;;  %v1782_v40 = vrot.slane %v4901_v34, 2 }
 0x149   : > { %3408 = vrot.lane.b32.xlu0 %v4732_v13, %s4011_s8  ;;  %v3775_v12 = vpop.eup %3774  ;;  %v4904_v13 = vmul.f32 %v3771_v49, %v4698_v16  ;;  %3786 = vrcp.f32 %v1004_v44  ;;  %v1015_v22 = vadd.f32 1.0, %v3773_v35  ;;  %v1621_v16 = vrot.slane %v4598_v0, 1  ;;  %v1150_v50 = vpop.xlane.xlu1 %1149 }
 0x14a   : > { %3393 = vrot.lane.b32.xlu1 %v3392_v2, %s4010_s23  ;;  %3788 = vrsqrt.f32 %v1189_v61  ;;  %v4916_v6 = vmul.f32 %v3775_v12, %v4701_v8  ;;  %v1190_v12 = vmax.f32 %v1150_v50, 1e-24 }
 0x14b   : > { %6781 = vst [vmem:[#allocation11_spill] sm:$0xff] %v4904_v13  ;;  %v3777_v4 = vpop.eup %3776  ;;  %3790 = vrcp.f32 %v1016_v55 }
 0x14c   : > { %v760_v52 = vmul.f32 %v3777_v4, %v4618_v20  ;;  %6782 = vst [vmem:[#allocation12_spill] sm:$0xff] %v4916_v6  ;;  %v3779_v33 = vpop.eup %3778  ;;  %3792 = vrcp.f32 %v1015_v22  ;;  %v1182_v20 = vmax.f32 %v4849_v58, 1e-24  ;;  %v1779_v49 = vrot.slane %v4916_v6, 2 }
 0x14d   : > { %3418 = vrot.lane.b32.xlu0 %v4810_v19, %s4011_s8  ;;  %v1781_v19 = vrot.slane %v4904_v13, 2  ;;  %v3781_v8 = vpop.eup %3780  ;;  %3794 = vrsqrt.f32 %v1181_v51  ;;  %v3109_v58 = vmul.f32 -1.442695, %v4920_v30  ;;  %v6685_v51 = vrot.slane %v4916_v6, 1  ;;  %v3955_v6 = vld [vmem:[%s4306_s14 + $0x70] sm:$0xff] }
 0x14e   : > { %3403 = vrot.lane.b32.xlu1 %v3402_v46, %s4010_s23  ;;  %v1622_v45 = vrot.slane %v760_v52, 1  ;;  %3796 = vpow2.f32 %v3110_v47  ;;  %v1649_v55 = vrot.slane %v760_v52, 2  ;;  %v4952_v4 = vsel %vm1466_vm3, %v1778_v57, %v1779_v49 }
 0x14f   : > { %v4941_v44 = vsel %vm1466_vm3, %v1781_v19, %v1782_v40  ;;  %3798 = vrsqrt.f32 %v1182_v20  ;;  %6786 = vst [vmem:[#allocation16_spill] sm:$0xff] %v4952_v4  ;;  %v1727_v19 = vrot.slane %v4672_v5, 1  ;;  %v1721_v49 = vrot.slane %v4613_v1, 1 }
 0x150   : > { %v1623_v41 = vsel %vm1417_vm2, %v1621_v16, %v1622_v45  ;;  %6784 = vst [vmem:[#allocation14_spill] sm:$0xff] %v4941_v44  ;;  %3800 = vpow2.f32 %v3109_v58  ;;  %v1730_v16 = vrot.slane %v4659_v59, 1  ;;  %v1733_v46 = vrot.slane %v4904_v13, 1 }
 0x151   : > { %3428 = vrot.lane.b32.xlu0 %v4842_v62, %s4012_s10  ;;  %v3783_v61 = vpop.eup %3782  ;;  %v4938_v62 = vmul.f32 %v3779_v33, %v4623_v56  ;;  %v3422_v10 = vpack.i.bf16 %v1623_v41, %v4878_v28  ;;  %v1715_v56 = vrot.slane %v4662_v36, 1  ;;  %3802 = vrsqrt.f32 %v1190_v12  ;;  %v3942_v33 = vld [vmem:[%s4306_s14 + $0x40] sm:$0xff] }
 0x152   : > { %3413 = vrot.lane.b32.xlu1 %v4774_v21, %s4011_s8  ;;  %v4935_v2 = vmul.f32 %v3783_v61, %v4784_v9  ;;  %v3785_v35 = vpop.eup %3784  ;;  %v4947_v21 = vmul.f32 %v3781_v8, %v4746_v63  ;;  %v1648_v9 = vrot.slane %v4598_v0, 2  ;;  %v1718_v63 = vrot.slane %v4665_v54, 1 }
 0x153   : > { %6783 = vst [vmem:[#allocation13_spill] sm:$0xff] %v4938_v62  ;;  %v3787_v43 = vpop.eup %3786  ;;  %v4961_v0 = vmul.f32 %v3785_v35, %v4680_v17  ;;  %v1722_v50 = vrot.slane %v4938_v62, 1  ;;  %v1724_v61 = vrot.slane %v4606_v32, 1  ;;  %v4984_v12 = vsel %vm1417_vm2, %v1730_v16, %v6685_v51 }
 0x154   : > { %6785 = vst [vmem:[#allocation15_spill] sm:$0xff] %v4947_v21  ;;  %v3789_v22 = vpop.eup %3788  ;;  %v1064_v28 = vmul.f32 %v3787_v43, %v4829_v7  ;;  %v1650_v45 = vsel %vm1466_vm3, %v1648_v9, %v1649_v55  ;;  %v6686_v40 = vrot.slane %v4947_v21, 1  ;;  %6788 = vst [vmem:[#allocation18_spill] sm:$0xff] %v4984_v12 }
 0x155   : > { %3438 = vrot.lane.b32.xlu0 %v4860_v26, %s4012_s10  ;;  %v1716_v26 = vrot.slane %v4935_v2, 1  ;;  %6787 = vst [vmem:[#allocation17_spill] sm:$0xff] %v4961_v0  ;;  %v3791_v47 = vpop.eup %3790  ;;  %v1229_v7 = vmul.f32 %v3942_v33, %v3789_v22  ;;  %v6688_v58 = vrot.slane %v4961_v0, 1  ;;  %v1775_v33 = vrot.slane %v4672_v5, 2 }
 0x156   : > { %3423 = vrot.lane.b32.xlu1 %v3422_v10, %s4011_s8  ;;  %v1719_v52 = vrot.slane %v1064_v28, 1  ;;  %v3793_v20 = vpop.eup %3792  ;;  %v1766_v10 = vrot.slane %v4665_v54, 2  ;;  %v1767_v43 = vrot.slane %v1064_v28, 2  ;;  %v4988_v9 = vmul.f32 %v3791_v47, %v4788_v23 }
 0x157   : > { %v1717_v17 = vsel %vm1417_vm2, %v1715_v56, %v1716_v26  ;;  %v3795_v41 = vpop.eup %3794  ;;  %v4991_v55 = vmul.f32 %v1229_v7, %v4364_v37  ;;  %v5000_v22 = vmul.f32 %v3793_v20, %v4839_v15  ;;  %v3943_v26 = vld [vmem:[%s4306_s14] sm:$0xff]  ;;  %v1763_v23 = vrot.slane %v4662_v36, 2 }
 0x158   : > { %v4973_v8 = vsel %vm1417_vm2, %v1718_v63, %v1719_v52  ;;  %v3797_v35 = vpop.eup %3796  ;;  %6789 = vst [vmem:[#allocation19_spill] sm:$0xff] %v4988_v9  ;;  %v1221_v28 = vmul.f32 %v3943_v26, %v3795_v41  ;;  %v1764_v63 = vrot.slane %v4935_v2, 2  ;;  %v5009_v52 = vsel %vm1417_vm2, %v1721_v49, %v1722_v50  ;;  %v3944_v41 = vld [vmem:[%s4306_s14 + $0x8] sm:$0x3] }
 0x159   : > { %v3452_v57 = vpack.i.bf16 %v4973_v8, %v1717_v17  ;;  %v3799_v56 = vpop.eup %3798  ;;  %6790 = vst [vmem:[#allocation20_spill] sm:$0xff] %v5000_v22  ;;  %v5016_v15 = vsel %vm1417_vm2, %v1724_v61, %v6688_v58  ;;  %v1772_v47 = vrot.slane %v4606_v32, 2  ;;  %v3447_v36 = vpack.i.bf16 %v5000_v22, %v4904_v13 }
 0x15a   : > { %3433 = vrot.lane.b32.xlu1 %v4804_v31, %s4012_s10  ;;  %v3442_v31 = vpack.i.bf16 %v1650_v45, %v4893_v39  ;;  %v4997_v39 = vsel %vm1417_vm2, %v1727_v19, %v6686_v40  ;;  %v5022_v2 = vsel %vm1466_vm3, %v1766_v10, %v1767_v43  ;;  %v1776_v7 = vrot.slane %v4947_v21, 2  ;;  %v3801_v45 = vpop.eup %3800 }
 0x15b   : > { %3453 = vrot.lane.b32.xlu0 %v3452_v57, %s4013_s11  ;;  %v3462_v16 = vpack.i.bf16 %v4984_v12, %v4997_v39  ;;  %v3121_v19 = vmul.f32 -1.442695, %v4991_v55  ;;  %v1736_v20 = vrot.slane %v5000_v22, 1  ;;  %v6687_v17 = vrot.slane %v4988_v9, 1  ;;  %v3803_v49 = vpop.eup %3802 }
 0x15c   : > { %v1222_v57 = vmul.f32 %v3944_v41, %v3799_v56  ;;  %v1765_v61 = vsel %vm1466_vm3, %v1763_v23, %v1764_v63  ;;  %v1785_v10 = vrot.slane %v4988_v9, 2  ;;  %v5036_v43 = vmul.f32 %v1221_v28, %v4364_v37 }
 0x15d   : > { %v1018_v26 = vadd.f32 1.0, %v3797_v35  ;;  %v3472_v51 = vpack.i.bf16 %v5022_v2, %v1765_v61  ;;  %v6689_v56 = vrot.slane %v4901_v34, 1  ;;  %v1017_v41 = vadd.f32 1.0, %v3801_v45  ;;  %v3945_v61 = vld [vmem:[%s4306_s14 + $0x48] sm:$0x3] }
 0x15e   : > { %3443 = vrot.lane.b32.xlu1 %v3442_v31, %s4012_s10  ;;  %v1784_v31 = vrot.slane %v5000_v22, 2  ;;  %v3457_v23 = vpack.i.bf16 %v5016_v15, %v5009_v52  ;;  %v1773_v63 = vrot.slane %v4961_v0, 2  ;;  %3804 = vpow2.f32 %v3121_v19 }
 0x15f   : > { %3463 = vrot.lane.b32.xlu0 %v3462_v16, %s4013_s11  ;;  %v1153_v16 = vpop.xlane.xlu0 %1152  ;;  %v5048_v35 = vsel %vm1417_vm2, %v1736_v20, %v6687_v17  ;;  %v5051_v28 = vmul.f32 %v1222_v57, %v4364_v37  ;;  %v1230_v45 = vmul.f32 %v3945_v61, %v3803_v49  ;;  %v1769_v19 = vrot.slane %v4613_v1, 2  ;;  %v1156_v20 = vpop.xlane.xlu1 %1155 }
 0x160   : > { %v5060_v40 = vsel %vm1466_vm3, %v1784_v31, %v1785_v10  ;;  %3806 = vrcp.f32 %v1018_v26  ;;  %v5066_v57 = vsel %vm1417_vm2, %v1733_v46, %v6689_v56  ;;  %v5075_v10 = vsel %vm1466_vm3, %v1772_v47, %v1773_v63 }
 0x161   : > { %6792 = vst [vmem:[#allocation22_spill] sm:$0xff] %v5060_v40  ;;  %3808 = vrcp.f32 %v1017_v41  ;;  %v3467_v31 = vpack.i.bf16 %v5048_v35, %v5066_v57  ;;  %6793 = vst [vmem:[#allocation23_spill] sm:$0xff] %v5075_v10  ;;  %v3114_v46 = vmul.f32 -1.442695, %v5051_v28  ;;  %v5080_v26 = vmul.f32 %v1230_v45, %v4364_v37 }
 0x162   : > { %3448 = vrot.lane.b32.xlu1 %v3447_v36, %s4006_s18  ;;  %v1191_v36 = vmax.f32 %v1153_v16, 1e-24  ;;  %v5056_v16 = vsel %vm1466_vm3, %v1775_v33, %v1776_v7  ;;  %v1770_v33 = vrot.slane %v4938_v62, 2  ;;  %v1183_v7 = vmax.f32 %v4812_v60, 1e-24 }
 0x163   : > { %3473 = vrot.lane.b32.xlu0 %v3472_v51, %s4014_s12  ;;  %6791 = vst [vmem:[#allocation21_spill] sm:$0xff] %v5056_v16  ;;  %v3113_v51 = vmul.f32 -1.442695, %v5036_v43  ;;  %v3482_v49 = vpack.i.bf16 %v4952_v4, %v5056_v16  ;;  %v5084_v41 = vpop.xlane.xlu0 %1158  ;;  %v3492_v47 = vpack.i.bf16 %v4613_v1, %v4665_v54  ;;  %v5091_v63 = vpop.xlane.xlu1 %1161  ;;  %v3122_v61 = vmul.f32 -1.442695, %v5080_v26 }
 0x164   : > { %3810 = vrsqrt.f32 %v1191_v36  ;;  %v1771_v60 = vsel %vm1466_vm3, %v1769_v19, %v1770_v33  ;;  %v3502_v19 = vpack.i.bf16 %v4904_v13, %v4659_v59  ;;  %v3497_v17 = vpack.i.bf16 %v4672_v5, %v4606_v32  ;;  %v3950_v5 = vld [vmem:[%s4306_s14 + $0x20] sm:$0xff]  ;;  %v3954_v13 = vld [vmem:[%s4306_s14 + $0x30] sm:$0xff] }
 0x165   : > { %3812 = vpow2.f32 %v3113_v51  ;;  %v3477_v36 = vpack.i.bf16 %v5075_v10, %v1771_v60  ;;  %v1184_v51 = vmax.f32 %v4866_v24, 1e-24  ;;  %v3522_v58 = vpack.i.bf16 %v5066_v57, %v4984_v12 }
 0x166   : > { %3458 = vrot.lane.b32.xlu1 %v3457_v23, %s4013_s11  ;;  %3814 = vrsqrt.f32 %v1183_v7  ;;  %v1192_v23 = vmax.f32 %v1156_v20, 1e-24  ;;  %v3946_v20 = vld [vmem:[%s4306_s14 + $0x50] sm:$0xff] }
 0x167   : > { %3483 = vrot.lane.b32.xlu0 %v3482_v49, %s4014_s12  ;;  %3816 = vpow2.f32 %v3114_v46  ;;  %v5099_v54 = vpop.xlane.xlu0 %1164  ;;  %v3487_v49 = vpack.i.bf16 %v5060_v40, %v4941_v44  ;;  %v1193_v40 = vmax.f32 %v5084_v41, 1e-24  ;;  %v3956_v44 = vld [vmem:[%s4223_s22 + $0x90] sm:$0xff] }
 0x168   : > { %v3805_v45 = vpop.eup %3804  ;;  %3818 = vpow2.f32 %v3122_v61 }
 0x169   : > { %3820 = vrsqrt.f32 %v1184_v51 }
 0x16a   : > { %3468 = vrot.lane.b32.xlu1 %v3467_v31, %s4013_s11  ;;  %v3807_v33 = vpop.eup %3806  ;;  %v1329_v31 = vadd.f32 1.0, %v3805_v45 }
 0x16b   : > { %3493 = vrot.lane.b32.xlu0 %v3492_v47, %s4015_s13  ;;  %v3809_v7 = vpop.eup %3808  ;;  %v3512_v47 = vpack.i.bf16 %v5009_v52, %v4973_v8  ;;  %v5119_v51 = vmul.f32 %v3807_v33, %v4896_v29  ;;  %v3947_v29 = vld [vmem:[%s4306_s14 + $0x10] sm:$0xff] }
 0x16c   : > { %v5113_v45 = vmul.f32 %v3809_v7, %v4920_v30  ;;  %3822 = vrcp.f32 %v1329_v31 }
 0x16d   : > { %6796 = vst [vmem:[#allocation26_spill] sm:$0xff] %v5119_v51  ;;  %3824 = vrsqrt.f32 %v1192_v23  ;;  %v6690_v31 = vrot.slane %v5119_v51, 1  ;;  %v3532_v23 = vpack.i.bf16 %v1771_v60, %v5022_v2 }
 0x16e   : > { %3478 = vrot.lane.b32.xlu1 %v3477_v36, %s4014_s12  ;;  %v3811_v46 = vpop.eup %3810  ;;  %v5107_v36 = vpop.xlane.xlu1 %1167  ;;  %6794 = vst [vmem:[#allocation24_spill] sm:$0xff] %v5113_v45  ;;  %v3507_v30 = vpack.i.bf16 %v5113_v45, %v5000_v22 }
 0x16f   : > { %3503 = vrot.lane.b32.xlu0 %v3502_v19, %s4015_s13  ;;  %v3813_v24 = vpop.eup %3812  ;;  %v5115_v19 = vpop.xlane.xlu0 %1170 }
 0x170   : > { %v3815_v61 = vpop.eup %3814  ;;  %6795 = vst [vmem:[#allocation25_spill] sm:$0xff] %v5115_v19 }
 0x171   : > { %v3817_v8 = vpop.eup %3816  ;;  %v1223_v33 = vmul.f32 %v3947_v29, %v3815_v61 }
 0x172   : > { %3488 = vrot.lane.b32.xlu1 %v3487_v49, %s4014_s12  ;;  %v1231_v49 = vmul.f32 %v3946_v20, %v3811_v46  ;;  %v5126_v7 = vpop.xlane.xlu1 %1173  ;;  %v1322_v46 = vadd.f32 1.0, %v3817_v8  ;;  %v3819_v20 = vpop.eup %3818 }
 0x173   : > { %3513 = vrot.lane.b32.xlu0 %v3512_v47, %s4016_s9  ;;  %v1321_v47 = vadd.f32 1.0, %v3813_v24  ;;  %6797 = vst [vmem:[#allocation27_spill] sm:$0xff] %v5126_v7  ;;  %v5137_v56 = vpop.xlane.xlu0 %1176  ;;  %v3821_v8 = vpop.eup %3820  ;;  %v1330_v2 = vadd.f32 1.0, %v3819_v20 }
 0x174   : > { %v5134_v24 = vmul.f32 %v1231_v49, %v4364_v37  ;;  %6798 = vst [vmem:[#allocation28_spill] sm:$0xff] %v5137_v56  ;;  %v5148_v49 = vmul.f32 %v1223_v33, %v4364_v37 }
 0x175   : > { %3826 = vrcp.f32 %v1321_v47 }
 0x176   : > { %3498 = vrot.lane.b32.xlu1 %v3497_v17, %s4015_s13  ;;  %v1837_v17 = vrot.slane %v5113_v45, 1  ;;  %3828 = vrcp.f32 %v1322_v46  ;;  %v3123_v60 = vmul.f32 -1.442695, %v5134_v24  ;;  %v5152_v47 = vpop.xlane.xlu1 %1179 }
 0x177   : > { %3523 = vrot.lane.b32.xlu0 %v3522_v58, %s4016_s9  ;;  %v3517_v58 = vpack.i.bf16 %v4997_v39, %v5016_v15  ;;  %6799 = vst [vmem:[#allocation29_spill] sm:$0xff] %v5152_v47  ;;  %v5161_v46 = vpop.permute.xlu0 %3273  ;;  %3830 = vrcp.f32 %v1330_v2 }
 0x178   : > { %v5145_v61 = vsel %vm1417_vm2, %v1837_v17, %v6690_v31  ;;  %v3948_v17 = vld [vmem:[%s4306_s14 + $0x18] sm:$0x3]  ;;  %3832 = vpow2.f32 %v3123_v60 }
 0x179   : > { %v3527_v29 = vpack.i.bf16 %v5145_v61, %v5048_v35  ;;  %v1224_v33 = vmul.f32 %v3948_v17, %v3821_v8  ;;  %v3949_v17 = vld [vmem:[%s4306_s14 + $0x58] sm:$0x3] }
 0x17a   : > { %3508 = vrot.lane.b32.xlu1 %v3507_v30, %s4015_s13  ;;  %v3823_v30 = vpop.eup %3822  ;;  %v5167_v31 = vpop.permute.xlu1 %3278 }
 0x17b   : > { %3533 = vrot.lane.b32.xlu0 %v3532_v23, %s4017_s15  ;;  %v3825_v23 = vpop.eup %3824  ;;  %v5165_v20 = vmul.f32 %v3823_v30, %v4991_v55  ;;  %v5173_v8 = vmul.f32 %v1224_v33, %v4364_v37  ;;  %v5176_v10 = vpop.permute.xlu0 %3283 }
 0x17c   : > { %v1232_v16 = vmul.f32 %v3949_v17, %v3825_v23 }
 0x17d   : > { %6800 = vst [vmem:[#allocation30_spill] sm:$0xff] %v5165_v20  ;;  %v5183_v2 = vrot.slane %v5165_v20, 7 }
 0x17e   : > { %3518 = vrot.lane.b32.xlu1 %v3517_v58, %s4016_s9  ;;  %v3115_v58 = vmul.f32 -1.442695, %v5148_v49  ;;  %v5190_v33 = vmul.f32 %v1232_v16, %v4364_v37 }
 0x17f   : > { %2056 = vrot.lane.b32.xlu0 %v1722_v50, %s4007_s19  ;;  %v3827_v59 = vpop.eup %3826  ;;  %v6801_v50 = vrot.slane %v4901_v34, 1  ;;  %6802 = vst [vmem:[#allocation31_spill] sm:$0xff] %v5183_v2 }
 0x180   : > { %3834 = vpow2.f32 %v3115_v58  ;;  %v3829_v60 = vpop.eup %3828  ;;  %v1381_v30 = vmul.f32 %v3827_v59, %v5036_v43  ;;  %v1185_v58 = vmax.f32 %v4853_v48, 1e-24  ;;  %v3124_v16 = vmul.f32 -1.442695, %v5190_v33 }
 0x181   : > { %v3831_v23 = vpop.eup %3830 }
 0x182   : > { %3528 = vrot.lane.b32.xlu1 %v3527_v29, %s4016_s9  ;;  %v3116_v29 = vmul.f32 -1.442695, %v5173_v8  ;;  %v2110_v17 = vrot.slane %v1381_v30, 7  ;;  %v3833_v59 = vpop.eup %3832 }
 0x183   : > { %2072 = vrot.lane.b32.xlu0 %v6801_v50, %s4007_s19  ;;  %v5196_v50 = vpop.permute.xlu0 %3293  ;;  %v1331_v48 = vadd.f32 1.0, %v3833_v59 }
 0x184   : > { %v5180_v55 = vpop.permute.xlu1 %3288  ;;  %6803 = vst [vmem:[#allocation32_spill] sm:$0xff] %v5196_v50  ;;  %3836 = vpow2.f32 %v3116_v29 }
 0x185   : > { %3838 = vrsqrt.f32 %v1185_v58 }
 0x186   : > { %2054 = vrot.lane.b32.xlu1 %v5009_v52, %s4007_s19  ;;  %v1382_v52 = vmul.f32 %v3829_v60, %v5051_v28  ;;  %v5205_v28 = vmul.f32 %v3831_v23, %v5080_v26  ;;  %3840 = vpow2.f32 %v3124_v16  ;;  %v1186_v60 = vmax.f32 %v4883_v27, 1e-24 }
 0x187   : > { %2126 = vrot.lane.b32.xlu0 %v5183_v2, %s4008_s20  ;;  %3842 = vrsqrt.f32 %v1193_v40  ;;  %v5210_v29 = vpop.permute.xlu0 %3303  ;;  %v1194_v26 = vmax.f32 %v5091_v63, 1e-24  ;;  %v2198_v23 = vrot.slane %v1381_v30, 1 }
 0x188   : > { %v5198_v43 = vpop.permute.xlu1 %3298  ;;  %6804 = vst [vmem:[#allocation33_spill] sm:$0xff] %v5205_v28  ;;  %6805 = vst [vmem:[#allocation34_spill] sm:$0xff] %v5210_v29  ;;  %3844 = vrcp.f32 %v1331_v48  ;;  %v5224_v59 = vrot.slane %v5205_v28, 1 }
 0x189   : > { %3846 = vrsqrt.f32 %v1186_v60 }
 0x18a   : > { %2070 = vrot.lane.b32.xlu1 %v5066_v57, %s4007_s19  ;;  %v3835_v57 = vpop.eup %3834  ;;  %6807 = vst [vmem:[#allocation36_spill] sm:$0xff] %v5224_v59 }
 0x18b   : > { %2152 = vrot.lane.b32.xlu0 %v1382_v52, %s4004_s16  ;;  %v1323_v41 = vadd.f32 1.0, %v3835_v57 }
 0x18c   : > { %v5213_v45 = vpop.permute.xlu1 %3308 }
 0x18d   : > { %3848 = vrcp.f32 %v1323_v41 }
 0x18e   : > { %2118 = vrot.lane.b32.xlu1 %v2110_v17, %s4008_s20  ;;  %v2199_v17 = vrot.slane %v1382_v52, 1  ;;  %v3837_v27 = vpop.eup %3836  ;;  %3850 = vrsqrt.f32 %v1194_v26 }
 0x18f   : > { %2168 = vrot.lane.b32.xlu0 %v5205_v28, %s4004_s16  ;;  %v3839_v52 = vpop.eup %3838  ;;  %v1324_v57 = vadd.f32 1.0, %v3837_v27 }
 0x190   : > { %v5221_v40 = vpop.permute.xlu1 %3318  ;;  %v2200_v63 = vsel %vm1417_vm2, %v2198_v23, %v2199_v17  ;;  %v3841_v48 = vpop.eup %3840  ;;  %v1225_v32 = vmul.f32 %v3950_v5, %v3839_v52 }
 0x191   : > { %v3843_v60 = vpop.eup %3842  ;;  %3852 = vrcp.f32 %v1324_v57  ;;  %v1332_v27 = vadd.f32 1.0, %v3841_v48 }
 0x192   : > { %2150 = vrot.lane.b32.xlu1 %v1381_v30, %s4004_s16  ;;  %v2210_v30 = vrot.slane %v5165_v20, 1  ;;  %v3845_v23 = vpop.eup %3844  ;;  %v5255_v52 = vmul.f32 %v1225_v32, %v4364_v37 }
 0x193   : > { %2224 = vrot.lane.b32.xlu0 %v2199_v17, %s4009_s21  ;;  %v6810_v17 = vrot.slane %v4961_v0, 1  ;;  %v5249_v22 = vmul.f32 %v3845_v23, %v5134_v24  ;;  %3854 = vrcp.f32 %v1332_v27  ;;  %v3952_v23 = vld [vmem:[%s4306_s14 + $0x28] sm:$0x3] }
 0x194   : > { %v5235_v41 = vsel %vm1417_vm2, %v2210_v30, %v5224_v59  ;;  %v3117_v27 = vmul.f32 -1.442695, %v5255_v52 }
 0x195   : > { %6809 = vst [vmem:[#allocation38_spill] sm:$0xff] %v5235_v41  ;;  %6812 = vst [vmem:[#allocation40_spill] sm:$0xff] %v5249_v22  ;;  %v5267_v24 = vrot.slane %v5249_v22, 7 }
 0x196   : > { %v5217_v58 = vpop.permute.xlu0 %3313  ;;  %2166 = vrot.lane.b32.xlu1 %v5165_v20, %s4004_s16  ;;  %v3951_v20 = vld [vmem:[%s4306_s14 + $0x60] sm:$0xff]  ;;  %3856 = vpow2.f32 %v3117_v27 }
 0x197   : > { %6806 = vst [vmem:[#allocation35_spill] sm:$0xff] %v5217_v58  ;;  %2240 = vrot.lane.b32.xlu0 %v5224_v59, %s4009_s21  ;;  %v1233_v30 = vmul.f32 %v3951_v20, %v3843_v60  ;;  %v3847_v59 = vpop.eup %3846  ;;  %6816 = vst [vmem:[#allocation43_spill] sm:$0xff] %v5267_v24 }
 0x198   : > { %v3849_v28 = vpop.eup %3848  ;;  %v1226_v32 = vmul.f32 %v3952_v23, %v3847_v59  ;;  %v1187_v23 = vmax.f32 %v4870_v42, 1e-24 }
 0x199   : > { %v3851_v5 = vpop.eup %3850  ;;  %v5262_v20 = vmul.f32 %v1233_v30, %v4364_v37  ;;  %v5270_v60 = vmul.f32 %v3849_v28, %v5148_v49 }
 0x19a   : > { %2222 = vrot.lane.b32.xlu1 %v2200_v63, %s4009_s21  ;;  %v5231_v16 = vpop.permute.xlu0 %3323  ;;  %v5286_v59 = vmul.f32 %v1226_v32, %v4364_v37 }
 0x19b   : > { %6808 = vst [vmem:[#allocation37_spill] sm:$0xff] %v5231_v16  ;;  %2060 = vrot.lane.b32.xlu0 %v6810_v17, %s4007_s19  ;;  %v6813_v17 = vrot.slane %v4988_v9, 1  ;;  %v3125_v0 = vmul.f32 -1.442695, %v5262_v20  ;;  %v3853_v49 = vpop.eup %3852  ;;  %v2111_v28 = vrot.slane %v5270_v60, 7  ;;  %v2201_v9 = vrot.slane %v5270_v60, 1 }
 0x19c   : > { %v1384_v2 = vmul.f32 %v3853_v49, %v5173_v8  ;;  %v3118_v34 = vmul.f32 -1.442695, %v5286_v59  ;;  %v879_v8 = vmax.f32 %v4728_v3, 1e-24  ;;  %v880_v49 = vmax.f32 %v4807_v53, 1e-24 }
 0x19d   : > { %v5237_v26 = vpop.permute.xlu1 %3333  ;;  %3858 = vpow2.f32 %v3125_v0  ;;  %v3855_v32 = vpop.eup %3854 }
 0x19e   : > { %2238 = vrot.lane.b32.xlu1 %v5235_v41, %s4009_s21  ;;  %v5245_v63 = vpop.permute.xlu0 %3328  ;;  %3860 = vrsqrt.f32 %v1187_v23  ;;  %v5310_v0 = vmul.f32 %v3855_v32, %v5190_v33  ;;  %v2202_v62 = vrot.slane %v1384_v2, 1 }
 0x19f   : > { %6811 = vst [vmem:[#allocation39_spill] sm:$0xff] %v5245_v63  ;;  %2076 = vrot.lane.b32.xlu0 %v6813_v17, %s4007_s19  ;;  %3862 = vpow2.f32 %v3118_v34 }
 0x1a0   : > { %6820 = vst [vmem:[#allocation47_spill] sm:$0xff] %v5310_v0  ;;  %v3857_v23 = vpop.eup %3856  ;;  %v5345_v7 = vrot.slane %v5310_v0, 1  ;;  %v2203_v19 = vsel %vm1417_vm2, %v2201_v9, %v2202_v62 }
 0x1a1   : > { %v1325_v53 = vadd.f32 1.0, %v3857_v23 }
 0x1a2   : > { %2058 = vrot.lane.b32.xlu1 %v5016_v15, %s4007_s19  ;;  %v5259_v57 = vpop.permute.xlu0 %3348  ;;  %v3953_v15 = vld [vmem:[%s4306_s14 + $0x68] sm:$0x3]  ;;  %6825 = vst [vmem:[#allocation52_spill] sm:$0xff] %v5345_v7 }
 0x1a3   : > { %6814 = vst [vmem:[#allocation41_spill] sm:$0xff] %v5259_v57  ;;  %v5264_v48 = vpop.permute.xlu1 %3338  ;;  %2280 = vrot.lane.b32.xlu0 %v5267_v24, %s4010_s23  ;;  %v1234_v17 = vmul.f32 %v3953_v15, %v3851_v5 }
 0x1a4   : > { %6815 = vst [vmem:[#allocation42_spill] sm:$0xff] %v5264_v48 }
 0x1a5   : > { %v5291_v5 = vmul.f32 %v1234_v17, %v4364_v37 }
 0x1a6   : > { %2074 = vrot.lane.b32.xlu1 %v5048_v35, %s4007_s19 }
 0x1a7   : > { %v5279_v30 = vpop.permute.xlu0 %3358  ;;  %v5282_v41 = vpop.permute.xlu1 %3343  ;;  %2128 = vrot.lane.b32.xlu0 %v5267_v24, %s4008_s20  ;;  %v3126_v17 = vmul.f32 -1.442695, %v5291_v5  ;;  %v1195_v24 = vmax.f32 %v5099_v54, 1e-24 }
 0x1a8   : > { %6817 = vst [vmem:[#allocation44_spill] sm:$0xff] %v5279_v30  ;;  %v3859_v33 = vpop.eup %3858 }
 0x1a9   : > { %3864 = vpow2.f32 %v3126_v17  ;;  %v1333_v34 = vadd.f32 1.0, %v3859_v33  ;;  %v3861_v17 = vpop.eup %3860 }
 0x1aa   : > { %2272 = vrot.lane.b32.xlu1 %v2111_v28, %s4010_s23  ;;  %3866 = vrsqrt.f32 %v1195_v24  ;;  %v3863_v24 = vpop.eup %3862  ;;  %v1227_v1 = vmul.f32 %v3954_v13, %v3861_v17  ;;  %v2213_v13 = vrot.slane %v5249_v22, 1  ;;  %v3957_v17 = vld [vmem:[%s4223_s22 + $0x98] sm:$0x3] }
 0x1ab   : > { %v5294_v35 = vpop.permute.xlu0 %3368  ;;  %2299 = vrot.lane.b32.xlu0 %v1384_v2, %s4005_s17  ;;  %3868 = vrsqrt.f32 %v879_v8  ;;  %v1326_v47 = vadd.f32 1.0, %v3863_v24 }
 0x1ac   : > { %6818 = vst [vmem:[#allocation45_spill] sm:$0xff] %v5294_v35  ;;  %v5297_v15 = vpop.permute.xlu1 %3353  ;;  %3870 = vrsqrt.f32 %v880_v49  ;;  %v5357_v12 = vmul.f32 %v1227_v1, %v4364_v37 }
 0x1ad   : > { %3872 = vrcp.f32 %v1325_v53 }
 0x1ae   : > { %2120 = vrot.lane.b32.xlu1 %v2111_v28, %s4008_s20  ;;  %3874 = vrcp.f32 %v1333_v34  ;;  %6826 = vst [vmem:[#allocation53_spill] sm:$0xff] %v5357_v12 }
 0x1af   : > { %v5304_v27 = vpop.permute.xlu0 %3378  ;;  %2315 = vrot.lane.b32.xlu0 %v5310_v0, %s4005_s17  ;;  %3876 = vrcp.f32 %v1326_v47  ;;  %v5370_v47 = vsel %vm1417_vm2, %v2213_v13, %v5345_v7 }
 0x1b0   : > { %6819 = vst [vmem:[#allocation46_spill] sm:$0xff] %v5304_v27  ;;  %v5307_v42 = vpop.permute.xlu1 %3363  ;;  %6829 = vst [vmem:[#allocation56_spill] sm:$0xff] %v5370_v47 }
 0x1b2   : > { %2297 = vrot.lane.b32.xlu1 %v5270_v60, %s4005_s17 }
 0x1b3   : > { %v5318_v28 = vpop.permute.xlu0 %3388  ;;  %2156 = vrot.lane.b32.xlu0 %v1384_v2, %s4004_s16  ;;  %v3865_v49 = vpop.eup %3864 }
 0x1b4   : > { %6821 = vst [vmem:[#allocation48_spill] sm:$0xff] %v5318_v28  ;;  %v5320_v54 = vpop.permute.xlu1 %3373  ;;  %v3867_v33 = vpop.eup %3866  ;;  %v1334_v2 = vadd.f32 1.0, %v3865_v49 }
 0x1b5   : > { %v3869_v56 = vpop.eup %3868  ;;  %v1235_v4 = vmul.f32 %v3955_v6, %v3867_v33  ;;  %v1188_v33 = vmax.f32 %v4906_v25, 1e-24  ;;  %v1196_v25 = vmax.f32 %v5107_v36, 1e-24 }
 0x1b6   : > { %2313 = vrot.lane.b32.xlu1 %v5249_v22, %s4005_s17  ;;  %v3871_v34 = vpop.eup %3870  ;;  %v919_v24 = vmul.f32 %v3956_v44, %v3869_v56  ;;  %3878 = vrcp.f32 %v1334_v2 }
 0x1b7   : > { %v5325_v3 = vpop.permute.xlu0 %3398  ;;  %2172 = vrot.lane.b32.xlu0 %v5310_v0, %s4004_s16  ;;  %v920_v49 = vmul.f32 %v3957_v17, %v3871_v34  ;;  %v5363_v44 = vmul.f32 %v1235_v4, %v4364_v37  ;;  %v3873_v56 = vpop.eup %3872  ;;  %v3119_v34 = vmul.f32 -1.442695, %v5357_v12  ;;  %3880 = vrsqrt.f32 %v1188_v33 }
 0x1b8   : > { %6822 = vst [vmem:[#allocation49_spill] sm:$0xff] %v5325_v3  ;;  %v5327_v32 = vpop.permute.xlu1 %3383  ;;  %v5374_v1 = vmul.f32 %v919_v24, %v4364_v37  ;;  %v3875_v2 = vpop.eup %3874  ;;  %v5384_v17 = vmul.f32 %v3873_v56, %v5255_v52  ;;  %v3356_v0 = vunpack.i.h.bf16 %v5297_v15 }
 0x1b9   : > { %6828 = vst [vmem:[#allocation55_spill] sm:$0xff] %v5363_v44  ;;  %v5380_v4 = vmul.f32 %v920_v49, %v4364_v37  ;;  %v3127_v13 = vmul.f32 -1.442695, %v5363_v44  ;;  %v5390_v24 = vmul.f32 %v3875_v2, %v5262_v20  ;;  %3882 = vpow2.f32 %v3119_v34  ;;  %v3877_v52 = vpop.eup %3876 }
 0x1ba   : > { %2154 = vrot.lane.b32.xlu1 %v5270_v60, %s4004_s16  ;;  %6830 = vst [vmem:[#allocation57_spill] sm:$0xff] %v5374_v1  ;;  %v3111_v49 = vmul.f32 -1.442695, %v5374_v1  ;;  %3884 = vrsqrt.f32 %v1196_v25  ;;  %v5405_v2 = vrot.slane %v5384_v17, 7  ;;  %v3341_v25 = vunpack.i.h.bf16 %v5264_v48 }
 0x1bb   : > { %v5333_v8 = vpop.permute.xlu0 %3408  ;;  %2350 = vrot.lane.b32.xlu0 %v2202_v62, %s4011_s8  ;;  %6831 = vst [vmem:[#allocation58_spill] sm:$0xff] %v5380_v4  ;;  %v3112_v36 = vmul.f32 -1.442695, %v5380_v4  ;;  %v5400_v56 = vrot.slane %v5390_v24, 7  ;;  %3886 = vpow2.f32 %v3127_v13  ;;  %v3335_v4 = vunpack.i.l.bf16 %v5237_v26 }
 0x1bc   : > { %6823 = vst [vmem:[#allocation50_spill] sm:$0xff] %v5333_v8  ;;  %v5335_v23 = vpop.permute.xlu1 %3393  ;;  %3888 = vpow2.f32 %v3111_v49  ;;  %v3355_v48 = vunpack.i.l.bf16 %v5297_v15  ;;  %v1921_v15 = vsel %vm472_vm0, %v4468_v38, %v3341_v25  ;;  %v3371_v38 = vunpack.i.h.bf16 %v5294_v35 }
 0x1bd   : > { %3890 = vpow2.f32 %v3112_v36  ;;  %v3331_v36 = vunpack.i.h.bf16 %v5245_v63  ;;  %v3346_v63 = vunpack.i.h.bf16 %v5282_v41  ;;  %v3366_v44 = vunpack.i.h.bf16 %v5307_v42 }
 0x1be   : > { %2170 = vrot.lane.b32.xlu1 %v5249_v22, %s4004_s16 }
 0x1bf   : > { %v5342_v53 = vpop.permute.xlu0 %3418  ;;  %2366 = vrot.lane.b32.xlu0 %v5345_v7, %s4011_s8 }
 0x1c0   : > { %6824 = vst [vmem:[#allocation51_spill] sm:$0xff] %v5342_v53  ;;  %v5348_v60 = vpop.permute.xlu1 %3403  ;;  %v3879_v33 = vpop.eup %3878 }
 0x1c1   : > { %v5425_v49 = vmul.f32 %v3879_v33, %v5291_v5  ;;  %v3361_v5 = vunpack.i.h.bf16 %v5279_v30 }
 0x1c2   : > { %2348 = vrot.lane.b32.xlu1 %v2203_v19, %s4011_s8 }
 0x1c3   : > { %v5360_v6 = vpop.permute.xlu0 %3428  ;;  %2228 = vrot.lane.b32.xlu0 %v2202_v62, %s4009_s21  ;;  %v1930_v12 = vsel %vm1924_vm4, %v1921_v15, %v3361_v5  ;;  %v3381_v5 = vunpack.i.h.bf16 %v5304_v27  ;;  %v3391_v15 = vunpack.i.h.bf16 %v5318_v28  ;;  %v6842_v28 = vunpack.i.l.bf16 %v5167_v31 }
 0x1c4   : > { %6827 = vst [vmem:[#allocation54_spill] sm:$0xff] %v5360_v6  ;;  %v5365_v9 = vpop.permute.xlu1 %3413 }
 0x1c6   : > { %2364 = vrot.lane.b32.xlu1 %v5370_v47, %s4011_s8 }
 0x1c7   : > { %2244 = vrot.lane.b32.xlu0 %v5345_v7, %s4009_s21  ;;  %v5394_v22 = vpop.permute.xlu0 %3438  ;;  %v3336_v7 = vunpack.i.h.bf16 %v5237_v26  ;;  %v5446_v26 = vpop.eup %3880 }
 0x1c8   : > { %v5387_v62 = vpop.permute.xlu1 %3423  ;;  %6832 = vst [vmem:[#allocation59_spill] sm:$0xff] %v5394_v22  ;;  %v5455_v13 = vpop.eup %3882 }
 0x1ca   : > { %2226 = vrot.lane.b32.xlu1 %v2203_v19, %s4009_s21  ;;  %v5422_v19 = vmul.f32 %v3877_v52, %v5286_v59  ;;  %v3351_v59 = vunpack.i.h.bf16 %v5259_v57  ;;  %v6834_v52 = vrot.slane %v4947_v21, 1  ;;  %v3345_v21 = vunpack.i.l.bf16 %v5282_v41  ;;  %v5465_v57 = vpop.eup %3884 }
 0x1cb   : > { %2406 = vrot.lane.b32.xlu0 %v5400_v56, %s4012_s10  ;;  %6836 = vst [vmem:[#allocation62_spill] sm:$0xff] %v5465_v57  ;;  %v6837_v41 = vrot.slane %v5119_v51, 1  ;;  %v6843_v51 = vunpack.i.h.bf16 %v5167_v31 }
 0x1cc   : > { %v5402_v20 = vpop.permute.xlu1 %3433 }
 0x1cd   : > { %v5419_v1 = vpop.permute.xlu0 %3453 }
 0x1ce   : > { %2242 = vrot.lane.b32.xlu1 %v5370_v47, %s4009_s21  ;;  %6833 = vst [vmem:[#allocation60_spill] sm:$0xff] %v5419_v1  ;;  %v1917_v47 = vsel %vm472_vm0, %v4423_v18, %v3331_v36  ;;  %v5475_v18 = vpop.eup %3886 }
 0x1cf   : > { %2064 = vrot.lane.b32.xlu0 %v6834_v52, %s4007_s19  ;;  %v1919_v52 = vsel %vm472_vm0, %v4438_v11, %v3336_v7  ;;  %v1918_v11 = vsel %vm472_vm0, %v4426_v14, %v3335_v4  ;;  %v1926_v7 = vsel %vm1924_vm4, %v1917_v47, %v3351_v59  ;;  %v3365_v14 = vunpack.i.l.bf16 %v5307_v42  ;;  %v5483_v47 = vpop.eup %3888 }
 0x1d0   : > { %v5431_v34 = vpop.permute.xlu1 %3443  ;;  %v1927_v25 = vsel %vm1924_vm4, %v1918_v11, %v3355_v48  ;;  %v1928_v36 = vsel %vm1924_vm4, %v1919_v52, %v3356_v0  ;;  %v5491_v0 = vpop.eup %3890  ;;  %v6839_v52 = vld [vmem:[#allocation4_spill] sm:$0xff]  ;;  %v6840_v11 = vld [vmem:[#allocation3_spill] sm:$0xff]  ;;  %v3401_v59 = vunpack.i.h.bf16 %v5325_v3 }
 0x1d1   : > { %v5453_v33 = vpop.permute.xlu0 %3463  ;;  %v1923_v42 = vsel %vm472_vm0, %v6839_v52, %v3346_v63  ;;  %v1936_v35 = vsel %vm1933_vm5, %v1927_v25, %v6842_v28  ;;  %v1937_v57 = vsel %vm1933_vm5, %v1928_v36, %v6843_v51  ;;  %v3375_v28 = vunpack.i.l.bf16 %v5320_v54 }
 0x1d2   : > { %2398 = vrot.lane.b32.xlu1 %v5405_v2, %s4012_s10  ;;  %6835 = vst [vmem:[#allocation61_spill] sm:$0xff] %v5453_v33  ;;  %v3386_v51 = vunpack.i.h.bf16 %v5327_v32  ;;  %v3396_v36 = vunpack.i.h.bf16 %v5335_v23 }
 0x1d3   : > { %2080 = vrot.lane.b32.xlu0 %v6837_v41, %s4007_s19  ;;  %v6841_v41 = vunpack.i.h.bf16 %v5161_v46 }
 0x1d4   : > { %v5463_v30 = vpop.permute.xlu1 %3448 }
 0x1d5   : > { %v5489_v48 = vpop.permute.xlu0 %3473  ;;  %v1935_v4 = vsel %vm1933_vm5, %v1926_v7, %v6841_v41  ;;  %v3376_v41 = vunpack.i.h.bf16 %v5320_v54 }
 0x1d6   : > { %2062 = vrot.lane.b32.xlu1 %v4997_v39, %s4007_s19  ;;  %6838 = vst [vmem:[#allocation63_spill] sm:$0xff] %v5489_v48  ;;  %v1922_v39 = vsel %vm472_vm0, %v6840_v11, %v3345_v21  ;;  %v1944_v63 = vsel %vm1942_vm6, %v1935_v4, %v3371_v38  ;;  %v6844_v21 = vunpack.i.h.bf16 %v5176_v10  ;;  %v1932_v11 = vsel %vm1924_vm4, %v1923_v42, %v3366_v44 }
 0x1d7   : > { %2282 = vrot.lane.b32.xlu0 %v5400_v56, %s4010_s23  ;;  %v1931_v7 = vsel %vm1924_vm4, %v1922_v39, %v3365_v14  ;;  %v1953_v38 = vsel %vm1951_vm7, %v1944_v63, %v3391_v15  ;;  %v3385_v44 = vunpack.i.l.bf16 %v5327_v32  ;;  %v3411_v14 = vunpack.i.h.bf16 %v5333_v8 }
 0x1d8   : > { %v5501_v27 = vpop.permute.xlu1 %3458  ;;  %v1939_v52 = vsel %vm1933_vm5, %v1930_v12, %v6844_v21  ;;  %v3395_v12 = vunpack.i.l.bf16 %v5335_v23  ;;  %v6846_v4 = vunpack.i.l.bf16 %v5180_v55  ;;  %v6847_v42 = vunpack.i.h.bf16 %v5180_v55 }
 0x1d9   : > { %v1948_v31 = vsel %vm1942_vm6, %v1939_v52, %v3381_v5  ;;  %v5525_v25 = vpop.permute.xlu0 %3483  ;;  %v3406_v39 = vunpack.i.h.bf16 %v5348_v60  ;;  %v3405_v32 = vunpack.i.l.bf16 %v5348_v60  ;;  %v1945_v23 = vsel %vm1942_vm6, %v1936_v35, %v3375_v28 }
 0x1da   : > { %2078 = vrot.lane.b32.xlu1 %v5145_v61, %s4007_s19  ;;  %6845 = vst [vmem:[#allocation4_spill] sm:$0xff] %v5525_v25  ;;  %v1957_v54 = vsel %vm1951_vm7, %v1948_v31, %v3401_v59  ;;  %v1940_v5 = vsel %vm1933_vm5, %v1931_v7, %v6846_v4  ;;  %v1941_v15 = vsel %vm1933_vm5, %v1932_v11, %v6847_v42  ;;  %v3421_v63 = vunpack.i.h.bf16 %v5342_v53 }
 0x1db   : > { %2425 = vrot.lane.b32.xlu0 %v5422_v19, %s4006_s18  ;;  %v1946_v59 = vsel %vm1942_vm6, %v1937_v57, %v3376_v41  ;;  %v3431_v21 = vunpack.i.h.bf16 %v5360_v6  ;;  %v1954_v55 = vsel %vm1951_vm7, %v1945_v23, %v3395_v12  ;;  %v6848_v60 = vunpack.i.h.bf16 %v5196_v50  ;;  %v3962_v6 = vld [vmem:[%s4306_s14 + $0x90] sm:$0xff] }
 0x1dc   : > { %v5531_v61 = vpop.permute.xlu1 %3468  ;;  %v6849_v7 = vunpack.i.h.bf16 %v5210_v29  ;;  %v3441_v57 = vunpack.i.h.bf16 %v5394_v22  ;;  %v1949_v41 = vsel %vm1942_vm6, %v1940_v5, %v3385_v44  ;;  %v1950_v28 = vsel %vm1942_vm6, %v1941_v15, %v3386_v51  ;;  %v6898_v29 = vld [vmem:[#allocation13_spill] sm:$0xff] }
 0x1dd   : > { %v1962_v52 = vsel %vm1960_vm8, %v1953_v38, %v6848_v60  ;;  %v5557_v11 = vpop.permute.xlu0 %3493  ;;  %v1955_v31 = vsel %vm1951_vm7, %v1946_v59, %v3396_v36  ;;  %v1958_v38 = vsel %vm1951_vm7, %v1949_v41, %v3405_v32  ;;  %v1959_v42 = vsel %vm1951_vm7, %v1950_v28, %v3406_v39 }
 0x1de   : > { %2274 = vrot.lane.b32.xlu1 %v5405_v2, %s4010_s23  ;;  %v1966_v35 = vsel %vm1960_vm8, %v1957_v54, %v6849_v7  ;;  %6850 = vst [vmem:[#allocation3_spill] sm:$0xff] %v5557_v11  ;;  %v1971_v12 = vsel %vm1969_vm9, %v1962_v52, %v3411_v14  ;;  %v3416_v54 = vunpack.i.h.bf16 %v5365_v9  ;;  %v3415_v23 = vunpack.i.l.bf16 %v5365_v9 }
 0x1df   : > { %2441 = vrot.lane.b32.xlu0 %v5425_v49, %s4006_s18  ;;  %v6851_v44 = vunpack.i.l.bf16 %v5198_v43  ;;  %v3425_v36 = vunpack.i.l.bf16 %v5387_v62  ;;  %v1975_v14 = vsel %vm1969_vm9, %v1966_v35, %v3421_v63  ;;  %v1980_v5 = vsel %vm1978_vm10, %v1971_v12, %v3431_v21 }
 0x1e0   : > { %v5563_v4 = vpop.permute.xlu1 %3478  ;;  %v6852_v15 = vunpack.i.h.bf16 %v5198_v43  ;;  %v3435_v39 = vunpack.i.l.bf16 %v5402_v20  ;;  %v1984_v32 = vsel %vm1978_vm10, %v1975_v14, %v3441_v57  ;;  %v3456_v59 = vunpack.i.h.bf16 %v5419_v1 }
 0x1e1   : > { %v1963_v51 = vsel %vm1960_vm8, %v1954_v55, %v6851_v44  ;;  %v5585_v55 = vpop.permute.xlu0 %3503  ;;  %v3426_v60 = vunpack.i.h.bf16 %v5387_v62  ;;  %v6854_v63 = vunpack.i.l.bf16 %v5213_v45  ;;  %v6855_v52 = vunpack.i.h.bf16 %v5213_v45 }
 0x1e2   : > { %2423 = vrot.lane.b32.xlu1 %v5384_v17, %s4006_s18  ;;  %v1964_v9 = vsel %vm1960_vm8, %v1955_v31, %v6852_v15  ;;  %6853 = vst [vmem:[#allocation64_spill] sm:$0xff] %v5585_v55  ;;  %v3476_v7 = vunpack.i.h.bf16 %v5489_v48  ;;  %v1972_v57 = vsel %vm1969_vm9, %v1963_v51, %v3415_v23  ;;  %v6856_v28 = vunpack.i.h.bf16 %v5217_v58 }
 0x1e3   : > { %v1967_v21 = vsel %vm1960_vm8, %v1958_v38, %v6854_v63  ;;  %v1968_v43 = vsel %vm1960_vm8, %v1959_v42, %v6855_v52  ;;  %v1973_v41 = vsel %vm1969_vm9, %v1964_v9, %v3416_v54  ;;  %v3496_v31 = vunpack.i.h.bf16 %v5557_v11  ;;  %2130 = vrot.lane.b32.xlu0 %v5400_v56, %s4008_s20 }
 0x1e4   : > { %v5595_v35 = vpop.permute.xlu1 %3488  ;;  %v1989_v62 = vsel %vm1987_vm11, %v1980_v5, %v6856_v28  ;;  %v1976_v45 = vsel %vm1969_vm9, %v1967_v21, %v3425_v36  ;;  %v3436_v12 = vunpack.i.h.bf16 %v5402_v20  ;;  %v3445_v38 = vunpack.i.l.bf16 %v5431_v34 }
 0x1e5   : > { %v6857_v42 = vunpack.i.h.bf16 %v5231_v16  ;;  %v1981_v54 = vsel %vm1978_vm10, %v1972_v57, %v3435_v39  ;;  %v3446_v44 = vunpack.i.h.bf16 %v5431_v34  ;;  %v1998_v51 = vsel %vm1996_vm12, %v1989_v62, %v3456_v59  ;;  %v5617_v36 = vpop.permute.xlu0 %3513 }
 0x1e6   : > { %2439 = vrot.lane.b32.xlu1 %v5390_v24, %s4006_s18  ;;  %v3466_v56 = vunpack.i.h.bf16 %v5453_v33  ;;  %6858 = vst [vmem:[#allocation65_spill] sm:$0xff] %v5617_v36  ;;  %v1977_v20 = vsel %vm1969_vm9, %v1968_v43, %v3426_v60  ;;  %v2007_v14 = vsel %vm2005_vm13, %v1998_v51, %v3476_v7  ;;  %v3486_v5 = vunpack.i.h.bf16 %v5525_v25  ;;  %v2722_v51 = vld [vmem:[%s6678_s5] sm:$0xff] }
 0x1e7   : > { %v1993_v23 = vsel %vm1987_vm11, %v1984_v32, %v6857_v42  ;;  %v3516_v9 = vunpack.i.h.bf16 %v5617_v36  ;;  %v3451_v32 = vunpack.i.h.bf16 %v5463_v30  ;;  %v3450_v39 = vunpack.i.l.bf16 %v5463_v30  ;;  %2303 = vrot.lane.b32.xlu0 %v5422_v19, %s4005_s17 }
 0x1e8   : > { %v3499_v15 = vpop.permute.xlu1 %3498  ;;  %v2016_v34 = vsel %vm2014_vm14, %v2007_v14, %v3496_v31  ;;  %v3506_v59 = vunpack.i.h.bf16 %v5585_v55  ;;  %v1982_v60 = vsel %vm1978_vm10, %v1973_v41, %v3436_v12  ;;  %v1985_v63 = vsel %vm1978_vm10, %v1976_v45, %v3445_v38 }
 0x1e9   : > { %v6859_v21 = vunpack.i.l.bf16 %v5221_v40  ;;  %v5637_v30 = vsel %vm2023_vm15, %v2016_v34, %v3516_v9  ;;  %v1986_v43 = vsel %vm1978_vm10, %v1977_v20, %v3446_v44  ;;  %v3461_v7 = vunpack.i.h.bf16 %v5501_v27  ;;  %v5643_v28 = vpop.permute.xlu0 %3523 }
 0x1ea   : > { %2122 = vrot.lane.b32.xlu1 %v5405_v2, %s4008_s20  ;;  %6860 = vst [vmem:[#allocation66_spill] sm:$0xff] %v5637_v30  ;;  %v3460_v57 = vunpack.i.l.bf16 %v5501_v27  ;;  %v2002_v41 = vsel %vm1996_vm12, %v1993_v23, %v3466_v56  ;;  %6861 = vst [vmem:[#allocation67_spill] sm:$0xff] %v5643_v28  ;;  %v3481_v62 = vunpack.i.h.bf16 %v5563_v4  ;;  %v3480_v31 = vunpack.i.l.bf16 %v5563_v4 }
 0x1eb   : > { %v1990_v52 = vsel %vm1987_vm11, %v1981_v54, %v6859_v21  ;;  %v2011_v45 = vsel %vm2005_vm13, %v2002_v41, %v3486_v5  ;;  %v3526_v12 = vunpack.i.h.bf16 %v5643_v28  ;;  %v1995_v38 = vsel %vm1987_vm11, %v1986_v43, %v3451_v32  ;;  %2319 = vrot.lane.b32.xlu0 %v5425_v49, %s4005_s17 }
 0x1ec   : > { %v3509_v2 = vpop.permute.xlu1 %3508  ;;  %v1994_v42 = vsel %vm1987_vm11, %v1985_v63, %v3450_v39  ;;  %v6862_v54 = vunpack.i.h.bf16 %v5221_v40  ;;  %v2020_v23 = vsel %vm2014_vm14, %v2011_v45, %v3506_v59  ;;  %v3501_v44 = vunpack.i.h.bf16 %v3499_v15  ;;  %v2723_v40 = vld [vmem:[%s6678_s5 + $0x8] sm:$0xff] }
 0x1ed   : > { %v3500_v4 = vunpack.i.l.bf16 %v3499_v15  ;;  %v5666_v56 = vsel %vm2023_vm15, %v2020_v23, %v3526_v12  ;;  %v1999_v14 = vsel %vm1996_vm12, %v1990_v52, %v3460_v57  ;;  %v5670_v5 = vpop.permute.xlu0 %3533  ;;  %v5673_v15 = vrot.slane %v5422_v19, 1 }
 0x1ee   : > { %v1991_v27 = vsel %vm1987_vm11, %v1982_v60, %v6862_v54  ;;  %2301 = vrot.lane.b32.xlu1 %v5384_v17, %s4005_s17  ;;  %6863 = vst [vmem:[#allocation68_spill] sm:$0xff] %v5666_v56  ;;  %6864 = vst [vmem:[#allocation69_spill] sm:$0xff] %v5670_v5  ;;  %v4018_v9 = vmov 0.0|0.0   ;;  %v3145_v32 = vpack.c.bf16 %v2723_v40, %v2722_v51  ;;  %v3471_v39 = vunpack.i.h.bf16 %v5531_v61 }
 0x1ef   : > { %v2000_v20 = vsel %vm1996_vm12, %v1991_v27, %v3461_v7  ;;  %3144 = vmatprep.subr.bf16.mxu0 %v4018_v9  ;;  %3183 = vmatprep.subr.bf16.mxu1 %v4018_v9  ;;  %v3470_v34 = vunpack.i.l.bf16 %v5531_v61  ;;  %v2008_v60 = vsel %vm2005_vm13, %v1999_v14, %v3480_v31  ;;  %v3491_v21 = vunpack.i.h.bf16 %v5595_v35 }
 0x1f0   : > { %v2009_v59 = vsel %vm2005_vm13, %v2000_v20, %v3481_v62  ;;  %v3519_v63 = vpop.permute.xlu1 %3518  ;;  %v3490_v52 = vunpack.i.l.bf16 %v5595_v35  ;;  %2476 = vrot.lane.b32.xlu0 %v5673_v15, %s4013_s11  ;;  %3146 = vmatpush1.bf16.msra.mxu0 %v3145_v32  ;;  %v2017_v57 = vsel %vm2014_vm14, %v2008_v60, %v3500_v4  ;;  %v3511_v61 = vunpack.i.h.bf16 %v3509_v2  ;;  %v2724_v35 = vld [vmem:[%s6678_s5 + $0x10] sm:$0xff]  ;;  %v2725_v62 = vld [vmem:[%s6678_s5 + $0x18] sm:$0xff] }
 0x1f1   : > { %v3521_v43 = vunpack.i.h.bf16 %v3519_v63  ;;  %v3520_v7 = vunpack.i.l.bf16 %v3519_v63  ;;  %v2018_v41 = vsel %vm2014_vm14, %v2009_v59, %v3501_v44  ;;  %v3510_v45 = vunpack.i.l.bf16 %v3509_v2  ;;  %3197 = vmatpush1.bf16.msra.mxu1 %v3145_v32  ;;  %v5695_v31 = vpop.permute.xlu0 %2056  ;;  %3147 = vmatprep.subr.bf16.mxu0 %v4018_v9 }
 0x1f2   : > { %2317 = vrot.lane.b32.xlu1 %v5390_v24, %s4005_s17  ;;  %v5698_v12 = vrot.slane %v5425_v49, 1  ;;  %3184 = vmatprep.subr.bf16.mxu1 %v4018_v9  ;;  %v3148_v2 = vpack.c.bf16 %v2725_v62, %v2724_v35  ;;  %v2004_v23 = vsel %vm1996_vm12, %v1995_v38, %v3471_v39  ;;  %v2003_v44 = vsel %vm1996_vm12, %v1994_v42, %v3470_v34  ;;  %v2726_v39 = vld [vmem:[%s6678_s5 + $0x20] sm:$0xff]  ;;  %v2727_v34 = vld [vmem:[%s6678_s5 + $0x28] sm:$0xff] }
 0x1f3   : > { %v5703_v54 = vsel %vm2023_vm15, %v2017_v57, %v3520_v7  ;;  %v5706_v27 = vsel %vm2023_vm15, %v2018_v41, %v3521_v43  ;;  %v6867_v51 = vrot.slane %v5384_v17, 1  ;;  %v2216_v20 = vrot.slane %v5390_v24, 1  ;;  %v2728_v41 = vld [vmem:[%s6678_s5 + $0x30] sm:$0xff] }
 0x1f4   : > { %6865 = vst [vmem:[#allocation70_spill] sm:$0xff] %v5703_v54  ;;  %6866 = vst [vmem:[#allocation71_spill] sm:$0xff] %v5706_v27  ;;  %v3529_v4 = vpop.permute.xlu1 %3528  ;;  %v2012_v14 = vsel %vm2005_vm13, %v2003_v44, %v3490_v52  ;;  %v2013_v32 = vsel %vm2005_vm13, %v2004_v23, %v3491_v21  ;;  %2492 = vrot.lane.b32.xlu0 %v5698_v12, %s4013_s11  ;;  %3149 = vmatpush1.bf16.msra.mxu0 %v3148_v2  ;;  %v1335_v35 = vadd.f32 1.0, %v5475_v18  ;;  %v3958_v23 = vld [vmem:[%s4306_s14 + $0x38] sm:$0x3]  ;;  %v2730_v18 = vld [vmem:[%s6678_s5 + $0x40] sm:$0xff] }
 0x1f5   : > { %v5714_v40 = vsel %vm1417_vm2, %v6867_v51, %v5673_v15  ;;  %v3531_v59 = vunpack.i.h.bf16 %v3529_v4  ;;  %v3530_v60 = vunpack.i.l.bf16 %v3529_v4  ;;  %v2022_v38 = vsel %vm2014_vm14, %v2013_v32, %v3511_v61  ;;  %3198 = vmatpush1.bf16.msra.mxu1 %v3148_v2  ;;  %v5731_v63 = vpop.permute.xlu0 %2072  ;;  %3150 = vmatprep.subr.bf16.mxu0 %v4018_v9  ;;  %v2729_v61 = vld [vmem:[%s6678_s5 + $0x38] sm:$0xff]  ;;  %v2731_v4 = vld [vmem:[%s6678_s5 + $0x48] sm:$0xff]  ;;  %v6882_v54 = vld [vmem:[#allocation16_spill] sm:$0xff] }
 0x1f6   : > { %v2021_v42 = vsel %vm2014_vm14, %v2012_v14, %v3510_v45  ;;  %2474 = vrot.lane.b32.xlu1 %v5714_v40, %s4013_s11  ;;  %3185 = vmatprep.subr.bf16.mxu1 %v4018_v9  ;;  %v3151_v21 = vpack.c.bf16 %v2727_v34, %v2726_v39  ;;  %v5745_v57 = vsel %vm1417_vm2, %v2216_v20, %v5698_v12  ;;  %v1327_v2 = vadd.f32 1.0, %v5455_v13  ;;  %v3959_v20 = vld [vmem:[%s4306_s14 + $0x78] sm:$0x3]  ;;  %v6870_v14 = vld [vmem:[#allocation62_spill] sm:$0xff] }
 0x1f7   : > { %v5736_v52 = vsel %vm2023_vm15, %v2021_v42, %v3530_v60  ;;  %v5739_v43 = vsel %vm2023_vm15, %v2022_v38, %v3531_v59  ;;  %v1228_v44 = vmul.f32 %v3958_v23, %v5446_v26  ;;  %v1020_v13 = vadd.f32 1.0, %v5491_v0  ;;  %v2732_v59 = vld [vmem:[%s6678_s5 + $0x50] sm:$0xff]  ;;  %v2734_v34 = vld [vmem:[%s6678_s5 + $0x60] sm:$0xff] }
 0x1f8   : > { %6868 = vst [vmem:[#allocation72_spill] sm:$0xff] %v5736_v52  ;;  %6869 = vst [vmem:[#allocation73_spill] sm:$0xff] %v5739_v43  ;;  %v5741_v7 = vpop.permute.xlu1 %2054  ;;  %2160 = vrot.lane.b32.xlu0 %v5422_v19, %s4004_s16  ;;  %3152 = vmatpush1.bf16.msra.mxu0 %v3151_v21  ;;  %v3154_v19 = vpack.c.bf16 %v2729_v61, %v2728_v41  ;;  %3892 = vrcp.f32 %v1335_v35  ;;  %v1019_v51 = vadd.f32 1.0, %v5483_v47  ;;  %v2733_v47 = vld [vmem:[%s6678_s5 + $0x58] sm:$0xff]  ;;  %v2736_v23 = vld [vmem:[%s6678_s5 + $0x70] sm:$0xff] }
 0x1f9   : > { %3199 = vmatpush1.bf16.msra.mxu1 %v3151_v21  ;;  %v5757_v45 = vpop.permute.xlu0 %2126  ;;  %3153 = vmatprep.subr.bf16.mxu0 %v4018_v9  ;;  %3894 = vrcp.f32 %v1327_v2  ;;  %v5790_v0 = vmul.f32 %v1228_v44, %v4364_v37  ;;  %v1236_v32 = vmul.f32 %v3959_v20, %v6870_v14  ;;  %v2735_v21 = vld [vmem:[%s6678_s5 + $0x68] sm:$0xff]  ;;  %v2737_v44 = vld [vmem:[%s6678_s5 + $0x78] sm:$0xff]  ;;  %v2738_v14 = vld [vmem:[%s6678_s5 + $0x80] sm:$0xff]  ;;  %v2523_v3 = vsel %vm472_vm0, %v6898_v29, %v5695_v31 }
 0x1fa   : > { %2490 = vrot.lane.b32.xlu1 %v5745_v57, %s4013_s11  ;;  %3186 = vmatprep.subr.bf16.mxu1 %v4018_v9  ;;  %3896 = vrcp.f32 %v1020_v13  ;;  %v3163_v61 = vpack.c.bf16 %v2735_v21, %v2734_v34  ;;  %v6874_v21 = vld [vmem:[#allocation58_spill] sm:$0xff]  ;;  %v6880_v43 = vld [vmem:[#allocation25_spill] sm:$0xff] }
 0x1fb   : > { %3898 = vrcp.f32 %v1019_v51  ;;  %v3120_v42 = vmul.f32 -1.442695, %v5790_v0  ;;  %v5812_v39 = vmul.f32 %v1236_v32, %v4364_v37  ;;  %v6871_v51 = vld [vmem:[#allocation55_spill] sm:$0xff]  ;;  %v1197_v27 = vmax.f32 %v6880_v43, 1e-24  ;;  %v6881_v52 = vld [vmem:[#allocation14_spill] sm:$0xff] }
 0x1fc   : > { %v5762_v62 = vpop.permute.xlu1 %2070  ;;  %2176 = vrot.lane.b32.xlu0 %v5425_v49, %s4004_s16  ;;  %3155 = vmatpush1.bf16.msra.mxu0 %v3154_v19  ;;  %v2739_v32 = vld [vmem:[%s6678_s5 + $0x88] sm:$0xff]  ;;  %v6883_v30 = vpack.i.bf16 %v6881_v52, %v6882_v54  ;;  %v6899_v29 = vld [vmem:[#allocation10_spill] sm:$0xff] }
 0x1fd   : > { %3200 = vmatpush1.bf16.msra.mxu1 %v3154_v19  ;;  %v5777_v49 = vpop.permute.xlu0 %2152  ;;  %3156 = vmatprep.subr.bf16.mxu0 %v4018_v9  ;;  %3900 = vpow2.f32 %v3120_v42  ;;  %v3128_v2 = vmul.f32 -1.442695, %v5812_v39  ;;  %v2531_v31 = vsel %vm472_vm0, %v6899_v29, %v5731_v63 }
 0x1fe   : > { %2158 = vrot.lane.b32.xlu1 %v5384_v17, %s4004_s16  ;;  %3187 = vmatprep.subr.bf16.mxu1 %v4018_v9  ;;  %v3157_v17 = vpack.c.bf16 %v2731_v4, %v2730_v18 }
 0x1ff   : > { %3902 = vpow2.f32 %v3128_v2 }
 0x200   : > { %v5782_v26 = vpop.permute.xlu1 %2118  ;;  %2354 = vrot.lane.b32.xlu0 %v5673_v15, %s4011_s8  ;;  %3158 = vmatpush1.bf16.msra.mxu0 %v3157_v17 }
 0x201   : > { %3201 = vmatpush1.bf16.msra.mxu1 %v3157_v17  ;;  %v5800_v60 = vpop.permute.xlu0 %2168  ;;  %3159 = vmatprep.subr.bf16.mxu0 %v4018_v9 }
 0x202   : > { %2174 = vrot.lane.b32.xlu1 %v5390_v24, %s4004_s16  ;;  %3188 = vmatprep.subr.bf16.mxu1 %v4018_v9  ;;  %v3160_v24 = vpack.c.bf16 %v2733_v47, %v2732_v59  ;;  %v3893_v35 = vpop.eup %3892 }
 0x203   : > { %v3895_v4 = vpop.eup %3894  ;;  %v5844_v20 = vmul.f32 %v3893_v35, %v6871_v51  ;;  %v6876_v35 = vld [vmem:[#allocation57_spill] sm:$0xff] }
 0x204   : > { %v5804_v38 = vpop.permute.xlu1 %2150  ;;  %2370 = vrot.lane.b32.xlu0 %v5698_v12, %s4011_s8  ;;  %3161 = vmatpush1.bf16.msra.mxu0 %v3160_v24  ;;  %v3897_v17 = vpop.eup %3896 }
 0x205   : > { %3202 = vmatpush1.bf16.msra.mxu1 %v3160_v24  ;;  %v5820_v41 = vpop.permute.xlu0 %2224  ;;  %3162 = vmatprep.subr.bf16.mxu0 %v4018_v9  ;;  %v3899_v59 = vpop.eup %3898  ;;  %v5859_v24 = vrot.slane %v5844_v20, 7  ;;  %v2219_v55 = vrot.slane %v5844_v20, 1 }
 0x206   : > { %2352 = vrot.lane.b32.xlu1 %v5714_v40, %s4011_s8  ;;  %3189 = vmatprep.subr.bf16.mxu1 %v4018_v9  ;;  %v5876_v2 = vmul.f32 %v3899_v59, %v6876_v35  ;;  %v6879_v59 = vld [vmem:[#allocation18_spill] sm:$0xff] }
 0x208   : > { %v5824_v19 = vpop.permute.xlu1 %2166  ;;  %2232 = vrot.lane.b32.xlu0 %v5673_v15, %s4009_s21  ;;  %3164 = vmatpush1.bf16.msra.mxu0 %v3163_v61  ;;  %v3166_v15 = vpack.c.bf16 %v2737_v44, %v2736_v23  ;;  %v2740_v23 = vld [vmem:[%s6678_s5 + $0x90] sm:$0xff]  ;;  %v2741_v44 = vld [vmem:[%s6678_s5 + $0x98] sm:$0xff] }
 0x209   : > { %3203 = vmatpush1.bf16.msra.mxu1 %v3163_v61  ;;  %v5837_v18 = vpop.permute.xlu0 %2240  ;;  %3165 = vmatprep.subr.bf16.mxu0 %v4018_v9  ;;  %v5869_v61 = vmul.f32 %v3897_v17, %v6874_v21 }
 0x20a   : > { %2368 = vrot.lane.b32.xlu1 %v5745_v57, %s4011_s8  ;;  %3190 = vmatprep.subr.bf16.mxu1 %v4018_v9 }
 0x20b   : > { %6875 = vst [vmem:[#allocation55_spill] sm:$0xff] %v5869_v61 }
 0x20c   : > { %v5841_v13 = vpop.permute.xlu1 %2222  ;;  %2248 = vrot.lane.b32.xlu0 %v5698_v12, %s4009_s21  ;;  %3167 = vmatpush1.bf16.msra.mxu0 %v3166_v15  ;;  %v3169_v12 = vpack.c.bf16 %v2739_v32, %v2738_v14  ;;  %v2051_v14 = vrot.slane %v5876_v2, 1  ;;  %v2052_v32 = vrot.slane %v5869_v61, 1 }
 0x20d   : > { %3204 = vmatpush1.bf16.msra.mxu1 %v3166_v15  ;;  %v5856_v47 = vpop.permute.xlu0 %2060  ;;  %3168 = vmatprep.subr.bf16.mxu0 %v4018_v9 }
 0x20e   : > { %2230 = vrot.lane.b32.xlu1 %v5714_v40, %s4009_s21  ;;  %6872 = vst [vmem:[#allocation62_spill] sm:$0xff] %v5856_v47  ;;  %3191 = vmatprep.subr.bf16.mxu1 %v4018_v9  ;;  %v6873_v40 = vld [vmem:[#allocation53_spill] sm:$0xff]  ;;  %v3960_v47 = vld [vmem:[%s4306_s14 + $0x80] sm:$0xff] }
 0x20f   : > { %v5864_v42 = vmul.f32 %v3895_v4, %v6873_v40  ;;  %6877 = vst [vmem:[#allocation53_spill] sm:$0xff] %v5876_v2  ;;  %v3172_v4 = vpack.c.bf16 %v2741_v44, %v2740_v23  ;;  %v2743_v40 = vld [vmem:[%s6678_s5 + $0xa8] sm:$0xff] }
 0x210   : > { %v5866_v34 = vpop.permute.xlu1 %2238  ;;  %2408 = vrot.lane.b32.xlu0 %v5859_v24, %s4012_s10  ;;  %3170 = vmatpush1.bf16.msra.mxu0 %v3169_v12 }
 0x211   : > { %3205 = vmatpush1.bf16.msra.mxu1 %v3169_v12  ;;  %v5884_v15 = vpop.permute.xlu0 %2076  ;;  %3171 = vmatprep.subr.bf16.mxu0 %v4018_v9  ;;  %v5891_v51 = vrot.slane %v5864_v42, 7  ;;  %v2742_v12 = vld [vmem:[%s6678_s5 + $0xa0] sm:$0xff]  ;;  %v2207_v28 = vrot.slane %v5864_v42, 1 }
 0x212   : > { %2246 = vrot.lane.b32.xlu1 %v5745_v57, %s4009_s21  ;;  %3192 = vmatprep.subr.bf16.mxu1 %v4018_v9  ;;  %v3901_v57 = vpop.eup %3900  ;;  %v3175_v23 = vpack.c.bf16 %v2743_v40, %v2742_v12  ;;  %v2745_v12 = vld [vmem:[%s6678_s5 + $0xb8] sm:$0xff] }
 0x213   : > { %v1328_v35 = vadd.f32 1.0, %v3901_v57  ;;  %v3903_v44 = vpop.eup %3902  ;;  %v2744_v57 = vld [vmem:[%s6678_s5 + $0xb0] sm:$0xff] }
 0x214   : > { %v5888_v17 = vpop.permute.xlu1 %2058  ;;  %2066 = vrot.lane.b32.xlu0 %v6879_v59, %s4007_s19  ;;  %3173 = vmatpush1.bf16.msra.mxu0 %v3172_v4  ;;  %v1336_v40 = vadd.f32 1.0, %v3903_v44  ;;  %v3178_v43 = vpack.c.bf16 %v2745_v12, %v2744_v57  ;;  %v2748_v57 = vld [vmem:[%s6678_s5 + $0xd0] sm:$0xff]  ;;  %v6887_v12 = vld [vmem:[#allocation27_spill] sm:$0xff] }
 0x215   : > { %6878 = vst [vmem:[#allocation58_spill] sm:$0xff] %v5888_v17  ;;  %3206 = vmatpush1.bf16.msra.mxu1 %v3172_v4  ;;  %v5905_v21 = vpop.permute.xlu0 %2280  ;;  %3174 = vmatprep.subr.bf16.mxu0 %v4018_v9  ;;  %v2053_v4 = vsel %vm1417_vm2, %v2051_v14, %v2052_v32  ;;  %3904 = vrcp.f32 %v1328_v35  ;;  %v2746_v35 = vld [vmem:[%s6678_s5 + $0xc0] sm:$0xff] }
 0x216   : > { %2400 = vrot.lane.b32.xlu1 %v5891_v51, %s4012_s10  ;;  %3193 = vmatprep.subr.bf16.mxu1 %v4018_v9  ;;  %3906 = vrsqrt.f32 %v1197_v27 }
 0x217   : > { %3908 = vrcp.f32 %v1336_v40  ;;  %v1198_v40 = vmax.f32 %v6887_v12, 1e-24 }
 0x218   : > { %v5909_v59 = vpop.permute.xlu1 %2074  ;;  %2082 = vrot.lane.b32.xlu0 %v2053_v4, %s4007_s19  ;;  %3176 = vmatpush1.bf16.msra.mxu0 %v3175_v23 }
 0x219   : > { %3207 = vmatpush1.bf16.msra.mxu1 %v3175_v23  ;;  %v5924_v14 = vpop.permute.xlu0 %2128  ;;  %3177 = vmatprep.subr.bf16.mxu0 %v4018_v9  ;;  %v2747_v23 = vld [vmem:[%s6678_s5 + $0xc8] sm:$0xff]  ;;  %3910 = vrsqrt.f32 %v1198_v40 }
 0x21a   : > { %3538 = vrot.lane.b32.xlu1 %v6883_v30, %s4017_s15  ;;  %3194 = vmatprep.subr.bf16.mxu1 %v4018_v9  ;;  %v6884_v30 = vld [vmem:[#allocation12_spill] sm:$0xff]  ;;  %v3181_v27 = vpack.c.bf16 %v2747_v23, %v2746_v35  ;;  %v6889_v23 = vld [vmem:[#allocation7_spill] sm:$0xff] }
 0x21b   : > { %v6885_v52 = vrot.slane %v6884_v30, 1 }
 0x21c   : > { %v5928_v54 = vpop.permute.xlu1 %2272  ;;  %2276 = vrot.lane.b32.xlu0 %v5891_v51, %s4010_s23  ;;  %3179 = vmatpush1.bf16.msra.mxu0 %v3178_v43 }
 0x21d   : > { %3208 = vmatpush1.bf16.msra.mxu1 %v3178_v43  ;;  %v5941_v44 = vpop.permute.xlu0 %2299  ;;  %3180 = vmatprep.subr.bf16.mxu0 %v4018_v9 }
 0x21e   : > { %2068 = vrot.lane.b32.xlu1 %v6885_v52, %s4007_s19  ;;  %3195 = vmatprep.subr.bf16.mxu1 %v4018_v9  ;;  %v4019_v52 = vmov 0.0  }
 0x21f   : > { %v3905_v35 = vpop.eup %3904 }
 0x220   : > { %v5945_v4 = vpop.permute.xlu1 %2120  ;;  %2427 = vrot.lane.b32.xlu0 %v5864_v42, %s4006_s18  ;;  %3182 = vmatpush1.bf16.msra.mxu0 %v3181_v27  ;;  %v3907_v17 = vpop.eup %3906 }
 0x221   : > { %6886 = vst [vmem:[#allocation57_spill] sm:$0xff] %v5945_v4  ;;  %3209 = vmatpush1.bf16.msra.mxu1 %v3181_v27  ;;  %v5954_v43 = vpop.permute.xlu0 %2315  ;;  %2824 = vmatprep.subr.mxu0 %v4019_v52  ;;  %v6890_v27 = vld [vmem:[#allocation11_spill] sm:$0xff]  ;;  %v1388_v4 = vmul.f32 %v3905_v35, %v5790_v0  ;;  %v3909_v30 = vpop.eup %3908 }
 0x222   : > { %2084 = vrot.lane.b32.xlu1 %v2052_v32, %s4007_s19  ;;  %3196 = vmatprep.subr.mxu1 %v4019_v52  ;;  %v3542_v12 = vpack.i.bf16 %v6890_v27, %v6889_v23  ;;  %s4020_s19 = smov 120   ;;  %v1396_v61 = vmul.f32 %v3909_v30, %v5812_v39 }
 0x223   : > { %v3911_v2 = vpop.eup %3910 }
 0x224   : > { %v5956_v9 = vpop.permute.xlu1 %2297  ;;  %2443 = vrot.lane.b32.xlu0 %v5844_v20, %s4006_s18  ;;  %2825 = vmatpush1.msra.mxu0 %v2748_v57 }
 0x225   : > { %3210 = vmatpush1.msra.mxu1 %v2748_v57  ;;  %v5962_v32 = vpop.permute.xlu0 %2156  ;;  %v1237_v57 = vmul.f32 %v3960_v47, %v3907_v17  ;;  %v3961_v17 = vld [vmem:[%s4306_s14 + $0x88] sm:$0x3] }
 0x226   : > { %2284 = vrot.lane.b32.xlu1 %v5859_v24, %s4010_s23  ;;  %6888 = vst [vmem:[#allocation18_spill] sm:$0xff] %v5962_v32  ;;  %v1238_v30 = vmul.f32 %v3961_v17, %v3911_v2  ;;  %v2220_v17 = vrot.slane %v1396_v61, 1 }
 0x227   : > { %v5981_v0 = vmul.f32 %v1237_v57, %v4364_v37 }
 0x228   : > { %v5966_v52 = vpop.permute.xlu1 %2313  ;;  %3543 = vrot.lane.b32.xlu0 %v3542_v12, %s4020_s19  ;;  %v2221_v48 = vsel %vm1417_vm2, %v2219_v55, %v2220_v17  ;;  %v6895_v55 = vld [vmem:[#allocation29_spill] sm:$0xff] }
 0x229   : > { %v5972_v40 = vpop.permute.xlu0 %2172  ;;  %v3129_v39 = vmul.f32 -1.442695, %v5981_v0 }
 0x22a   : > { %2429 = vrot.lane.b32.xlu1 %v1388_v4, %s4006_s18 }
 0x22b   : > { %3912 = vpow2.f32 %v3129_v39 }
 0x22c   : > { %v5974_v32 = vpop.permute.xlu1 %2154  ;;  %2132 = vrot.lane.b32.xlu0 %v5859_v24, %s4008_s20 }
 0x22d   : > { %6891 = vst [vmem:[#allocation25_spill] sm:$0xff] %v5974_v32  ;;  %v5983_v35 = vpop.permute.xlu0 %2350  ;;  %v2208_v32 = vrot.slane %v1388_v4, 1 }
 0x22e   : > { %2445 = vrot.lane.b32.xlu1 %v1396_v61, %s4006_s18 }
 0x230   : > { %v5985_v12 = vpop.permute.xlu1 %2170  ;;  %2307 = vrot.lane.b32.xlu0 %v1388_v4, %s4005_s17 }
 0x231   : > { %v5991_v47 = vpop.permute.xlu0 %2366 }
 0x232   : > { %2124 = vrot.lane.b32.xlu1 %v5891_v51, %s4008_s20  ;;  %v6004_v51 = vmul.f32 %v1238_v30, %v4364_v37 }
 0x234   : > { %v5993_v24 = vpop.permute.xlu1 %2348  ;;  %2323 = vrot.lane.b32.xlu0 %v1396_v61, %s4005_s17  ;;  %v3130_v39 = vmul.f32 -1.442695, %v6004_v51 }
 0x235   : > { %v5999_v57 = vpop.permute.xlu0 %2228  ;;  %v3913_v25 = vpop.eup %3912 }
 0x236   : > { %2305 = vrot.lane.b32.xlu1 %v5864_v42, %s4005_s17  ;;  %6892 = vst [vmem:[#allocation14_spill] sm:$0xff] %v5999_v57  ;;  %v2209_v57 = vsel %vm1417_vm2, %v2207_v28, %v2208_v32  ;;  %3914 = vpow2.f32 %v3130_v39  ;;  %v1337_v58 = vadd.f32 1.0, %v3913_v25 }
 0x238   : > { %v6001_v5 = vpop.permute.xlu1 %2364  ;;  %2480 = vrot.lane.b32.xlu0 %v2208_v32, %s4013_s11 }
 0x239   : > { %v6010_v2 = vpop.permute.xlu0 %2244 }
 0x23a   : > { %2321 = vrot.lane.b32.xlu1 %v5844_v20, %s4005_s17 }
 0x23c   : > { %v6012_v36 = vpop.permute.xlu1 %2226  ;;  %2496 = vrot.lane.b32.xlu0 %v2220_v17, %s4013_s11 }
 0x23d   : > { %6893 = vst [vmem:[#allocation16_spill] sm:$0xff] %v6012_v36  ;;  %v6019_v30 = vpop.permute.xlu0 %2406  ;;  %v6894_v36 = vld [vmem:[#allocation28_spill] sm:$0xff] }
 0x23e   : > { %2478 = vrot.lane.b32.xlu1 %v2209_v57, %s4013_s11  ;;  %v1199_v28 = vmax.f32 %v6894_v36, 1e-24 }
 0x240   : > { %v6021_v11 = vpop.permute.xlu1 %2242  ;;  %2164 = vrot.lane.b32.xlu0 %v1388_v4, %s4004_s16  ;;  %3916 = vrsqrt.f32 %v1199_v28  ;;  %v1200_v4 = vmax.f32 %v6895_v55, 1e-24  ;;  %v3915_v36 = vpop.eup %3914 }
 0x241   : > { %v6027_v16 = vpop.permute.xlu0 %2064  ;;  %3918 = vrcp.f32 %v1337_v58 }
 0x242   : > { %2494 = vrot.lane.b32.xlu1 %v2221_v48, %s4013_s11  ;;  %3920 = vrsqrt.f32 %v1200_v4 }
 0x244   : > { %v6029_v33 = vpop.permute.xlu1 %2398  ;;  %2180 = vrot.lane.b32.xlu0 %v1396_v61, %s4004_s16 }
 0x245   : > { %v6034_v39 = vpop.permute.xlu0 %2080 }
 0x246   : > { %2162 = vrot.lane.b32.xlu1 %v5864_v42, %s4004_s16  ;;  %v1338_v42 = vadd.f32 1.0, %v3915_v36 }
 0x248   : > { %v6037_v1 = vpop.permute.xlu1 %2062  ;;  %2358 = vrot.lane.b32.xlu0 %v2208_v32, %s4011_s8  ;;  %3922 = vrcp.f32 %v1338_v42 }
 0x249   : > { %v6042_v25 = vpop.permute.xlu0 %2282 }
 0x24a   : > { %2178 = vrot.lane.b32.xlu1 %v5844_v20, %s4004_s16  ;;  %v3917_v55 = vpop.eup %3916  ;;  %s3068_s16 = sshll.u32 %s6977_s25, 5 }
 0x24b   : > { %v3919_v20 = vpop.eup %3918  ;;  %v1239_v36 = vmul.f32 %v3962_v6, %v3917_v55  ;;  %v3963_v6 = vld [vmem:[%s4306_s14 + $0x98] sm:$0x3]  ;;  %s3067_s14 = sshll.u32 %s6983_s24, 3 }
 0x24c   : > { %v6044_v61 = vpop.permute.xlu1 %2078  ;;  %2374 = vrot.lane.b32.xlu0 %v2220_v17, %s4011_s8  ;;  %v6061_v56 = vmul.f32 %v3919_v20, %v5981_v0 }
 0x24d   : > { %v6048_v58 = vpop.permute.xlu0 %2425  ;;  %v6071_v8 = vmul.f32 %v1239_v36, %v4364_v37 }
 0x24e   : > { %2356 = vrot.lane.b32.xlu1 %v2209_v57, %s4011_s8  ;;  %v2271_v42 = vrot.slane %v6061_v56, 7 }
 0x250   : > { %v6050_v28 = vpop.permute.xlu1 %2274  ;;  %2236 = vrot.lane.b32.xlu0 %v2208_v32, %s4009_s21 }
 0x251   : > { %6896 = vst [vmem:[#allocation27_spill] sm:$0xff] %v6050_v28  ;;  %v6054_v4 = vpop.permute.xlu0 %2441  ;;  %v3921_v28 = vpop.eup %3920 }
 0x252   : > { %2372 = vrot.lane.b32.xlu1 %v2221_v48, %s4011_s8  ;;  %v1240_v55 = vmul.f32 %v3963_v6, %v3921_v28  ;;  %v3923_v0 = vpop.eup %3922  ;;  %v2539_v28 = vsel %vm1924_vm4, %v2523_v3, %v5782_v26 }
 0x254   : > { %v6056_v22 = vpop.permute.xlu1 %2423  ;;  %2252 = vrot.lane.b32.xlu0 %v2220_v17, %s4009_s21  ;;  %v6897_v17 = vld [vmem:[#allocation19_spill] sm:$0xff]  ;;  %v6094_v6 = vmul.f32 %v1240_v55, %v4364_v37  ;;  %v2522_v37 = vsel %vm472_vm0, %v6889_v23, %v5741_v7 }
 0x255   : > { %v6064_v32 = vpop.permute.xlu0 %2130 }
 0x256   : > { %2234 = vrot.lane.b32.xlu1 %v2209_v57, %s4009_s21  ;;  %v2533_v57 = vsel %vm472_vm0, %v6897_v17, %v5884_v15  ;;  %v3131_v15 = vmul.f32 -1.442695, %v6071_v8  ;;  %v2555_v17 = vsel %vm1933_vm5, %v2539_v28, %v5777_v49 }
 0x257   : > { %v2549_v50 = vsel %vm1924_vm4, %v2533_v57, %v5924_v14  ;;  %v6900_v57 = vld [vmem:[#allocation31_spill] sm:$0xff]  ;;  %v2571_v63 = vsel %vm1942_vm6, %v2555_v17, %v5820_v41  ;;  %v2538_v41 = vsel %vm1924_vm4, %v2522_v37, %v5782_v26  ;;  %v6903_v37 = vld [vmem:[#allocation30_spill] sm:$0xff] }
 0x258   : > { %v6067_v53 = vpop.permute.xlu1 %2439  ;;  %2410 = vrot.lane.b32.xlu0 %v2271_v42, %s4012_s10  ;;  %v2587_v7 = vsel %vm1951_vm7, %v2571_v63, %v5928_v54  ;;  %3924 = vpow2.f32 %v3131_v15 }
 0x259   : > { %v6078_v20 = vpop.permute.xlu0 %2303 }
 0x25a   : > { %2250 = vrot.lane.b32.xlu1 %v2221_v48, %s4009_s21  ;;  %v2565_v48 = vsel %vm1933_vm5, %v2549_v50, %v5972_v40  ;;  %v6106_v50 = vmul.f32 %v3923_v0, %v6004_v51  ;;  %v2547_v40 = vsel %vm1924_vm4, %v2531_v31, %v5757_v45  ;;  %v6901_v51 = vld [vmem:[#allocation20_spill] sm:$0xff] }
 0x25b   : > { %v2581_v3 = vsel %vm1942_vm6, %v2565_v48, %v6010_v2  ;;  %v2532_v55 = vsel %vm472_vm0, %v6901_v51, %v5909_v59  ;;  %v2603_v59 = vsel %vm1960_vm8, %v2587_v7, %v5941_v44  ;;  %v2554_v48 = vsel %vm1933_vm5, %v2538_v41, %v5804_v38 }
 0x25c   : > { %v6085_v36 = vpop.permute.xlu1 %2122  ;;  %2286 = vrot.lane.b32.xlu0 %v2271_v42, %s4010_s23  ;;  %v2597_v49 = vsel %vm1951_vm7, %v2581_v3, %v6042_v25  ;;  %v2530_v42 = vsel %vm472_vm0, %v6890_v27, %v5762_v62  ;;  %v2548_v62 = vsel %vm1924_vm4, %v2532_v55, %v5924_v14  ;;  %v6902_v27 = vld [vmem:[#allocation33_spill] sm:$0xff]  ;;  %v2563_v29 = vsel %vm1933_vm5, %v2547_v40, %v5800_v60 }
 0x25d   : > { %v2320_v2 = vpop.permute.xlu0 %2319  ;;  %v2546_v28 = vsel %vm1924_vm4, %v2530_v42, %v5757_v45  ;;  %v2564_v26 = vsel %vm1933_vm5, %v2548_v62, %v5985_v12  ;;  %v2619_v45 = vsel %vm1969_vm9, %v2603_v59, %v5983_v35  ;;  %v2570_v14 = vsel %vm1942_vm6, %v2554_v48, %v5841_v13 }
 0x25e   : > { %2402 = vrot.lane.b32.xlu1 %v6900_v57, %s4012_s10  ;;  %v6128_v0 = vsel %vm1960_vm8, %v2597_v49, %v2320_v2  ;;  %v2579_v44 = vsel %vm1942_vm6, %v2563_v29, %v5837_v18  ;;  %v2580_v38 = vsel %vm1942_vm6, %v2564_v26, %v6021_v11  ;;  %v2635_v60 = vsel %vm1978_vm10, %v2619_v45, %v6029_v33 }
 0x25f   : > { %v2586_v12 = vsel %vm1951_vm7, %v2570_v14, %v5928_v54  ;;  %v2595_v35 = vsel %vm1951_vm7, %v2579_v44, %v5905_v21  ;;  %v2596_v17 = vsel %vm1951_vm7, %v2580_v38, %v6042_v25  ;;  %v2651_v13 = vsel %vm1987_vm11, %v2635_v60, %v6048_v58 }
 0x260   : > { %v6125_v23 = vpop.permute.xlu1 %2301  ;;  %2433 = vrot.lane.b32.xlu0 %v6902_v27, %s4006_s18  ;;  %v2602_v11 = vsel %vm1960_vm8, %v2586_v12, %v5956_v9  ;;  %v2611_v3 = vsel %vm1960_vm8, %v2595_v35, %v5954_v43  ;;  %v2562_v25 = vsel %vm1933_vm5, %v2546_v28, %v5824_v19  ;;  %v3132_v49 = vmul.f32 -1.442695, %v6094_v6  ;;  %v6905_v28 = vld [vmem:[#allocation6_spill] sm:$0xff] }
 0x261   : > { %v2618_v58 = vsel %vm1969_vm9, %v2602_v11, %v5993_v24  ;;  %v2627_v9 = vsel %vm1969_vm9, %v2611_v3, %v5991_v47  ;;  %v2578_v43 = vsel %vm1942_vm6, %v2562_v25, %v5866_v34  ;;  %v3547_v62 = vpack.i.bf16 %v6901_v51, %v6905_v28 }
 0x262   : > { %2278 = vrot.lane.b32.xlu1 %v6900_v57, %s4010_s23  ;;  %v2477_v31 = vpop.permute.xlu0 %2476  ;;  %v2634_v40 = vsel %vm1978_vm10, %v2618_v58, %v6029_v33  ;;  %v2643_v63 = vsel %vm1978_vm10, %v2627_v9, %v6019_v30  ;;  %v2594_v24 = vsel %vm1951_vm7, %v2578_v43, %v5905_v21  ;;  %3926 = vpow2.f32 %v3132_v49  ;;  %v3925_v12 = vpop.eup %3924 }
 0x263   : > { %v2667_v54 = vsel %vm1996_vm12, %v2651_v13, %v2477_v31  ;;  %v2650_v47 = vsel %vm1987_vm11, %v2634_v40, %v6056_v22  ;;  %v2659_v15 = vsel %vm1987_vm11, %v2643_v63, %v6054_v4  ;;  %v2610_v33 = vsel %vm1960_vm8, %v2594_v24, %v5966_v52  ;;  %v6904_v22 = vld [vmem:[#allocation15_spill] sm:$0xff]  ;;  %v6910_v40 = vld [vmem:[#allocation36_spill] sm:$0xff] }
 0x264   : > { %v2318_v18 = vpop.permute.xlu1 %2317  ;;  %2449 = vrot.lane.b32.xlu0 %v6106_v50, %s4006_s18  ;;  %v2699_v34 = vrot.slane %v2667_v54, 1  ;;  %v2626_v21 = vsel %vm1969_vm9, %v2610_v33, %v6001_v5  ;;  %v2527_v7 = vsel %vm472_vm0, %v6904_v22, %v6027_v16  ;;  %v2345_v31 = vrot.slane %v6061_v56, 1  ;;  %v6913_v22 = vld [vmem:[#allocation42_spill] sm:$0xff] }
 0x265   : > { %v6171_v57 = vsel %vm1960_vm8, %v2596_v17, %v2318_v18  ;;  %v2642_v52 = vsel %vm1978_vm10, %v2626_v21, %v6019_v30  ;;  %v2543_v41 = vsel %vm1924_vm4, %v2527_v7, %v6085_v36  ;;  %v6906_v30 = vld [vmem:[#allocation26_spill] sm:$0xff]  ;;  %v2346_v18 = vrot.slane %v6106_v50, 1 }
 0x266   : > { %2431 = vrot.lane.b32.xlu1 %v6903_v37, %s4006_s18  ;;  %v2493_v19 = vpop.permute.xlu0 %2492  ;;  %v2658_v5 = vsel %vm1987_vm11, %v2642_v52, %v6067_v53  ;;  %v2535_v51 = vsel %vm472_vm0, %v6906_v30, %v6034_v39  ;;  %v6907_v53 = vld [vmem:[#allocation9_spill] sm:$0xff]  ;;  %v1339_v43 = vadd.f32 1.0, %v3925_v12  ;;  %v3340_v7 = vunpack.i.l.bf16 %v6913_v22  ;;  %v6928_v22 = vld [vmem:[#allocation40_spill] sm:$0xff] }
 0x267   : > { %v2675_v55 = vsel %vm1996_vm12, %v2659_v15, %v2493_v19  ;;  %v2526_v44 = vsel %vm472_vm0, %v6907_v53, %v6037_v1  ;;  %v2551_v38 = vsel %vm1924_vm4, %v2535_v51, %v6064_v32  ;;  %v6908_v1 = vld [vmem:[#allocation38_spill] sm:$0xff]  ;;  %v2347_v58 = vsel %vm1417_vm2, %v2345_v31, %v2346_v18  ;;  %v6919_v51 = vld [vmem:[#allocation5_spill] sm:$0xff] }
 0x268   : > { %v2475_v2 = vpop.permute.xlu1 %2474  ;;  %2309 = vrot.lane.b32.xlu0 %v6903_v37, %s4005_s17  ;;  %v2711_v16 = vrot.slane %v2675_v55, 1  ;;  %v2542_v35 = vsel %vm1924_vm4, %v2526_v44, %v6085_v36  ;;  %3928 = vrcp.f32 %v1339_v43  ;;  %v6920_v31 = vld [vmem:[#allocation2_spill] sm:$0xff] }
 0x269   : > { %v2666_v42 = vsel %vm1996_vm12, %v2650_v47, %v2475_v2  ;;  %v6911_v2 = vld [vmem:[#allocation43_spill] sm:$0xff]  ;;  %v1920_v12 = vsel %vm472_vm0, %v6920_v31, %v3340_v7 }
 0x26a   : > { %v2698_v4 = vrot.slane %v2666_v42, 1  ;;  %2447 = vrot.lane.b32.xlu1 %v6061_v56, %s4006_s18  ;;  %v2161_v59 = vpop.permute.xlu0 %2160  ;;  %v6912_v42 = vld [vmem:[#allocation39_spill] sm:$0xff] }
 0x26b   : > { %v2559_v26 = vsel %vm1933_vm5, %v2543_v41, %v2161_v59  ;;  %v3330_v55 = vunpack.i.l.bf16 %v6912_v42  ;;  %v6916_v59 = vld [vmem:[#allocation23_spill] sm:$0xff] }
 0x26c   : > { %v2491_v48 = vpop.permute.xlu1 %2490  ;;  %v2700_v29 = vsel %vm1417_vm2, %v2698_v4, %v2699_v34  ;;  %2325 = vrot.lane.b32.xlu0 %v6061_v56, %s4005_s17  ;;  %v6909_v56 = vld [vmem:[#allocation24_spill] sm:$0xff]  ;;  %v3927_v9 = vpop.eup %3926  ;;  %v6914_v4 = vld [vmem:[#allocation41_spill] sm:$0xff] }
 0x26d   : > { %v2674_v45 = vsel %vm1996_vm12, %v2658_v5, %v2491_v48  ;;  %3134 = vmatprep.mubr.msk.f32.mxu0 %vm2005_vm13, %v2700_v29  ;;  %v2534_v36 = vsel %vm472_vm0, %v6909_v56, %v6044_v61  ;;  %v3350_v52 = vunpack.i.l.bf16 %v6914_v4  ;;  %v6918_v48 = vld [vmem:[#allocation44_spill] sm:$0xff]  ;;  %v6929_v4 = vld [vmem:[#allocation50_spill] sm:$0xff] }
 0x26e   : > { %v2710_v14 = vrot.slane %v2674_v45, 1  ;;  %3548 = vrot.lane.b32.xlu1 %v3547_v62, %s4020_s19  ;;  %v2177_v60 = vpop.permute.xlu0 %2176  ;;  %v2550_v54 = vsel %vm1924_vm4, %v2534_v36, %v6064_v32  ;;  %v1340_v32 = vadd.f32 1.0, %v3927_v9  ;;  %v6915_v62 = vld [vmem:[#allocation22_spill] sm:$0xff]  ;;  %v6926_v9 = vld [vmem:[#allocation49_spill] sm:$0xff] }
 0x26f   : > { %v2567_v13 = vsel %vm1933_vm5, %v2551_v38, %v2177_v60  ;;  %v6917_v5 = vpack.i.bf16 %v6915_v62, %v6916_v59  ;;  %v3275_v60 = vunpack.i.l.bf16 %v5161_v46  ;;  %v6930_v62 = vld [vmem:[#allocation51_spill] sm:$0xff] }
 0x270   : > { %v2159_v17 = vpop.permute.xlu1 %2158  ;;  %v2712_v39 = vsel %vm1417_vm2, %v2710_v14, %v2711_v16  ;;  %2482 = vrot.lane.b32.xlu0 %v6908_v1, %s4013_s11  ;;  %3930 = vrcp.f32 %v1340_v32  ;;  %v3360_v16 = vunpack.i.l.bf16 %v6918_v48  ;;  %v1916_v14 = vsel %vm472_vm0, %v6919_v51, %v3330_v55  ;;  %v6927_v32 = vld [vmem:[#allocation34_spill] sm:$0xff]  ;;  %v6931_v48 = vld [vmem:[#allocation68_spill] sm:$0xff] }
 0x271   : > { %v2558_v11 = vsel %vm1933_vm5, %v2542_v35, %v2159_v17  ;;  %3138 = vmatprep.mubr.msk.f32.mxu1 %vm2005_vm13, %v2712_v39  ;;  %v1925_v35 = vsel %vm1924_vm4, %v1916_v14, %v3350_v52  ;;  %v6921_v17 = vld [vmem:[#allocation45_spill] sm:$0xff]  ;;  %v3410_v52 = vunpack.i.l.bf16 %v6929_v4  ;;  %v3420_v59 = vunpack.i.l.bf16 %v6930_v62  ;;  %v6933_v14 = vld [vmem:[#allocation59_spill] sm:$0xff] }
 0x272   : > { %2311 = vrot.lane.b32.xlu1 %v6902_v27, %s4005_s17  ;;  %v6248_v3 = vpop.permute.xlu0 %2354  ;;  %v3929_v34 = vpop.eup %3928  ;;  %v3370_v39 = vunpack.i.l.bf16 %v6921_v17 }
 0x273   : > { %v1399_v29 = vmul.f32 %v3929_v34, %v6071_v8  ;;  %v6922_v8 = vld [vmem:[#allocation47_spill] sm:$0xff] }
 0x274   : > { %v2175_v25 = vpop.permute.xlu1 %2174  ;;  %2498 = vrot.lane.b32.xlu0 %v2347_v58, %s4013_s11 }
 0x275   : > { %v2566_v37 = vsel %vm1933_vm5, %v2550_v54, %v2175_v25  ;;  %v2397_v38 = vrot.slane %v1399_v29, 7  ;;  %v3285_v54 = vunpack.i.l.bf16 %v5176_v10  ;;  %v6925_v25 = vld [vmem:[#allocation32_spill] sm:$0xff]  ;;  %v2471_v42 = vrot.slane %v1399_v29, 1 }
 0x276   : > { %2327 = vrot.lane.b32.xlu1 %v6106_v50, %s4005_s17  ;;  %v6257_v27 = vpop.permute.xlu0 %2370  ;;  %s419_s17 = sadd.s32 %s3068_s16, %s3067_s14 }
 0x278   : > { %v6259_v61 = vpop.permute.xlu1 %2352  ;;  %2360 = vrot.lane.b32.xlu0 %v6908_v1, %s4011_s8  ;;  %v6924_v1 = vld [vmem:[#allocation48_spill] sm:$0xff] }
 0x279   : > { %v3390_v36 = vunpack.i.l.bf16 %v6924_v1 }
 0x27a   : > { %2484 = vrot.lane.b32.xlu1 %v6910_v40, %s4013_s11  ;;  %v2233_v63 = vpop.permute.xlu0 %2232 }
 0x27b   : > { %v6268_v49 = vsel %vm1942_vm6, %v2559_v26, %v2233_v63  ;;  %v3931_v26 = vpop.eup %3930  ;;  %v1934_v63 = vsel %vm1933_vm5, %v1925_v35, %v3275_v60  ;;  %v6934_v35 = vld [vmem:[#allocation56_spill] sm:$0xff] }
 0x27c   : > { %v6265_v19 = vpop.permute.xlu1 %2368  ;;  %2376 = vrot.lane.b32.xlu0 %v2347_v58, %s4011_s8  ;;  %v6313_v46 = vmul.f32 %v3931_v26, %v6094_v6  ;;  %v3295_v58 = vunpack.i.l.bf16 %v6925_v25  ;;  %v1943_v6 = vsel %vm1942_vm6, %v1934_v63, %v3370_v39  ;;  %v6932_v26 = vld [vmem:[#allocation54_spill] sm:$0xff]  ;;  %v6936_v25 = vld [vmem:[#allocation61_spill] sm:$0xff] }
 0x27d   : > { %v3430_v51 = vunpack.i.l.bf16 %v6932_v26 }
 0x27e   : > { %2500 = vrot.lane.b32.xlu1 %v2346_v18, %s4013_s11  ;;  %v2249_v50 = vpop.permute.xlu0 %2248  ;;  %v2472_v7 = vrot.slane %v6313_v46, 1 }
 0x27f   : > { %v6273_v47 = vsel %vm1942_vm6, %v2567_v13, %v2249_v50  ;;  %v1929_v13 = vsel %vm1924_vm4, %v1920_v12, %v3360_v16 }
 0x280   : > { %v2231_v24 = vpop.permute.xlu1 %2230  ;;  %2404 = vrot.lane.b32.xlu0 %v6911_v2, %s4012_s10  ;;  %v1865_v2 = vrot.slane %v6906_v30, 2  ;;  %v1938_v10 = vsel %vm1933_vm5, %v1929_v13, %v3285_v54 }
 0x281   : > { %v2574_v15 = vsel %vm1942_vm6, %v2558_v11, %v2231_v24  ;;  %v1864_v24 = vrot.slane %v6909_v56, 2 }
 0x282   : > { %2362 = vrot.lane.b32.xlu1 %v6910_v40, %s4011_s8  ;;  %v6280_v33 = vpop.permute.xlu0 %2408  ;;  %v3305_v40 = vunpack.i.l.bf16 %v6927_v32 }
 0x284   : > { %v2247_v21 = vpop.permute.xlu1 %2246  ;;  %3553 = vrot.lane.b32.xlu0 %v6917_v5, %s4017_s15 }
 0x285   : > { %v6286_v41 = vsel %vm1942_vm6, %v2566_v37, %v2247_v21  ;;  %v3400_v37 = vunpack.i.l.bf16 %v6926_v9  ;;  %v1952_v21 = vsel %vm1951_vm7, %v1943_v6, %v3390_v36  ;;  %v6940_v6 = vld [vmem:[#allocation4_spill] sm:$0xff] }
 0x286   : > { %2378 = vrot.lane.b32.xlu1 %v2346_v18, %s4011_s8  ;;  %v6295_v45 = vpop.permute.xlu0 %2066  ;;  %v6923_v18 = vld [vmem:[#allocation46_spill] sm:$0xff]  ;;  %v1961_v17 = vsel %vm1960_vm8, %v1952_v21, %v3295_v58  ;;  %v6937_v58 = vld [vmem:[#allocation35_spill] sm:$0xff] }
 0x287   : > { %v3380_v11 = vunpack.i.l.bf16 %v6923_v18  ;;  %v1970_v13 = vsel %vm1969_vm9, %v1961_v17, %v3410_v52  ;;  %v3315_v9 = vunpack.i.l.bf16 %v6937_v58 }
 0x288   : > { %v6299_v44 = vpop.permute.xlu1 %2400  ;;  %2437 = vrot.lane.b32.xlu0 %v6922_v8, %s4006_s18  ;;  %v3557_v8 = vpack.i.bf16 %v6909_v56, %v6907_v53  ;;  %v1979_v1 = vsel %vm1978_vm10, %v1970_v13, %v3430_v51  ;;  %v3465_v53 = vunpack.i.l.bf16 %v6936_v25 }
 0x289   : > { %v1947_v55 = vsel %vm1942_vm6, %v1938_v10, %v3380_v11  ;;  %v1866_v11 = vsel %vm1466_vm3, %v1864_v24, %v1865_v2  ;;  %v3485_v10 = vunpack.i.l.bf16 %v6940_v6  ;;  %v6941_v24 = vld [vmem:[#allocation21_spill] sm:$0xff]  ;;  %vm2041_vm3 = vcmask 982016  }
 0x28a   : > { %2412 = vrot.lane.b32.xlu1 %v2397_v38, %s4012_s10  ;;  %v6318_v43 = vpop.permute.xlu0 %2082  ;;  %v1956_v30 = vsel %vm1951_vm7, %v1947_v55, %v3400_v37  ;;  %v3440_v38 = vunpack.i.l.bf16 %v6933_v14  ;;  %v6938_v37 = vld [vmem:[#allocation37_spill] sm:$0xff]  ;;  %v3562_v2 = vpack.i.bf16 %v1866_v11, %v6941_v24  ;;  %v6942_v55 = vld [vmem:[#allocation3_spill] sm:$0xff] }
 0x28b   : > { %v1965_v39 = vsel %vm1960_vm8, %v1956_v30, %v3305_v40  ;;  %v3325_v32 = vunpack.i.l.bf16 %v6938_v37  ;;  %v6939_v40 = vld [vmem:[#allocation63_spill] sm:$0xff]  ;;  %v3495_v21 = vunpack.i.l.bf16 %v6942_v55  ;;  %v6946_v14 = vld [vmem:[#allocation69_spill] sm:$0xff]  ;;  %v6953_v55 = vld [vmem:[#allocation12_spill] sm:$0xff] }
 0x28c   : > { %v6322_v50 = vpop.permute.xlu1 %3538  ;;  %2453 = vrot.lane.b32.xlu0 %v6313_v46, %s4006_s18  ;;  %v3475_v63 = vunpack.i.l.bf16 %v6939_v40 }
 0x28d   : > { %v3541_v34 = vunpack.i.h.bf16 %v6322_v50 }
 0x28e   : > { %2435 = vrot.lane.b32.xlu1 %v6928_v22, %s4006_s18  ;;  %v2277_v5 = vpop.permute.xlu0 %2276  ;;  %v6943_v22 = vld [vmem:[#allocation64_spill] sm:$0xff] }
 0x28f   : > { %v6341_v16 = vsel %vm2032_vm1, %v6931_v48, %v3541_v34  ;;  %v6348_v31 = vsel %vm1951_vm7, %v2574_v15, %v2277_v5  ;;  %v6352_v12 = vsel %vm1951_vm7, %v6268_v49, %v2277_v5  ;;  %v1974_v15 = vsel %vm1969_vm9, %v1965_v39, %v3420_v59  ;;  %v6944_v59 = vld [vmem:[#allocation65_spill] sm:$0xff]  ;;  %v6945_v48 = vld [vmem:[#allocation67_spill] sm:$0xff] }
 0x290   : > { %v6345_v60 = vpop.permute.xlu1 %2068  ;;  %2486 = vrot.lane.b32.xlu0 %v6934_v35, %s4013_s11  ;;  %v2473_v49 = vsel %vm1417_vm2, %v2471_v42, %v2472_v7  ;;  %v1983_v36 = vsel %vm1978_vm10, %v1974_v15, %v3440_v38  ;;  %v1988_v34 = vsel %vm1987_vm11, %v1979_v1, %v3315_v9  ;;  %v3505_v30 = vunpack.i.l.bf16 %v6943_v22  ;;  %v6947_v15 = vld [vmem:[#allocation52_spill] sm:$0xff]  ;;  %v6948_v9 = vld [vmem:[#allocation53_spill] sm:$0xff] }
 0x291   : > { %v1992_v42 = vsel %vm1987_vm11, %v1983_v36, %v3325_v32  ;;  %v3515_v5 = vunpack.i.l.bf16 %v6944_v59  ;;  %v3525_v26 = vunpack.i.l.bf16 %v6945_v48  ;;  %v3535_v38 = vunpack.i.l.bf16 %v6946_v14  ;;  %v6949_v32 = vld [vmem:[#allocation55_spill] sm:$0xff]  ;;  %v6955_v48 = vld [vmem:[#allocation18_spill] sm:$0xff] }
 0x292   : > { %2451 = vrot.lane.b32.xlu1 %v1399_v29, %s4006_s18  ;;  %v6363_v18 = vpop.permute.xlu0 %2427  ;;  %v6935_v29 = vld [vmem:[#allocation60_spill] sm:$0xff]  ;;  %v2001_v62 = vsel %vm1996_vm12, %v1992_v42, %v3465_v53  ;;  %v3540_v35 = vunpack.i.l.bf16 %v6322_v50  ;;  %v2536_v37 = vsel %vm472_vm0, %v6948_v9, %v6318_v43  ;;  %v6952_v43 = vld [vmem:[#allocation17_spill] sm:$0xff]  ;;  %s3069_s18 = sshll.u32 %s419_s17, 3 }
 0x293   : > { %v3455_v54 = vunpack.i.l.bf16 %v6935_v29  ;;  %v2010_v13 = vsel %vm2005_vm13, %v2001_v62, %v3485_v10  ;;  %v6950_v10 = vld [vmem:[#allocation8_spill] sm:$0xff]  ;;  %s6624_s23 = scalar_lea.vmem %s6676_s3, %s3069_s18 }
 0x294   : > { %v2085_v56 = vpop.permute.xlu1 %2084  ;;  %2502 = vrot.lane.b32.xlu0 %v2473_v49, %s4013_s11  ;;  %v2019_v11 = vsel %vm2014_vm14, %v2010_v13, %v3505_v30  ;;  %v3567_v24 = vpack.i.bf16 %v6948_v9, %v6950_v10 }
 0x295   : > { %v1997_v52 = vsel %vm1996_vm12, %v1988_v34, %v3455_v54  ;;  %v2028_v29 = vsel %vm2023_vm15, %v2019_v11, %v3525_v26  ;;  %v2537_v40 = vsel %vm472_vm0, %v6949_v32, %v2085_v56  ;;  %v6951_v34 = vld [vmem:[#allocation62_spill] sm:$0xff]  ;;  %v2528_v56 = vsel %vm472_vm0, %v6950_v10, %v6295_v45 }
 0x296   : > { %3558 = vrot.lane.b32.xlu1 %v3557_v8, %s4020_s19  ;;  %v6384_v4 = vpop.permute.xlu0 %2443  ;;  %v2006_v8 = vsel %vm2005_vm13, %v1997_v52, %v3475_v63  ;;  %v2037_v25 = vsel %vm2032_vm1, %v2028_v29, %v3540_v35  ;;  %v2525_v42 = vsel %vm472_vm0, %v6952_v43, %v6951_v34  ;;  %v6954_v52 = vld [vmem:[#allocation57_spill] sm:$0xff]  ;;  %v6956_v45 = vld [vmem:[#allocation14_spill] sm:$0xff] }
 0x297   : > { %v2015_v49 = vsel %vm2014_vm14, %v2006_v8, %v3495_v21  ;;  %v2529_v21 = vsel %vm472_vm0, %v6953_v55, %v6345_v60  ;;  %v2541_v62 = vsel %vm1924_vm4, %v2525_v42, %v6954_v52  ;;  %v6957_v60 = vld [vmem:[#allocation58_spill] sm:$0xff] }
 0x298   : > { %v2285_v51 = vpop.permute.xlu1 %2284  ;;  %3563 = vrot.lane.b32.xlu0 %v3562_v2, %s4017_s15  ;;  %v2557_v26 = vsel %vm1933_vm5, %v2541_v62, %v6955_v48  ;;  %v2524_v35 = vsel %vm472_vm0, %v6905_v28, %v6957_v60 }
 0x299   : > { %v2598_v17 = vsel %vm1951_vm7, %v6286_v41, %v2285_v51  ;;  %v2599_v39 = vsel %vm1951_vm7, %v6273_v47, %v2285_v51  ;;  %v2024_v47 = vsel %vm2023_vm15, %v2015_v49, %v3515_v5  ;;  %v2573_v51 = vsel %vm1942_vm6, %v2557_v26, %v6956_v45 }
 0x29a   : > { %2488 = vrot.lane.b32.xlu1 %v6947_v15, %s4013_s11  ;;  %v3544_v50 = vpop.permute.xlu0 %3543  ;;  %v2033_v54 = vsel %vm2032_vm1, %v2024_v47, %v3535_v38  ;;  %v2540_v49 = vsel %vm1924_vm4, %v2524_v35, %v6954_v52  ;;  %v6960_v47 = vld [vmem:[#allocation16_spill] sm:$0xff] }
 0x29b   : > { %v3546_v41 = vunpack.i.h.bf16 %v3544_v50  ;;  %v3545_v36 = vunpack.i.l.bf16 %v3544_v50 }
 0x29c   : > { %v2430_v1 = vpop.permute.xlu1 %2429 }
 0x29d   : > { %v2042_v53 = vsel %vm2041_vm3, %v2033_v54, %v3545_v36  ;;  %v2046_v58 = vsel %vm2041_vm3, %v2037_v25, %v3546_v41  ;;  %v6959_v41 = vld [vmem:[#allocation25_spill] sm:$0xff] }
 0x29e   : > { %2504 = vrot.lane.b32.xlu1 %v2472_v7, %s4013_s11  ;;  %v2133_v63 = vpop.permute.xlu0 %2132  ;;  %2837 = vmatmul.mubr.f32.vlgmr.msra.gmra.mrb[0].mxu0 %v2042_v53  ;;  %v2556_v28 = vsel %vm1933_vm5, %v2540_v49, %v6959_v41  ;;  %v3536_v41 = vunpack.i.h.bf16 %v6946_v14  ;;  %s6634_s11 = scalar_lea.vmem %s6680_s7, %s3069_s18 }
 0x29f   : > { %2857 = vmatmul.mubr.f32.vlgmr.msra.gmra.mrb[0].mxu1 %v2046_v58  ;;  %v6420_v46 = vsel %vm1924_vm4, %v2536_v37, %v2133_v63  ;;  %v2553_v7 = vsel %vm1924_vm4, %v2537_v40, %v2133_v63  ;;  %v2629_v37 = vsel %vm1969_vm9, %v6128_v0, %v6257_v27  ;;  %v2628_v0 = vsel %vm1969_vm9, %v6171_v57, %v6265_v19 }
 0x2a0   : > { %v2446_v6 = vpop.permute.xlu1 %2445 }
 0x2a2   : > { %3568 = vrot.lane.b32.xlu1 %v3567_v24, %s4020_s19  ;;  %v2308_v2 = vpop.permute.xlu0 %2307 }
 0x2a3   : > { %v6435_v30 = vsel %vm1960_vm8, %v6352_v12, %v2308_v2  ;;  %v6958_v12 = vld [vmem:[#allocation27_spill] sm:$0xff] }
 0x2a4   : > { %v2125_v22 = vpop.permute.xlu1 %2124  ;;  %v2589_v8 = vsel %vm1951_vm7, %v2573_v51, %v6958_v12 }
 0x2a5   : > { %v2544_v59 = vsel %vm1924_vm4, %v2528_v56, %v2125_v22  ;;  %v2545_v5 = vsel %vm1924_vm4, %v2529_v21, %v2125_v22  ;;  %v2605_v11 = vsel %vm1960_vm8, %v2589_v8, %v6078_v20 }
 0x2a6   : > { %v2324_v38 = vpop.permute.xlu0 %2323  ;;  %v2621_v36 = vsel %vm1969_vm9, %v2605_v11, %v6248_v3 }
 0x2a7   : > { %v6451_v15 = vsel %vm1960_vm8, %v2599_v39, %v2324_v38  ;;  %v2572_v39 = vsel %vm1942_vm6, %v2556_v28, %v6960_v47  ;;  %v2637_v29 = vsel %vm1978_vm10, %v2621_v36, %v6299_v44 }
 0x2a8   : > { %v2306_v13 = vpop.permute.xlu1 %2305  ;;  %v2588_v20 = vsel %vm1951_vm7, %v2572_v39, %v6958_v12  ;;  %v2653_v25 = vsel %vm1987_vm11, %v2637_v29, %v2430_v1  ;;  %v2645_v1 = vsel %vm1978_vm10, %v2629_v37, %v6280_v33  ;;  %v6961_v29 = vld [vmem:[#allocation66_spill] sm:$0xff] }
 0x2a9   : > { %v6459_v50 = vsel %vm1960_vm8, %v6348_v31, %v2306_v13  ;;  %v2604_v53 = vsel %vm1960_vm8, %v2588_v20, %v6125_v23 }
 0x2aa   : > { %v2481_v54 = vpop.permute.xlu0 %2480  ;;  %v2620_v9 = vsel %vm1969_vm9, %v2604_v53, %v6259_v61 }
 0x2ab   : > { %v2669_v3 = vsel %vm1996_vm12, %v2653_v25, %v2481_v54  ;;  %v2636_v32 = vsel %vm1978_vm10, %v2620_v9, %v6299_v44  ;;  %v2644_v44 = vsel %vm1978_vm10, %v2628_v0, %v6280_v33  ;;  %v2034_v54 = vsel %vm2032_vm1, %v6961_v29, %v3536_v41 }
 0x2ac   : > { %v2322_v31 = vpop.permute.xlu1 %2321  ;;  %v2652_v23 = vsel %vm1987_vm11, %v2636_v32, %v6363_v18  ;;  %v2702_v10 = vrot.slane %v2669_v3, 1  ;;  %v2660_v18 = vsel %vm1987_vm11, %v2644_v44, %v6384_v4 }
 0x2ad   : > { %v6475_v58 = vsel %vm1960_vm8, %v2598_v17, %v2322_v31  ;;  %v2661_v17 = vsel %vm1987_vm11, %v2645_v1, %v2446_v6 }
 0x2ae   : > { %v2497_v40 = vpop.permute.xlu0 %2496 }
 0x2af   : > { %v2677_v24 = vsel %vm1996_vm12, %v2661_v17, %v2497_v40 }
 0x2b0   : > { %v2479_v63 = vpop.permute.xlu1 %2478  ;;  %v2714_v6 = vrot.slane %v2677_v24, 1 }
 0x2b1   : > { %v2668_v61 = vsel %vm1996_vm12, %v2652_v23, %v2479_v63 }
 0x2b2   : > { %v2701_v27 = vrot.slane %v2668_v61, 1  ;;  %v2165_v2 = vpop.permute.xlu0 %2164 }
 0x2b3   : > { %v6501_v42 = vsel %vm1933_vm5, %v2545_v5, %v2165_v2 }
 0x2b4   : > { %v2495_v34 = vpop.permute.xlu1 %2494  ;;  %v2703_v43 = vsel %vm1417_vm2, %v2701_v27, %v2702_v10 }
 0x2b5   : > { %v2676_v56 = vsel %vm1996_vm12, %v2660_v18, %v2495_v34  ;;  %3135 = vmatprep.mubr.msk.f32.mxu0 %vm2005_vm13, %v2703_v43 }
 0x2b6   : > { %v2713_v57 = vrot.slane %v2676_v56, 1  ;;  %v2181_v19 = vpop.permute.xlu0 %2180 }
 0x2b7   : > { %v6507_v21 = vsel %vm1933_vm5, %v2553_v7, %v2181_v19 }
 0x2b8   : > { %v2163_v55 = vpop.permute.xlu1 %2162  ;;  %v2715_v33 = vsel %vm1417_vm2, %v2713_v57, %v2714_v6 }
 0x2b9   : > { %v6510_v4 = vsel %vm1933_vm5, %v2544_v59, %v2163_v55  ;;  %3139 = vmatprep.mubr.msk.f32.mxu1 %vm2005_vm13, %v2715_v33 }
 0x2ba   : > { %v2359_v22 = vpop.permute.xlu0 %2358 }
 0x2bb   : > { %v2623_v32 = vsel %vm1969_vm9, %v6435_v30, %v2359_v22 }
 0x2bc   : > { %v2179_v52 = vpop.permute.xlu1 %2178 }
 0x2bd   : > { %v6515_v62 = vsel %vm1933_vm5, %v6420_v46, %v2179_v52 }
 0x2be   : > { %v2375_v5 = vpop.permute.xlu0 %2374 }
 0x2bf   : > { %v2631_v30 = vsel %vm1969_vm9, %v6451_v15, %v2375_v5 }
 0x2c0   : > { %v2357_v48 = vpop.permute.xlu1 %2356 }
 0x2c1   : > { %v2622_v14 = vsel %vm1969_vm9, %v6459_v50, %v2357_v48 }
 0x2c2   : > { %v6517_v26 = vpop.permute.xlu0 %2236 }
 0x2c4   : > { %v2373_v45 = vpop.permute.xlu1 %2372 }
 0x2c5   : > { %v2630_v17 = vsel %vm1969_vm9, %v6475_v58, %v2373_v45 }
 0x2c6   : > { %v6519_v51 = vpop.permute.xlu0 %2252 }
 0x2c8   : > { %v6521_v7 = vpop.permute.xlu1 %2234 }
 0x2ca   : > { %v2411_v38 = vpop.permute.xlu0 %2410 }
 0x2cb   : > { %v2646_v10 = vsel %vm1978_vm10, %v2630_v17, %v2411_v38  ;;  %v2647_v44 = vsel %vm1978_vm10, %v2631_v30, %v2411_v38 }
 0x2cc   : > { %v6523_v59 = vpop.permute.xlu1 %2250 }
 0x2ce   : > { %v6525_v60 = vpop.permute.xlu0 %2286 }
 0x2d0   : > { %v2403_v35 = vpop.permute.xlu1 %2402 }
 0x2d1   : > { %v2638_v37 = vsel %vm1978_vm10, %v2622_v14, %v2403_v35  ;;  %v2639_v40 = vsel %vm1978_vm10, %v2623_v32, %v2403_v35 }
 0x2d2   : > { %v2434_v12 = vpop.permute.xlu0 %2433 }
 0x2d3   : > { %v2655_v63 = vsel %vm1987_vm11, %v2639_v40, %v2434_v12  ;;  %v2576_v12 = vsel %vm1942_vm6, %v6510_v4, %v6521_v7  ;;  %v2585_v4 = vsel %vm1942_vm6, %v6507_v21, %v6519_v51  ;;  %v6962_v21 = vld [vmem:[#allocation70_spill] sm:$0xff] }
 0x2d4   : > { %v6527_v8 = vpop.permute.xlu1 %2278  ;;  %v2601_v32 = vsel %vm1951_vm7, %v2585_v4, %v6525_v60  ;;  %v2878_v4 = vld [vmem:[%s6624_s23 + $0x8] sm:$0xff] }
 0x2d6   : > { %v2450_v46 = vpop.permute.xlu0 %2449 }
 0x2d7   : > { %v2663_v58 = vsel %vm1987_vm11, %v2647_v44, %v2450_v46  ;;  %v2584_v46 = vsel %vm1942_vm6, %v6515_v62, %v6523_v59 }
 0x2d8   : > { %v2432_v13 = vpop.permute.xlu1 %2431 }
 0x2d9   : > { %v2654_v1 = vsel %vm1987_vm11, %v2638_v37, %v2432_v13  ;;  %v2592_v13 = vsel %vm1951_vm7, %v2576_v12, %v6527_v8  ;;  %v2881_v12 = vld [vmem:[%s6624_s23 + $0x20] sm:$0xff] }
 0x2da   : > { %v2310_v49 = vpop.permute.xlu0 %2309 }
 0x2dc   : > { %v2448_v11 = vpop.permute.xlu1 %2447 }
 0x2dd   : > { %v2662_v24 = vsel %vm1987_vm11, %v2646_v10, %v2448_v11 }
 0x2de   : > { %v2326_v28 = vpop.permute.xlu0 %2325 }
 0x2e0   : > { %v3549_v36 = vpop.permute.xlu1 %3548 }
 0x2e1   : > { %v3551_v47 = vunpack.i.h.bf16 %v3549_v36  ;;  %v3550_v39 = vunpack.i.l.bf16 %v3549_v36  ;;  %v2577_v36 = vsel %vm1942_vm6, %v6501_v42, %v6517_v26 }
 0x2e2   : > { %v2483_v31 = vpop.permute.xlu0 %2482  ;;  %v2593_v62 = vsel %vm1951_vm7, %v2577_v36, %v6527_v8  ;;  %v6963_v8 = vld [vmem:[#allocation72_spill] sm:$0xff] }
 0x2e3   : > { %v2043_v20 = vsel %vm2041_vm3, %v2034_v54, %v3550_v39  ;;  %v2047_v25 = vsel %vm2041_vm3, %v6341_v16, %v3551_v47  ;;  %v2670_v16 = vsel %vm1996_vm12, %v2654_v1, %v2483_v31  ;;  %v2600_v47 = vsel %vm1951_vm7, %v2584_v46, %v6525_v60 }
 0x2e4   : > { %v2312_v53 = vpop.permute.xlu1 %2311  ;;  %2842 = vmatmul.mubr.f32.gmra.mrb[2].mxu0 %v2043_v20  ;;  %2862 = vmatmul.mubr.f32.gmra.mrb[2].mxu1 %v2047_v25  ;;  %v2704_v0 = vrot.slane %v2670_v16, 1  ;;  %v2608_v39 = vsel %vm1960_vm8, %v2592_v13, %v2310_v49  ;;  %v2616_v7 = vsel %vm1960_vm8, %v2600_v47, %v2326_v28 }
 0x2e5   : > { %v2609_v54 = vsel %vm1960_vm8, %v2593_v62, %v2312_v53 }
 0x2e6   : > { %v2499_v3 = vpop.permute.xlu0 %2498 }
 0x2e7   : > { %v2678_v2 = vsel %vm1996_vm12, %v2662_v24, %v2499_v3 }
 0x2e8   : > { %v6537_v9 = vpop.permute.xlu1 %2327  ;;  %v2716_v56 = vrot.slane %v2678_v2, 1 }
 0x2ea   : > { %v2361_v23 = vpop.permute.xlu0 %2360 }
 0x2eb   : > { %v2624_v59 = vsel %vm1969_vm9, %v2608_v39, %v2361_v23  ;;  %v2617_v23 = vsel %vm1960_vm8, %v2601_v32, %v6537_v9  ;;  %v2880_v32 = vld [vmem:[%s6624_s23 + $0x18] sm:$0xff] }
 0x2ec   : > { %v2485_v50 = vpop.permute.xlu1 %2484 }
 0x2ed   : > { %v2671_v61 = vsel %vm1996_vm12, %v2655_v63, %v2485_v50 }
 0x2ee   : > { %v2705_v27 = vrot.slane %v2671_v61, 1  ;;  %v2377_v18 = vpop.permute.xlu0 %2376 }
 0x2ef   : > { %v2632_v1 = vsel %vm1969_vm9, %v2616_v7, %v2377_v18  ;;  %v2882_v7 = vld [vmem:[%s6624_s23 + $0x28] sm:$0xff] }
 0x2f0   : > { %v2501_v34 = vpop.permute.xlu1 %2500  ;;  %v2706_v6 = vsel %vm1417_vm2, %v2704_v0, %v2705_v27 }
 0x2f1   : > { %v2679_v43 = vsel %vm1996_vm12, %v2663_v58, %v2501_v34  ;;  %3136 = vmatprep.mubr.msk.f32.mxu0 %vm2005_vm13, %v2706_v6 }
 0x2f2   : > { %v2717_v15 = vrot.slane %v2679_v43, 1  ;;  %v2405_v57 = vpop.permute.xlu0 %2404 }
 0x2f3   : > { %v2640_v42 = vsel %vm1978_vm10, %v2624_v59, %v2405_v57 }
 0x2f4   : > { %v2363_v19 = vpop.permute.xlu1 %2362  ;;  %v2718_v55 = vsel %vm1417_vm2, %v2716_v56, %v2717_v15 }
 0x2f5   : > { %3140 = vmatprep.mubr.msk.f32.mxu1 %vm2005_vm13, %v2718_v55  ;;  %v2625_v49 = vsel %vm1969_vm9, %v2609_v54, %v2363_v19  ;;  %v6964_v19 = vld [vmem:[#allocation71_spill] sm:$0xff] }
 0x2f6   : > { %v3554_v33 = vpop.permute.xlu0 %3553  ;;  %v2641_v3 = vsel %vm1978_vm10, %v2625_v49, %v2405_v57  ;;  %v2879_v49 = vld [vmem:[%s6624_s23 + $0x10] sm:$0xff] }
 0x2f7   : > { %v3556_v11 = vunpack.i.h.bf16 %v3554_v33  ;;  %v3555_v41 = vunpack.i.l.bf16 %v3554_v33  ;;  %v6965_v33 = vld [vmem:[#allocation73_spill] sm:$0xff] }
 0x2f8   : > { %v2379_v22 = vpop.permute.xlu1 %2378 }
 0x2f9   : > { %v2035_v51 = vsel %vm2032_vm1, %v6962_v21, %v3555_v41  ;;  %v2039_v28 = vsel %vm2032_vm1, %v6963_v8, %v3556_v11  ;;  %v2633_v50 = vsel %vm1969_vm9, %v2617_v23, %v2379_v22  ;;  %v2883_v21 = vld [vmem:[%s6624_s23 + $0x30] sm:$0xff] }
 0x2fa   : > { %v2438_v52 = vpop.permute.xlu0 %2437 }
 0x2fb   : > { %v2657_v40 = vsel %vm1987_vm11, %v2641_v3, %v2438_v52 }
 0x2fc   : > { %v2413_v5 = vpop.permute.xlu1 %2412 }
 0x2fd   : > { %v2648_v17 = vsel %vm1978_vm10, %v2632_v1, %v2413_v5  ;;  %v2649_v30 = vsel %vm1978_vm10, %v2633_v50, %v2413_v5 }
 0x2fe   : > { %v2454_v48 = vpop.permute.xlu0 %2453 }
 0x2ff   : > { %v2665_v27 = vsel %vm1987_vm11, %v2649_v30, %v2454_v48  ;;  %v3133_v48 = vld [vmem:[%s6679_s6] ss:$0 sm:$0xff] }
 0x300   : > { %v2436_v45 = vpop.permute.xlu1 %2435 }
 0x301   : > { %v2656_v31 = vsel %vm1987_vm11, %v2640_v42, %v2436_v45 }
 0x302   : > { %v2487_v38 = vpop.permute.xlu0 %2486 }
 0x303   : > { %v2672_v14 = vsel %vm1996_vm12, %v2656_v31, %v2487_v38  ;;  %v2877_v38 = vld [vmem:[%s6624_s23] sm:$0xff] }
 0x304   : > { %v2452_v35 = vpop.permute.xlu1 %2451  ;;  %v2707_v61 = vrot.slane %v2672_v14, 1 }
 0x305   : > { %v2664_v10 = vsel %vm1987_vm11, %v2648_v17, %v2452_v35 }
 0x306   : > { %v2503_v25 = vpop.permute.xlu0 %2502 }
 0x307   : > { %v2680_v24 = vsel %vm1996_vm12, %v2664_v10, %v2503_v25 }
 0x308   : > { %v3559_v29 = vpop.permute.xlu1 %3558  ;;  %v2719_v18 = vrot.slane %v2680_v24, 1 }
 0x309   : > { %v3561_v26 = vunpack.i.h.bf16 %v3559_v29  ;;  %v3560_v20 = vunpack.i.l.bf16 %v3559_v29 }
 0x30a   : > { %v3564_v0 = vpop.permute.xlu0 %3563 }
 0x30b   : > { %v2044_v53 = vsel %vm2041_vm3, %v2035_v51, %v3560_v20  ;;  %v2048_v37 = vsel %vm2041_vm3, %v2039_v28, %v3561_v26  ;;  %v3566_v34 = vunpack.i.h.bf16 %v3564_v0  ;;  %v3565_v6 = vunpack.i.l.bf16 %v3564_v0 }
 0x30c   : > { %v2489_v16 = vpop.permute.xlu1 %2488  ;;  %2847 = vmatmul.mubr.f32.gmra.mrb[4].mxu0 %v2044_v53  ;;  %2867 = vmatmul.mubr.f32.gmra.mrb[4].mxu1 %v2048_v37 }
 0x30d   : > { %v2673_v63 = vsel %vm1996_vm12, %v2657_v40, %v2489_v16  ;;  %v2036_v55 = vsel %vm2032_vm1, %v6964_v19, %v3565_v6  ;;  %v2040_v22 = vsel %vm2032_vm1, %v6965_v33, %v3566_v34  ;;  %v2884_v40 = vld [vmem:[%s6624_s23 + $0x38] sm:$0xff] }
 0x30e   : > { %v2708_v60 = vrot.slane %v2673_v63, 1 }
 0x310   : > { %v2505_v44 = vpop.permute.xlu1 %2504  ;;  %v2709_v9 = vsel %vm1417_vm2, %v2707_v61, %v2708_v60 }
 0x311   : > { %v2681_v2 = vsel %vm1996_vm12, %v2665_v27, %v2505_v44  ;;  %3137 = vmatprep.mubr.msk.f32.mxu0 %vm2005_vm13, %v2709_v9 }
 0x312   : > { %v2720_v58 = vrot.slane %v2681_v2, 1 }
 0x314   : > { %v3569_v43 = vpop.permute.xlu1 %3568  ;;  %v2721_v56 = vsel %vm1417_vm2, %v2719_v18, %v2720_v58 }
 0x315   : > { %v3571_v15 = vunpack.i.h.bf16 %v3569_v43  ;;  %v3570_v57 = vunpack.i.l.bf16 %v3569_v43  ;;  %3141 = vmatprep.mubr.msk.f32.mxu1 %vm2005_vm13, %v2721_v56 }
 0x317   : > { %v2045_v52 = vsel %vm2041_vm3, %v2036_v55, %v3570_v57  ;;  %v2049_v5 = vsel %vm2041_vm3, %v2040_v22, %v3571_v15 }
 0x318   : > { %2852 = vmatmul.mubr.f32.gmra.mrb[6].mxu0 %v2045_v52  ;;  %2872 = vmatmul.mubr.f32.gmra.mrb[6].mxu1 %v2049_v5 }
 0x371   : > { %v2838_v45 = vpop.f32.mrb[0].mxu0 }
 0x372   : > { %v2858_v35 = vpop.f32.mrb[0].mxu1  ;;  %v2839_v46 = vadd.f32 %v3133_v48, %v2838_v45  ;;  %v2840_v11 = vpop.f32.mrb[1].mxu0 }
 0x373   : > { %v2859_v13 = vadd.f32 %v3133_v48, %v2858_v35  ;;  %v2860_v41 = vpop.f32.mrb[1].mxu1 }
 0x374   : > { %v2885_v36 = vadd.f32 %v2877_v38, %v2839_v46 }
 0x375   : > { %v2889_v47 = vadd.f32 %v2881_v12, %v2859_v13 }
 0x376   : > { %2893 = vst.msk [vmem:[%s6634_s11] sm:$0xff] %vm472_vm0, %v2885_v36 }
 0x377   : > { %2897 = vst.msk [vmem:[%s6634_s11 + $0x20] sm:$0xff] %vm472_vm0, %v2889_v47 }
 0x3b7   : > { %v2843_v39 = vpop.f32.mrb[2].mxu0  ;;  %v2863_v62 = vpop.f32.mrb[2].mxu1 }
 0x3b8   : > { %v2844_v59 = vadd.f32 %v3133_v48, %v2843_v39  ;;  %v2864_v29 = vadd.f32 %v3133_v48, %v2863_v62  ;;  %v2845_v54 = vpop.f32.mrb[3].mxu0  ;;  %v2865_v42 = vpop.f32.mrb[3].mxu1 }
 0x3ba   : > { %v2886_v26 = vadd.f32 %v2878_v4, %v2844_v59  ;;  %v2890_v20 = vadd.f32 %v2882_v7, %v2864_v29 }
 0x3bc   : > { %2894 = vst.msk [vmem:[%s6634_s11 + $0x8] sm:$0xff] %vm472_vm0, %v2886_v26  ;;  %2898 = vst.msk [vmem:[%s6634_s11 + $0x28] sm:$0xff] %vm472_vm0, %v2890_v20 }
 0x3df   : > { %v2848_v25 = vpop.f32.mrb[4].mxu0  ;;  %v2868_v31 = vpop.f32.mrb[4].mxu1 }
 0x3e0   : > { %v2849_v51 = vadd.f32 %v3133_v48, %v2848_v25  ;;  %v2869_v8 = vadd.f32 %v3133_v48, %v2868_v31  ;;  %v2850_v28 = vpop.f32.mrb[5].mxu0  ;;  %v2870_v3 = vpop.f32.mrb[5].mxu1 }
 0x3e2   : > { %v2887_v14 = vadd.f32 %v2879_v49, %v2849_v51  ;;  %v2891_v53 = vadd.f32 %v2883_v21, %v2869_v8 }
 0x3e4   : > { %2895 = vst.msk [vmem:[%s6634_s11 + $0x10] sm:$0xff] %vm472_vm0, %v2887_v14  ;;  %2899 = vst.msk [vmem:[%s6634_s11 + $0x30] sm:$0xff] %vm472_vm0, %v2891_v53 }
 0x3eb   : > { %v2853_v37 = vpop.f32.mrb[6].mxu0  ;;  %v2873_v1 = vpop.f32.mrb[6].mxu1 }
 0x3ec   : > { %v2854_v16 = vadd.f32 %v3133_v48, %v2853_v37  ;;  %v2874_v23 = vadd.f32 %v3133_v48, %v2873_v1  ;;  %v2855_v17 = vpop.f32.mrb[7].mxu0  ;;  %v2875_v63 = vpop.f32.mrb[7].mxu1 }
 0x3ee   : > { %v2888_v50 = vadd.f32 %v2880_v32, %v2854_v16  ;;  %v2892_v10 = vadd.f32 %v2884_v40, %v2874_v23 }
 0x3f0   : > { %2896 = vst.msk [vmem:[%s6634_s11 + $0x18] sm:$0xff] %vm472_vm0, %v2888_v50  ;;  %2900 = vst.msk [vmem:[%s6634_s11 + $0x38] sm:$0xff] %vm472_vm0, %v2892_v10 }
 0x3f1 PF: > { %s17_s28 = sadd.s32 1, %s4002_s28   ;;  %s6966_s24 = smov %s3994_s26 }
 0x3f2   : > { %p14_p10 = scmp.ge.s32.totalorder %s17_s28, 10   ;;  %s6967_s25 = smov %s3998_s27 }
 0x3f3   : > { %s6968_s26 = smov %s6971_s29  ;;  %s6969_s27 = smov %s6975_s30 }
 0x3f4   :  { %16 = sbr.rel (!%p14_p10) target bundleno = 3 (0x3), region = 87 }

</bundles_post_ra>
